<compile_context>
chip_gen: v5e
topology: v5e:2x2
jax: 0.10.0
libtpu: 0.0.40
codegen_flags: <defaults>
</compile_context>

<pallas_src>
import functools

import jax
import jax.numpy as jnp
from jax.experimental import pallas as pl
from jax.experimental.pallas import tpu as pltpu

# ---------------------------------------------------------------------------
# sizes
# ---------------------------------------------------------------------------
V = 64            # vocab size
H = 32            # hidden / embedding size (contraction dim, NOT padded)
S = 8             # input sequence length
MAX_LENGTH = 8    # greedy decode steps
SOS_TOKEN = 1

GATE = 128        # lane stride per GRU gate block (keeps gate slices vreg-aligned)
LANE = 128        # lane-dense output row width


# ---------------------------------------------------------------------------
# fused kernel: encoder + greedy decode, everything resident in VMEM
# ---------------------------------------------------------------------------
def fused_greedy_kernel(tokens_ref, enc_emb,
                        fwi, fwh, fbi, fbh,            # encoder fwd GRU
                        bwi, bwh, bbi, bbh,            # encoder bwd GRU
                        dewi, dwh, dbi, dbh,           # decoder GRU (emb folded into dewi)
                        wcat_r, wcat_c, bcat,          # concat linear (split)
                        wout, bout,                    # output projection
                        tokens_out, scores_out,        # (1, LANE) outputs
                        *, seq_len, max_length, sos_token):
    f32 = jnp.float32

    def gru_step(gi_row, h, wh, bh):
        # gi_row / gh: (1, 3*GATE); gate g occupies lanes [g*GATE, g*GATE + H)
        gh = jnp.dot(h, wh, preferred_element_type=f32) + bh
        r = jax.nn.sigmoid(gi_row[:, 0:H] + gh[:, 0:H])
        z = jax.nn.sigmoid(gi_row[:, GATE:GATE + H] + gh[:, GATE:GATE + H])
        n = jnp.tanh(gi_row[:, 2 * GATE:2 * GATE + H]
                     + r * gh[:, 2 * GATE:2 * GATE + H])
        return (1.0 - z) * n + z * h

    # ------------------------------ encoder ------------------------------
    tok_col = tokens_ref[...]                                              # (S, 1) int32
    vocab_iota_s = jax.lax.broadcasted_iota(jnp.int32, (seq_len, V), 1)
    onehot_seq = (tok_col == vocab_iota_s).astype(f32)                     # (S, V)
    xemb = jnp.dot(onehot_seq, enc_emb[...], preferred_element_type=f32)   # (S, H)

    # batched input projections -> off the serial recurrence
    gi_f = jnp.dot(xemb, fwi[...], preferred_element_type=f32) + fbi[...]  # (S, 3*GATE)
    gi_b = jnp.dot(xemb, bwi[...], preferred_element_type=f32) + bbi[...]  # (S, 3*GATE)

    fwh_v, fbh_v = fwh[...], fbh[...]
    bwh_v, bbh_v = bwh[...], bbh[...]

    row_iota = jax.lax.broadcasted_iota(jnp.int32, (seq_len, H), 0)
    h_f = jnp.zeros((1, H), f32)
    h_b = jnp.zeros((1, H), f32)
    fwd_stack = jnp.zeros((seq_len, H), f32)
    bwd_stack = jnp.zeros((seq_len, H), f32)
    for t in range(seq_len):                    # fully unrolled, static indices
        h_f = gru_step(gi_f[t:t + 1, :], h_f, fwh_v, fbh_v)
        fwd_stack = jnp.where(row_iota == t, h_f, fwd_stack)
        tb = seq_len - 1 - t
        h_b = gru_step(gi_b[tb:tb + 1, :], h_b, bwh_v, bbh_v)
        bwd_stack = jnp.where(row_iota == tb, h_b, bwd_stack)

    enc = fwd_stack + bwd_stack                 # (S, H): summed bi-directional outputs
    h = h_f                                     # decoder_hidden = encoder_hidden[:n_layers]

    # ------------------------------ greedy decode ------------------------------
    dewi_v, dbi_v = dewi[...], dbi[...]
    dwh_v, dbh_v = dwh[...], dbh[...]
    wcat_r_v, bcat_v = wcat_r[...], bcat[...]
    wout_v, bout_v = wout[...], bout[...]

    # context @ Wc folded: precompute enc @ Wc once; per step the context term
    # becomes a sublane-weighted reduce (removes 2 dependent matmuls per step).
    encWc = jnp.dot(enc, wcat_c[...], preferred_element_type=f32)          # (S, H)

    lane_iota_v = jax.lax.broadcasted_iota(jnp.int32, (1, V), 1)
    out_iota = jax.lax.broadcasted_iota(jnp.int32, tokens_out.shape, 1)

    tok = jnp.full((1, 1), sos_token, jnp.int32)
    toks = jnp.zeros(tokens_out.shape, jnp.int32)
    scs = jnp.zeros(scores_out.shape, f32)
    for t in range(max_length):                 # fully unrolled
        # decoder embedding folded into the GRU input weights (one-hot @ EWi)
        onehot_tok = (tok == lane_iota_v).astype(f32)                       # (1, V)
        gi = jnp.dot(onehot_tok, dewi_v, preferred_element_type=f32) + dbi_v
        h = gru_step(gi, h, dwh_v, dbh_v)                                   # (1, H)

        # Luong "dot" attention: broadcast-multiply + reductions (no transpose)
        e_raw = jnp.sum(enc * h, axis=1, keepdims=True)                     # (S, 1)
        e_max = jnp.max(e_raw, axis=0, keepdims=True)
        e = jnp.exp(e_raw - e_max)
        attn = e / jnp.sum(e, axis=0, keepdims=True)                        # (S, 1) exact
        ctx_wc = jnp.sum(attn * encWc, axis=0, keepdims=True)               # (1, H) == context @ Wc

        concat_out = jnp.tanh(
            jnp.dot(h, wcat_r_v, preferred_element_type=f32) + ctx_wc + bcat_v)    # (1, H)
        logits = jnp.dot(concat_out, wout_v, preferred_element_type=f32) + bout_v  # (1, V)

        # greedy: argmax(logits) == argmax(softmax); score = max softmax probability
        l_max = jnp.max(logits, axis=1, keepdims=True)
        idx = jnp.min(jnp.where(logits >= l_max, lane_iota_v, V),
                      axis=1, keepdims=True).astype(jnp.int32)              # (1, 1)
        score = 1.0 / jnp.sum(jnp.exp(logits - l_max), axis=1, keepdims=True)

        write = out_iota == t
        toks = jnp.where(write, idx, toks)
        scs = jnp.where(write, score, scs)
        tok = idx

    tokens_out[...] = toks                      # lane-dense (1, 128) stores
    scores_out[...] = scs


# ---------------------------------------------------------------------------
# parameter init (deterministic synthetic encoder/decoder, logical shapes)
# ---------------------------------------------------------------------------
def init_params(key):
    keys = jax.random.split(key, 10)
    scale = 0.1

    def gru_params(k):
        k1, k2, k3, k4 = jax.random.split(k, 4)
        wi = jax.random.normal(k1, (3, H, H), jnp.float32) * scale   # x @ W per gate [r|z|n]
        wh = jax.random.normal(k2, (3, H, H), jnp.float32) * scale   # h @ W per gate
        bi = jax.random.normal(k3, (3, 1, H), jnp.float32) * scale
        bh = jax.random.normal(k4, (3, 1, H), jnp.float32) * scale
        return (wi, wh, bi, bh)

    return {
        "enc_embedding": jax.random.normal(keys[0], (V, H), jnp.float32) * scale,
        "dec_embedding": jax.random.normal(keys[1], (V, H), jnp.float32) * scale,
        "enc_fwd": gru_params(keys[2]),
        "enc_bwd": gru_params(keys[3]),
        "dec_gru": gru_params(keys[4]),
        "wcat_r": jax.random.normal(keys[5], (H, H), jnp.float32) * scale,
        "wcat_c": jax.random.normal(keys[6], (H, H), jnp.float32) * scale,
        "bcat": jax.random.normal(keys[7], (1, H), jnp.float32) * scale,
        "wout": jax.random.normal(keys[8], (H, V), jnp.float32) * scale,
        "bout": jax.random.normal(keys[9], (1, V), jnp.float32) * scale,
    }


def _stack_gate_weight(w):   # (3, K, H) -> (K, 3*GATE), gate g at lanes [g*GATE, g*GATE+H)
    k_dim = w.shape[1]
    out = jnp.zeros((k_dim, 3 * GATE), jnp.float32)
    for g in range(3):
        out = out.at[:, g * GATE:g * GATE + H].set(w[g])
    return out


def _stack_gate_bias(b):     # (3, 1, H) -> (1, 3*GATE)
    out = jnp.zeros((1, 3 * GATE), jnp.float32)
    for g in range(3):
        out = out.at[:, g * GATE:g * GATE + H].set(b[g])
    return out


def prepare_weights(params):
    fwi, fwh, fbi, fbh = params["enc_fwd"]
    bwi, bwh, bbi, bbh = params["enc_bwd"]
    dwi, dwh, dbi, dbh = params["dec_gru"]
    dwi_s = _stack_gate_weight(dwi)                                  # (H, 3*GATE)
    return {
        "enc_emb": params["enc_embedding"],                          # (V, H)
        "enc_fwd": (_stack_gate_weight(fwi), _stack_gate_weight(fwh),
                    _stack_gate_bias(fbi), _stack_gate_bias(fbh)),
        "enc_bwd": (_stack_gate_weight(bwi), _stack_gate_weight(bwh),
                    _stack_gate_bias(bbi), _stack_gate_bias(bbh)),
        # decoder embedding folded into the GRU input weights:
        "dec_ewi": jnp.dot(params["dec_embedding"], dwi_s),          # (V, 3*GATE)
        "dec_wh": _stack_gate_weight(dwh),
        "dec_bi": _stack_gate_bias(dbi),
        "dec_bh": _stack_gate_bias(dbh),
        "wcat_r": params["wcat_r"],                                  # (H, H)
        "wcat_c": params["wcat_c"],                                  # (H, H)
        "bcat": params["bcat"],                                      # (1, H)
        "wout": params["wout"],                                      # (H, V)
        "bout": params["bout"],                                      # (1, V)
    }


# ---------------------------------------------------------------------------
# GreedySearchDecoder.forward equivalent (single fused pallas_call, jitted)
# ---------------------------------------------------------------------------
@functools.partial(jax.jit, static_argnames=("max_length",))
def greedy_search_decode(weights, input_seq, input_length, max_length):
    # TODO(synk): input_length / pack_padded_sequence masking is not modeled;
    # full-length sequences are assumed (matches the reference for length == S).
    del input_length
    assert max_length <= LANE

    tokens_2d = input_seq.reshape(-1, 1).astype(jnp.int32)   # (S, 1)
    seq_len = tokens_2d.shape[0]

    kernel = functools.partial(
        fused_greedy_kernel, seq_len=seq_len, max_length=max_length,
        sos_token=SOS_TOKEN)

    vmem = pl.BlockSpec(memory_space=pltpu.MemorySpace.VMEM)
    inputs = (tokens_2d, weights["enc_emb"],
              *weights["enc_fwd"], *weights["enc_bwd"],
              weights["dec_ewi"], weights["dec_wh"], weights["dec_bi"], weights["dec_bh"],
              weights["wcat_r"], weights["wcat_c"], weights["bcat"],
              weights["wout"], weights["bout"])

    toks, scs = pl.pallas_call(
        kernel,
        out_shape=(jax.ShapeDtypeStruct((1, LANE), jnp.int32),
                   jax.ShapeDtypeStruct((1, LANE), jnp.float32)),
        in_specs=[vmem] * len(inputs),
        out_specs=(vmem, vmem),
    )(*inputs)

    all_tokens = toks[0, :max_length]     # (max_length,) int32 (torch.long analogue)
    all_scores = scs[0, :max_length]      # (max_length,) float32
    return all_tokens, all_scores


# ---------------------------------------------------------------------------
if __name__ == "__main__":
    key = jax.random.PRNGKey(0)
    pkey, dkey = jax.random.split(key)
    params = init_params(pkey)
    weights = prepare_weights(params)

    input_seq = jax.random.randint(dkey, (S,), 2, V, dtype=jnp.int32)  # (S,) token ids
    input_length = jnp.array([S], dtype=jnp.int32)

    all_tokens, all_scores = greedy_search_decode(weights, input_seq, input_length, MAX_LENGTH)
    jax.block_until_ready((all_tokens, all_scores))

    assert all_tokens.shape == (MAX_LENGTH,) and all_tokens.dtype == jnp.int32
    assert all_scores.shape == (MAX_LENGTH,) and all_scores.dtype == jnp.float32
    assert bool(jnp.all((all_tokens >= 0) & (all_tokens < V)))
    assert bool(jnp.all(all_scores > 0.0)) and bool(jnp.all(all_scores <= 1.0))
    print("KERNEL_OK")
</pallas_src>

<mosaic_0001>
module attributes {stable_mosaic.version = 11 : i64} {
  func.func @fused_greedy_kernel(%arg0: memref<8x1xi32, #tpu.memory_space<vmem>>, %arg1: memref<64x32xf32, #tpu.memory_space<vmem>>, %arg2: memref<32x384xf32, #tpu.memory_space<vmem>>, %arg3: memref<32x384xf32, #tpu.memory_space<vmem>>, %arg4: memref<1x384xf32, #tpu.memory_space<vmem>>, %arg5: memref<1x384xf32, #tpu.memory_space<vmem>>, %arg6: memref<32x384xf32, #tpu.memory_space<vmem>>, %arg7: memref<32x384xf32, #tpu.memory_space<vmem>>, %arg8: memref<1x384xf32, #tpu.memory_space<vmem>>, %arg9: memref<1x384xf32, #tpu.memory_space<vmem>>, %arg10: memref<64x384xf32, #tpu.memory_space<vmem>>, %arg11: memref<32x384xf32, #tpu.memory_space<vmem>>, %arg12: memref<1x384xf32, #tpu.memory_space<vmem>>, %arg13: memref<1x384xf32, #tpu.memory_space<vmem>>, %arg14: memref<32x32xf32, #tpu.memory_space<vmem>>, %arg15: memref<32x32xf32, #tpu.memory_space<vmem>>, %arg16: memref<1x32xf32, #tpu.memory_space<vmem>>, %arg17: memref<32x64xf32, #tpu.memory_space<vmem>>, %arg18: memref<1x64xf32, #tpu.memory_space<vmem>>, %arg19: memref<1x128xi32, #tpu.memory_space<vmem>>, %arg20: memref<1x128xf32, #tpu.memory_space<vmem>>) attributes {dimension_semantics = [], scalar_prefetch = 0 : i64, scratch_operands = 0 : i64, tpu.core_type = #tpu.core_type<tc>} {
    %c0 = arith.constant 0 : index
    %c0_0 = arith.constant 0 : index
    %0 = vector.load %arg0[%c0, %c0_0] : memref<8x1xi32, #tpu.memory_space<vmem>>, vector<8x1xi32>
    %1 = tpu.iota {dimensions = array<i32: 1>} : vector<8x64xi32>
    %2 = vector.broadcast %0 : vector<8x1xi32> to vector<8x64xi32>
    %3 = arith.cmpi eq, %2, %1 : vector<8x64xi32>
    %4 = arith.extui %3 : vector<8x64xi1> to vector<8x64xi32>
    %5 = arith.sitofp %4 : vector<8x64xi32> to vector<8x64xf32>
    %c0_1 = arith.constant 0 : index
    %c0_2 = arith.constant 0 : index
    %6 = vector.load %arg1[%c0_1, %c0_2] : memref<64x32xf32, #tpu.memory_space<vmem>>, vector<64x32xf32>
    %cst = arith.constant dense<0.000000e+00> : vector<8x32xf32>
    %7 = tpu.matmul %5, %6, %cst {dimension_numbers = #tpu.dot_dimension_numbers<[1], [0], [0], [1], [0, 0, 1, 1], [], []>} : vector<8x64xf32>, vector<64x32xf32>, vector<8x32xf32> -> vector<8x32xf32>
    %c0_3 = arith.constant 0 : index
    %c0_4 = arith.constant 0 : index
    %8 = vector.load %arg2[%c0_3, %c0_4] : memref<32x384xf32, #tpu.memory_space<vmem>>, vector<32x384xf32>
    %cst_5 = arith.constant dense<0.000000e+00> : vector<8x384xf32>
    %9 = tpu.matmul %7, %8, %cst_5 {dimension_numbers = #tpu.dot_dimension_numbers<[1], [0], [0], [1], [0, 0, 1, 1], [], []>} : vector<8x32xf32>, vector<32x384xf32>, vector<8x384xf32> -> vector<8x384xf32>
    %c0_6 = arith.constant 0 : index
    %c0_7 = arith.constant 0 : index
    %10 = vector.load %arg4[%c0_6, %c0_7] : memref<1x384xf32, #tpu.memory_space<vmem>>, vector<1x384xf32>
    %11 = vector.broadcast %10 : vector<1x384xf32> to vector<8x384xf32>
    %12 = arith.addf %9, %11 : vector<8x384xf32>
    %c0_8 = arith.constant 0 : index
    %c0_9 = arith.constant 0 : index
    %13 = vector.load %arg6[%c0_8, %c0_9] : memref<32x384xf32, #tpu.memory_space<vmem>>, vector<32x384xf32>
    %cst_10 = arith.constant dense<0.000000e+00> : vector<8x384xf32>
    %14 = tpu.matmul %7, %13, %cst_10 {dimension_numbers = #tpu.dot_dimension_numbers<[1], [0], [0], [1], [0, 0, 1, 1], [], []>} : vector<8x32xf32>, vector<32x384xf32>, vector<8x384xf32> -> vector<8x384xf32>
    %c0_11 = arith.constant 0 : index
    %c0_12 = arith.constant 0 : index
    %15 = vector.load %arg8[%c0_11, %c0_12] : memref<1x384xf32, #tpu.memory_space<vmem>>, vector<1x384xf32>
    %16 = vector.broadcast %15 : vector<1x384xf32> to vector<8x384xf32>
    %17 = arith.addf %14, %16 : vector<8x384xf32>
    %c0_13 = arith.constant 0 : index
    %c0_14 = arith.constant 0 : index
    %18 = vector.load %arg3[%c0_13, %c0_14] : memref<32x384xf32, #tpu.memory_space<vmem>>, vector<32x384xf32>
    %c0_15 = arith.constant 0 : index
    %c0_16 = arith.constant 0 : index
    %19 = vector.load %arg5[%c0_15, %c0_16] : memref<1x384xf32, #tpu.memory_space<vmem>>, vector<1x384xf32>
    %c0_17 = arith.constant 0 : index
    %c0_18 = arith.constant 0 : index
    %20 = vector.load %arg7[%c0_17, %c0_18] : memref<32x384xf32, #tpu.memory_space<vmem>>, vector<32x384xf32>
    %c0_19 = arith.constant 0 : index
    %c0_20 = arith.constant 0 : index
    %21 = vector.load %arg9[%c0_19, %c0_20] : memref<1x384xf32, #tpu.memory_space<vmem>>, vector<1x384xf32>
    %22 = tpu.iota {dimensions = array<i32: 0>} : vector<8x32xi32>
    %cst_21 = arith.constant 0.000000e+00 : f32
    %23 = vector.broadcast %cst_21 : f32 to vector<1x32xf32>
    %cst_22 = arith.constant 0.000000e+00 : f32
    %24 = vector.broadcast %cst_22 : f32 to vector<1x32xf32>
    %cst_23 = arith.constant 0.000000e+00 : f32
    %25 = vector.broadcast %cst_23 : f32 to vector<8x32xf32>
    %cst_24 = arith.constant 0.000000e+00 : f32
    %26 = vector.broadcast %cst_24 : f32 to vector<8x32xf32>
    %27 = vector.extract_strided_slice %12 {offsets = [0, 0], sizes = [1, 384], strides = [1, 1]} : vector<8x384xf32> to vector<1x384xf32>
    %cst_25 = arith.constant dense<0.000000e+00> : vector<1x384xf32>
    %28 = tpu.matmul %23, %18, %cst_25 {dimension_numbers = #tpu.dot_dimension_numbers<[1], [0], [0], [1], [0, 0, 1, 1], [], []>} : vector<1x32xf32>, vector<32x384xf32>, vector<1x384xf32> -> vector<1x384xf32>
    %29 = arith.addf %28, %19 : vector<1x384xf32>
    %30 = vector.extract_strided_slice %27 {offsets = [0, 0], sizes = [1, 32], strides = [1, 1]} : vector<1x384xf32> to vector<1x32xf32>
    %31 = vector.extract_strided_slice %29 {offsets = [0, 0], sizes = [1, 32], strides = [1, 1]} : vector<1x384xf32> to vector<1x32xf32>
    %32 = arith.addf %30, %31 : vector<1x32xf32>
    %33 = arith.negf %32 : vector<1x32xf32>
    %34 = math.exp %33 : vector<1x32xf32>
    %cst_26 = arith.constant 1.000000e+00 : f32
    %35 = vector.broadcast %cst_26 : f32 to vector<1x32xf32>
    %36 = arith.addf %35, %34 : vector<1x32xf32>
    %37 = arith.divf %35, %36 : vector<1x32xf32>
    %38 = vector.extract_strided_slice %27 {offsets = [0, 128], sizes = [1, 32], strides = [1, 1]} : vector<1x384xf32> to vector<1x32xf32>
    %39 = vector.extract_strided_slice %29 {offsets = [0, 128], sizes = [1, 32], strides = [1, 1]} : vector<1x384xf32> to vector<1x32xf32>
    %40 = arith.addf %38, %39 : vector<1x32xf32>
    %41 = arith.negf %40 : vector<1x32xf32>
    %42 = math.exp %41 : vector<1x32xf32>
    %cst_27 = arith.constant 1.000000e+00 : f32
    %43 = vector.broadcast %cst_27 : f32 to vector<1x32xf32>
    %44 = arith.addf %43, %42 : vector<1x32xf32>
    %45 = arith.divf %43, %44 : vector<1x32xf32>
    %46 = vector.extract_strided_slice %27 {offsets = [0, 256], sizes = [1, 32], strides = [1, 1]} : vector<1x384xf32> to vector<1x32xf32>
    %47 = vector.extract_strided_slice %29 {offsets = [0, 256], sizes = [1, 32], strides = [1, 1]} : vector<1x384xf32> to vector<1x32xf32>
    %48 = arith.mulf %37, %47 : vector<1x32xf32>
    %49 = arith.addf %46, %48 : vector<1x32xf32>
    %50 = math.tanh %49 : vector<1x32xf32>
    %cst_28 = arith.constant 1.000000e+00 : f32
    %51 = vector.broadcast %cst_28 : f32 to vector<1x32xf32>
    %52 = arith.subf %51, %45 : vector<1x32xf32>
    %53 = arith.mulf %52, %50 : vector<1x32xf32>
    %54 = arith.mulf %45, %23 : vector<1x32xf32>
    %55 = arith.addf %53, %54 : vector<1x32xf32>
    %c0_i32 = arith.constant 0 : i32
    %56 = vector.broadcast %c0_i32 : i32 to vector<8x32xi32>
    %57 = arith.cmpi eq, %22, %56 : vector<8x32xi32>
    %58 = vector.shape_cast %55 : vector<1x32xf32> to vector<1x32xf32>
    %59 = vector.broadcast %58 : vector<1x32xf32> to vector<8x32xf32>
    %60 = arith.select %57, %59, %25 : vector<8x32xi1>, vector<8x32xf32>
    %61 = vector.extract_strided_slice %17 {offsets = [7, 0], sizes = [1, 384], strides = [1, 1]} : vector<8x384xf32> to vector<1x384xf32>
    %cst_29 = arith.constant dense<0.000000e+00> : vector<1x384xf32>
    %62 = tpu.matmul %24, %20, %cst_29 {dimension_numbers = #tpu.dot_dimension_numbers<[1], [0], [0], [1], [0, 0, 1, 1], [], []>} : vector<1x32xf32>, vector<32x384xf32>, vector<1x384xf32> -> vector<1x384xf32>
    %63 = arith.addf %62, %21 : vector<1x384xf32>
    %64 = vector.extract_strided_slice %61 {offsets = [0, 0], sizes = [1, 32], strides = [1, 1]} : vector<1x384xf32> to vector<1x32xf32>
    %65 = vector.extract_strided_slice %63 {offsets = [0, 0], sizes = [1, 32], strides = [1, 1]} : vector<1x384xf32> to vector<1x32xf32>
    %66 = arith.addf %64, %65 : vector<1x32xf32>
    %67 = arith.negf %66 : vector<1x32xf32>
    %68 = math.exp %67 : vector<1x32xf32>
    %cst_30 = arith.constant 1.000000e+00 : f32
    %69 = vector.broadcast %cst_30 : f32 to vector<1x32xf32>
    %70 = arith.addf %69, %68 : vector<1x32xf32>
    %71 = arith.divf %69, %70 : vector<1x32xf32>
    %72 = vector.extract_strided_slice %61 {offsets = [0, 128], sizes = [1, 32], strides = [1, 1]} : vector<1x384xf32> to vector<1x32xf32>
    %73 = vector.extract_strided_slice %63 {offsets = [0, 128], sizes = [1, 32], strides = [1, 1]} : vector<1x384xf32> to vector<1x32xf32>
    %74 = arith.addf %72, %73 : vector<1x32xf32>
    %75 = arith.negf %74 : vector<1x32xf32>
    %76 = math.exp %75 : vector<1x32xf32>
    %cst_31 = arith.constant 1.000000e+00 : f32
    %77 = vector.broadcast %cst_31 : f32 to vector<1x32xf32>
    %78 = arith.addf %77, %76 : vector<1x32xf32>
    %79 = arith.divf %77, %78 : vector<1x32xf32>
    %80 = vector.extract_strided_slice %61 {offsets = [0, 256], sizes = [1, 32], strides = [1, 1]} : vector<1x384xf32> to vector<1x32xf32>
    %81 = vector.extract_strided_slice %63 {offsets = [0, 256], sizes = [1, 32], strides = [1, 1]} : vector<1x384xf32> to vector<1x32xf32>
    %82 = arith.mulf %71, %81 : vector<1x32xf32>
    %83 = arith.addf %80, %82 : vector<1x32xf32>
    %84 = math.tanh %83 : vector<1x32xf32>
    %cst_32 = arith.constant 1.000000e+00 : f32
    %85 = vector.broadcast %cst_32 : f32 to vector<1x32xf32>
    %86 = arith.subf %85, %79 : vector<1x32xf32>
    %87 = arith.mulf %86, %84 : vector<1x32xf32>
    %88 = arith.mulf %79, %24 : vector<1x32xf32>
    %89 = arith.addf %87, %88 : vector<1x32xf32>
    %c7_i32 = arith.constant 7 : i32
    %90 = vector.broadcast %c7_i32 : i32 to vector<8x32xi32>
    %91 = arith.cmpi eq, %22, %90 : vector<8x32xi32>
    %92 = vector.shape_cast %89 : vector<1x32xf32> to vector<1x32xf32>
    %93 = vector.broadcast %92 : vector<1x32xf32> to vector<8x32xf32>
    %94 = arith.select %91, %93, %26 : vector<8x32xi1>, vector<8x32xf32>
    %95 = vector.extract_strided_slice %12 {offsets = [1, 0], sizes = [1, 384], strides = [1, 1]} : vector<8x384xf32> to vector<1x384xf32>
    %cst_33 = arith.constant dense<0.000000e+00> : vector<1x384xf32>
    %96 = tpu.matmul %55, %18, %cst_33 {dimension_numbers = #tpu.dot_dimension_numbers<[1], [0], [0], [1], [0, 0, 1, 1], [], []>} : vector<1x32xf32>, vector<32x384xf32>, vector<1x384xf32> -> vector<1x384xf32>
    %97 = arith.addf %96, %19 : vector<1x384xf32>
    %98 = vector.extract_strided_slice %95 {offsets = [0, 0], sizes = [1, 32], strides = [1, 1]} : vector<1x384xf32> to vector<1x32xf32>
    %99 = vector.extract_strided_slice %97 {offsets = [0, 0], sizes = [1, 32], strides = [1, 1]} : vector<1x384xf32> to vector<1x32xf32>
    %100 = arith.addf %98, %99 : vector<1x32xf32>
    %101 = arith.negf %100 : vector<1x32xf32>
    %102 = math.exp %101 : vector<1x32xf32>
    %cst_34 = arith.constant 1.000000e+00 : f32
    %103 = vector.broadcast %cst_34 : f32 to vector<1x32xf32>
    %104 = arith.addf %103, %102 : vector<1x32xf32>
    %105 = arith.divf %103, %104 : vector<1x32xf32>
    %106 = vector.extract_strided_slice %95 {offsets = [0, 128], sizes = [1, 32], strides = [1, 1]} : vector<1x384xf32> to vector<1x32xf32>
    %107 = vector.extract_strided_slice %97 {offsets = [0, 128], sizes = [1, 32], strides = [1, 1]} : vector<1x384xf32> to vector<1x32xf32>
    %108 = arith.addf %106, %107 : vector<1x32xf32>
    %109 = arith.negf %108 : vector<1x32xf32>
    %110 = math.exp %109 : vector<1x32xf32>
    %cst_35 = arith.constant 1.000000e+00 : f32
    %111 = vector.broadcast %cst_35 : f32 to vector<1x32xf32>
    %112 = arith.addf %111, %110 : vector<1x32xf32>
    %113 = arith.divf %111, %112 : vector<1x32xf32>
    %114 = vector.extract_strided_slice %95 {offsets = [0, 256], sizes = [1, 32], strides = [1, 1]} : vector<1x384xf32> to vector<1x32xf32>
    %115 = vector.extract_strided_slice %97 {offsets = [0, 256], sizes = [1, 32], strides = [1, 1]} : vector<1x384xf32> to vector<1x32xf32>
    %116 = arith.mulf %105, %115 : vector<1x32xf32>
    %117 = arith.addf %114, %116 : vector<1x32xf32>
    %118 = math.tanh %117 : vector<1x32xf32>
    %cst_36 = arith.constant 1.000000e+00 : f32
    %119 = vector.broadcast %cst_36 : f32 to vector<1x32xf32>
    %120 = arith.subf %119, %113 : vector<1x32xf32>
    %121 = arith.mulf %120, %118 : vector<1x32xf32>
    %122 = arith.mulf %113, %55 : vector<1x32xf32>
    %123 = arith.addf %121, %122 : vector<1x32xf32>
    %c1_i32 = arith.constant 1 : i32
    %124 = vector.broadcast %c1_i32 : i32 to vector<8x32xi32>
    %125 = arith.cmpi eq, %22, %124 : vector<8x32xi32>
    %126 = vector.shape_cast %123 : vector<1x32xf32> to vector<1x32xf32>
    %127 = vector.broadcast %126 : vector<1x32xf32> to vector<8x32xf32>
    %128 = arith.select %125, %127, %60 : vector<8x32xi1>, vector<8x32xf32>
    %129 = vector.extract_strided_slice %17 {offsets = [6, 0], sizes = [1, 384], strides = [1, 1]} : vector<8x384xf32> to vector<1x384xf32>
    %cst_37 = arith.constant dense<0.000000e+00> : vector<1x384xf32>
    %130 = tpu.matmul %89, %20, %cst_37 {dimension_numbers = #tpu.dot_dimension_numbers<[1], [0], [0], [1], [0, 0, 1, 1], [], []>} : vector<1x32xf32>, vector<32x384xf32>, vector<1x384xf32> -> vector<1x384xf32>
    %131 = arith.addf %130, %21 : vector<1x384xf32>
    %132 = vector.extract_strided_slice %129 {offsets = [0, 0], sizes = [1, 32], strides = [1, 1]} : vector<1x384xf32> to vector<1x32xf32>
    %133 = vector.extract_strided_slice %131 {offsets = [0, 0], sizes = [1, 32], strides = [1, 1]} : vector<1x384xf32> to vector<1x32xf32>
    %134 = arith.addf %132, %133 : vector<1x32xf32>
    %135 = arith.negf %134 : vector<1x32xf32>
    %136 = math.exp %135 : vector<1x32xf32>
    %cst_38 = arith.constant 1.000000e+00 : f32
    %137 = vector.broadcast %cst_38 : f32 to vector<1x32xf32>
    %138 = arith.addf %137, %136 : vector<1x32xf32>
    %139 = arith.divf %137, %138 : vector<1x32xf32>
    %140 = vector.extract_strided_slice %129 {offsets = [0, 128], sizes = [1, 32], strides = [1, 1]} : vector<1x384xf32> to vector<1x32xf32>
    %141 = vector.extract_strided_slice %131 {offsets = [0, 128], sizes = [1, 32], strides = [1, 1]} : vector<1x384xf32> to vector<1x32xf32>
    %142 = arith.addf %140, %141 : vector<1x32xf32>
    %143 = arith.negf %142 : vector<1x32xf32>
    %144 = math.exp %143 : vector<1x32xf32>
    %cst_39 = arith.constant 1.000000e+00 : f32
    %145 = vector.broadcast %cst_39 : f32 to vector<1x32xf32>
    %146 = arith.addf %145, %144 : vector<1x32xf32>
    %147 = arith.divf %145, %146 : vector<1x32xf32>
    %148 = vector.extract_strided_slice %129 {offsets = [0, 256], sizes = [1, 32], strides = [1, 1]} : vector<1x384xf32> to vector<1x32xf32>
    %149 = vector.extract_strided_slice %131 {offsets = [0, 256], sizes = [1, 32], strides = [1, 1]} : vector<1x384xf32> to vector<1x32xf32>
    %150 = arith.mulf %139, %149 : vector<1x32xf32>
    %151 = arith.addf %148, %150 : vector<1x32xf32>
    %152 = math.tanh %151 : vector<1x32xf32>
    %cst_40 = arith.constant 1.000000e+00 : f32
    %153 = vector.broadcast %cst_40 : f32 to vector<1x32xf32>
    %154 = arith.subf %153, %147 : vector<1x32xf32>
    %155 = arith.mulf %154, %152 : vector<1x32xf32>
    %156 = arith.mulf %147, %89 : vector<1x32xf32>
    %157 = arith.addf %155, %156 : vector<1x32xf32>
    %c6_i32 = arith.constant 6 : i32
    %158 = vector.broadcast %c6_i32 : i32 to vector<8x32xi32>
    %159 = arith.cmpi eq, %22, %158 : vector<8x32xi32>
    %160 = vector.shape_cast %157 : vector<1x32xf32> to vector<1x32xf32>
    %161 = vector.broadcast %160 : vector<1x32xf32> to vector<8x32xf32>
    %162 = arith.select %159, %161, %94 : vector<8x32xi1>, vector<8x32xf32>
    %163 = vector.extract_strided_slice %12 {offsets = [2, 0], sizes = [1, 384], strides = [1, 1]} : vector<8x384xf32> to vector<1x384xf32>
    %cst_41 = arith.constant dense<0.000000e+00> : vector<1x384xf32>
    %164 = tpu.matmul %123, %18, %cst_41 {dimension_numbers = #tpu.dot_dimension_numbers<[1], [0], [0], [1], [0, 0, 1, 1], [], []>} : vector<1x32xf32>, vector<32x384xf32>, vector<1x384xf32> -> vector<1x384xf32>
    %165 = arith.addf %164, %19 : vector<1x384xf32>
    %166 = vector.extract_strided_slice %163 {offsets = [0, 0], sizes = [1, 32], strides = [1, 1]} : vector<1x384xf32> to vector<1x32xf32>
    %167 = vector.extract_strided_slice %165 {offsets = [0, 0], sizes = [1, 32], strides = [1, 1]} : vector<1x384xf32> to vector<1x32xf32>
    %168 = arith.addf %166, %167 : vector<1x32xf32>
    %169 = arith.negf %168 : vector<1x32xf32>
    %170 = math.exp %169 : vector<1x32xf32>
    %cst_42 = arith.constant 1.000000e+00 : f32
    %171 = vector.broadcast %cst_42 : f32 to vector<1x32xf32>
    %172 = arith.addf %171, %170 : vector<1x32xf32>
    %173 = arith.divf %171, %172 : vector<1x32xf32>
    %174 = vector.extract_strided_slice %163 {offsets = [0, 128], sizes = [1, 32], strides = [1, 1]} : vector<1x384xf32> to vector<1x32xf32>
    %175 = vector.extract_strided_slice %165 {offsets = [0, 128], sizes = [1, 32], strides = [1, 1]} : vector<1x384xf32> to vector<1x32xf32>
    %176 = arith.addf %174, %175 : vector<1x32xf32>
    %177 = arith.negf %176 : vector<1x32xf32>
    %178 = math.exp %177 : vector<1x32xf32>
    %cst_43 = arith.constant 1.000000e+00 : f32
    %179 = vector.broadcast %cst_43 : f32 to vector<1x32xf32>
    %180 = arith.addf %179, %178 : vector<1x32xf32>
    %181 = arith.divf %179, %180 : vector<1x32xf32>
    %182 = vector.extract_strided_slice %163 {offsets = [0, 256], sizes = [1, 32], strides = [1, 1]} : vector<1x384xf32> to vector<1x32xf32>
    %183 = vector.extract_strided_slice %165 {offsets = [0, 256], sizes = [1, 32], strides = [1, 1]} : vector<1x384xf32> to vector<1x32xf32>
    %184 = arith.mulf %173, %183 : vector<1x32xf32>
    %185 = arith.addf %182, %184 : vector<1x32xf32>
    %186 = math.tanh %185 : vector<1x32xf32>
    %cst_44 = arith.constant 1.000000e+00 : f32
    %187 = vector.broadcast %cst_44 : f32 to vector<1x32xf32>
    %188 = arith.subf %187, %181 : vector<1x32xf32>
    %189 = arith.mulf %188, %186 : vector<1x32xf32>
    %190 = arith.mulf %181, %123 : vector<1x32xf32>
    %191 = arith.addf %189, %190 : vector<1x32xf32>
    %c2_i32 = arith.constant 2 : i32
    %192 = vector.broadcast %c2_i32 : i32 to vector<8x32xi32>
    %193 = arith.cmpi eq, %22, %192 : vector<8x32xi32>
    %194 = vector.shape_cast %191 : vector<1x32xf32> to vector<1x32xf32>
    %195 = vector.broadcast %194 : vector<1x32xf32> to vector<8x32xf32>
    %196 = arith.select %193, %195, %128 : vector<8x32xi1>, vector<8x32xf32>
    %197 = vector.extract_strided_slice %17 {offsets = [5, 0], sizes = [1, 384], strides = [1, 1]} : vector<8x384xf32> to vector<1x384xf32>
    %cst_45 = arith.constant dense<0.000000e+00> : vector<1x384xf32>
    %198 = tpu.matmul %157, %20, %cst_45 {dimension_numbers = #tpu.dot_dimension_numbers<[1], [0], [0], [1], [0, 0, 1, 1], [], []>} : vector<1x32xf32>, vector<32x384xf32>, vector<1x384xf32> -> vector<1x384xf32>
    %199 = arith.addf %198, %21 : vector<1x384xf32>
    %200 = vector.extract_strided_slice %197 {offsets = [0, 0], sizes = [1, 32], strides = [1, 1]} : vector<1x384xf32> to vector<1x32xf32>
    %201 = vector.extract_strided_slice %199 {offsets = [0, 0], sizes = [1, 32], strides = [1, 1]} : vector<1x384xf32> to vector<1x32xf32>
    %202 = arith.addf %200, %201 : vector<1x32xf32>
    %203 = arith.negf %202 : vector<1x32xf32>
    %204 = math.exp %203 : vector<1x32xf32>
    %cst_46 = arith.constant 1.000000e+00 : f32
    %205 = vector.broadcast %cst_46 : f32 to vector<1x32xf32>
    %206 = arith.addf %205, %204 : vector<1x32xf32>
    %207 = arith.divf %205, %206 : vector<1x32xf32>
    %208 = vector.extract_strided_slice %197 {offsets = [0, 128], sizes = [1, 32], strides = [1, 1]} : vector<1x384xf32> to vector<1x32xf32>
    %209 = vector.extract_strided_slice %199 {offsets = [0, 128], sizes = [1, 32], strides = [1, 1]} : vector<1x384xf32> to vector<1x32xf32>
    %210 = arith.addf %208, %209 : vector<1x32xf32>
    %211 = arith.negf %210 : vector<1x32xf32>
    %212 = math.exp %211 : vector<1x32xf32>
    %cst_47 = arith.constant 1.000000e+00 : f32
    %213 = vector.broadcast %cst_47 : f32 to vector<1x32xf32>
    %214 = arith.addf %213, %212 : vector<1x32xf32>
    %215 = arith.divf %213, %214 : vector<1x32xf32>
    %216 = vector.extract_strided_slice %197 {offsets = [0, 256], sizes = [1, 32], strides = [1, 1]} : vector<1x384xf32> to vector<1x32xf32>
    %217 = vector.extract_strided_slice %199 {offsets = [0, 256], sizes = [1, 32], strides = [1, 1]} : vector<1x384xf32> to vector<1x32xf32>
    %218 = arith.mulf %207, %217 : vector<1x32xf32>
    %219 = arith.addf %216, %218 : vector<1x32xf32>
    %220 = math.tanh %219 : vector<1x32xf32>
    %cst_48 = arith.constant 1.000000e+00 : f32
    %221 = vector.broadcast %cst_48 : f32 to vector<1x32xf32>
    %222 = arith.subf %221, %215 : vector<1x32xf32>
    %223 = arith.mulf %222, %220 : vector<1x32xf32>
    %224 = arith.mulf %215, %157 : vector<1x32xf32>
    %225 = arith.addf %223, %224 : vector<1x32xf32>
    %c5_i32 = arith.constant 5 : i32
    %226 = vector.broadcast %c5_i32 : i32 to vector<8x32xi32>
    %227 = arith.cmpi eq, %22, %226 : vector<8x32xi32>
    %228 = vector.shape_cast %225 : vector<1x32xf32> to vector<1x32xf32>
    %229 = vector.broadcast %228 : vector<1x32xf32> to vector<8x32xf32>
    %230 = arith.select %227, %229, %162 : vector<8x32xi1>, vector<8x32xf32>
    %231 = vector.extract_strided_slice %12 {offsets = [3, 0], sizes = [1, 384], strides = [1, 1]} : vector<8x384xf32> to vector<1x384xf32>
    %cst_49 = arith.constant dense<0.000000e+00> : vector<1x384xf32>
    %232 = tpu.matmul %191, %18, %cst_49 {dimension_numbers = #tpu.dot_dimension_numbers<[1], [0], [0], [1], [0, 0, 1, 1], [], []>} : vector<1x32xf32>, vector<32x384xf32>, vector<1x384xf32> -> vector<1x384xf32>
    %233 = arith.addf %232, %19 : vector<1x384xf32>
    %234 = vector.extract_strided_slice %231 {offsets = [0, 0], sizes = [1, 32], strides = [1, 1]} : vector<1x384xf32> to vector<1x32xf32>
    %235 = vector.extract_strided_slice %233 {offsets = [0, 0], sizes = [1, 32], strides = [1, 1]} : vector<1x384xf32> to vector<1x32xf32>
    %236 = arith.addf %234, %235 : vector<1x32xf32>
    %237 = arith.negf %236 : vector<1x32xf32>
    %238 = math.exp %237 : vector<1x32xf32>
    %cst_50 = arith.constant 1.000000e+00 : f32
    %239 = vector.broadcast %cst_50 : f32 to vector<1x32xf32>
    %240 = arith.addf %239, %238 : vector<1x32xf32>
    %241 = arith.divf %239, %240 : vector<1x32xf32>
    %242 = vector.extract_strided_slice %231 {offsets = [0, 128], sizes = [1, 32], strides = [1, 1]} : vector<1x384xf32> to vector<1x32xf32>
    %243 = vector.extract_strided_slice %233 {offsets = [0, 128], sizes = [1, 32], strides = [1, 1]} : vector<1x384xf32> to vector<1x32xf32>
    %244 = arith.addf %242, %243 : vector<1x32xf32>
    %245 = arith.negf %244 : vector<1x32xf32>
    %246 = math.exp %245 : vector<1x32xf32>
    %cst_51 = arith.constant 1.000000e+00 : f32
    %247 = vector.broadcast %cst_51 : f32 to vector<1x32xf32>
    %248 = arith.addf %247, %246 : vector<1x32xf32>
    %249 = arith.divf %247, %248 : vector<1x32xf32>
    %250 = vector.extract_strided_slice %231 {offsets = [0, 256], sizes = [1, 32], strides = [1, 1]} : vector<1x384xf32> to vector<1x32xf32>
    %251 = vector.extract_strided_slice %233 {offsets = [0, 256], sizes = [1, 32], strides = [1, 1]} : vector<1x384xf32> to vector<1x32xf32>
    %252 = arith.mulf %241, %251 : vector<1x32xf32>
    %253 = arith.addf %250, %252 : vector<1x32xf32>
    %254 = math.tanh %253 : vector<1x32xf32>
    %cst_52 = arith.constant 1.000000e+00 : f32
    %255 = vector.broadcast %cst_52 : f32 to vector<1x32xf32>
    %256 = arith.subf %255, %249 : vector<1x32xf32>
    %257 = arith.mulf %256, %254 : vector<1x32xf32>
    %258 = arith.mulf %249, %191 : vector<1x32xf32>
    %259 = arith.addf %257, %258 : vector<1x32xf32>
    %c3_i32 = arith.constant 3 : i32
    %260 = vector.broadcast %c3_i32 : i32 to vector<8x32xi32>
    %261 = arith.cmpi eq, %22, %260 : vector<8x32xi32>
    %262 = vector.shape_cast %259 : vector<1x32xf32> to vector<1x32xf32>
    %263 = vector.broadcast %262 : vector<1x32xf32> to vector<8x32xf32>
    %264 = arith.select %261, %263, %196 : vector<8x32xi1>, vector<8x32xf32>
    %265 = vector.extract_strided_slice %17 {offsets = [4, 0], sizes = [1, 384], strides = [1, 1]} : vector<8x384xf32> to vector<1x384xf32>
    %cst_53 = arith.constant dense<0.000000e+00> : vector<1x384xf32>
    %266 = tpu.matmul %225, %20, %cst_53 {dimension_numbers = #tpu.dot_dimension_numbers<[1], [0], [0], [1], [0, 0, 1, 1], [], []>} : vector<1x32xf32>, vector<32x384xf32>, vector<1x384xf32> -> vector<1x384xf32>
    %267 = arith.addf %266, %21 : vector<1x384xf32>
    %268 = vector.extract_strided_slice %265 {offsets = [0, 0], sizes = [1, 32], strides = [1, 1]} : vector<1x384xf32> to vector<1x32xf32>
    %269 = vector.extract_strided_slice %267 {offsets = [0, 0], sizes = [1, 32], strides = [1, 1]} : vector<1x384xf32> to vector<1x32xf32>
    %270 = arith.addf %268, %269 : vector<1x32xf32>
    %271 = arith.negf %270 : vector<1x32xf32>
    %272 = math.exp %271 : vector<1x32xf32>
    %cst_54 = arith.constant 1.000000e+00 : f32
    %273 = vector.broadcast %cst_54 : f32 to vector<1x32xf32>
    %274 = arith.addf %273, %272 : vector<1x32xf32>
    %275 = arith.divf %273, %274 : vector<1x32xf32>
    %276 = vector.extract_strided_slice %265 {offsets = [0, 128], sizes = [1, 32], strides = [1, 1]} : vector<1x384xf32> to vector<1x32xf32>
    %277 = vector.extract_strided_slice %267 {offsets = [0, 128], sizes = [1, 32], strides = [1, 1]} : vector<1x384xf32> to vector<1x32xf32>
    %278 = arith.addf %276, %277 : vector<1x32xf32>
    %279 = arith.negf %278 : vector<1x32xf32>
    %280 = math.exp %279 : vector<1x32xf32>
    %cst_55 = arith.constant 1.000000e+00 : f32
    %281 = vector.broadcast %cst_55 : f32 to vector<1x32xf32>
    %282 = arith.addf %281, %280 : vector<1x32xf32>
    %283 = arith.divf %281, %282 : vector<1x32xf32>
    %284 = vector.extract_strided_slice %265 {offsets = [0, 256], sizes = [1, 32], strides = [1, 1]} : vector<1x384xf32> to vector<1x32xf32>
    %285 = vector.extract_strided_slice %267 {offsets = [0, 256], sizes = [1, 32], strides = [1, 1]} : vector<1x384xf32> to vector<1x32xf32>
    %286 = arith.mulf %275, %285 : vector<1x32xf32>
    %287 = arith.addf %284, %286 : vector<1x32xf32>
    %288 = math.tanh %287 : vector<1x32xf32>
    %cst_56 = arith.constant 1.000000e+00 : f32
    %289 = vector.broadcast %cst_56 : f32 to vector<1x32xf32>
    %290 = arith.subf %289, %283 : vector<1x32xf32>
    %291 = arith.mulf %290, %288 : vector<1x32xf32>
    %292 = arith.mulf %283, %225 : vector<1x32xf32>
    %293 = arith.addf %291, %292 : vector<1x32xf32>
    %c4_i32 = arith.constant 4 : i32
    %294 = vector.broadcast %c4_i32 : i32 to vector<8x32xi32>
    %295 = arith.cmpi eq, %22, %294 : vector<8x32xi32>
    %296 = vector.shape_cast %293 : vector<1x32xf32> to vector<1x32xf32>
    %297 = vector.broadcast %296 : vector<1x32xf32> to vector<8x32xf32>
    %298 = arith.select %295, %297, %230 : vector<8x32xi1>, vector<8x32xf32>
    %299 = vector.extract_strided_slice %12 {offsets = [4, 0], sizes = [1, 384], strides = [1, 1]} : vector<8x384xf32> to vector<1x384xf32>
    %cst_57 = arith.constant dense<0.000000e+00> : vector<1x384xf32>
    %300 = tpu.matmul %259, %18, %cst_57 {dimension_numbers = #tpu.dot_dimension_numbers<[1], [0], [0], [1], [0, 0, 1, 1], [], []>} : vector<1x32xf32>, vector<32x384xf32>, vector<1x384xf32> -> vector<1x384xf32>
    %301 = arith.addf %300, %19 : vector<1x384xf32>
    %302 = vector.extract_strided_slice %299 {offsets = [0, 0], sizes = [1, 32], strides = [1, 1]} : vector<1x384xf32> to vector<1x32xf32>
    %303 = vector.extract_strided_slice %301 {offsets = [0, 0], sizes = [1, 32], strides = [1, 1]} : vector<1x384xf32> to vector<1x32xf32>
    %304 = arith.addf %302, %303 : vector<1x32xf32>
    %305 = arith.negf %304 : vector<1x32xf32>
    %306 = math.exp %305 : vector<1x32xf32>
    %cst_58 = arith.constant 1.000000e+00 : f32
    %307 = vector.broadcast %cst_58 : f32 to vector<1x32xf32>
    %308 = arith.addf %307, %306 : vector<1x32xf32>
    %309 = arith.divf %307, %308 : vector<1x32xf32>
    %310 = vector.extract_strided_slice %299 {offsets = [0, 128], sizes = [1, 32], strides = [1, 1]} : vector<1x384xf32> to vector<1x32xf32>
    %311 = vector.extract_strided_slice %301 {offsets = [0, 128], sizes = [1, 32], strides = [1, 1]} : vector<1x384xf32> to vector<1x32xf32>
    %312 = arith.addf %310, %311 : vector<1x32xf32>
    %313 = arith.negf %312 : vector<1x32xf32>
    %314 = math.exp %313 : vector<1x32xf32>
    %cst_59 = arith.constant 1.000000e+00 : f32
    %315 = vector.broadcast %cst_59 : f32 to vector<1x32xf32>
    %316 = arith.addf %315, %314 : vector<1x32xf32>
    %317 = arith.divf %315, %316 : vector<1x32xf32>
    %318 = vector.extract_strided_slice %299 {offsets = [0, 256], sizes = [1, 32], strides = [1, 1]} : vector<1x384xf32> to vector<1x32xf32>
    %319 = vector.extract_strided_slice %301 {offsets = [0, 256], sizes = [1, 32], strides = [1, 1]} : vector<1x384xf32> to vector<1x32xf32>
    %320 = arith.mulf %309, %319 : vector<1x32xf32>
    %321 = arith.addf %318, %320 : vector<1x32xf32>
    %322 = math.tanh %321 : vector<1x32xf32>
    %cst_60 = arith.constant 1.000000e+00 : f32
    %323 = vector.broadcast %cst_60 : f32 to vector<1x32xf32>
    %324 = arith.subf %323, %317 : vector<1x32xf32>
    %325 = arith.mulf %324, %322 : vector<1x32xf32>
    %326 = arith.mulf %317, %259 : vector<1x32xf32>
    %327 = arith.addf %325, %326 : vector<1x32xf32>
    %c4_i32_61 = arith.constant 4 : i32
    %328 = vector.broadcast %c4_i32_61 : i32 to vector<8x32xi32>
    %329 = arith.cmpi eq, %22, %328 : vector<8x32xi32>
    %330 = vector.shape_cast %327 : vector<1x32xf32> to vector<1x32xf32>
    %331 = vector.broadcast %330 : vector<1x32xf32> to vector<8x32xf32>
    %332 = arith.select %329, %331, %264 : vector<8x32xi1>, vector<8x32xf32>
    %333 = vector.extract_strided_slice %17 {offsets = [3, 0], sizes = [1, 384], strides = [1, 1]} : vector<8x384xf32> to vector<1x384xf32>
    %cst_62 = arith.constant dense<0.000000e+00> : vector<1x384xf32>
    %334 = tpu.matmul %293, %20, %cst_62 {dimension_numbers = #tpu.dot_dimension_numbers<[1], [0], [0], [1], [0, 0, 1, 1], [], []>} : vector<1x32xf32>, vector<32x384xf32>, vector<1x384xf32> -> vector<1x384xf32>
    %335 = arith.addf %334, %21 : vector<1x384xf32>
    %336 = vector.extract_strided_slice %333 {offsets = [0, 0], sizes = [1, 32], strides = [1, 1]} : vector<1x384xf32> to vector<1x32xf32>
    %337 = vector.extract_strided_slice %335 {offsets = [0, 0], sizes = [1, 32], strides = [1, 1]} : vector<1x384xf32> to vector<1x32xf32>
    %338 = arith.addf %336, %337 : vector<1x32xf32>
    %339 = arith.negf %338 : vector<1x32xf32>
    %340 = math.exp %339 : vector<1x32xf32>
    %cst_63 = arith.constant 1.000000e+00 : f32
    %341 = vector.broadcast %cst_63 : f32 to vector<1x32xf32>
    %342 = arith.addf %341, %340 : vector<1x32xf32>
    %343 = arith.divf %341, %342 : vector<1x32xf32>
    %344 = vector.extract_strided_slice %333 {offsets = [0, 128], sizes = [1, 32], strides = [1, 1]} : vector<1x384xf32> to vector<1x32xf32>
    %345 = vector.extract_strided_slice %335 {offsets = [0, 128], sizes = [1, 32], strides = [1, 1]} : vector<1x384xf32> to vector<1x32xf32>
    %346 = arith.addf %344, %345 : vector<1x32xf32>
    %347 = arith.negf %346 : vector<1x32xf32>
    %348 = math.exp %347 : vector<1x32xf32>
    %cst_64 = arith.constant 1.000000e+00 : f32
    %349 = vector.broadcast %cst_64 : f32 to vector<1x32xf32>
    %350 = arith.addf %349, %348 : vector<1x32xf32>
    %351 = arith.divf %349, %350 : vector<1x32xf32>
    %352 = vector.extract_strided_slice %333 {offsets = [0, 256], sizes = [1, 32], strides = [1, 1]} : vector<1x384xf32> to vector<1x32xf32>
    %353 = vector.extract_strided_slice %335 {offsets = [0, 256], sizes = [1, 32], strides = [1, 1]} : vector<1x384xf32> to vector<1x32xf32>
    %354 = arith.mulf %343, %353 : vector<1x32xf32>
    %355 = arith.addf %352, %354 : vector<1x32xf32>
    %356 = math.tanh %355 : vector<1x32xf32>
    %cst_65 = arith.constant 1.000000e+00 : f32
    %357 = vector.broadcast %cst_65 : f32 to vector<1x32xf32>
    %358 = arith.subf %357, %351 : vector<1x32xf32>
    %359 = arith.mulf %358, %356 : vector<1x32xf32>
    %360 = arith.mulf %351, %293 : vector<1x32xf32>
    %361 = arith.addf %359, %360 : vector<1x32xf32>
    %c3_i32_66 = arith.constant 3 : i32
    %362 = vector.broadcast %c3_i32_66 : i32 to vector<8x32xi32>
    %363 = arith.cmpi eq, %22, %362 : vector<8x32xi32>
    %364 = vector.shape_cast %361 : vector<1x32xf32> to vector<1x32xf32>
    %365 = vector.broadcast %364 : vector<1x32xf32> to vector<8x32xf32>
    %366 = arith.select %363, %365, %298 : vector<8x32xi1>, vector<8x32xf32>
    %367 = vector.extract_strided_slice %12 {offsets = [5, 0], sizes = [1, 384], strides = [1, 1]} : vector<8x384xf32> to vector<1x384xf32>
    %cst_67 = arith.constant dense<0.000000e+00> : vector<1x384xf32>
    %368 = tpu.matmul %327, %18, %cst_67 {dimension_numbers = #tpu.dot_dimension_numbers<[1], [0], [0], [1], [0, 0, 1, 1], [], []>} : vector<1x32xf32>, vector<32x384xf32>, vector<1x384xf32> -> vector<1x384xf32>
    %369 = arith.addf %368, %19 : vector<1x384xf32>
    %370 = vector.extract_strided_slice %367 {offsets = [0, 0], sizes = [1, 32], strides = [1, 1]} : vector<1x384xf32> to vector<1x32xf32>
    %371 = vector.extract_strided_slice %369 {offsets = [0, 0], sizes = [1, 32], strides = [1, 1]} : vector<1x384xf32> to vector<1x32xf32>
    %372 = arith.addf %370, %371 : vector<1x32xf32>
    %373 = arith.negf %372 : vector<1x32xf32>
    %374 = math.exp %373 : vector<1x32xf32>
    %cst_68 = arith.constant 1.000000e+00 : f32
    %375 = vector.broadcast %cst_68 : f32 to vector<1x32xf32>
    %376 = arith.addf %375, %374 : vector<1x32xf32>
    %377 = arith.divf %375, %376 : vector<1x32xf32>
    %378 = vector.extract_strided_slice %367 {offsets = [0, 128], sizes = [1, 32], strides = [1, 1]} : vector<1x384xf32> to vector<1x32xf32>
    %379 = vector.extract_strided_slice %369 {offsets = [0, 128], sizes = [1, 32], strides = [1, 1]} : vector<1x384xf32> to vector<1x32xf32>
    %380 = arith.addf %378, %379 : vector<1x32xf32>
    %381 = arith.negf %380 : vector<1x32xf32>
    %382 = math.exp %381 : vector<1x32xf32>
    %cst_69 = arith.constant 1.000000e+00 : f32
    %383 = vector.broadcast %cst_69 : f32 to vector<1x32xf32>
    %384 = arith.addf %383, %382 : vector<1x32xf32>
    %385 = arith.divf %383, %384 : vector<1x32xf32>
    %386 = vector.extract_strided_slice %367 {offsets = [0, 256], sizes = [1, 32], strides = [1, 1]} : vector<1x384xf32> to vector<1x32xf32>
    %387 = vector.extract_strided_slice %369 {offsets = [0, 256], sizes = [1, 32], strides = [1, 1]} : vector<1x384xf32> to vector<1x32xf32>
    %388 = arith.mulf %377, %387 : vector<1x32xf32>
    %389 = arith.addf %386, %388 : vector<1x32xf32>
    %390 = math.tanh %389 : vector<1x32xf32>
    %cst_70 = arith.constant 1.000000e+00 : f32
    %391 = vector.broadcast %cst_70 : f32 to vector<1x32xf32>
    %392 = arith.subf %391, %385 : vector<1x32xf32>
    %393 = arith.mulf %392, %390 : vector<1x32xf32>
    %394 = arith.mulf %385, %327 : vector<1x32xf32>
    %395 = arith.addf %393, %394 : vector<1x32xf32>
    %c5_i32_71 = arith.constant 5 : i32
    %396 = vector.broadcast %c5_i32_71 : i32 to vector<8x32xi32>
    %397 = arith.cmpi eq, %22, %396 : vector<8x32xi32>
    %398 = vector.shape_cast %395 : vector<1x32xf32> to vector<1x32xf32>
    %399 = vector.broadcast %398 : vector<1x32xf32> to vector<8x32xf32>
    %400 = arith.select %397, %399, %332 : vector<8x32xi1>, vector<8x32xf32>
    %401 = vector.extract_strided_slice %17 {offsets = [2, 0], sizes = [1, 384], strides = [1, 1]} : vector<8x384xf32> to vector<1x384xf32>
    %cst_72 = arith.constant dense<0.000000e+00> : vector<1x384xf32>
    %402 = tpu.matmul %361, %20, %cst_72 {dimension_numbers = #tpu.dot_dimension_numbers<[1], [0], [0], [1], [0, 0, 1, 1], [], []>} : vector<1x32xf32>, vector<32x384xf32>, vector<1x384xf32> -> vector<1x384xf32>
    %403 = arith.addf %402, %21 : vector<1x384xf32>
    %404 = vector.extract_strided_slice %401 {offsets = [0, 0], sizes = [1, 32], strides = [1, 1]} : vector<1x384xf32> to vector<1x32xf32>
    %405 = vector.extract_strided_slice %403 {offsets = [0, 0], sizes = [1, 32], strides = [1, 1]} : vector<1x384xf32> to vector<1x32xf32>
    %406 = arith.addf %404, %405 : vector<1x32xf32>
    %407 = arith.negf %406 : vector<1x32xf32>
    %408 = math.exp %407 : vector<1x32xf32>
    %cst_73 = arith.constant 1.000000e+00 : f32
    %409 = vector.broadcast %cst_73 : f32 to vector<1x32xf32>
    %410 = arith.addf %409, %408 : vector<1x32xf32>
    %411 = arith.divf %409, %410 : vector<1x32xf32>
    %412 = vector.extract_strided_slice %401 {offsets = [0, 128], sizes = [1, 32], strides = [1, 1]} : vector<1x384xf32> to vector<1x32xf32>
    %413 = vector.extract_strided_slice %403 {offsets = [0, 128], sizes = [1, 32], strides = [1, 1]} : vector<1x384xf32> to vector<1x32xf32>
    %414 = arith.addf %412, %413 : vector<1x32xf32>
    %415 = arith.negf %414 : vector<1x32xf32>
    %416 = math.exp %415 : vector<1x32xf32>
    %cst_74 = arith.constant 1.000000e+00 : f32
    %417 = vector.broadcast %cst_74 : f32 to vector<1x32xf32>
    %418 = arith.addf %417, %416 : vector<1x32xf32>
    %419 = arith.divf %417, %418 : vector<1x32xf32>
    %420 = vector.extract_strided_slice %401 {offsets = [0, 256], sizes = [1, 32], strides = [1, 1]} : vector<1x384xf32> to vector<1x32xf32>
    %421 = vector.extract_strided_slice %403 {offsets = [0, 256], sizes = [1, 32], strides = [1, 1]} : vector<1x384xf32> to vector<1x32xf32>
    %422 = arith.mulf %411, %421 : vector<1x32xf32>
    %423 = arith.addf %420, %422 : vector<1x32xf32>
    %424 = math.tanh %423 : vector<1x32xf32>
    %cst_75 = arith.constant 1.000000e+00 : f32
    %425 = vector.broadcast %cst_75 : f32 to vector<1x32xf32>
    %426 = arith.subf %425, %419 : vector<1x32xf32>
    %427 = arith.mulf %426, %424 : vector<1x32xf32>
    %428 = arith.mulf %419, %361 : vector<1x32xf32>
    %429 = arith.addf %427, %428 : vector<1x32xf32>
    %c2_i32_76 = arith.constant 2 : i32
    %430 = vector.broadcast %c2_i32_76 : i32 to vector<8x32xi32>
    %431 = arith.cmpi eq, %22, %430 : vector<8x32xi32>
    %432 = vector.shape_cast %429 : vector<1x32xf32> to vector<1x32xf32>
    %433 = vector.broadcast %432 : vector<1x32xf32> to vector<8x32xf32>
    %434 = arith.select %431, %433, %366 : vector<8x32xi1>, vector<8x32xf32>
    %435 = vector.extract_strided_slice %12 {offsets = [6, 0], sizes = [1, 384], strides = [1, 1]} : vector<8x384xf32> to vector<1x384xf32>
    %cst_77 = arith.constant dense<0.000000e+00> : vector<1x384xf32>
    %436 = tpu.matmul %395, %18, %cst_77 {dimension_numbers = #tpu.dot_dimension_numbers<[1], [0], [0], [1], [0, 0, 1, 1], [], []>} : vector<1x32xf32>, vector<32x384xf32>, vector<1x384xf32> -> vector<1x384xf32>
    %437 = arith.addf %436, %19 : vector<1x384xf32>
    %438 = vector.extract_strided_slice %435 {offsets = [0, 0], sizes = [1, 32], strides = [1, 1]} : vector<1x384xf32> to vector<1x32xf32>
    %439 = vector.extract_strided_slice %437 {offsets = [0, 0], sizes = [1, 32], strides = [1, 1]} : vector<1x384xf32> to vector<1x32xf32>
    %440 = arith.addf %438, %439 : vector<1x32xf32>
    %441 = arith.negf %440 : vector<1x32xf32>
    %442 = math.exp %441 : vector<1x32xf32>
    %cst_78 = arith.constant 1.000000e+00 : f32
    %443 = vector.broadcast %cst_78 : f32 to vector<1x32xf32>
    %444 = arith.addf %443, %442 : vector<1x32xf32>
    %445 = arith.divf %443, %444 : vector<1x32xf32>
    %446 = vector.extract_strided_slice %435 {offsets = [0, 128], sizes = [1, 32], strides = [1, 1]} : vector<1x384xf32> to vector<1x32xf32>
    %447 = vector.extract_strided_slice %437 {offsets = [0, 128], sizes = [1, 32], strides = [1, 1]} : vector<1x384xf32> to vector<1x32xf32>
    %448 = arith.addf %446, %447 : vector<1x32xf32>
    %449 = arith.negf %448 : vector<1x32xf32>
    %450 = math.exp %449 : vector<1x32xf32>
    %cst_79 = arith.constant 1.000000e+00 : f32
    %451 = vector.broadcast %cst_79 : f32 to vector<1x32xf32>
    %452 = arith.addf %451, %450 : vector<1x32xf32>
    %453 = arith.divf %451, %452 : vector<1x32xf32>
    %454 = vector.extract_strided_slice %435 {offsets = [0, 256], sizes = [1, 32], strides = [1, 1]} : vector<1x384xf32> to vector<1x32xf32>
    %455 = vector.extract_strided_slice %437 {offsets = [0, 256], sizes = [1, 32], strides = [1, 1]} : vector<1x384xf32> to vector<1x32xf32>
    %456 = arith.mulf %445, %455 : vector<1x32xf32>
    %457 = arith.addf %454, %456 : vector<1x32xf32>
    %458 = math.tanh %457 : vector<1x32xf32>
    %cst_80 = arith.constant 1.000000e+00 : f32
    %459 = vector.broadcast %cst_80 : f32 to vector<1x32xf32>
    %460 = arith.subf %459, %453 : vector<1x32xf32>
    %461 = arith.mulf %460, %458 : vector<1x32xf32>
    %462 = arith.mulf %453, %395 : vector<1x32xf32>
    %463 = arith.addf %461, %462 : vector<1x32xf32>
    %c6_i32_81 = arith.constant 6 : i32
    %464 = vector.broadcast %c6_i32_81 : i32 to vector<8x32xi32>
    %465 = arith.cmpi eq, %22, %464 : vector<8x32xi32>
    %466 = vector.shape_cast %463 : vector<1x32xf32> to vector<1x32xf32>
    %467 = vector.broadcast %466 : vector<1x32xf32> to vector<8x32xf32>
    %468 = arith.select %465, %467, %400 : vector<8x32xi1>, vector<8x32xf32>
    %469 = vector.extract_strided_slice %17 {offsets = [1, 0], sizes = [1, 384], strides = [1, 1]} : vector<8x384xf32> to vector<1x384xf32>
    %cst_82 = arith.constant dense<0.000000e+00> : vector<1x384xf32>
    %470 = tpu.matmul %429, %20, %cst_82 {dimension_numbers = #tpu.dot_dimension_numbers<[1], [0], [0], [1], [0, 0, 1, 1], [], []>} : vector<1x32xf32>, vector<32x384xf32>, vector<1x384xf32> -> vector<1x384xf32>
    %471 = arith.addf %470, %21 : vector<1x384xf32>
    %472 = vector.extract_strided_slice %469 {offsets = [0, 0], sizes = [1, 32], strides = [1, 1]} : vector<1x384xf32> to vector<1x32xf32>
    %473 = vector.extract_strided_slice %471 {offsets = [0, 0], sizes = [1, 32], strides = [1, 1]} : vector<1x384xf32> to vector<1x32xf32>
    %474 = arith.addf %472, %473 : vector<1x32xf32>
    %475 = arith.negf %474 : vector<1x32xf32>
    %476 = math.exp %475 : vector<1x32xf32>
    %cst_83 = arith.constant 1.000000e+00 : f32
    %477 = vector.broadcast %cst_83 : f32 to vector<1x32xf32>
    %478 = arith.addf %477, %476 : vector<1x32xf32>
    %479 = arith.divf %477, %478 : vector<1x32xf32>
    %480 = vector.extract_strided_slice %469 {offsets = [0, 128], sizes = [1, 32], strides = [1, 1]} : vector<1x384xf32> to vector<1x32xf32>
    %481 = vector.extract_strided_slice %471 {offsets = [0, 128], sizes = [1, 32], strides = [1, 1]} : vector<1x384xf32> to vector<1x32xf32>
    %482 = arith.addf %480, %481 : vector<1x32xf32>
    %483 = arith.negf %482 : vector<1x32xf32>
    %484 = math.exp %483 : vector<1x32xf32>
    %cst_84 = arith.constant 1.000000e+00 : f32
    %485 = vector.broadcast %cst_84 : f32 to vector<1x32xf32>
    %486 = arith.addf %485, %484 : vector<1x32xf32>
    %487 = arith.divf %485, %486 : vector<1x32xf32>
    %488 = vector.extract_strided_slice %469 {offsets = [0, 256], sizes = [1, 32], strides = [1, 1]} : vector<1x384xf32> to vector<1x32xf32>
    %489 = vector.extract_strided_slice %471 {offsets = [0, 256], sizes = [1, 32], strides = [1, 1]} : vector<1x384xf32> to vector<1x32xf32>
    %490 = arith.mulf %479, %489 : vector<1x32xf32>
    %491 = arith.addf %488, %490 : vector<1x32xf32>
    %492 = math.tanh %491 : vector<1x32xf32>
    %cst_85 = arith.constant 1.000000e+00 : f32
    %493 = vector.broadcast %cst_85 : f32 to vector<1x32xf32>
    %494 = arith.subf %493, %487 : vector<1x32xf32>
    %495 = arith.mulf %494, %492 : vector<1x32xf32>
    %496 = arith.mulf %487, %429 : vector<1x32xf32>
    %497 = arith.addf %495, %496 : vector<1x32xf32>
    %c1_i32_86 = arith.constant 1 : i32
    %498 = vector.broadcast %c1_i32_86 : i32 to vector<8x32xi32>
    %499 = arith.cmpi eq, %22, %498 : vector<8x32xi32>
    %500 = vector.shape_cast %497 : vector<1x32xf32> to vector<1x32xf32>
    %501 = vector.broadcast %500 : vector<1x32xf32> to vector<8x32xf32>
    %502 = arith.select %499, %501, %434 : vector<8x32xi1>, vector<8x32xf32>
    %503 = vector.extract_strided_slice %12 {offsets = [7, 0], sizes = [1, 384], strides = [1, 1]} : vector<8x384xf32> to vector<1x384xf32>
    %cst_87 = arith.constant dense<0.000000e+00> : vector<1x384xf32>
    %504 = tpu.matmul %463, %18, %cst_87 {dimension_numbers = #tpu.dot_dimension_numbers<[1], [0], [0], [1], [0, 0, 1, 1], [], []>} : vector<1x32xf32>, vector<32x384xf32>, vector<1x384xf32> -> vector<1x384xf32>
    %505 = arith.addf %504, %19 : vector<1x384xf32>
    %506 = vector.extract_strided_slice %503 {offsets = [0, 0], sizes = [1, 32], strides = [1, 1]} : vector<1x384xf32> to vector<1x32xf32>
    %507 = vector.extract_strided_slice %505 {offsets = [0, 0], sizes = [1, 32], strides = [1, 1]} : vector<1x384xf32> to vector<1x32xf32>
    %508 = arith.addf %506, %507 : vector<1x32xf32>
    %509 = arith.negf %508 : vector<1x32xf32>
    %510 = math.exp %509 : vector<1x32xf32>
    %cst_88 = arith.constant 1.000000e+00 : f32
    %511 = vector.broadcast %cst_88 : f32 to vector<1x32xf32>
    %512 = arith.addf %511, %510 : vector<1x32xf32>
    %513 = arith.divf %511, %512 : vector<1x32xf32>
    %514 = vector.extract_strided_slice %503 {offsets = [0, 128], sizes = [1, 32], strides = [1, 1]} : vector<1x384xf32> to vector<1x32xf32>
    %515 = vector.extract_strided_slice %505 {offsets = [0, 128], sizes = [1, 32], strides = [1, 1]} : vector<1x384xf32> to vector<1x32xf32>
    %516 = arith.addf %514, %515 : vector<1x32xf32>
    %517 = arith.negf %516 : vector<1x32xf32>
    %518 = math.exp %517 : vector<1x32xf32>
    %cst_89 = arith.constant 1.000000e+00 : f32
    %519 = vector.broadcast %cst_89 : f32 to vector<1x32xf32>
    %520 = arith.addf %519, %518 : vector<1x32xf32>
    %521 = arith.divf %519, %520 : vector<1x32xf32>
    %522 = vector.extract_strided_slice %503 {offsets = [0, 256], sizes = [1, 32], strides = [1, 1]} : vector<1x384xf32> to vector<1x32xf32>
    %523 = vector.extract_strided_slice %505 {offsets = [0, 256], sizes = [1, 32], strides = [1, 1]} : vector<1x384xf32> to vector<1x32xf32>
    %524 = arith.mulf %513, %523 : vector<1x32xf32>
    %525 = arith.addf %522, %524 : vector<1x32xf32>
    %526 = math.tanh %525 : vector<1x32xf32>
    %cst_90 = arith.constant 1.000000e+00 : f32
    %527 = vector.broadcast %cst_90 : f32 to vector<1x32xf32>
    %528 = arith.subf %527, %521 : vector<1x32xf32>
    %529 = arith.mulf %528, %526 : vector<1x32xf32>
    %530 = arith.mulf %521, %463 : vector<1x32xf32>
    %531 = arith.addf %529, %530 : vector<1x32xf32>
    %c7_i32_91 = arith.constant 7 : i32
    %532 = vector.broadcast %c7_i32_91 : i32 to vector<8x32xi32>
    %533 = arith.cmpi eq, %22, %532 : vector<8x32xi32>
    %534 = vector.shape_cast %531 : vector<1x32xf32> to vector<1x32xf32>
    %535 = vector.broadcast %534 : vector<1x32xf32> to vector<8x32xf32>
    %536 = arith.select %533, %535, %468 : vector<8x32xi1>, vector<8x32xf32>
    %537 = vector.extract_strided_slice %17 {offsets = [0, 0], sizes = [1, 384], strides = [1, 1]} : vector<8x384xf32> to vector<1x384xf32>
    %cst_92 = arith.constant dense<0.000000e+00> : vector<1x384xf32>
    %538 = tpu.matmul %497, %20, %cst_92 {dimension_numbers = #tpu.dot_dimension_numbers<[1], [0], [0], [1], [0, 0, 1, 1], [], []>} : vector<1x32xf32>, vector<32x384xf32>, vector<1x384xf32> -> vector<1x384xf32>
    %539 = arith.addf %538, %21 : vector<1x384xf32>
    %540 = vector.extract_strided_slice %537 {offsets = [0, 0], sizes = [1, 32], strides = [1, 1]} : vector<1x384xf32> to vector<1x32xf32>
    %541 = vector.extract_strided_slice %539 {offsets = [0, 0], sizes = [1, 32], strides = [1, 1]} : vector<1x384xf32> to vector<1x32xf32>
    %542 = arith.addf %540, %541 : vector<1x32xf32>
    %543 = arith.negf %542 : vector<1x32xf32>
    %544 = math.exp %543 : vector<1x32xf32>
    %cst_93 = arith.constant 1.000000e+00 : f32
    %545 = vector.broadcast %cst_93 : f32 to vector<1x32xf32>
    %546 = arith.addf %545, %544 : vector<1x32xf32>
    %547 = arith.divf %545, %546 : vector<1x32xf32>
    %548 = vector.extract_strided_slice %537 {offsets = [0, 128], sizes = [1, 32], strides = [1, 1]} : vector<1x384xf32> to vector<1x32xf32>
    %549 = vector.extract_strided_slice %539 {offsets = [0, 128], sizes = [1, 32], strides = [1, 1]} : vector<1x384xf32> to vector<1x32xf32>
    %550 = arith.addf %548, %549 : vector<1x32xf32>
    %551 = arith.negf %550 : vector<1x32xf32>
    %552 = math.exp %551 : vector<1x32xf32>
    %cst_94 = arith.constant 1.000000e+00 : f32
    %553 = vector.broadcast %cst_94 : f32 to vector<1x32xf32>
    %554 = arith.addf %553, %552 : vector<1x32xf32>
    %555 = arith.divf %553, %554 : vector<1x32xf32>
    %556 = vector.extract_strided_slice %537 {offsets = [0, 256], sizes = [1, 32], strides = [1, 1]} : vector<1x384xf32> to vector<1x32xf32>
    %557 = vector.extract_strided_slice %539 {offsets = [0, 256], sizes = [1, 32], strides = [1, 1]} : vector<1x384xf32> to vector<1x32xf32>
    %558 = arith.mulf %547, %557 : vector<1x32xf32>
    %559 = arith.addf %556, %558 : vector<1x32xf32>
    %560 = math.tanh %559 : vector<1x32xf32>
    %cst_95 = arith.constant 1.000000e+00 : f32
    %561 = vector.broadcast %cst_95 : f32 to vector<1x32xf32>
    %562 = arith.subf %561, %555 : vector<1x32xf32>
    %563 = arith.mulf %562, %560 : vector<1x32xf32>
    %564 = arith.mulf %555, %497 : vector<1x32xf32>
    %565 = arith.addf %563, %564 : vector<1x32xf32>
    %c0_i32_96 = arith.constant 0 : i32
    %566 = vector.broadcast %c0_i32_96 : i32 to vector<8x32xi32>
    %567 = arith.cmpi eq, %22, %566 : vector<8x32xi32>
    %568 = vector.shape_cast %565 : vector<1x32xf32> to vector<1x32xf32>
    %569 = vector.broadcast %568 : vector<1x32xf32> to vector<8x32xf32>
    %570 = arith.select %567, %569, %502 : vector<8x32xi1>, vector<8x32xf32>
    %571 = arith.addf %536, %570 : vector<8x32xf32>
    %c0_97 = arith.constant 0 : index
    %c0_98 = arith.constant 0 : index
    %572 = vector.load %arg10[%c0_97, %c0_98] : memref<64x384xf32, #tpu.memory_space<vmem>>, vector<64x384xf32>
    %c0_99 = arith.constant 0 : index
    %c0_100 = arith.constant 0 : index
    %573 = vector.load %arg12[%c0_99, %c0_100] : memref<1x384xf32, #tpu.memory_space<vmem>>, vector<1x384xf32>
    %c0_101 = arith.constant 0 : index
    %c0_102 = arith.constant 0 : index
    %574 = vector.load %arg11[%c0_101, %c0_102] : memref<32x384xf32, #tpu.memory_space<vmem>>, vector<32x384xf32>
    %c0_103 = arith.constant 0 : index
    %c0_104 = arith.constant 0 : index
    %575 = vector.load %arg13[%c0_103, %c0_104] : memref<1x384xf32, #tpu.memory_space<vmem>>, vector<1x384xf32>
    %c0_105 = arith.constant 0 : index
    %c0_106 = arith.constant 0 : index
    %576 = vector.load %arg14[%c0_105, %c0_106] : memref<32x32xf32, #tpu.memory_space<vmem>>, vector<32x32xf32>
    %c0_107 = arith.constant 0 : index
    %c0_108 = arith.constant 0 : index
    %577 = vector.load %arg16[%c0_107, %c0_108] : memref<1x32xf32, #tpu.memory_space<vmem>>, vector<1x32xf32>
    %c0_109 = arith.constant 0 : index
    %c0_110 = arith.constant 0 : index
    %578 = vector.load %arg17[%c0_109, %c0_110] : memref<32x64xf32, #tpu.memory_space<vmem>>, vector<32x64xf32>
    %c0_111 = arith.constant 0 : index
    %c0_112 = arith.constant 0 : index
    %579 = vector.load %arg18[%c0_111, %c0_112] : memref<1x64xf32, #tpu.memory_space<vmem>>, vector<1x64xf32>
    %c0_113 = arith.constant 0 : index
    %c0_114 = arith.constant 0 : index
    %580 = vector.load %arg15[%c0_113, %c0_114] : memref<32x32xf32, #tpu.memory_space<vmem>>, vector<32x32xf32>
    %cst_115 = arith.constant dense<0.000000e+00> : vector<8x32xf32>
    %581 = tpu.matmul %571, %580, %cst_115 {dimension_numbers = #tpu.dot_dimension_numbers<[1], [0], [0], [1], [0, 0, 1, 1], [], []>} : vector<8x32xf32>, vector<32x32xf32>, vector<8x32xf32> -> vector<8x32xf32>
    %582 = tpu.iota {dimensions = array<i32: 1>} : vector<1x64xi32>
    %583 = tpu.iota {dimensions = array<i32: 1>} : vector<1x128xi32>
    %c1_i32_116 = arith.constant 1 : i32
    %584 = vector.broadcast %c1_i32_116 : i32 to vector<1x1xi32>
    %c0_i32_117 = arith.constant 0 : i32
    %585 = vector.broadcast %c0_i32_117 : i32 to vector<1x128xi32>
    %cst_118 = arith.constant 0.000000e+00 : f32
    %586 = vector.broadcast %cst_118 : f32 to vector<1x128xf32>
    %587 = vector.broadcast %584 : vector<1x1xi32> to vector<1x64xi32>
    %588 = arith.cmpi eq, %587, %582 : vector<1x64xi32>
    %589 = arith.extui %588 : vector<1x64xi1> to vector<1x64xi32>
    %590 = arith.sitofp %589 : vector<1x64xi32> to vector<1x64xf32>
    %cst_119 = arith.constant dense<0.000000e+00> : vector<1x384xf32>
    %591 = tpu.matmul %590, %572, %cst_119 {dimension_numbers = #tpu.dot_dimension_numbers<[1], [0], [0], [1], [0, 0, 1, 1], [], []>} : vector<1x64xf32>, vector<64x384xf32>, vector<1x384xf32> -> vector<1x384xf32>
    %592 = arith.addf %591, %573 : vector<1x384xf32>
    %cst_120 = arith.constant dense<0.000000e+00> : vector<1x384xf32>
    %593 = tpu.matmul %531, %574, %cst_120 {dimension_numbers = #tpu.dot_dimension_numbers<[1], [0], [0], [1], [0, 0, 1, 1], [], []>} : vector<1x32xf32>, vector<32x384xf32>, vector<1x384xf32> -> vector<1x384xf32>
    %594 = arith.addf %593, %575 : vector<1x384xf32>
    %595 = vector.extract_strided_slice %592 {offsets = [0, 0], sizes = [1, 32], strides = [1, 1]} : vector<1x384xf32> to vector<1x32xf32>
    %596 = vector.extract_strided_slice %594 {offsets = [0, 0], sizes = [1, 32], strides = [1, 1]} : vector<1x384xf32> to vector<1x32xf32>
    %597 = arith.addf %595, %596 : vector<1x32xf32>
    %598 = arith.negf %597 : vector<1x32xf32>
    %599 = math.exp %598 : vector<1x32xf32>
    %cst_121 = arith.constant 1.000000e+00 : f32
    %600 = vector.broadcast %cst_121 : f32 to vector<1x32xf32>
    %601 = arith.addf %600, %599 : vector<1x32xf32>
    %602 = arith.divf %600, %601 : vector<1x32xf32>
    %603 = vector.extract_strided_slice %592 {offsets = [0, 128], sizes = [1, 32], strides = [1, 1]} : vector<1x384xf32> to vector<1x32xf32>
    %604 = vector.extract_strided_slice %594 {offsets = [0, 128], sizes = [1, 32], strides = [1, 1]} : vector<1x384xf32> to vector<1x32xf32>
    %605 = arith.addf %603, %604 : vector<1x32xf32>
    %606 = arith.negf %605 : vector<1x32xf32>
    %607 = math.exp %606 : vector<1x32xf32>
    %cst_122 = arith.constant 1.000000e+00 : f32
    %608 = vector.broadcast %cst_122 : f32 to vector<1x32xf32>
    %609 = arith.addf %608, %607 : vector<1x32xf32>
    %610 = arith.divf %608, %609 : vector<1x32xf32>
    %611 = vector.extract_strided_slice %592 {offsets = [0, 256], sizes = [1, 32], strides = [1, 1]} : vector<1x384xf32> to vector<1x32xf32>
    %612 = vector.extract_strided_slice %594 {offsets = [0, 256], sizes = [1, 32], strides = [1, 1]} : vector<1x384xf32> to vector<1x32xf32>
    %613 = arith.mulf %602, %612 : vector<1x32xf32>
    %614 = arith.addf %611, %613 : vector<1x32xf32>
    %615 = math.tanh %614 : vector<1x32xf32>
    %cst_123 = arith.constant 1.000000e+00 : f32
    %616 = vector.broadcast %cst_123 : f32 to vector<1x32xf32>
    %617 = arith.subf %616, %610 : vector<1x32xf32>
    %618 = arith.mulf %617, %615 : vector<1x32xf32>
    %619 = arith.mulf %610, %531 : vector<1x32xf32>
    %620 = arith.addf %618, %619 : vector<1x32xf32>
    %621 = vector.broadcast %620 : vector<1x32xf32> to vector<8x32xf32>
    %622 = arith.mulf %571, %621 : vector<8x32xf32>
    %cst_124 = arith.constant dense<0.000000e+00> : vector<8xf32>
    %623 = vector.multi_reduction <add>, %622, %cst_124 [1] : vector<8x32xf32> to vector<8xf32>
    %624 = vector.shape_cast %623 : vector<8xf32> to vector<8x1xf32>
    %cst_125 = arith.constant dense<0xFF800000> : vector<1xf32>
    %625 = vector.multi_reduction <maximumf>, %624, %cst_125 [0] : vector<8x1xf32> to vector<1xf32>
    %626 = vector.shape_cast %625 : vector<1xf32> to vector<1x1xf32>
    %627 = vector.broadcast %626 : vector<1x1xf32> to vector<8x1xf32>
    %628 = arith.subf %624, %627 : vector<8x1xf32>
    %629 = math.exp %628 : vector<8x1xf32>
    %cst_126 = arith.constant dense<0.000000e+00> : vector<1xf32>
    %630 = vector.multi_reduction <add>, %629, %cst_126 [0] : vector<8x1xf32> to vector<1xf32>
    %631 = vector.shape_cast %630 : vector<1xf32> to vector<1x1xf32>
    %632 = vector.broadcast %631 : vector<1x1xf32> to vector<8x1xf32>
    %633 = arith.divf %629, %632 : vector<8x1xf32>
    %634 = vector.broadcast %633 : vector<8x1xf32> to vector<8x32xf32>
    %635 = arith.mulf %634, %581 : vector<8x32xf32>
    %cst_127 = arith.constant dense<0.000000e+00> : vector<32xf32>
    %636 = vector.multi_reduction <add>, %635, %cst_127 [0] : vector<8x32xf32> to vector<32xf32>
    %637 = vector.shape_cast %636 : vector<32xf32> to vector<1x32xf32>
    %cst_128 = arith.constant dense<0.000000e+00> : vector<1x32xf32>
    %638 = tpu.matmul %620, %576, %cst_128 {dimension_numbers = #tpu.dot_dimension_numbers<[1], [0], [0], [1], [0, 0, 1, 1], [], []>} : vector<1x32xf32>, vector<32x32xf32>, vector<1x32xf32> -> vector<1x32xf32>
    %639 = arith.addf %638, %637 : vector<1x32xf32>
    %640 = arith.addf %639, %577 : vector<1x32xf32>
    %641 = math.tanh %640 : vector<1x32xf32>
    %cst_129 = arith.constant dense<0.000000e+00> : vector<1x64xf32>
    %642 = tpu.matmul %641, %578, %cst_129 {dimension_numbers = #tpu.dot_dimension_numbers<[1], [0], [0], [1], [0, 0, 1, 1], [], []>} : vector<1x32xf32>, vector<32x64xf32>, vector<1x64xf32> -> vector<1x64xf32>
    %643 = arith.addf %642, %579 : vector<1x64xf32>
    %cst_130 = arith.constant dense<0xFF800000> : vector<1xf32>
    %644 = vector.multi_reduction <maximumf>, %643, %cst_130 [1] : vector<1x64xf32> to vector<1xf32>
    %645 = vector.shape_cast %644 : vector<1xf32> to vector<1x1xf32>
    %646 = vector.broadcast %645 : vector<1x1xf32> to vector<1x64xf32>
    %647 = arith.cmpf oge, %643, %646 : vector<1x64xf32>
    %c64_i32 = arith.constant 64 : i32
    %648 = vector.broadcast %c64_i32 : i32 to vector<1x64xi32>
    %649 = arith.select %647, %582, %648 : vector<1x64xi1>, vector<1x64xi32>
    %cst_131 = arith.constant dense<2147483647> : vector<1xi32>
    %650 = vector.multi_reduction <minsi>, %649, %cst_131 [1] : vector<1x64xi32> to vector<1xi32>
    %651 = vector.shape_cast %650 : vector<1xi32> to vector<1x1xi32>
    %652 = vector.broadcast %645 : vector<1x1xf32> to vector<1x64xf32>
    %653 = arith.subf %643, %652 : vector<1x64xf32>
    %654 = math.exp %653 : vector<1x64xf32>
    %cst_132 = arith.constant dense<0.000000e+00> : vector<1xf32>
    %655 = vector.multi_reduction <add>, %654, %cst_132 [1] : vector<1x64xf32> to vector<1xf32>
    %656 = vector.shape_cast %655 : vector<1xf32> to vector<1x1xf32>
    %cst_133 = arith.constant 1.000000e+00 : f32
    %657 = vector.broadcast %cst_133 : f32 to vector<1x1xf32>
    %658 = arith.divf %657, %656 : vector<1x1xf32>
    %c0_i32_134 = arith.constant 0 : i32
    %659 = vector.broadcast %c0_i32_134 : i32 to vector<1x128xi32>
    %660 = arith.cmpi eq, %583, %659 : vector<1x128xi32>
    %661 = vector.shape_cast %651 : vector<1x1xi32> to vector<1x1xi32>
    %662 = vector.broadcast %661 : vector<1x1xi32> to vector<1x128xi32>
    %663 = arith.select %660, %662, %585 : vector<1x128xi1>, vector<1x128xi32>
    %664 = vector.shape_cast %658 : vector<1x1xf32> to vector<1x1xf32>
    %665 = vector.broadcast %664 : vector<1x1xf32> to vector<1x128xf32>
    %666 = arith.select %660, %665, %586 : vector<1x128xi1>, vector<1x128xf32>
    %667 = vector.broadcast %651 : vector<1x1xi32> to vector<1x64xi32>
    %668 = arith.cmpi eq, %667, %582 : vector<1x64xi32>
    %669 = arith.extui %668 : vector<1x64xi1> to vector<1x64xi32>
    %670 = arith.sitofp %669 : vector<1x64xi32> to vector<1x64xf32>
    %cst_135 = arith.constant dense<0.000000e+00> : vector<1x384xf32>
    %671 = tpu.matmul %670, %572, %cst_135 {dimension_numbers = #tpu.dot_dimension_numbers<[1], [0], [0], [1], [0, 0, 1, 1], [], []>} : vector<1x64xf32>, vector<64x384xf32>, vector<1x384xf32> -> vector<1x384xf32>
    %672 = arith.addf %671, %573 : vector<1x384xf32>
    %cst_136 = arith.constant dense<0.000000e+00> : vector<1x384xf32>
    %673 = tpu.matmul %620, %574, %cst_136 {dimension_numbers = #tpu.dot_dimension_numbers<[1], [0], [0], [1], [0, 0, 1, 1], [], []>} : vector<1x32xf32>, vector<32x384xf32>, vector<1x384xf32> -> vector<1x384xf32>
    %674 = arith.addf %673, %575 : vector<1x384xf32>
    %675 = vector.extract_strided_slice %672 {offsets = [0, 0], sizes = [1, 32], strides = [1, 1]} : vector<1x384xf32> to vector<1x32xf32>
    %676 = vector.extract_strided_slice %674 {offsets = [0, 0], sizes = [1, 32], strides = [1, 1]} : vector<1x384xf32> to vector<1x32xf32>
    %677 = arith.addf %675, %676 : vector<1x32xf32>
    %678 = arith.negf %677 : vector<1x32xf32>
    %679 = math.exp %678 : vector<1x32xf32>
    %cst_137 = arith.constant 1.000000e+00 : f32
    %680 = vector.broadcast %cst_137 : f32 to vector<1x32xf32>
    %681 = arith.addf %680, %679 : vector<1x32xf32>
    %682 = arith.divf %680, %681 : vector<1x32xf32>
    %683 = vector.extract_strided_slice %672 {offsets = [0, 128], sizes = [1, 32], strides = [1, 1]} : vector<1x384xf32> to vector<1x32xf32>
    %684 = vector.extract_strided_slice %674 {offsets = [0, 128], sizes = [1, 32], strides = [1, 1]} : vector<1x384xf32> to vector<1x32xf32>
    %685 = arith.addf %683, %684 : vector<1x32xf32>
    %686 = arith.negf %685 : vector<1x32xf32>
    %687 = math.exp %686 : vector<1x32xf32>
    %cst_138 = arith.constant 1.000000e+00 : f32
    %688 = vector.broadcast %cst_138 : f32 to vector<1x32xf32>
    %689 = arith.addf %688, %687 : vector<1x32xf32>
    %690 = arith.divf %688, %689 : vector<1x32xf32>
    %691 = vector.extract_strided_slice %672 {offsets = [0, 256], sizes = [1, 32], strides = [1, 1]} : vector<1x384xf32> to vector<1x32xf32>
    %692 = vector.extract_strided_slice %674 {offsets = [0, 256], sizes = [1, 32], strides = [1, 1]} : vector<1x384xf32> to vector<1x32xf32>
    %693 = arith.mulf %682, %692 : vector<1x32xf32>
    %694 = arith.addf %691, %693 : vector<1x32xf32>
    %695 = math.tanh %694 : vector<1x32xf32>
    %cst_139 = arith.constant 1.000000e+00 : f32
    %696 = vector.broadcast %cst_139 : f32 to vector<1x32xf32>
    %697 = arith.subf %696, %690 : vector<1x32xf32>
    %698 = arith.mulf %697, %695 : vector<1x32xf32>
    %699 = arith.mulf %690, %620 : vector<1x32xf32>
    %700 = arith.addf %698, %699 : vector<1x32xf32>
    %701 = vector.broadcast %700 : vector<1x32xf32> to vector<8x32xf32>
    %702 = arith.mulf %571, %701 : vector<8x32xf32>
    %cst_140 = arith.constant dense<0.000000e+00> : vector<8xf32>
    %703 = vector.multi_reduction <add>, %702, %cst_140 [1] : vector<8x32xf32> to vector<8xf32>
    %704 = vector.shape_cast %703 : vector<8xf32> to vector<8x1xf32>
    %cst_141 = arith.constant dense<0xFF800000> : vector<1xf32>
    %705 = vector.multi_reduction <maximumf>, %704, %cst_141 [0] : vector<8x1xf32> to vector<1xf32>
    %706 = vector.shape_cast %705 : vector<1xf32> to vector<1x1xf32>
    %707 = vector.broadcast %706 : vector<1x1xf32> to vector<8x1xf32>
    %708 = arith.subf %704, %707 : vector<8x1xf32>
    %709 = math.exp %708 : vector<8x1xf32>
    %cst_142 = arith.constant dense<0.000000e+00> : vector<1xf32>
    %710 = vector.multi_reduction <add>, %709, %cst_142 [0] : vector<8x1xf32> to vector<1xf32>
    %711 = vector.shape_cast %710 : vector<1xf32> to vector<1x1xf32>
    %712 = vector.broadcast %711 : vector<1x1xf32> to vector<8x1xf32>
    %713 = arith.divf %709, %712 : vector<8x1xf32>
    %714 = vector.broadcast %713 : vector<8x1xf32> to vector<8x32xf32>
    %715 = arith.mulf %714, %581 : vector<8x32xf32>
    %cst_143 = arith.constant dense<0.000000e+00> : vector<32xf32>
    %716 = vector.multi_reduction <add>, %715, %cst_143 [0] : vector<8x32xf32> to vector<32xf32>
    %717 = vector.shape_cast %716 : vector<32xf32> to vector<1x32xf32>
    %cst_144 = arith.constant dense<0.000000e+00> : vector<1x32xf32>
    %718 = tpu.matmul %700, %576, %cst_144 {dimension_numbers = #tpu.dot_dimension_numbers<[1], [0], [0], [1], [0, 0, 1, 1], [], []>} : vector<1x32xf32>, vector<32x32xf32>, vector<1x32xf32> -> vector<1x32xf32>
    %719 = arith.addf %718, %717 : vector<1x32xf32>
    %720 = arith.addf %719, %577 : vector<1x32xf32>
    %721 = math.tanh %720 : vector<1x32xf32>
    %cst_145 = arith.constant dense<0.000000e+00> : vector<1x64xf32>
    %722 = tpu.matmul %721, %578, %cst_145 {dimension_numbers = #tpu.dot_dimension_numbers<[1], [0], [0], [1], [0, 0, 1, 1], [], []>} : vector<1x32xf32>, vector<32x64xf32>, vector<1x64xf32> -> vector<1x64xf32>
    %723 = arith.addf %722, %579 : vector<1x64xf32>
    %cst_146 = arith.constant dense<0xFF800000> : vector<1xf32>
    %724 = vector.multi_reduction <maximumf>, %723, %cst_146 [1] : vector<1x64xf32> to vector<1xf32>
    %725 = vector.shape_cast %724 : vector<1xf32> to vector<1x1xf32>
    %726 = vector.broadcast %725 : vector<1x1xf32> to vector<1x64xf32>
    %727 = arith.cmpf oge, %723, %726 : vector<1x64xf32>
    %c64_i32_147 = arith.constant 64 : i32
    %728 = vector.broadcast %c64_i32_147 : i32 to vector<1x64xi32>
    %729 = arith.select %727, %582, %728 : vector<1x64xi1>, vector<1x64xi32>
    %cst_148 = arith.constant dense<2147483647> : vector<1xi32>
    %730 = vector.multi_reduction <minsi>, %729, %cst_148 [1] : vector<1x64xi32> to vector<1xi32>
    %731 = vector.shape_cast %730 : vector<1xi32> to vector<1x1xi32>
    %732 = vector.broadcast %725 : vector<1x1xf32> to vector<1x64xf32>
    %733 = arith.subf %723, %732 : vector<1x64xf32>
    %734 = math.exp %733 : vector<1x64xf32>
    %cst_149 = arith.constant dense<0.000000e+00> : vector<1xf32>
    %735 = vector.multi_reduction <add>, %734, %cst_149 [1] : vector<1x64xf32> to vector<1xf32>
    %736 = vector.shape_cast %735 : vector<1xf32> to vector<1x1xf32>
    %cst_150 = arith.constant 1.000000e+00 : f32
    %737 = vector.broadcast %cst_150 : f32 to vector<1x1xf32>
    %738 = arith.divf %737, %736 : vector<1x1xf32>
    %c1_i32_151 = arith.constant 1 : i32
    %739 = vector.broadcast %c1_i32_151 : i32 to vector<1x128xi32>
    %740 = arith.cmpi eq, %583, %739 : vector<1x128xi32>
    %741 = vector.shape_cast %731 : vector<1x1xi32> to vector<1x1xi32>
    %742 = vector.broadcast %741 : vector<1x1xi32> to vector<1x128xi32>
    %743 = arith.select %740, %742, %663 : vector<1x128xi1>, vector<1x128xi32>
    %744 = vector.shape_cast %738 : vector<1x1xf32> to vector<1x1xf32>
    %745 = vector.broadcast %744 : vector<1x1xf32> to vector<1x128xf32>
    %746 = arith.select %740, %745, %666 : vector<1x128xi1>, vector<1x128xf32>
    %747 = vector.broadcast %731 : vector<1x1xi32> to vector<1x64xi32>
    %748 = arith.cmpi eq, %747, %582 : vector<1x64xi32>
    %749 = arith.extui %748 : vector<1x64xi1> to vector<1x64xi32>
    %750 = arith.sitofp %749 : vector<1x64xi32> to vector<1x64xf32>
    %cst_152 = arith.constant dense<0.000000e+00> : vector<1x384xf32>
    %751 = tpu.matmul %750, %572, %cst_152 {dimension_numbers = #tpu.dot_dimension_numbers<[1], [0], [0], [1], [0, 0, 1, 1], [], []>} : vector<1x64xf32>, vector<64x384xf32>, vector<1x384xf32> -> vector<1x384xf32>
    %752 = arith.addf %751, %573 : vector<1x384xf32>
    %cst_153 = arith.constant dense<0.000000e+00> : vector<1x384xf32>
    %753 = tpu.matmul %700, %574, %cst_153 {dimension_numbers = #tpu.dot_dimension_numbers<[1], [0], [0], [1], [0, 0, 1, 1], [], []>} : vector<1x32xf32>, vector<32x384xf32>, vector<1x384xf32> -> vector<1x384xf32>
    %754 = arith.addf %753, %575 : vector<1x384xf32>
    %755 = vector.extract_strided_slice %752 {offsets = [0, 0], sizes = [1, 32], strides = [1, 1]} : vector<1x384xf32> to vector<1x32xf32>
    %756 = vector.extract_strided_slice %754 {offsets = [0, 0], sizes = [1, 32], strides = [1, 1]} : vector<1x384xf32> to vector<1x32xf32>
    %757 = arith.addf %755, %756 : vector<1x32xf32>
    %758 = arith.negf %757 : vector<1x32xf32>
    %759 = math.exp %758 : vector<1x32xf32>
    %cst_154 = arith.constant 1.000000e+00 : f32
    %760 = vector.broadcast %cst_154 : f32 to vector<1x32xf32>
    %761 = arith.addf %760, %759 : vector<1x32xf32>
    %762 = arith.divf %760, %761 : vector<1x32xf32>
    %763 = vector.extract_strided_slice %752 {offsets = [0, 128], sizes = [1, 32], strides = [1, 1]} : vector<1x384xf32> to vector<1x32xf32>
    %764 = vector.extract_strided_slice %754 {offsets = [0, 128], sizes = [1, 32], strides = [1, 1]} : vector<1x384xf32> to vector<1x32xf32>
    %765 = arith.addf %763, %764 : vector<1x32xf32>
    %766 = arith.negf %765 : vector<1x32xf32>
    %767 = math.exp %766 : vector<1x32xf32>
    %cst_155 = arith.constant 1.000000e+00 : f32
    %768 = vector.broadcast %cst_155 : f32 to vector<1x32xf32>
    %769 = arith.addf %768, %767 : vector<1x32xf32>
    %770 = arith.divf %768, %769 : vector<1x32xf32>
    %771 = vector.extract_strided_slice %752 {offsets = [0, 256], sizes = [1, 32], strides = [1, 1]} : vector<1x384xf32> to vector<1x32xf32>
    %772 = vector.extract_strided_slice %754 {offsets = [0, 256], sizes = [1, 32], strides = [1, 1]} : vector<1x384xf32> to vector<1x32xf32>
    %773 = arith.mulf %762, %772 : vector<1x32xf32>
    %774 = arith.addf %771, %773 : vector<1x32xf32>
    %775 = math.tanh %774 : vector<1x32xf32>
    %cst_156 = arith.constant 1.000000e+00 : f32
    %776 = vector.broadcast %cst_156 : f32 to vector<1x32xf32>
    %777 = arith.subf %776, %770 : vector<1x32xf32>
    %778 = arith.mulf %777, %775 : vector<1x32xf32>
    %779 = arith.mulf %770, %700 : vector<1x32xf32>
    %780 = arith.addf %778, %779 : vector<1x32xf32>
    %781 = vector.broadcast %780 : vector<1x32xf32> to vector<8x32xf32>
    %782 = arith.mulf %571, %781 : vector<8x32xf32>
    %cst_157 = arith.constant dense<0.000000e+00> : vector<8xf32>
    %783 = vector.multi_reduction <add>, %782, %cst_157 [1] : vector<8x32xf32> to vector<8xf32>
    %784 = vector.shape_cast %783 : vector<8xf32> to vector<8x1xf32>
    %cst_158 = arith.constant dense<0xFF800000> : vector<1xf32>
    %785 = vector.multi_reduction <maximumf>, %784, %cst_158 [0] : vector<8x1xf32> to vector<1xf32>
    %786 = vector.shape_cast %785 : vector<1xf32> to vector<1x1xf32>
    %787 = vector.broadcast %786 : vector<1x1xf32> to vector<8x1xf32>
    %788 = arith.subf %784, %787 : vector<8x1xf32>
    %789 = math.exp %788 : vector<8x1xf32>
    %cst_159 = arith.constant dense<0.000000e+00> : vector<1xf32>
    %790 = vector.multi_reduction <add>, %789, %cst_159 [0] : vector<8x1xf32> to vector<1xf32>
    %791 = vector.shape_cast %790 : vector<1xf32> to vector<1x1xf32>
    %792 = vector.broadcast %791 : vector<1x1xf32> to vector<8x1xf32>
    %793 = arith.divf %789, %792 : vector<8x1xf32>
    %794 = vector.broadcast %793 : vector<8x1xf32> to vector<8x32xf32>
    %795 = arith.mulf %794, %581 : vector<8x32xf32>
    %cst_160 = arith.constant dense<0.000000e+00> : vector<32xf32>
    %796 = vector.multi_reduction <add>, %795, %cst_160 [0] : vector<8x32xf32> to vector<32xf32>
    %797 = vector.shape_cast %796 : vector<32xf32> to vector<1x32xf32>
    %cst_161 = arith.constant dense<0.000000e+00> : vector<1x32xf32>
    %798 = tpu.matmul %780, %576, %cst_161 {dimension_numbers = #tpu.dot_dimension_numbers<[1], [0], [0], [1], [0, 0, 1, 1], [], []>} : vector<1x32xf32>, vector<32x32xf32>, vector<1x32xf32> -> vector<1x32xf32>
    %799 = arith.addf %798, %797 : vector<1x32xf32>
    %800 = arith.addf %799, %577 : vector<1x32xf32>
    %801 = math.tanh %800 : vector<1x32xf32>
    %cst_162 = arith.constant dense<0.000000e+00> : vector<1x64xf32>
    %802 = tpu.matmul %801, %578, %cst_162 {dimension_numbers = #tpu.dot_dimension_numbers<[1], [0], [0], [1], [0, 0, 1, 1], [], []>} : vector<1x32xf32>, vector<32x64xf32>, vector<1x64xf32> -> vector<1x64xf32>
    %803 = arith.addf %802, %579 : vector<1x64xf32>
    %cst_163 = arith.constant dense<0xFF800000> : vector<1xf32>
    %804 = vector.multi_reduction <maximumf>, %803, %cst_163 [1] : vector<1x64xf32> to vector<1xf32>
    %805 = vector.shape_cast %804 : vector<1xf32> to vector<1x1xf32>
    %806 = vector.broadcast %805 : vector<1x1xf32> to vector<1x64xf32>
    %807 = arith.cmpf oge, %803, %806 : vector<1x64xf32>
    %c64_i32_164 = arith.constant 64 : i32
    %808 = vector.broadcast %c64_i32_164 : i32 to vector<1x64xi32>
    %809 = arith.select %807, %582, %808 : vector<1x64xi1>, vector<1x64xi32>
    %cst_165 = arith.constant dense<2147483647> : vector<1xi32>
    %810 = vector.multi_reduction <minsi>, %809, %cst_165 [1] : vector<1x64xi32> to vector<1xi32>
    %811 = vector.shape_cast %810 : vector<1xi32> to vector<1x1xi32>
    %812 = vector.broadcast %805 : vector<1x1xf32> to vector<1x64xf32>
    %813 = arith.subf %803, %812 : vector<1x64xf32>
    %814 = math.exp %813 : vector<1x64xf32>
    %cst_166 = arith.constant dense<0.000000e+00> : vector<1xf32>
    %815 = vector.multi_reduction <add>, %814, %cst_166 [1] : vector<1x64xf32> to vector<1xf32>
    %816 = vector.shape_cast %815 : vector<1xf32> to vector<1x1xf32>
    %cst_167 = arith.constant 1.000000e+00 : f32
    %817 = vector.broadcast %cst_167 : f32 to vector<1x1xf32>
    %818 = arith.divf %817, %816 : vector<1x1xf32>
    %c2_i32_168 = arith.constant 2 : i32
    %819 = vector.broadcast %c2_i32_168 : i32 to vector<1x128xi32>
    %820 = arith.cmpi eq, %583, %819 : vector<1x128xi32>
    %821 = vector.shape_cast %811 : vector<1x1xi32> to vector<1x1xi32>
    %822 = vector.broadcast %821 : vector<1x1xi32> to vector<1x128xi32>
    %823 = arith.select %820, %822, %743 : vector<1x128xi1>, vector<1x128xi32>
    %824 = vector.shape_cast %818 : vector<1x1xf32> to vector<1x1xf32>
    %825 = vector.broadcast %824 : vector<1x1xf32> to vector<1x128xf32>
    %826 = arith.select %820, %825, %746 : vector<1x128xi1>, vector<1x128xf32>
    %827 = vector.broadcast %811 : vector<1x1xi32> to vector<1x64xi32>
    %828 = arith.cmpi eq, %827, %582 : vector<1x64xi32>
    %829 = arith.extui %828 : vector<1x64xi1> to vector<1x64xi32>
    %830 = arith.sitofp %829 : vector<1x64xi32> to vector<1x64xf32>
    %cst_169 = arith.constant dense<0.000000e+00> : vector<1x384xf32>
    %831 = tpu.matmul %830, %572, %cst_169 {dimension_numbers = #tpu.dot_dimension_numbers<[1], [0], [0], [1], [0, 0, 1, 1], [], []>} : vector<1x64xf32>, vector<64x384xf32>, vector<1x384xf32> -> vector<1x384xf32>
    %832 = arith.addf %831, %573 : vector<1x384xf32>
    %cst_170 = arith.constant dense<0.000000e+00> : vector<1x384xf32>
    %833 = tpu.matmul %780, %574, %cst_170 {dimension_numbers = #tpu.dot_dimension_numbers<[1], [0], [0], [1], [0, 0, 1, 1], [], []>} : vector<1x32xf32>, vector<32x384xf32>, vector<1x384xf32> -> vector<1x384xf32>
    %834 = arith.addf %833, %575 : vector<1x384xf32>
    %835 = vector.extract_strided_slice %832 {offsets = [0, 0], sizes = [1, 32], strides = [1, 1]} : vector<1x384xf32> to vector<1x32xf32>
    %836 = vector.extract_strided_slice %834 {offsets = [0, 0], sizes = [1, 32], strides = [1, 1]} : vector<1x384xf32> to vector<1x32xf32>
    %837 = arith.addf %835, %836 : vector<1x32xf32>
    %838 = arith.negf %837 : vector<1x32xf32>
    %839 = math.exp %838 : vector<1x32xf32>
    %cst_171 = arith.constant 1.000000e+00 : f32
    %840 = vector.broadcast %cst_171 : f32 to vector<1x32xf32>
    %841 = arith.addf %840, %839 : vector<1x32xf32>
    %842 = arith.divf %840, %841 : vector<1x32xf32>
    %843 = vector.extract_strided_slice %832 {offsets = [0, 128], sizes = [1, 32], strides = [1, 1]} : vector<1x384xf32> to vector<1x32xf32>
    %844 = vector.extract_strided_slice %834 {offsets = [0, 128], sizes = [1, 32], strides = [1, 1]} : vector<1x384xf32> to vector<1x32xf32>
    %845 = arith.addf %843, %844 : vector<1x32xf32>
    %846 = arith.negf %845 : vector<1x32xf32>
    %847 = math.exp %846 : vector<1x32xf32>
    %cst_172 = arith.constant 1.000000e+00 : f32
    %848 = vector.broadcast %cst_172 : f32 to vector<1x32xf32>
    %849 = arith.addf %848, %847 : vector<1x32xf32>
    %850 = arith.divf %848, %849 : vector<1x32xf32>
    %851 = vector.extract_strided_slice %832 {offsets = [0, 256], sizes = [1, 32], strides = [1, 1]} : vector<1x384xf32> to vector<1x32xf32>
    %852 = vector.extract_strided_slice %834 {offsets = [0, 256], sizes = [1, 32], strides = [1, 1]} : vector<1x384xf32> to vector<1x32xf32>
    %853 = arith.mulf %842, %852 : vector<1x32xf32>
    %854 = arith.addf %851, %853 : vector<1x32xf32>
    %855 = math.tanh %854 : vector<1x32xf32>
    %cst_173 = arith.constant 1.000000e+00 : f32
    %856 = vector.broadcast %cst_173 : f32 to vector<1x32xf32>
    %857 = arith.subf %856, %850 : vector<1x32xf32>
    %858 = arith.mulf %857, %855 : vector<1x32xf32>
    %859 = arith.mulf %850, %780 : vector<1x32xf32>
    %860 = arith.addf %858, %859 : vector<1x32xf32>
    %861 = vector.broadcast %860 : vector<1x32xf32> to vector<8x32xf32>
    %862 = arith.mulf %571, %861 : vector<8x32xf32>
    %cst_174 = arith.constant dense<0.000000e+00> : vector<8xf32>
    %863 = vector.multi_reduction <add>, %862, %cst_174 [1] : vector<8x32xf32> to vector<8xf32>
    %864 = vector.shape_cast %863 : vector<8xf32> to vector<8x1xf32>
    %cst_175 = arith.constant dense<0xFF800000> : vector<1xf32>
    %865 = vector.multi_reduction <maximumf>, %864, %cst_175 [0] : vector<8x1xf32> to vector<1xf32>
    %866 = vector.shape_cast %865 : vector<1xf32> to vector<1x1xf32>
    %867 = vector.broadcast %866 : vector<1x1xf32> to vector<8x1xf32>
    %868 = arith.subf %864, %867 : vector<8x1xf32>
    %869 = math.exp %868 : vector<8x1xf32>
    %cst_176 = arith.constant dense<0.000000e+00> : vector<1xf32>
    %870 = vector.multi_reduction <add>, %869, %cst_176 [0] : vector<8x1xf32> to vector<1xf32>
    %871 = vector.shape_cast %870 : vector<1xf32> to vector<1x1xf32>
    %872 = vector.broadcast %871 : vector<1x1xf32> to vector<8x1xf32>
    %873 = arith.divf %869, %872 : vector<8x1xf32>
    %874 = vector.broadcast %873 : vector<8x1xf32> to vector<8x32xf32>
    %875 = arith.mulf %874, %581 : vector<8x32xf32>
    %cst_177 = arith.constant dense<0.000000e+00> : vector<32xf32>
    %876 = vector.multi_reduction <add>, %875, %cst_177 [0] : vector<8x32xf32> to vector<32xf32>
    %877 = vector.shape_cast %876 : vector<32xf32> to vector<1x32xf32>
    %cst_178 = arith.constant dense<0.000000e+00> : vector<1x32xf32>
    %878 = tpu.matmul %860, %576, %cst_178 {dimension_numbers = #tpu.dot_dimension_numbers<[1], [0], [0], [1], [0, 0, 1, 1], [], []>} : vector<1x32xf32>, vector<32x32xf32>, vector<1x32xf32> -> vector<1x32xf32>
    %879 = arith.addf %878, %877 : vector<1x32xf32>
    %880 = arith.addf %879, %577 : vector<1x32xf32>
    %881 = math.tanh %880 : vector<1x32xf32>
    %cst_179 = arith.constant dense<0.000000e+00> : vector<1x64xf32>
    %882 = tpu.matmul %881, %578, %cst_179 {dimension_numbers = #tpu.dot_dimension_numbers<[1], [0], [0], [1], [0, 0, 1, 1], [], []>} : vector<1x32xf32>, vector<32x64xf32>, vector<1x64xf32> -> vector<1x64xf32>
    %883 = arith.addf %882, %579 : vector<1x64xf32>
    %cst_180 = arith.constant dense<0xFF800000> : vector<1xf32>
    %884 = vector.multi_reduction <maximumf>, %883, %cst_180 [1] : vector<1x64xf32> to vector<1xf32>
    %885 = vector.shape_cast %884 : vector<1xf32> to vector<1x1xf32>
    %886 = vector.broadcast %885 : vector<1x1xf32> to vector<1x64xf32>
    %887 = arith.cmpf oge, %883, %886 : vector<1x64xf32>
    %c64_i32_181 = arith.constant 64 : i32
    %888 = vector.broadcast %c64_i32_181 : i32 to vector<1x64xi32>
    %889 = arith.select %887, %582, %888 : vector<1x64xi1>, vector<1x64xi32>
    %cst_182 = arith.constant dense<2147483647> : vector<1xi32>
    %890 = vector.multi_reduction <minsi>, %889, %cst_182 [1] : vector<1x64xi32> to vector<1xi32>
    %891 = vector.shape_cast %890 : vector<1xi32> to vector<1x1xi32>
    %892 = vector.broadcast %885 : vector<1x1xf32> to vector<1x64xf32>
    %893 = arith.subf %883, %892 : vector<1x64xf32>
    %894 = math.exp %893 : vector<1x64xf32>
    %cst_183 = arith.constant dense<0.000000e+00> : vector<1xf32>
    %895 = vector.multi_reduction <add>, %894, %cst_183 [1] : vector<1x64xf32> to vector<1xf32>
    %896 = vector.shape_cast %895 : vector<1xf32> to vector<1x1xf32>
    %cst_184 = arith.constant 1.000000e+00 : f32
    %897 = vector.broadcast %cst_184 : f32 to vector<1x1xf32>
    %898 = arith.divf %897, %896 : vector<1x1xf32>
    %c3_i32_185 = arith.constant 3 : i32
    %899 = vector.broadcast %c3_i32_185 : i32 to vector<1x128xi32>
    %900 = arith.cmpi eq, %583, %899 : vector<1x128xi32>
    %901 = vector.shape_cast %891 : vector<1x1xi32> to vector<1x1xi32>
    %902 = vector.broadcast %901 : vector<1x1xi32> to vector<1x128xi32>
    %903 = arith.select %900, %902, %823 : vector<1x128xi1>, vector<1x128xi32>
    %904 = vector.shape_cast %898 : vector<1x1xf32> to vector<1x1xf32>
    %905 = vector.broadcast %904 : vector<1x1xf32> to vector<1x128xf32>
    %906 = arith.select %900, %905, %826 : vector<1x128xi1>, vector<1x128xf32>
    %907 = vector.broadcast %891 : vector<1x1xi32> to vector<1x64xi32>
    %908 = arith.cmpi eq, %907, %582 : vector<1x64xi32>
    %909 = arith.extui %908 : vector<1x64xi1> to vector<1x64xi32>
    %910 = arith.sitofp %909 : vector<1x64xi32> to vector<1x64xf32>
    %cst_186 = arith.constant dense<0.000000e+00> : vector<1x384xf32>
    %911 = tpu.matmul %910, %572, %cst_186 {dimension_numbers = #tpu.dot_dimension_numbers<[1], [0], [0], [1], [0, 0, 1, 1], [], []>} : vector<1x64xf32>, vector<64x384xf32>, vector<1x384xf32> -> vector<1x384xf32>
    %912 = arith.addf %911, %573 : vector<1x384xf32>
    %cst_187 = arith.constant dense<0.000000e+00> : vector<1x384xf32>
    %913 = tpu.matmul %860, %574, %cst_187 {dimension_numbers = #tpu.dot_dimension_numbers<[1], [0], [0], [1], [0, 0, 1, 1], [], []>} : vector<1x32xf32>, vector<32x384xf32>, vector<1x384xf32> -> vector<1x384xf32>
    %914 = arith.addf %913, %575 : vector<1x384xf32>
    %915 = vector.extract_strided_slice %912 {offsets = [0, 0], sizes = [1, 32], strides = [1, 1]} : vector<1x384xf32> to vector<1x32xf32>
    %916 = vector.extract_strided_slice %914 {offsets = [0, 0], sizes = [1, 32], strides = [1, 1]} : vector<1x384xf32> to vector<1x32xf32>
    %917 = arith.addf %915, %916 : vector<1x32xf32>
    %918 = arith.negf %917 : vector<1x32xf32>
    %919 = math.exp %918 : vector<1x32xf32>
    %cst_188 = arith.constant 1.000000e+00 : f32
    %920 = vector.broadcast %cst_188 : f32 to vector<1x32xf32>
    %921 = arith.addf %920, %919 : vector<1x32xf32>
    %922 = arith.divf %920, %921 : vector<1x32xf32>
    %923 = vector.extract_strided_slice %912 {offsets = [0, 128], sizes = [1, 32], strides = [1, 1]} : vector<1x384xf32> to vector<1x32xf32>
    %924 = vector.extract_strided_slice %914 {offsets = [0, 128], sizes = [1, 32], strides = [1, 1]} : vector<1x384xf32> to vector<1x32xf32>
    %925 = arith.addf %923, %924 : vector<1x32xf32>
    %926 = arith.negf %925 : vector<1x32xf32>
    %927 = math.exp %926 : vector<1x32xf32>
    %cst_189 = arith.constant 1.000000e+00 : f32
    %928 = vector.broadcast %cst_189 : f32 to vector<1x32xf32>
    %929 = arith.addf %928, %927 : vector<1x32xf32>
    %930 = arith.divf %928, %929 : vector<1x32xf32>
    %931 = vector.extract_strided_slice %912 {offsets = [0, 256], sizes = [1, 32], strides = [1, 1]} : vector<1x384xf32> to vector<1x32xf32>
    %932 = vector.extract_strided_slice %914 {offsets = [0, 256], sizes = [1, 32], strides = [1, 1]} : vector<1x384xf32> to vector<1x32xf32>
    %933 = arith.mulf %922, %932 : vector<1x32xf32>
    %934 = arith.addf %931, %933 : vector<1x32xf32>
    %935 = math.tanh %934 : vector<1x32xf32>
    %cst_190 = arith.constant 1.000000e+00 : f32
    %936 = vector.broadcast %cst_190 : f32 to vector<1x32xf32>
    %937 = arith.subf %936, %930 : vector<1x32xf32>
    %938 = arith.mulf %937, %935 : vector<1x32xf32>
    %939 = arith.mulf %930, %860 : vector<1x32xf32>
    %940 = arith.addf %938, %939 : vector<1x32xf32>
    %941 = vector.broadcast %940 : vector<1x32xf32> to vector<8x32xf32>
    %942 = arith.mulf %571, %941 : vector<8x32xf32>
    %cst_191 = arith.constant dense<0.000000e+00> : vector<8xf32>
    %943 = vector.multi_reduction <add>, %942, %cst_191 [1] : vector<8x32xf32> to vector<8xf32>
    %944 = vector.shape_cast %943 : vector<8xf32> to vector<8x1xf32>
    %cst_192 = arith.constant dense<0xFF800000> : vector<1xf32>
    %945 = vector.multi_reduction <maximumf>, %944, %cst_192 [0] : vector<8x1xf32> to vector<1xf32>
    %946 = vector.shape_cast %945 : vector<1xf32> to vector<1x1xf32>
    %947 = vector.broadcast %946 : vector<1x1xf32> to vector<8x1xf32>
    %948 = arith.subf %944, %947 : vector<8x1xf32>
    %949 = math.exp %948 : vector<8x1xf32>
    %cst_193 = arith.constant dense<0.000000e+00> : vector<1xf32>
    %950 = vector.multi_reduction <add>, %949, %cst_193 [0] : vector<8x1xf32> to vector<1xf32>
    %951 = vector.shape_cast %950 : vector<1xf32> to vector<1x1xf32>
    %952 = vector.broadcast %951 : vector<1x1xf32> to vector<8x1xf32>
    %953 = arith.divf %949, %952 : vector<8x1xf32>
    %954 = vector.broadcast %953 : vector<8x1xf32> to vector<8x32xf32>
    %955 = arith.mulf %954, %581 : vector<8x32xf32>
    %cst_194 = arith.constant dense<0.000000e+00> : vector<32xf32>
    %956 = vector.multi_reduction <add>, %955, %cst_194 [0] : vector<8x32xf32> to vector<32xf32>
    %957 = vector.shape_cast %956 : vector<32xf32> to vector<1x32xf32>
    %cst_195 = arith.constant dense<0.000000e+00> : vector<1x32xf32>
    %958 = tpu.matmul %940, %576, %cst_195 {dimension_numbers = #tpu.dot_dimension_numbers<[1], [0], [0], [1], [0, 0, 1, 1], [], []>} : vector<1x32xf32>, vector<32x32xf32>, vector<1x32xf32> -> vector<1x32xf32>
    %959 = arith.addf %958, %957 : vector<1x32xf32>
    %960 = arith.addf %959, %577 : vector<1x32xf32>
    %961 = math.tanh %960 : vector<1x32xf32>
    %cst_196 = arith.constant dense<0.000000e+00> : vector<1x64xf32>
    %962 = tpu.matmul %961, %578, %cst_196 {dimension_numbers = #tpu.dot_dimension_numbers<[1], [0], [0], [1], [0, 0, 1, 1], [], []>} : vector<1x32xf32>, vector<32x64xf32>, vector<1x64xf32> -> vector<1x64xf32>
    %963 = arith.addf %962, %579 : vector<1x64xf32>
    %cst_197 = arith.constant dense<0xFF800000> : vector<1xf32>
    %964 = vector.multi_reduction <maximumf>, %963, %cst_197 [1] : vector<1x64xf32> to vector<1xf32>
    %965 = vector.shape_cast %964 : vector<1xf32> to vector<1x1xf32>
    %966 = vector.broadcast %965 : vector<1x1xf32> to vector<1x64xf32>
    %967 = arith.cmpf oge, %963, %966 : vector<1x64xf32>
    %c64_i32_198 = arith.constant 64 : i32
    %968 = vector.broadcast %c64_i32_198 : i32 to vector<1x64xi32>
    %969 = arith.select %967, %582, %968 : vector<1x64xi1>, vector<1x64xi32>
    %cst_199 = arith.constant dense<2147483647> : vector<1xi32>
    %970 = vector.multi_reduction <minsi>, %969, %cst_199 [1] : vector<1x64xi32> to vector<1xi32>
    %971 = vector.shape_cast %970 : vector<1xi32> to vector<1x1xi32>
    %972 = vector.broadcast %965 : vector<1x1xf32> to vector<1x64xf32>
    %973 = arith.subf %963, %972 : vector<1x64xf32>
    %974 = math.exp %973 : vector<1x64xf32>
    %cst_200 = arith.constant dense<0.000000e+00> : vector<1xf32>
    %975 = vector.multi_reduction <add>, %974, %cst_200 [1] : vector<1x64xf32> to vector<1xf32>
    %976 = vector.shape_cast %975 : vector<1xf32> to vector<1x1xf32>
    %cst_201 = arith.constant 1.000000e+00 : f32
    %977 = vector.broadcast %cst_201 : f32 to vector<1x1xf32>
    %978 = arith.divf %977, %976 : vector<1x1xf32>
    %c4_i32_202 = arith.constant 4 : i32
    %979 = vector.broadcast %c4_i32_202 : i32 to vector<1x128xi32>
    %980 = arith.cmpi eq, %583, %979 : vector<1x128xi32>
    %981 = vector.shape_cast %971 : vector<1x1xi32> to vector<1x1xi32>
    %982 = vector.broadcast %981 : vector<1x1xi32> to vector<1x128xi32>
    %983 = arith.select %980, %982, %903 : vector<1x128xi1>, vector<1x128xi32>
    %984 = vector.shape_cast %978 : vector<1x1xf32> to vector<1x1xf32>
    %985 = vector.broadcast %984 : vector<1x1xf32> to vector<1x128xf32>
    %986 = arith.select %980, %985, %906 : vector<1x128xi1>, vector<1x128xf32>
    %987 = vector.broadcast %971 : vector<1x1xi32> to vector<1x64xi32>
    %988 = arith.cmpi eq, %987, %582 : vector<1x64xi32>
    %989 = arith.extui %988 : vector<1x64xi1> to vector<1x64xi32>
    %990 = arith.sitofp %989 : vector<1x64xi32> to vector<1x64xf32>
    %cst_203 = arith.constant dense<0.000000e+00> : vector<1x384xf32>
    %991 = tpu.matmul %990, %572, %cst_203 {dimension_numbers = #tpu.dot_dimension_numbers<[1], [0], [0], [1], [0, 0, 1, 1], [], []>} : vector<1x64xf32>, vector<64x384xf32>, vector<1x384xf32> -> vector<1x384xf32>
    %992 = arith.addf %991, %573 : vector<1x384xf32>
    %cst_204 = arith.constant dense<0.000000e+00> : vector<1x384xf32>
    %993 = tpu.matmul %940, %574, %cst_204 {dimension_numbers = #tpu.dot_dimension_numbers<[1], [0], [0], [1], [0, 0, 1, 1], [], []>} : vector<1x32xf32>, vector<32x384xf32>, vector<1x384xf32> -> vector<1x384xf32>
    %994 = arith.addf %993, %575 : vector<1x384xf32>
    %995 = vector.extract_strided_slice %992 {offsets = [0, 0], sizes = [1, 32], strides = [1, 1]} : vector<1x384xf32> to vector<1x32xf32>
    %996 = vector.extract_strided_slice %994 {offsets = [0, 0], sizes = [1, 32], strides = [1, 1]} : vector<1x384xf32> to vector<1x32xf32>
    %997 = arith.addf %995, %996 : vector<1x32xf32>
    %998 = arith.negf %997 : vector<1x32xf32>
    %999 = math.exp %998 : vector<1x32xf32>
    %cst_205 = arith.constant 1.000000e+00 : f32
    %1000 = vector.broadcast %cst_205 : f32 to vector<1x32xf32>
    %1001 = arith.addf %1000, %999 : vector<1x32xf32>
    %1002 = arith.divf %1000, %1001 : vector<1x32xf32>
    %1003 = vector.extract_strided_slice %992 {offsets = [0, 128], sizes = [1, 32], strides = [1, 1]} : vector<1x384xf32> to vector<1x32xf32>
    %1004 = vector.extract_strided_slice %994 {offsets = [0, 128], sizes = [1, 32], strides = [1, 1]} : vector<1x384xf32> to vector<1x32xf32>
    %1005 = arith.addf %1003, %1004 : vector<1x32xf32>
    %1006 = arith.negf %1005 : vector<1x32xf32>
    %1007 = math.exp %1006 : vector<1x32xf32>
    %cst_206 = arith.constant 1.000000e+00 : f32
    %1008 = vector.broadcast %cst_206 : f32 to vector<1x32xf32>
    %1009 = arith.addf %1008, %1007 : vector<1x32xf32>
    %1010 = arith.divf %1008, %1009 : vector<1x32xf32>
    %1011 = vector.extract_strided_slice %992 {offsets = [0, 256], sizes = [1, 32], strides = [1, 1]} : vector<1x384xf32> to vector<1x32xf32>
    %1012 = vector.extract_strided_slice %994 {offsets = [0, 256], sizes = [1, 32], strides = [1, 1]} : vector<1x384xf32> to vector<1x32xf32>
    %1013 = arith.mulf %1002, %1012 : vector<1x32xf32>
    %1014 = arith.addf %1011, %1013 : vector<1x32xf32>
    %1015 = math.tanh %1014 : vector<1x32xf32>
    %cst_207 = arith.constant 1.000000e+00 : f32
    %1016 = vector.broadcast %cst_207 : f32 to vector<1x32xf32>
    %1017 = arith.subf %1016, %1010 : vector<1x32xf32>
    %1018 = arith.mulf %1017, %1015 : vector<1x32xf32>
    %1019 = arith.mulf %1010, %940 : vector<1x32xf32>
    %1020 = arith.addf %1018, %1019 : vector<1x32xf32>
    %1021 = vector.broadcast %1020 : vector<1x32xf32> to vector<8x32xf32>
    %1022 = arith.mulf %571, %1021 : vector<8x32xf32>
    %cst_208 = arith.constant dense<0.000000e+00> : vector<8xf32>
    %1023 = vector.multi_reduction <add>, %1022, %cst_208 [1] : vector<8x32xf32> to vector<8xf32>
    %1024 = vector.shape_cast %1023 : vector<8xf32> to vector<8x1xf32>
    %cst_209 = arith.constant dense<0xFF800000> : vector<1xf32>
    %1025 = vector.multi_reduction <maximumf>, %1024, %cst_209 [0] : vector<8x1xf32> to vector<1xf32>
    %1026 = vector.shape_cast %1025 : vector<1xf32> to vector<1x1xf32>
    %1027 = vector.broadcast %1026 : vector<1x1xf32> to vector<8x1xf32>
    %1028 = arith.subf %1024, %1027 : vector<8x1xf32>
    %1029 = math.exp %1028 : vector<8x1xf32>
    %cst_210 = arith.constant dense<0.000000e+00> : vector<1xf32>
    %1030 = vector.multi_reduction <add>, %1029, %cst_210 [0] : vector<8x1xf32> to vector<1xf32>
    %1031 = vector.shape_cast %1030 : vector<1xf32> to vector<1x1xf32>
    %1032 = vector.broadcast %1031 : vector<1x1xf32> to vector<8x1xf32>
    %1033 = arith.divf %1029, %1032 : vector<8x1xf32>
    %1034 = vector.broadcast %1033 : vector<8x1xf32> to vector<8x32xf32>
    %1035 = arith.mulf %1034, %581 : vector<8x32xf32>
    %cst_211 = arith.constant dense<0.000000e+00> : vector<32xf32>
    %1036 = vector.multi_reduction <add>, %1035, %cst_211 [0] : vector<8x32xf32> to vector<32xf32>
    %1037 = vector.shape_cast %1036 : vector<32xf32> to vector<1x32xf32>
    %cst_212 = arith.constant dense<0.000000e+00> : vector<1x32xf32>
    %1038 = tpu.matmul %1020, %576, %cst_212 {dimension_numbers = #tpu.dot_dimension_numbers<[1], [0], [0], [1], [0, 0, 1, 1], [], []>} : vector<1x32xf32>, vector<32x32xf32>, vector<1x32xf32> -> vector<1x32xf32>
    %1039 = arith.addf %1038, %1037 : vector<1x32xf32>
    %1040 = arith.addf %1039, %577 : vector<1x32xf32>
    %1041 = math.tanh %1040 : vector<1x32xf32>
    %cst_213 = arith.constant dense<0.000000e+00> : vector<1x64xf32>
    %1042 = tpu.matmul %1041, %578, %cst_213 {dimension_numbers = #tpu.dot_dimension_numbers<[1], [0], [0], [1], [0, 0, 1, 1], [], []>} : vector<1x32xf32>, vector<32x64xf32>, vector<1x64xf32> -> vector<1x64xf32>
    %1043 = arith.addf %1042, %579 : vector<1x64xf32>
    %cst_214 = arith.constant dense<0xFF800000> : vector<1xf32>
    %1044 = vector.multi_reduction <maximumf>, %1043, %cst_214 [1] : vector<1x64xf32> to vector<1xf32>
    %1045 = vector.shape_cast %1044 : vector<1xf32> to vector<1x1xf32>
    %1046 = vector.broadcast %1045 : vector<1x1xf32> to vector<1x64xf32>
    %1047 = arith.cmpf oge, %1043, %1046 : vector<1x64xf32>
    %c64_i32_215 = arith.constant 64 : i32
    %1048 = vector.broadcast %c64_i32_215 : i32 to vector<1x64xi32>
    %1049 = arith.select %1047, %582, %1048 : vector<1x64xi1>, vector<1x64xi32>
    %cst_216 = arith.constant dense<2147483647> : vector<1xi32>
    %1050 = vector.multi_reduction <minsi>, %1049, %cst_216 [1] : vector<1x64xi32> to vector<1xi32>
    %1051 = vector.shape_cast %1050 : vector<1xi32> to vector<1x1xi32>
    %1052 = vector.broadcast %1045 : vector<1x1xf32> to vector<1x64xf32>
    %1053 = arith.subf %1043, %1052 : vector<1x64xf32>
    %1054 = math.exp %1053 : vector<1x64xf32>
    %cst_217 = arith.constant dense<0.000000e+00> : vector<1xf32>
    %1055 = vector.multi_reduction <add>, %1054, %cst_217 [1] : vector<1x64xf32> to vector<1xf32>
    %1056 = vector.shape_cast %1055 : vector<1xf32> to vector<1x1xf32>
    %cst_218 = arith.constant 1.000000e+00 : f32
    %1057 = vector.broadcast %cst_218 : f32 to vector<1x1xf32>
    %1058 = arith.divf %1057, %1056 : vector<1x1xf32>
    %c5_i32_219 = arith.constant 5 : i32
    %1059 = vector.broadcast %c5_i32_219 : i32 to vector<1x128xi32>
    %1060 = arith.cmpi eq, %583, %1059 : vector<1x128xi32>
    %1061 = vector.shape_cast %1051 : vector<1x1xi32> to vector<1x1xi32>
    %1062 = vector.broadcast %1061 : vector<1x1xi32> to vector<1x128xi32>
    %1063 = arith.select %1060, %1062, %983 : vector<1x128xi1>, vector<1x128xi32>
    %1064 = vector.shape_cast %1058 : vector<1x1xf32> to vector<1x1xf32>
    %1065 = vector.broadcast %1064 : vector<1x1xf32> to vector<1x128xf32>
    %1066 = arith.select %1060, %1065, %986 : vector<1x128xi1>, vector<1x128xf32>
    %1067 = vector.broadcast %1051 : vector<1x1xi32> to vector<1x64xi32>
    %1068 = arith.cmpi eq, %1067, %582 : vector<1x64xi32>
    %1069 = arith.extui %1068 : vector<1x64xi1> to vector<1x64xi32>
    %1070 = arith.sitofp %1069 : vector<1x64xi32> to vector<1x64xf32>
    %cst_220 = arith.constant dense<0.000000e+00> : vector<1x384xf32>
    %1071 = tpu.matmul %1070, %572, %cst_220 {dimension_numbers = #tpu.dot_dimension_numbers<[1], [0], [0], [1], [0, 0, 1, 1], [], []>} : vector<1x64xf32>, vector<64x384xf32>, vector<1x384xf32> -> vector<1x384xf32>
    %1072 = arith.addf %1071, %573 : vector<1x384xf32>
    %cst_221 = arith.constant dense<0.000000e+00> : vector<1x384xf32>
    %1073 = tpu.matmul %1020, %574, %cst_221 {dimension_numbers = #tpu.dot_dimension_numbers<[1], [0], [0], [1], [0, 0, 1, 1], [], []>} : vector<1x32xf32>, vector<32x384xf32>, vector<1x384xf32> -> vector<1x384xf32>
    %1074 = arith.addf %1073, %575 : vector<1x384xf32>
    %1075 = vector.extract_strided_slice %1072 {offsets = [0, 0], sizes = [1, 32], strides = [1, 1]} : vector<1x384xf32> to vector<1x32xf32>
    %1076 = vector.extract_strided_slice %1074 {offsets = [0, 0], sizes = [1, 32], strides = [1, 1]} : vector<1x384xf32> to vector<1x32xf32>
    %1077 = arith.addf %1075, %1076 : vector<1x32xf32>
    %1078 = arith.negf %1077 : vector<1x32xf32>
    %1079 = math.exp %1078 : vector<1x32xf32>
    %cst_222 = arith.constant 1.000000e+00 : f32
    %1080 = vector.broadcast %cst_222 : f32 to vector<1x32xf32>
    %1081 = arith.addf %1080, %1079 : vector<1x32xf32>
    %1082 = arith.divf %1080, %1081 : vector<1x32xf32>
    %1083 = vector.extract_strided_slice %1072 {offsets = [0, 128], sizes = [1, 32], strides = [1, 1]} : vector<1x384xf32> to vector<1x32xf32>
    %1084 = vector.extract_strided_slice %1074 {offsets = [0, 128], sizes = [1, 32], strides = [1, 1]} : vector<1x384xf32> to vector<1x32xf32>
    %1085 = arith.addf %1083, %1084 : vector<1x32xf32>
    %1086 = arith.negf %1085 : vector<1x32xf32>
    %1087 = math.exp %1086 : vector<1x32xf32>
    %cst_223 = arith.constant 1.000000e+00 : f32
    %1088 = vector.broadcast %cst_223 : f32 to vector<1x32xf32>
    %1089 = arith.addf %1088, %1087 : vector<1x32xf32>
    %1090 = arith.divf %1088, %1089 : vector<1x32xf32>
    %1091 = vector.extract_strided_slice %1072 {offsets = [0, 256], sizes = [1, 32], strides = [1, 1]} : vector<1x384xf32> to vector<1x32xf32>
    %1092 = vector.extract_strided_slice %1074 {offsets = [0, 256], sizes = [1, 32], strides = [1, 1]} : vector<1x384xf32> to vector<1x32xf32>
    %1093 = arith.mulf %1082, %1092 : vector<1x32xf32>
    %1094 = arith.addf %1091, %1093 : vector<1x32xf32>
    %1095 = math.tanh %1094 : vector<1x32xf32>
    %cst_224 = arith.constant 1.000000e+00 : f32
    %1096 = vector.broadcast %cst_224 : f32 to vector<1x32xf32>
    %1097 = arith.subf %1096, %1090 : vector<1x32xf32>
    %1098 = arith.mulf %1097, %1095 : vector<1x32xf32>
    %1099 = arith.mulf %1090, %1020 : vector<1x32xf32>
    %1100 = arith.addf %1098, %1099 : vector<1x32xf32>
    %1101 = vector.broadcast %1100 : vector<1x32xf32> to vector<8x32xf32>
    %1102 = arith.mulf %571, %1101 : vector<8x32xf32>
    %cst_225 = arith.constant dense<0.000000e+00> : vector<8xf32>
    %1103 = vector.multi_reduction <add>, %1102, %cst_225 [1] : vector<8x32xf32> to vector<8xf32>
    %1104 = vector.shape_cast %1103 : vector<8xf32> to vector<8x1xf32>
    %cst_226 = arith.constant dense<0xFF800000> : vector<1xf32>
    %1105 = vector.multi_reduction <maximumf>, %1104, %cst_226 [0] : vector<8x1xf32> to vector<1xf32>
    %1106 = vector.shape_cast %1105 : vector<1xf32> to vector<1x1xf32>
    %1107 = vector.broadcast %1106 : vector<1x1xf32> to vector<8x1xf32>
    %1108 = arith.subf %1104, %1107 : vector<8x1xf32>
    %1109 = math.exp %1108 : vector<8x1xf32>
    %cst_227 = arith.constant dense<0.000000e+00> : vector<1xf32>
    %1110 = vector.multi_reduction <add>, %1109, %cst_227 [0] : vector<8x1xf32> to vector<1xf32>
    %1111 = vector.shape_cast %1110 : vector<1xf32> to vector<1x1xf32>
    %1112 = vector.broadcast %1111 : vector<1x1xf32> to vector<8x1xf32>
    %1113 = arith.divf %1109, %1112 : vector<8x1xf32>
    %1114 = vector.broadcast %1113 : vector<8x1xf32> to vector<8x32xf32>
    %1115 = arith.mulf %1114, %581 : vector<8x32xf32>
    %cst_228 = arith.constant dense<0.000000e+00> : vector<32xf32>
    %1116 = vector.multi_reduction <add>, %1115, %cst_228 [0] : vector<8x32xf32> to vector<32xf32>
    %1117 = vector.shape_cast %1116 : vector<32xf32> to vector<1x32xf32>
    %cst_229 = arith.constant dense<0.000000e+00> : vector<1x32xf32>
    %1118 = tpu.matmul %1100, %576, %cst_229 {dimension_numbers = #tpu.dot_dimension_numbers<[1], [0], [0], [1], [0, 0, 1, 1], [], []>} : vector<1x32xf32>, vector<32x32xf32>, vector<1x32xf32> -> vector<1x32xf32>
    %1119 = arith.addf %1118, %1117 : vector<1x32xf32>
    %1120 = arith.addf %1119, %577 : vector<1x32xf32>
    %1121 = math.tanh %1120 : vector<1x32xf32>
    %cst_230 = arith.constant dense<0.000000e+00> : vector<1x64xf32>
    %1122 = tpu.matmul %1121, %578, %cst_230 {dimension_numbers = #tpu.dot_dimension_numbers<[1], [0], [0], [1], [0, 0, 1, 1], [], []>} : vector<1x32xf32>, vector<32x64xf32>, vector<1x64xf32> -> vector<1x64xf32>
    %1123 = arith.addf %1122, %579 : vector<1x64xf32>
    %cst_231 = arith.constant dense<0xFF800000> : vector<1xf32>
    %1124 = vector.multi_reduction <maximumf>, %1123, %cst_231 [1] : vector<1x64xf32> to vector<1xf32>
    %1125 = vector.shape_cast %1124 : vector<1xf32> to vector<1x1xf32>
    %1126 = vector.broadcast %1125 : vector<1x1xf32> to vector<1x64xf32>
    %1127 = arith.cmpf oge, %1123, %1126 : vector<1x64xf32>
    %c64_i32_232 = arith.constant 64 : i32
    %1128 = vector.broadcast %c64_i32_232 : i32 to vector<1x64xi32>
    %1129 = arith.select %1127, %582, %1128 : vector<1x64xi1>, vector<1x64xi32>
    %cst_233 = arith.constant dense<2147483647> : vector<1xi32>
    %1130 = vector.multi_reduction <minsi>, %1129, %cst_233 [1] : vector<1x64xi32> to vector<1xi32>
    %1131 = vector.shape_cast %1130 : vector<1xi32> to vector<1x1xi32>
    %1132 = vector.broadcast %1125 : vector<1x1xf32> to vector<1x64xf32>
    %1133 = arith.subf %1123, %1132 : vector<1x64xf32>
    %1134 = math.exp %1133 : vector<1x64xf32>
    %cst_234 = arith.constant dense<0.000000e+00> : vector<1xf32>
    %1135 = vector.multi_reduction <add>, %1134, %cst_234 [1] : vector<1x64xf32> to vector<1xf32>
    %1136 = vector.shape_cast %1135 : vector<1xf32> to vector<1x1xf32>
    %cst_235 = arith.constant 1.000000e+00 : f32
    %1137 = vector.broadcast %cst_235 : f32 to vector<1x1xf32>
    %1138 = arith.divf %1137, %1136 : vector<1x1xf32>
    %c6_i32_236 = arith.constant 6 : i32
    %1139 = vector.broadcast %c6_i32_236 : i32 to vector<1x128xi32>
    %1140 = arith.cmpi eq, %583, %1139 : vector<1x128xi32>
    %1141 = vector.shape_cast %1131 : vector<1x1xi32> to vector<1x1xi32>
    %1142 = vector.broadcast %1141 : vector<1x1xi32> to vector<1x128xi32>
    %1143 = arith.select %1140, %1142, %1063 : vector<1x128xi1>, vector<1x128xi32>
    %1144 = vector.shape_cast %1138 : vector<1x1xf32> to vector<1x1xf32>
    %1145 = vector.broadcast %1144 : vector<1x1xf32> to vector<1x128xf32>
    %1146 = arith.select %1140, %1145, %1066 : vector<1x128xi1>, vector<1x128xf32>
    %1147 = vector.broadcast %1131 : vector<1x1xi32> to vector<1x64xi32>
    %1148 = arith.cmpi eq, %1147, %582 : vector<1x64xi32>
    %1149 = arith.extui %1148 : vector<1x64xi1> to vector<1x64xi32>
    %1150 = arith.sitofp %1149 : vector<1x64xi32> to vector<1x64xf32>
    %cst_237 = arith.constant dense<0.000000e+00> : vector<1x384xf32>
    %1151 = tpu.matmul %1150, %572, %cst_237 {dimension_numbers = #tpu.dot_dimension_numbers<[1], [0], [0], [1], [0, 0, 1, 1], [], []>} : vector<1x64xf32>, vector<64x384xf32>, vector<1x384xf32> -> vector<1x384xf32>
    %1152 = arith.addf %1151, %573 : vector<1x384xf32>
    %cst_238 = arith.constant dense<0.000000e+00> : vector<1x384xf32>
    %1153 = tpu.matmul %1100, %574, %cst_238 {dimension_numbers = #tpu.dot_dimension_numbers<[1], [0], [0], [1], [0, 0, 1, 1], [], []>} : vector<1x32xf32>, vector<32x384xf32>, vector<1x384xf32> -> vector<1x384xf32>
    %1154 = arith.addf %1153, %575 : vector<1x384xf32>
    %1155 = vector.extract_strided_slice %1152 {offsets = [0, 0], sizes = [1, 32], strides = [1, 1]} : vector<1x384xf32> to vector<1x32xf32>
    %1156 = vector.extract_strided_slice %1154 {offsets = [0, 0], sizes = [1, 32], strides = [1, 1]} : vector<1x384xf32> to vector<1x32xf32>
    %1157 = arith.addf %1155, %1156 : vector<1x32xf32>
    %1158 = arith.negf %1157 : vector<1x32xf32>
    %1159 = math.exp %1158 : vector<1x32xf32>
    %cst_239 = arith.constant 1.000000e+00 : f32
    %1160 = vector.broadcast %cst_239 : f32 to vector<1x32xf32>
    %1161 = arith.addf %1160, %1159 : vector<1x32xf32>
    %1162 = arith.divf %1160, %1161 : vector<1x32xf32>
    %1163 = vector.extract_strided_slice %1152 {offsets = [0, 128], sizes = [1, 32], strides = [1, 1]} : vector<1x384xf32> to vector<1x32xf32>
    %1164 = vector.extract_strided_slice %1154 {offsets = [0, 128], sizes = [1, 32], strides = [1, 1]} : vector<1x384xf32> to vector<1x32xf32>
    %1165 = arith.addf %1163, %1164 : vector<1x32xf32>
    %1166 = arith.negf %1165 : vector<1x32xf32>
    %1167 = math.exp %1166 : vector<1x32xf32>
    %cst_240 = arith.constant 1.000000e+00 : f32
    %1168 = vector.broadcast %cst_240 : f32 to vector<1x32xf32>
    %1169 = arith.addf %1168, %1167 : vector<1x32xf32>
    %1170 = arith.divf %1168, %1169 : vector<1x32xf32>
    %1171 = vector.extract_strided_slice %1152 {offsets = [0, 256], sizes = [1, 32], strides = [1, 1]} : vector<1x384xf32> to vector<1x32xf32>
    %1172 = vector.extract_strided_slice %1154 {offsets = [0, 256], sizes = [1, 32], strides = [1, 1]} : vector<1x384xf32> to vector<1x32xf32>
    %1173 = arith.mulf %1162, %1172 : vector<1x32xf32>
    %1174 = arith.addf %1171, %1173 : vector<1x32xf32>
    %1175 = math.tanh %1174 : vector<1x32xf32>
    %cst_241 = arith.constant 1.000000e+00 : f32
    %1176 = vector.broadcast %cst_241 : f32 to vector<1x32xf32>
    %1177 = arith.subf %1176, %1170 : vector<1x32xf32>
    %1178 = arith.mulf %1177, %1175 : vector<1x32xf32>
    %1179 = arith.mulf %1170, %1100 : vector<1x32xf32>
    %1180 = arith.addf %1178, %1179 : vector<1x32xf32>
    %1181 = vector.broadcast %1180 : vector<1x32xf32> to vector<8x32xf32>
    %1182 = arith.mulf %571, %1181 : vector<8x32xf32>
    %cst_242 = arith.constant dense<0.000000e+00> : vector<8xf32>
    %1183 = vector.multi_reduction <add>, %1182, %cst_242 [1] : vector<8x32xf32> to vector<8xf32>
    %1184 = vector.shape_cast %1183 : vector<8xf32> to vector<8x1xf32>
    %cst_243 = arith.constant dense<0xFF800000> : vector<1xf32>
    %1185 = vector.multi_reduction <maximumf>, %1184, %cst_243 [0] : vector<8x1xf32> to vector<1xf32>
    %1186 = vector.shape_cast %1185 : vector<1xf32> to vector<1x1xf32>
    %1187 = vector.broadcast %1186 : vector<1x1xf32> to vector<8x1xf32>
    %1188 = arith.subf %1184, %1187 : vector<8x1xf32>
    %1189 = math.exp %1188 : vector<8x1xf32>
    %cst_244 = arith.constant dense<0.000000e+00> : vector<1xf32>
    %1190 = vector.multi_reduction <add>, %1189, %cst_244 [0] : vector<8x1xf32> to vector<1xf32>
    %1191 = vector.shape_cast %1190 : vector<1xf32> to vector<1x1xf32>
    %1192 = vector.broadcast %1191 : vector<1x1xf32> to vector<8x1xf32>
    %1193 = arith.divf %1189, %1192 : vector<8x1xf32>
    %1194 = vector.broadcast %1193 : vector<8x1xf32> to vector<8x32xf32>
    %1195 = arith.mulf %1194, %581 : vector<8x32xf32>
    %cst_245 = arith.constant dense<0.000000e+00> : vector<32xf32>
    %1196 = vector.multi_reduction <add>, %1195, %cst_245 [0] : vector<8x32xf32> to vector<32xf32>
    %1197 = vector.shape_cast %1196 : vector<32xf32> to vector<1x32xf32>
    %cst_246 = arith.constant dense<0.000000e+00> : vector<1x32xf32>
    %1198 = tpu.matmul %1180, %576, %cst_246 {dimension_numbers = #tpu.dot_dimension_numbers<[1], [0], [0], [1], [0, 0, 1, 1], [], []>} : vector<1x32xf32>, vector<32x32xf32>, vector<1x32xf32> -> vector<1x32xf32>
    %1199 = arith.addf %1198, %1197 : vector<1x32xf32>
    %1200 = arith.addf %1199, %577 : vector<1x32xf32>
    %1201 = math.tanh %1200 : vector<1x32xf32>
    %cst_247 = arith.constant dense<0.000000e+00> : vector<1x64xf32>
    %1202 = tpu.matmul %1201, %578, %cst_247 {dimension_numbers = #tpu.dot_dimension_numbers<[1], [0], [0], [1], [0, 0, 1, 1], [], []>} : vector<1x32xf32>, vector<32x64xf32>, vector<1x64xf32> -> vector<1x64xf32>
    %1203 = arith.addf %1202, %579 : vector<1x64xf32>
    %cst_248 = arith.constant dense<0xFF800000> : vector<1xf32>
    %1204 = vector.multi_reduction <maximumf>, %1203, %cst_248 [1] : vector<1x64xf32> to vector<1xf32>
    %1205 = vector.shape_cast %1204 : vector<1xf32> to vector<1x1xf32>
    %1206 = vector.broadcast %1205 : vector<1x1xf32> to vector<1x64xf32>
    %1207 = arith.cmpf oge, %1203, %1206 : vector<1x64xf32>
    %c64_i32_249 = arith.constant 64 : i32
    %1208 = vector.broadcast %c64_i32_249 : i32 to vector<1x64xi32>
    %1209 = arith.select %1207, %582, %1208 : vector<1x64xi1>, vector<1x64xi32>
    %cst_250 = arith.constant dense<2147483647> : vector<1xi32>
    %1210 = vector.multi_reduction <minsi>, %1209, %cst_250 [1] : vector<1x64xi32> to vector<1xi32>
    %1211 = vector.shape_cast %1210 : vector<1xi32> to vector<1x1xi32>
    %1212 = vector.broadcast %1205 : vector<1x1xf32> to vector<1x64xf32>
    %1213 = arith.subf %1203, %1212 : vector<1x64xf32>
    %1214 = math.exp %1213 : vector<1x64xf32>
    %cst_251 = arith.constant dense<0.000000e+00> : vector<1xf32>
    %1215 = vector.multi_reduction <add>, %1214, %cst_251 [1] : vector<1x64xf32> to vector<1xf32>
    %1216 = vector.shape_cast %1215 : vector<1xf32> to vector<1x1xf32>
    %cst_252 = arith.constant 1.000000e+00 : f32
    %1217 = vector.broadcast %cst_252 : f32 to vector<1x1xf32>
    %1218 = arith.divf %1217, %1216 : vector<1x1xf32>
    %c7_i32_253 = arith.constant 7 : i32
    %1219 = vector.broadcast %c7_i32_253 : i32 to vector<1x128xi32>
    %1220 = arith.cmpi eq, %583, %1219 : vector<1x128xi32>
    %1221 = vector.shape_cast %1211 : vector<1x1xi32> to vector<1x1xi32>
    %1222 = vector.broadcast %1221 : vector<1x1xi32> to vector<1x128xi32>
    %1223 = arith.select %1220, %1222, %1143 : vector<1x128xi1>, vector<1x128xi32>
    %1224 = vector.shape_cast %1218 : vector<1x1xf32> to vector<1x1xf32>
    %1225 = vector.broadcast %1224 : vector<1x1xf32> to vector<1x128xf32>
    %1226 = arith.select %1220, %1225, %1146 : vector<1x128xi1>, vector<1x128xf32>
    %c0_254 = arith.constant 0 : index
    %c0_255 = arith.constant 0 : index
    %1227 = vector.load %arg19[%c0_254, %c0_255] : memref<1x128xi32, #tpu.memory_space<vmem>>, vector<1x128xi32>
    tpu.vector_store %arg19[%c0_254, %c0_255], %1223 {strides = array<i32>} : memref<1x128xi32, #tpu.memory_space<vmem>>, vector<1x128xi32>,
    %c0_256 = arith.constant 0 : index
    %c0_257 = arith.constant 0 : index
    %1228 = vector.load %arg20[%c0_256, %c0_257] : memref<1x128xf32, #tpu.memory_space<vmem>>, vector<1x128xf32>
    tpu.vector_store %arg20[%c0_256, %c0_257], %1226 {strides = array<i32>} : memref<1x128xf32, #tpu.memory_space<vmem>>, vector<1x128xf32>,
    return
  }
}

</mosaic_0001>

<bundles_post_ra>
// kernel: greedy_search_decode.1
= control target key start
LH: loop header
LB: loop body
LE: loop exit
PB: predicated region body
PF: predicated region fallthrough
CT: control target
= control target key end

     0   :  { %s8053_s0 = inlined_call_operand.vmem [shape: s32[8,1], index: 0, kind: input, shape index: {}]   ;;  %s8054_s1 = inlined_call_operand.vmem [shape: f32[64,32], index: 1, kind: input, shape index: {}]   ;;  %s8055_s2 = inlined_call_operand.vmem [shape: f32[32,384], index: 2, kind: input, shape index: {}]   ;;  %s8056_s3 = inlined_call_operand.hbm [shape: f32[32,384], index: 3, kind: input, shape index: {}]   ;;  %s8057_s4 = inlined_call_operand.vmem [shape: f32[1,384], index: 4, kind: input, shape index: {}]   ;;  %s8058_s5 = inlined_call_operand.vmem [shape: f32[1,384], index: 5, kind: input, shape index: {}]   ;;  %s8059_s6 = inlined_call_operand.hbm [shape: f32[32,384], index: 6, kind: input, shape index: {}]   ;;  %s8060_s7 = inlined_call_operand.hbm [shape: f32[32,384], index: 7, kind: input, shape index: {}]   ;;  %s8061_s8 = inlined_call_operand.vmem [shape: f32[1,384], index: 8, kind: input, shape index: {}]   ;;  %s8062_s9 = inlined_call_operand.vmem [shape: f32[1,384], index: 9, kind: input, shape index: {}]   ;;  %s8063_s10 = inlined_call_operand.hbm [shape: f32[64,384], index: 10, kind: input, shape index: {}]   ;;  %s8064_s11 = inlined_call_operand.hbm [shape: f32[32,384], index: 11, kind: input, shape index: {}]   ;;  %s8065_s12 = inlined_call_operand.hbm [shape: f32[1,384], index: 12, kind: input, shape index: {}]   ;;  %s8066_s13 = inlined_call_operand.hbm [shape: f32[1,384], index: 13, kind: input, shape index: {}]   ;;  %s8067_s14 = inlined_call_operand.hbm [shape: f32[32,32], index: 14, kind: input, shape index: {}]   ;;  %s8068_s15 = inlined_call_operand.hbm [shape: f32[32,32], index: 15, kind: input, shape index: {}]   ;;  %s8069_s16 = inlined_call_operand.hbm [shape: f32[1,32], index: 16, kind: input, shape index: {}]   ;;  %s8070_s17 = inlined_call_operand.hbm [shape: f32[32,64], index: 17, kind: input, shape index: {}]   ;;  %s8071_s18 = inlined_call_operand.hbm [shape: f32[1,64], index: 18, kind: input, shape index: {}]   ;;  %s8072_s19 = inlined_call_operand.vmem [shape: s32[1,128], index: 19, kind: output, shape index: {0}]   ;;  %s8073_s20 = inlined_call_operand.vmem [shape: f32[1,128], index: 20, kind: output, shape index: {1}]  }
   0x1   :  { %8125 = sst [smem:[#allocation47_spill]] %s8053_s0 }
   0x2   :  { %8126 = sst [smem:[#allocation48_spill]] %s8054_s1 }
   0x3   :  { %8127 = sst [smem:[#allocation49_spill]] %s8055_s2 }
   0x4   :  { %8128 = sst [smem:[#allocation50_spill]] %s8056_s3 }
   0x5   :  { %8129 = sst [smem:[#allocation51_spill]] %s8057_s4 }
   0x6   :  { %26 = vsyncpa [#allocation3], 0 }
   0x7   :  { %27 = vsyncpa [#allocation5], 0 }
   0x8   :  { %28 = vsyncpa [#allocation8], 0 }
   0x9   :  { %29 = vsyncpa [#allocation11], 0 }
   0xa   :  { %30 = vsyncpa [#allocation14], 0 }
   0xb   :  { %31 = vsyncpa [#allocation17], 0 }
   0xc   :  { %32 = vsyncpa [#allocation20], 0  ;;  %s60_s23 = sshll.u32 %s8059_s6, 4  ;;  %s5957_s24 = smov [#allocation4]   ;;  %s61_s23 = int_to_ptr.hbm [resolvable:$true] %s60_s23 }
   0xd   :  { %s62_s2 = sshll.u32 %s5957_s24, 4  ;;  %s90_s26 = sshll.u32 %s8063_s10, 4  ;;  %s63_s2 = int_to_ptr.vmem [resolvable:$true] %s62_s2  ;;  %s91_s26 = int_to_ptr.hbm [resolvable:$true] %s90_s26 }
   0xe   :  { %s5958_s27 = smov 384   ;;  %s5959_s28 = smov 24  }
   0xf   :  { %68 = dma.hbm_to_vmem [thread:$0]  %s61_s23, 1536, %s63_s2, [#allocation5], %s5958_s27, %s5958_s27, %s5959_s28  }
  0x10   :  { %s5960_s4 = smov [#allocation7]   ;;  %s117_s6 = sshll.u32 %s8065_s12, 4  ;;  %s118_s6 = int_to_ptr.hbm [resolvable:$true] %s117_s6 }
  0x11   :  { %s92_s29 = sshll.u32 %s5960_s4, 4  ;;  %s138_s1 = sshll.u32 %s8067_s14, 4  ;;  %s93_s29 = int_to_ptr.vmem [resolvable:$true] %s92_s29  ;;  %s139_s1 = int_to_ptr.hbm [resolvable:$true] %s138_s1 }
  0x12   :  { %98 = dma.hbm_to_vmem [thread:$0]  %s91_s26, 3072, %s93_s29, [#allocation8], %s5958_s27, %s5958_s27, %s5959_s28  }
  0x13   :  { %s5961_s22 = smov [#allocation10]   ;;  %s5962_s23 = smov [#allocation13]  }
  0x14   :  { %s119_s24 = sshll.u32 %s5961_s22, 4  ;;  %s140_s2 = sshll.u32 %s5962_s23, 4  ;;  %s120_s24 = int_to_ptr.vmem [resolvable:$true] %s119_s24  ;;  %s141_s2 = int_to_ptr.vmem [resolvable:$true] %s140_s2 }
  0x15   :  { %122 = dma.hbm_to_vmem [thread:$0]  %s118_s6, 48, %s120_s24, [#allocation11]  }
  0x16   :  { %s5963_s25 = smov 128   ;;  %s5964_s12 = smov 8  }
  0x17   :  { %146 = dma.hbm_to_vmem [thread:$0]  %s139_s1, 512, %s141_s2, [#allocation14], %s5963_s25, %s5963_s25, %s5964_s12  }
  0x18   :  { %s165_s4 = sshll.u32 %s8069_s16, 4  ;;  %s5965_s14 = smov [#allocation16]   ;;  %s166_s4 = int_to_ptr.hbm [resolvable:$true] %s165_s4 }
  0x19   :  { %s167_s29 = sshll.u32 %s5965_s14, 4  ;;  %s8130_s6 = sld [smem:[#allocation50_spill]]  ;;  %s168_s29 = int_to_ptr.vmem [resolvable:$true] %s167_s29 }
  0x1a   :  { %170 = dma.hbm_to_vmem [thread:$0]  %s166_s4, 16, %s168_s29, [#allocation17]  }
  0x1b   :  { %s5966_s21 = smov [#allocation2]   ;;  %s73_s1 = sshll.u32 %s8060_s7, 4  ;;  %s74_s1 = int_to_ptr.hbm [resolvable:$true] %s73_s1 }
  0x1c   :  { %s45_s22 = sshll.u32 %s5966_s21, 4  ;;  %s103_s3 = sshll.u32 %s8064_s11, 4  ;;  %s46_s22 = int_to_ptr.vmem [resolvable:$true] %s45_s22  ;;  %s104_s3 = int_to_ptr.hbm [resolvable:$true] %s103_s3 }
  0x1d   :  { %s5967_s26 = smov [#allocation6]   ;;  %s5968_s4 = smov [#allocation9]  }
  0x1e   :  { %s75_s14 = sshll.u32 %s5967_s26, 4  ;;  %s105_s7 = sshll.u32 %s5968_s4, 4  ;;  %s76_s14 = int_to_ptr.vmem [resolvable:$true] %s75_s14  ;;  %s106_s7 = int_to_ptr.vmem [resolvable:$true] %s105_s7 }
  0x1f   :  { %s43_s10 = sshll.u32 %s8130_s6, 4  ;;  %s128_s0 = sshll.u32 %s8066_s13, 4  ;;  %s44_s10 = int_to_ptr.hbm [resolvable:$true] %s43_s10  ;;  %s129_s0 = int_to_ptr.hbm [resolvable:$true] %s128_s0 }
  0x20   :  { %51 = dma.hbm_to_vmem [thread:$0]  %s44_s10, 1536, %s46_s22, [#allocation3], %s5958_s27, %s5958_s27, %s5959_s28  }
  0x21   :  { %81 = dma.hbm_to_vmem [thread:$0]  %s74_s1, 1536, %s76_s14, [#allocation5], %s5958_s27, %s5958_s27, %s5959_s28  }
  0x22   :  { %111 = dma.hbm_to_vmem [thread:$0]  %s104_s3, 1536, %s106_s7, [#allocation8], %s5958_s27, %s5958_s27, %s5959_s28  }
  0x23   :  { %s151_s10 = sshll.u32 %s8068_s15, 4  ;;  %s5969_s21 = smov [#allocation12]   ;;  %s152_s10 = int_to_ptr.hbm [resolvable:$true] %s151_s10 }
  0x24   :  { %s130_s22 = sshll.u32 %s5969_s21, 4  ;;  %s5970_s24 = smov [#allocation15]   ;;  %s131_s22 = int_to_ptr.vmem [resolvable:$true] %s130_s22 }
  0x25   :  { %133 = dma.hbm_to_vmem [thread:$0]  %s129_s0, 48, %s131_s22, [#allocation11]  }
  0x26   :  { %s153_s23 = sshll.u32 %s5970_s24, 4  ;;  %s175_s13 = sshll.u32 %s8070_s17, 4  ;;  %s154_s23 = int_to_ptr.vmem [resolvable:$true] %s153_s23  ;;  %s176_s13 = int_to_ptr.hbm [resolvable:$true] %s175_s13 }
  0x27   :  { %159 = dma.hbm_to_vmem [thread:$0]  %s152_s10, 512, %s154_s23, [#allocation14], %s5963_s25, %s5963_s25, %s5964_s12  }
  0x28   :  { %s189_s15 = sshll.u32 %s8071_s18, 4  ;;  %s5971_s2 = smov [#allocation18]   ;;  %s190_s15 = int_to_ptr.hbm [resolvable:$true] %s189_s15 }
  0x29   :  { %s177_s3 = sshll.u32 %s5971_s2, 4  ;;  %s5972_s26 = smov [#allocation19]   ;;  %s178_s3 = int_to_ptr.vmem [resolvable:$true] %s177_s3 }
  0x2a   :  { %183 = dma.hbm_to_vmem [thread:$0]  %s176_s13, 512, %s178_s3, [#allocation17], %s5963_s25, %s5963_s25, %s5964_s12  }
  0x2b   :  { %s191_s17 = sshll.u32 %s5972_s26, 4  ;;  %s192_s17 = int_to_ptr.vmem [resolvable:$true] %s191_s17 }
  0x2c   :  { %194 = dma.hbm_to_vmem [thread:$0]  %s190_s15, 16, %s192_s17, [#allocation20]  }
  0x2d   :  { %5943 = dma.done.wait [#allocation3], 1536  }
  0x2e   :  { %5944 = vsyncadd [#allocation3], 4294965760 }
  0x2f   :  { %5945 = dma.done.wait [#allocation5], 3072  }
  0x30   :  { %5946 = vsyncadd [#allocation5], 4294964224 }
  0x31   :  { %5947 = dma.done.wait [#allocation8], 4608  }
  0x32   :  { %5948 = vsyncadd [#allocation8], 4294962688 }
  0x33   :  { %5949 = dma.done.wait [#allocation11], 96  }
  0x34   :  { %5950 = vsyncadd [#allocation11], 4294967200 }
  0x35   :  { %5951 = dma.done.wait [#allocation14], 1024  }
  0x36   :  { %5952 = vsyncadd [#allocation14], 4294966272 }
  0x37   :  { %5953 = dma.done.wait [#allocation17], 528  }
  0x38   :  { %5954 = vsyncadd [#allocation17], 4294966768 }
  0x39   :  { %5955 = dma.done.wait [#allocation20], 16  }
  0x3a   :  { %5956 = vsyncadd [#allocation20], 4294967280  ;;  %v5973_v0 = vmov 0   ;;  %s8131_s12 = sld [smem:[#allocation47_spill]]  ;;  %v6176_v13 = vld [vmem:[#allocation2 + $0x48] sm:$0xff]  ;;  %v6188_v17 = vld [vmem:[#allocation2 + $0x30] sm:$0xff]  ;;  %v244_v22 = vlaneseq }
  0x3b   :  { %5218 = vset.pattern.permute.xlu0 %v5973_v0  ;;  %s8132_s7 = sld [smem:[#allocation48_spill]]  ;;  %v6199_v21 = vld [vmem:[#allocation2 + $0x18] sm:$0xff]  ;;  %vm260_vm0 = vcmask 523264   ;;  %v8076_v25 = vmov 0.0   ;;  %v6218_v30 = vld [vmem:[#allocation2] sm:$0xff]  ;;  %v377_v32 = vld [vmem:[#allocation4 + $0x48] sm:$0xff] }
  0x3c   :  { %s8133_s2 = sld [smem:[#allocation49_spill]]  ;;  %v6204_v23 = vand.u32 127, %v244_v22  ;;  %v379_v31 = vld [vmem:[#allocation4 + $0x58] sm:$0xff]  ;;  %v378_v33 = vld [vmem:[#allocation4 + $0x50] sm:$0xff]  ;;  %v376_v34 = vld [vmem:[#allocation4 + $0x40] sm:$0xff]  ;;  %vm304_vm2 = vcmask 261120  }
  0x3d   :  { %v374_v35 = vld [vmem:[#allocation4 + $0x30] sm:$0xff]  ;;  %v375_v36 = vld [vmem:[#allocation4 + $0x38] sm:$0xff]  ;;  %v373_v37 = vld [vmem:[#allocation4 + $0x28] sm:$0xff]  ;;  %s8135_s3 = sld [smem:[#allocation51_spill]] }
  0x3e   :  { %8134 = vst [vmem:[#allocation28_spill] sm:$0xff] %v6204_v23  ;;  %v371_v38 = vld [vmem:[#allocation4 + $0x18] sm:$0xff]  ;;  %v372_v39 = vld [vmem:[#allocation4 + $0x20] sm:$0xff]  ;;  %v6222_v40 = vld [vmem:[#allocation6 + $0x50] sm:$0xff] }
  0x3f   :  { %v370_v41 = vld [vmem:[#allocation4 + $0x10] sm:$0xff]  ;;  %v368_v42 = vld [vmem:[#allocation4] sm:$0xff]  ;;  %v6225_v43 = vld [vmem:[#allocation6 + $0x38] sm:$0xff] }
  0x40   :  { %v243_v1 = vld [vmem:[%s8131_s12] sm:$0xff]  ;;  %v369_v44 = vld [vmem:[#allocation4 + $0x8] sm:$0xff]  ;;  %v6235_v47 = vld [vmem:[#allocation2 + $0x58] sm:$0xff] }
  0x41   :  { %v259_v2 = vld [vmem:[%s8132_s7 + $0x38] sm:$0xff]  ;;  %v258_v3 = vld [vmem:[%s8132_s7 + $0x30] sm:$0xff]  ;;  %247 = vperm.xlu0 %5218, %v243_v1   ;;  %v257_v4 = vld [vmem:[%s8132_s7 + $0x28] sm:$0xff] }
  0x42   :  { %272 = vmatpush.msra.mxu0 %v259_v2  ;;  %v256_v5 = vld [vmem:[%s8132_s7 + $0x20] sm:$0xff]  ;;  %v255_v6 = vld [vmem:[%s8132_s7 + $0x18] sm:$0xff]  ;;  %v254_v7 = vld [vmem:[%s8132_s7 + $0x10] sm:$0xff] }
  0x43   :  { %v253_v8 = vld [vmem:[%s8132_s7 + $0x8] sm:$0xff]  ;;  %v252_v9 = vld [vmem:[%s8132_s7] sm:$0xff]  ;;  %v294_v11 = vld [vmem:[%s8133_s2 + $0x50] sm:$0xff] }
  0x44   :  { %273 = vmatpush.msra.mxu0 %v258_v3  ;;  %v293_v10 = vld [vmem:[%s8133_s2 + $0x48] sm:$0xff]  ;;  %v295_v12 = vld [vmem:[%s8133_s2 + $0x58] sm:$0xff]  ;;  %340 = vmatpush.msra.mxu2 %v294_v11  ;;  %v290_v14 = vld [vmem:[%s8133_s2 + $0x30] sm:$0xff] }
  0x45   :  { %320 = vmatpush.msra.mxu1 %v293_v10  ;;  %v291_v15 = vld [vmem:[%s8133_s2 + $0x38] sm:$0xff]  ;;  %360 = vmatpush.msra.mxu3 %v295_v12  ;;  %v292_v16 = vld [vmem:[%s8133_s2 + $0x40] sm:$0xff]  ;;  %v289_v20 = vld [vmem:[%s8133_s2 + $0x28] sm:$0xff] }
  0x46   :  { %274 = vmatpush.msra.mxu0 %v257_v4  ;;  %v287_v18 = vld [vmem:[%s8133_s2 + $0x18] sm:$0xff]  ;;  %341 = vmatpush.msra.mxu2 %v291_v15  ;;  %v288_v19 = vld [vmem:[%s8133_s2 + $0x20] sm:$0xff]  ;;  %v285_v28 = vld [vmem:[%s8133_s2 + $0x8] sm:$0xff] }
  0x47   :  { %321 = vmatpush.msra.mxu1 %v290_v14  ;;  %361 = vmatpush.msra.mxu3 %v292_v16  ;;  %v284_v27 = vld [vmem:[%s8133_s2] sm:$0xff]  ;;  %v286_v29 = vld [vmem:[%s8133_s2 + $0x10] sm:$0xff]  ;;  %v6231_v46 = vld [vmem:[#allocation6 + $0x8] sm:$0xff] }
  0x48   :  { %275 = vmatpush.msra.mxu0 %v256_v5  ;;  %342 = vmatpush.msra.mxu2 %v288_v19  ;;  %v6228_v45 = vld [vmem:[#allocation6 + $0x20] sm:$0xff]  ;;  %v6241_v49 = vld [vmem:[#allocation2 + $0x28] sm:$0xff]  ;;  %v6244_v50 = vld [vmem:[#allocation2 + $0x10] sm:$0xff] }
  0x49   :  { %322 = vmatpush.msra.mxu1 %v287_v18  ;;  %362 = vmatpush.msra.mxu3 %v289_v20  ;;  %v6238_v48 = vld [vmem:[#allocation2 + $0x40] sm:$0xff]  ;;  %v6250_v51 = vld [vmem:[#allocation2 + $0x50] sm:$0xff]  ;;  %v6252_v53 = vld [vmem:[#allocation6 + $0x48] sm:$0xff] }
  0x4a   :  { %276 = vmatpush.msra.mxu0 %v255_v6  ;;  %343 = vmatpush.msra.mxu2 %v285_v28  ;;  %v6257_v54 = vld [vmem:[#allocation2 + $0x38] sm:$0xff]  ;;  %v6261_v55 = vld [vmem:[#allocation6 + $0x30] sm:$0xff]  ;;  %v6264_v56 = vld [vmem:[#allocation2 + $0x20] sm:$0xff] }
  0x4b   :  { %323 = vmatpush.msra.mxu1 %v284_v27  ;;  %363 = vmatpush.msra.mxu3 %v286_v29  ;;  %v6268_v57 = vld [vmem:[#allocation6 + $0x18] sm:$0xff]  ;;  %v6271_v58 = vld [vmem:[#allocation2 + $0x8] sm:$0xff]  ;;  %v6277_v59 = vld [vmem:[#allocation6] sm:$0xff] }
  0x4c   :  { %277 = vmatpush.msra.mxu0 %v254_v7  ;;  %420 = vmatpush.msrb.mxu2 %v378_v33  ;;  %v6280_v60 = vld [vmem:[#allocation6 + $0x58] sm:$0xff]  ;;  %v6286_v61 = vld [vmem:[#allocation6 + $0x40] sm:$0xff]  ;;  %v6290_v62 = vld [vmem:[#allocation6 + $0x28] sm:$0xff] }
  0x4d   :  { %440 = vmatpush.msrb.mxu3 %v379_v31  ;;  %400 = vmatpush.msrb.mxu1 %v377_v32  ;;  %v6298_v63 = vld [vmem:[#allocation6 + $0x10] sm:$0xff]  ;;  %v460_v0 = vld [vmem:[%s8058_s5] sm:$0x7] }
  0x4e   :  { %278 = vmatpush.msra.mxu0 %v253_v8  ;;  %421 = vmatpush.msrb.mxu2 %v375_v36  ;;  %v6331_v1 = vld [vmem:[%s8135_s3] sm:$0x7]  ;;  %v6333_v2 = vperm.slane %v460_v0, 0  ;;  %v6356_v28 = vperm.slane %v460_v0, 1 }
  0x4f   :  { %441 = vmatpush.msrb.mxu3 %v376_v34  ;;  %401 = vmatpush.msrb.mxu1 %v374_v35  ;;  %v298_v4 = vperm.slane %v6331_v1, 0  ;;  %v6342_v8 = vld [vmem:[%s8062_s9] sm:$0x7] }
  0x50   :  { %279 = vmatpush.msra.mxu0 %v252_v9  ;;  %422 = vmatpush.msrb.mxu2 %v372_v39  ;;  %v6346_v11 = vperm.slane %v6342_v8, 1  ;;  %v6352_v19 = vld [vmem:[%s8061_s8] sm:$0x7]  ;;  %v6368_v39 = vperm.slane %v6342_v8, 0 }
  0x51   :  { %442 = vmatpush.msrb.mxu3 %v373_v37  ;;  %402 = vmatpush.msrb.mxu1 %v371_v38  ;;  %v383_v20 = vperm.slane %v6352_v19, 1 }
  0x52   :  { %498 = vmatpush.msrb.mxu0 %v6176_v13  ;;  %423 = vmatpush.msrb.mxu2 %v369_v44 }
  0x53   :  { %443 = vmatpush.msrb.mxu3 %v370_v41  ;;  %403 = vmatpush.msrb.mxu1 %v368_v42 }
  0x54   :  { %499 = vmatpush.msrb.mxu0 %v6188_v17 }
  0x56   :  { %500 = vmatpush.msrb.mxu0 %v6199_v21 }
  0x58   :  { %501 = vmatpush.msrb.mxu0 %v6218_v30 }
  0xb3   :  { %v248_v24 = vpop.permute.xlu0 %247 }
  0xb4   :  { %vm249_vm1 = vcmp.eq.s32.totalorder %v248_v24, %v6204_v23 }
  0xb5   :  { %v5029_v26 = vsel %vm249_vm1, 1.0, %v8076_v25 }
  0xb6   :  { %5030 = vmatmul.msk.f32.vlgmr.msra.gmra.mxu0 %vm260_vm0, %v5029_v26  ;;  %v299_v26 = vperm.slane %v6331_v1, 1 }
  0xb7   :  { %635 = vmatpush.msra.mxu0 %v6222_v40 }
  0xb9   :  { %636 = vmatpush.msra.mxu0 %v6225_v43 }
  0xbb   :  { %637 = vmatpush.msra.mxu0 %v6228_v45 }
  0xbd   :  { %638 = vmatpush.msra.mxu0 %v6231_v46 }
  0xbe   :  { %502 = vmatmul.f32.vlgmr.msrb.gmra.mxu0 %v8076_v25 }
  0xbf   :  { %777 = vmatpush.msrb.mxu0 %v6235_v47 }
  0xc1   :  { %778 = vmatpush.msrb.mxu0 %v6238_v48 }
  0xc3   :  { %779 = vmatpush.msrb.mxu0 %v6241_v49 }
  0xc5   :  { %780 = vmatpush.msrb.mxu0 %v6244_v50 }
  0xc6   :  { %639 = vmatmul.f32.vlgmr.msra.gmra.mxu0 %v8076_v25 }
  0xc7   :  { %987 = vmatpush.msra.mxu0 %v6176_v13 }
  0xc9   :  { %988 = vmatpush.msra.mxu0 %v6188_v17 }
  0xcb   :  { %989 = vmatpush.msra.mxu0 %v6199_v21 }
  0xcd   :  { %990 = vmatpush.msra.mxu0 %v6218_v30 }
 0x133   :  { %v281_v52 = vpop.f32.mrf.mxu0 }
 0x134   :  { %5031 = vmatmul.msk.f32.vlgmr.msra.gmra.mxu1 %vm304_vm2, %v281_v52  ;;  %5032 = vmatmul.msk.f32.vlgmr.msra.gmra.mxu2 %vm304_vm2, %v281_v52 }
 0x135   :  { %5033 = vmatmul.msk.f32.vlgmr.msra.gmra.mxu3 %vm304_vm2, %v281_v52  ;;  %518 = vmatpush.msra.mxu1 %v6250_v51 }
 0x136   :  { %615 = vmatpush.msra.mxu3 %v6252_v53  ;;  %538 = vmatpush.msra.mxu2 %v6235_v47 }
 0x137   :  { %519 = vmatpush.msra.mxu1 %v6257_v54 }
 0x138   :  { %616 = vmatpush.msra.mxu3 %v6261_v55  ;;  %539 = vmatpush.msra.mxu2 %v6238_v48 }
 0x139   :  { %520 = vmatpush.msra.mxu1 %v6264_v56 }
 0x13a   :  { %617 = vmatpush.msra.mxu3 %v6268_v57  ;;  %540 = vmatpush.msra.mxu2 %v6241_v49 }
 0x13b   :  { %521 = vmatpush.msra.mxu1 %v6271_v58  ;;  %v503_v3 = vpop.f32.mrf.mxu0 }
 0x13c   :  { %5034 = vmatmul.msk.f32.vlgmr.msrb.gmra.mxu1 %vm304_vm2, %v281_v52  ;;  %5035 = vmatmul.msk.f32.vlgmr.msrb.gmra.mxu2 %vm304_vm2, %v281_v52  ;;  %v504_v5 = vadd.f32 %v503_v3, %v6333_v2 }
 0x13d   :  { %5036 = vmatmul.msk.f32.vlgmr.msrb.gmra.mxu3 %vm304_vm2, %v281_v52  ;;  %541 = vmatpush.msra.mxu2 %v6244_v50  ;;  %v382_v52 = vperm.slane %v6352_v19, 0 }
 0x13e   :  { %618 = vmatpush.msra.mxu3 %v6277_v59  ;;  %655 = vmatpush.msrb.mxu1 %v6280_v60 }
 0x13f   :  { %737 = vmatpush.msrb.mxu2 %v6176_v13 }
 0x140   :  { %757 = vmatpush.msrb.mxu3 %v6250_v51  ;;  %656 = vmatpush.msrb.mxu1 %v6286_v61 }
 0x141   :  { %738 = vmatpush.msrb.mxu2 %v6188_v17 }
 0x142   :  { %758 = vmatpush.msrb.mxu3 %v6257_v54  ;;  %657 = vmatpush.msrb.mxu1 %v6290_v62 }
 0x143   :  { %739 = vmatpush.msrb.mxu2 %v6199_v21  ;;  %v640_v14 = vpop.f32.mrf.mxu0 }
 0x144   :  { %759 = vmatpush.msrb.mxu3 %v6264_v56  ;;  %522 = vmatmul.f32.vlgmr.msra.gmra.mxu1 %v8076_v25  ;;  %v641_v18 = vadd.f32 %v640_v14, %v6346_v11 }
 0x145   :  { %542 = vmatmul.f32.vlgmr.msra.gmra.mxu2 %v8076_v25  ;;  %619 = vmatmul.f32.vlgmr.msra.gmra.mxu3 %v8076_v25 }
 0x146   :  { %658 = vmatpush.msrb.mxu1 %v6298_v63  ;;  %740 = vmatpush.msrb.mxu2 %v6218_v30  ;;  %v687_v27 = vrot.slane %v641_v18, 1 }
 0x147   :  { %760 = vmatpush.msrb.mxu3 %v6271_v58 }
 0x148   :  { %862 = vmatpush.msra.mxu1 %v6252_v53  ;;  %882 = vmatpush.msra.mxu2 %v6222_v40 }
 0x149   :  { %902 = vmatpush.msra.mxu3 %v6280_v60 }
 0x14a   :  { %863 = vmatpush.msra.mxu1 %v6261_v55  ;;  %883 = vmatpush.msra.mxu2 %v6225_v43 }
 0x14b   :  { %903 = vmatpush.msra.mxu3 %v6286_v61 }
 0x14c   :  { %864 = vmatpush.msra.mxu1 %v6268_v57  ;;  %884 = vmatpush.msra.mxu2 %v6228_v45 }
 0x14d   :  { %659 = vmatmul.f32.vlgmr.msrb.gmra.mxu1 %v8076_v25  ;;  %904 = vmatpush.msra.mxu3 %v6290_v62 }
 0x14e   :  { %865 = vmatpush.msra.mxu1 %v6277_v59  ;;  %885 = vmatpush.msra.mxu2 %v6231_v46 }
 0x14f   :  { %905 = vmatpush.msra.mxu3 %v6298_v63 }
 0x150   :  { %1007 = vmatpush.msrb.mxu1 %v6250_v51 }
 0x152   :  { %1008 = vmatpush.msrb.mxu1 %v6257_v54 }
 0x154   :  { %1009 = vmatpush.msrb.mxu1 %v6264_v56 }
 0x156   :  { %1010 = vmatpush.msrb.mxu1 %v6271_v58 }
 0x1b1   :  { %v325_v6 = vpop.f32.mrf.mxu1 }
 0x1b2   :  { %v6337_v7 = vadd.f32 %v325_v6, %v298_v4 }
 0x1b4   :  { %v546_v9 = vadd.f32 %v504_v5, %v6337_v7 }
 0x1b6   :  { %v5037_v10 = vmul.f32 -1.442695, %v546_v9 }
 0x1b7   :  { %v345_v12 = vpop.f32.mrf.mxu2 }
 0x1b8   :  { %5219 = vpow2.f32 %v5037_v10  ;;  %v365_v15 = vpop.f32.mrf.mxu3  ;;  %v6362_v35 = vadd.f32 %v345_v12, %v299_v26 }
 0x1b9   :  { %v405_v16 = vpop.f32.mrf.mxu1 }
 0x1ba   :  { %v6372_v9 = vadd.f32 %v405_v16, %v382_v52 }
 0x1be   :  { %v5220_v24 = vpop.eup %5219 }
 0x1bf   :  { %v550_v29 = vadd.f32 1.0, %v5220_v24  ;;  %v425_v31 = vpop.f32.mrf.mxu2 }
 0x1c0   :  { %v6358_v32 = vadd.f32 %v425_v31, %v383_v20  ;;  %v6360_v33 = vpop.f32.mrf.mxu3  ;;  %v6375_v20 = vperm.slane %v460_v0, 2  ;;  %v300_v0 = vperm.slane %v6331_v1, 2 }
 0x1c1   :  { %5221 = vrcp.f32 %v550_v29  ;;  %v523_v34 = vpop.f32.mrf.mxu1  ;;  %v562_v14 = vand.u32 2147483648, %v550_v29  ;;  %v560_v24 = vand.u32 2147483647, %v550_v29  ;;  %vm556_vm4 = vweird.f32 %v550_v29 }
 0x1c2   :  { %v689_v36 = vadd.f32 %v687_v27, %v6358_v32  ;;  %v524_v37 = vadd.f32 %v523_v34, %v6356_v28 }
 0x1c3   :  { %v563_v16 = vor.u32 1.1754944e-38, %v562_v14  ;;  %vm561_vm6 = vcmp.eq.f32.partialorder %v560_v24, 8.507059e+37 }
 0x1c4   :  { %v566_v38 = vadd.f32 %v524_v37, %v6362_v35  ;;  %v5040_v41 = vmul.f32 -1.442695, %v689_v36 }
 0x1c6   :  { %v5038_v42 = vmul.f32 -1.442695, %v566_v38 }
 0x1c7   :  { %v5222_v44 = vpop.eup %5221 }
 0x1c8   :  { %5223 = vpow2.f32 %v5038_v42  ;;  %v620_v3 = vpop.f32.mrf.mxu3  ;;  %v552_v4 = vmul.f32 %v5222_v44, %v550_v29  ;;  %vm557_vm3 = vweird.f32 %v5222_v44  ;;  %v543_v27 = vpop.f32.mrf.mxu2 }
 0x1c9   :  { %v621_v5 = vadd.f32 %v620_v3, %v6368_v39  ;;  %5225 = vpow2.f32 %v5040_v41  ;;  %vm558_vm5 = vmor %vm556_vm4, %vm557_vm3  ;;  %v544_v41 = vadd.f32 %v543_v27, %v6375_v20 }
 0x1ca   :  { %v553_v6 = vsub.f32 1.0, %v552_v4  ;;  %v6382_v4 = vadd.f32 %v365_v15, %v300_v0 }
 0x1cb   :  { %v664_v10 = vrot.slane %v621_v5, 1 }
 0x1cc   :  { %v554_v12 = vmul.f32 %v5222_v44, %v553_v6 }
 0x1cd   :  { %v666_v18 = vadd.f32 %v664_v10, %v6372_v9 }
 0x1ce   :  { %v5224_v26 = vpop.eup %5223  ;;  %v555_v31 = vadd.f32 %v5222_v44, %v554_v12 }
 0x1cf   :  { %v5226_v34 = vpop.eup %5225  ;;  %v570_v36 = vadd.f32 1.0, %v5224_v26  ;;  %v5039_v37 = vmul.f32 -1.442695, %v666_v18 }
 0x1d0   :  { %v559_v38 = vsel %vm558_vm5, %v5222_v44, %v555_v31  ;;  %v6378_v52 = vadd.f32 1.0, %v5226_v34  ;;  %v6390_v34 = vperm.slane %v6342_v8, 2 }
 0x1d1   :  { %5227 = vrcp.f32 %v570_v36  ;;  %v564_v42 = vsel %vm561_vm6, %v563_v16, %v559_v38  ;;  %v582_v14 = vand.u32 2147483648, %v570_v36  ;;  %v580_v26 = vand.u32 2147483647, %v570_v36  ;;  %v660_v16 = vpop.f32.mrf.mxu1 }
 0x1d2   :  { %5229 = vpow2.f32 %v5039_v37  ;;  %v586_v3 = vmul.f32 %v564_v42, %v544_v41  ;;  %vm576_vm8 = vweird.f32 %v570_v36  ;;  %vm699_vm1 = vweird.f32 %v6378_v52 }
 0x1d3   :  { %5231 = vrcp.f32 %v6378_v52  ;;  %v583_v27 = vor.u32 1.1754944e-38, %v582_v14  ;;  %vm581_vm10 = vcmp.eq.f32.partialorder %v580_v26, 8.507059e+37  ;;  %v384_v26 = vperm.slane %v6352_v19, 2 }
 0x1d4   :  { %v587_v10 = vadd.f32 %v586_v3, %v6382_v4 }
 0x1d7   :  { %v5228_v29 = vpop.eup %5227 }
 0x1d8   :  { %v5230_v5 = vpop.eup %5229  ;;  %v572_v6 = vmul.f32 %v5228_v29, %v570_v36  ;;  %vm577_vm7 = vweird.f32 %v5228_v29  ;;  %v661_v36 = vadd.f32 %v660_v16, %v6390_v34  ;;  %v705_v16 = vand.u32 2147483648, %v6378_v52 }
 0x1d9   :  { %v670_v44 = vadd.f32 1.0, %v5230_v5  ;;  %v6385_v18 = vpop.eup %5231  ;;  %vm578_vm9 = vmor %vm576_vm8, %vm577_vm7 }
 0x1da   :  { %v573_v12 = vsub.f32 1.0, %v572_v6  ;;  %v695_v15 = vmul.f32 %v6385_v18, %v6378_v52  ;;  %vm700_vm15 = vweird.f32 %v6385_v18 }
 0x1db   :  { %5233 = vrcp.f32 %v670_v44  ;;  %vm676_vm12 = vweird.f32 %v670_v44  ;;  %vm701_vm3 = vmor %vm699_vm1, %vm700_vm15 }
 0x1dc   :  { %v574_v24 = vmul.f32 %v5228_v29, %v573_v12  ;;  %5235 = vtanh.f32 %v587_v10  ;;  %v696_v3 = vsub.f32 1.0, %v695_v15  ;;  %v682_v12 = vand.u32 2147483648, %v670_v44 }
 0x1de   :  { %v575_v1 = vadd.f32 %v5228_v29, %v574_v24  ;;  %v697_v8 = vmul.f32 %v6385_v18, %v696_v3  ;;  %v683_v15 = vor.u32 1.1754944e-38, %v682_v12 }
 0x1e0   :  { %v579_v31 = vsel %vm578_vm9, %v5228_v29, %v575_v1  ;;  %v680_v29 = vand.u32 2147483647, %v670_v44 }
 0x1e1   :  { %v5234_v37 = vpop.eup %5233  ;;  %v584_v38 = vsel %vm581_vm10, %v583_v27, %v579_v31  ;;  %v710_v27 = vrot.slane %v661_v36, 1 }
 0x1e2   :  { %v589_v41 = vsub.f32 1.0, %v584_v38  ;;  %v672_v42 = vmul.f32 %v5234_v37, %v670_v44  ;;  %v5236_v0 = vpop.eup %5235  ;;  %v591_v10 = vmul.f32 0.0, %v584_v38  ;;  %vm677_vm11 = vweird.f32 %v5234_v37 }
 0x1e3   :  { %vm678_vm13 = vmor %vm676_vm12, %vm677_vm11  ;;  %vm681_vm14 = vcmp.eq.f32.partialorder %v680_v29, 8.507059e+37  ;;  %v698_v44 = vadd.f32 %v6385_v18, %v697_v8  ;;  %v6410_v38 = vadd.f32 %v6360_v33, %v384_v26 }
 0x1e4   :  { %v590_v5 = vmul.f32 %v5236_v0, %v589_v41  ;;  %v673_v6 = vsub.f32 1.0, %v672_v42  ;;  %v706_v0 = vor.u32 1.1754944e-38, %v705_v16 }
 0x1e5   :  { %v702_v33 = vsel %vm701_vm3, %v6385_v18, %v698_v44 }
 0x1e6   :  { %v674_v14 = vmul.f32 %v5234_v37, %v673_v6  ;;  %v6393_v24 = vadd.f32 %v591_v10, %v590_v5 }
 0x1e8   :  { %v675_v1 = vadd.f32 %v5234_v37, %v674_v14  ;;  %5041 = vmatmul.msk.f32.vlgmr.msrb.gmra.mxu2 %vm304_vm2, %v6393_v24  ;;  %5042 = vmatmul.msk.f32.vlgmr.msrb.gmra.mxu3 %vm304_vm2, %v6393_v24 }
 0x1e9   :  { %5043 = vmatmul.msk.f32.vlgmr.msrb.gmra.mxu0 %vm304_vm2, %v6393_v24  ;;  %1027 = vmatpush.msrb.mxu2 %v6235_v47 }
 0x1ea   :  { %v679_v31 = vsel %vm678_vm13, %v5234_v37, %v675_v1  ;;  %1112 = vmatpush.msrb.mxu3 %v6252_v53  ;;  %1132 = vmatpush.msrb.mxu0 %v6222_v40  ;;  %v703_v37 = vand.u32 2147483647, %v6378_v52 }
 0x1eb   :  { %v684_v19 = vsel %vm681_vm14, %v683_v15, %v679_v31  ;;  %1028 = vmatpush.msrb.mxu2 %v6238_v48 }
 0x1ec   :  { %v712_v41 = vmul.f32 %v710_v27, %v684_v19  ;;  %1113 = vmatpush.msrb.mxu3 %v6261_v55  ;;  %1133 = vmatpush.msrb.mxu0 %v6225_v43  ;;  %vm704_vm4 = vcmp.eq.f32.partialorder %v703_v37, 8.507059e+37 }
 0x1ed   :  { %1029 = vmatpush.msrb.mxu2 %v6241_v49  ;;  %v707_v52 = vsel %vm704_vm4, %v706_v0, %v702_v33 }
 0x1ee   :  { %v713_v42 = vadd.f32 %v712_v41, %v6410_v38  ;;  %1114 = vmatpush.msrb.mxu3 %v6268_v57  ;;  %1134 = vmatpush.msrb.mxu0 %v6228_v45  ;;  %v715_v3 = vsub.f32 1.0, %v707_v52  ;;  %v717_v6 = vmul.f32 0.0, %v707_v52 }
 0x1ef   :  { %1030 = vmatpush.msrb.mxu2 %v6244_v50 }
 0x1f0   :  { %5237 = vtanh.f32 %v713_v42  ;;  %1115 = vmatpush.msrb.mxu3 %v6277_v59  ;;  %1135 = vmatpush.msrb.mxu0 %v6231_v46 }
 0x1f6   :  { %v5238_v5 = vpop.eup %5237 }
 0x1f7   :  { %v716_v36 = vmul.f32 %v5238_v5, %v715_v3 }
 0x1f9   :  { %v6425_v10 = vadd.f32 %v717_v6, %v716_v36 }
 0x1fb   :  { %v847_v12 = vrot.slane %v6425_v10, 7 }
 0x1fd   :  { %5046 = vmatmul.msk.f32.vlgmr.msra.gmra.mxu1 %vm304_vm2, %v847_v12  ;;  %5047 = vmatmul.msk.f32.vlgmr.msra.gmra.mxu2 %vm304_vm2, %v847_v12 }
 0x1fe   :  { %5048 = vmatmul.msk.f32.vlgmr.msra.gmra.mxu3 %vm304_vm2, %v847_v12  ;;  %1152 = vmatpush.msra.mxu1 %v6280_v60 }
 0x1ff   :  { %1237 = vmatpush.msra.mxu2 %v6176_v13  ;;  %1257 = vmatpush.msra.mxu3 %v6250_v51 }
 0x200   :  { %1153 = vmatpush.msra.mxu1 %v6286_v61 }
 0x201   :  { %1238 = vmatpush.msra.mxu2 %v6188_v17  ;;  %1258 = vmatpush.msra.mxu3 %v6257_v54 }
 0x202   :  { %1154 = vmatpush.msra.mxu1 %v6290_v62 }
 0x203   :  { %1239 = vmatpush.msra.mxu2 %v6199_v21  ;;  %1259 = vmatpush.msra.mxu3 %v6264_v56 }
 0x204   :  { %1155 = vmatpush.msra.mxu1 %v6298_v63 }
 0x205   :  { %1240 = vmatpush.msra.mxu2 %v6218_v30  ;;  %1260 = vmatpush.msra.mxu3 %v6271_v58 }
 0x26b   :  { %v742_v18 = vpop.f32.mrf.mxu2  ;;  %v762_v14 = vpop.f32.mrf.mxu3 }
 0x26c   :  { %v743_v29 = vadd.f32 %v742_v18, %v6333_v2  ;;  %v763_v8 = vadd.f32 %v762_v14, %v6356_v28 }
 0x26e   :  { %v786_v26 = vrot.slane %v743_v29, 7  ;;  %v809_v1 = vrot.slane %v763_v8, 7  ;;  %v782_v29 = vpop.f32.mrf.mxu0 }
 0x270   :  { %v788_v27 = vadd.f32 %v786_v26, %v6337_v7  ;;  %v811_v15 = vadd.f32 %v809_v1, %v6362_v35 }
 0x272   :  { %v5044_v31 = vmul.f32 -1.442695, %v788_v27  ;;  %v5045_v19 = vmul.f32 -1.442695, %v811_v15 }
 0x274   :  { %5239 = vpow2.f32 %v5044_v31 }
 0x275   :  { %5241 = vpow2.f32 %v5045_v19  ;;  %v783_v19 = vadd.f32 %v782_v29, %v6375_v20 }
 0x27a   :  { %v5240_v44 = vpop.eup %5239  ;;  %v867_v16 = vpop.f32.mrf.mxu1 }
 0x27b   :  { %v5242_v41 = vpop.eup %5241  ;;  %v792_v37 = vadd.f32 1.0, %v5240_v44  ;;  %v868_v42 = vadd.f32 %v867_v16, %v6368_v39 }
 0x27c   :  { %v815_v33 = vadd.f32 1.0, %v5242_v41 }
 0x27d   :  { %5243 = vrcp.f32 %v792_v37  ;;  %v911_v0 = vrot.slane %v868_v42, 2  ;;  %v804_v27 = vand.u32 2147483648, %v792_v37  ;;  %v802_v16 = vand.u32 2147483647, %v792_v37 }
 0x27e   :  { %5245 = vrcp.f32 %v815_v33  ;;  %vm798_vm6 = vweird.f32 %v792_v37  ;;  %vm821_vm10 = vweird.f32 %v815_v33 }
 0x27f   :  { %v913_v3 = vadd.f32 %v911_v0, %v6372_v9  ;;  %vm803_vm8 = vcmp.eq.f32.partialorder %v802_v16, 8.507059e+37 }
 0x280   :  { %v887_v52 = vpop.f32.mrf.mxu2 }
 0x281   :  { %v888_v5 = vadd.f32 %v887_v52, %v6346_v11  ;;  %v5049_v6 = vmul.f32 -1.442695, %v913_v3  ;;  %v805_v52 = vor.u32 1.1754944e-38, %v804_v27  ;;  %v832_v3 = vrot.slane %v783_v19, 7  ;;  %v907_v19 = vpop.f32.mrf.mxu3 }
 0x283   :  { %v5244_v36 = vpop.eup %5243  ;;  %v934_v12 = vrot.slane %v888_v5, 2  ;;  %5247 = vpow2.f32 %v5049_v6 }
 0x284   :  { %v5246_v18 = vpop.eup %5245  ;;  %v794_v14 = vmul.f32 %v5244_v36, %v792_v37  ;;  %vm799_vm5 = vweird.f32 %v5244_v36 }
 0x285   :  { %v817_v8 = vmul.f32 %v5246_v18, %v815_v33  ;;  %v936_v26 = vadd.f32 %v934_v12, %v6358_v32  ;;  %vm800_vm7 = vmor %vm798_vm6, %vm799_vm5  ;;  %vm822_vm9 = vweird.f32 %v5246_v18 }
 0x286   :  { %v795_v1 = vsub.f32 1.0, %v794_v14  ;;  %vm823_vm11 = vmor %vm821_vm10, %vm822_vm9 }
 0x287   :  { %v818_v15 = vsub.f32 1.0, %v817_v8  ;;  %v5050_v31 = vmul.f32 -1.442695, %v936_v26  ;;  %v827_v26 = vand.u32 2147483648, %v815_v33 }
 0x288   :  { %v796_v44 = vmul.f32 %v5244_v36, %v795_v1 }
 0x289   :  { %5249 = vpow2.f32 %v5050_v31  ;;  %v819_v42 = vmul.f32 %v5246_v18, %v818_v15  ;;  %v5248_v0 = vpop.eup %5247  ;;  %v825_v31 = vand.u32 2147483647, %v815_v33  ;;  %v828_v27 = vor.u32 1.1754944e-38, %v827_v26 }
 0x28a   :  { %v797_v41 = vadd.f32 %v5244_v36, %v796_v44  ;;  %v917_v6 = vadd.f32 1.0, %v5248_v0 }
 0x28b   :  { %v820_v8 = vadd.f32 %v5246_v18, %v819_v42  ;;  %vm826_vm12 = vcmp.eq.f32.partialorder %v825_v31, 8.507059e+37 }
 0x28c   :  { %v801_v5 = vsel %vm800_vm7, %v5244_v36, %v797_v41  ;;  %5251 = vrcp.f32 %v917_v6  ;;  %v6454_v41 = vshrl.u32 %v244_v22, 7  ;;  %vm923_vm14 = vweird.f32 %v917_v6 }
 0x28d   :  { %v806_v12 = vsel %vm803_vm8, %v805_v52, %v801_v5  ;;  %v824_v15 = vsel %vm823_vm11, %v5246_v18, %v820_v8  ;;  %v908_v52 = vadd.f32 %v907_v19, %v6390_v34  ;;  %v839_v5 = vrot.slane %v6393_v24, 7 }
 0x28e   :  { %v834_v14 = vmul.f32 %v832_v3, %v806_v12  ;;  %v829_v16 = vsel %vm826_vm12, %v828_v27, %v824_v15  ;;  %v929_v3 = vand.u32 2147483648, %v917_v6  ;;  %v927_v8 = vand.u32 2147483647, %v917_v6 }
 0x28f   :  { %v5250_v29 = vpop.eup %5249  ;;  %v837_v33 = vsub.f32 1.0, %v829_v16  ;;  %v841_v26 = vmul.f32 %v839_v5, %v829_v16  ;;  %v594_v22 = vperm.slane %v6393_v24, 0  ;;  %v957_v27 = vrot.slane %v908_v52, 2 }
 0x290   :  { %v835_v1 = vadd.f32 %v834_v14, %v6382_v4  ;;  %v940_v37 = vadd.f32 1.0, %v5250_v29  ;;  %v930_v15 = vor.u32 1.1754944e-38, %v929_v3  ;;  %vm8080_vm1 = vcmp.eq.s32.totalorder %v6454_v41, 0 }
 0x291   :  { %vm928_vm3 = vcmp.eq.f32.partialorder %v927_v8, 8.507059e+37  ;;  %vm843_vm4 = vcmp.eq.s32.totalorder %v6454_v41, 1  ;;  %v595_v52 = vsel %vm8080_vm1, %v594_v22, 0.0  ;;  %vm719_vm9 = vcmp.eq.s32.totalorder %v6454_v41, 7 }
 0x292   :  { %5253 = vrcp.f32 %v940_v37  ;;  %v5252_v36 = vpop.eup %5251  ;;  %vm946_vm6 = vweird.f32 %v940_v37  ;;  %v950_v3 = vand.u32 2147483647, %v940_v37  ;;  %vm968_vm10 = vcmp.eq.s32.totalorder %v6454_v41, 6 }
 0x293   :  { %5255 = vtanh.f32 %v835_v1  ;;  %v919_v44 = vmul.f32 %v5252_v36, %v917_v6  ;;  %vm924_vm13 = vweird.f32 %v5252_v36 }
 0x294   :  { %vm925_vm15 = vmor %vm923_vm14, %vm924_vm13  ;;  %vm951_vm8 = vcmp.eq.f32.partialorder %v950_v3, 8.507059e+37 }
 0x295   :  { %v920_v42 = vsub.f32 1.0, %v919_v44 }
 0x297   :  { %v921_v14 = vmul.f32 %v5252_v36, %v920_v42 }
 0x298   :  { %v5254_v0 = vpop.eup %5253 }
 0x299   :  { %v5256_v12 = vpop.eup %5255  ;;  %v942_v18 = vmul.f32 %v5254_v0, %v940_v37  ;;  %v922_v31 = vadd.f32 %v5252_v36, %v921_v14  ;;  %vm947_vm5 = vweird.f32 %v5254_v0 }
 0x29a   :  { %v838_v29 = vmul.f32 %v5256_v12, %v837_v33  ;;  %v952_v33 = vand.u32 2147483648, %v940_v37  ;;  %vm948_vm7 = vmor %vm946_vm6, %vm947_vm5 }
 0x29b   :  { %v943_v1 = vsub.f32 1.0, %v942_v18  ;;  %v926_v25 = vsel %vm925_vm15, %v5252_v36, %v922_v31 }
 0x29c   :  { %v6459_v19 = vadd.f32 %v841_v26, %v838_v29  ;;  %v931_v42 = vsel %vm928_vm3, %v930_v15, %v926_v25  ;;  %v953_v37 = vor.u32 1.1754944e-38, %v952_v33 }
 0x29d   :  { %v944_v44 = vmul.f32 %v5254_v0, %v943_v1  ;;  %v959_v5 = vmul.f32 %v957_v27, %v931_v42 }
 0x29e   :  { %v844_v16 = vperm.slane %v6459_v19, 1  ;;  %v972_v6 = vrot.slane %v6459_v19, 1 }
 0x29f   :  { %v945_v24 = vadd.f32 %v5254_v0, %v944_v44  ;;  %v960_v25 = vadd.f32 %v959_v5, %v6410_v38 }
 0x2a0   :  { %5051 = vmatmul.msk.f32.vlgmr.msra.gmra.mxu0 %vm304_vm2, %v972_v6  ;;  %5052 = vmatmul.msk.f32.vlgmr.msrb.gmra.mxu1 %vm304_vm2, %v972_v6  ;;  %v6471_v36 = vsel %vm843_vm4, %v844_v16, %v595_v52 }
 0x2a1   :  { %5053 = vmatmul.msk.f32.vlgmr.msrb.gmra.mxu2 %vm304_vm2, %v972_v6  ;;  %1277 = vmatpush.msra.mxu0 %v6235_v47  ;;  %v949_v12 = vsel %vm948_vm7, %v5254_v0, %v945_v24  ;;  %5257 = vtanh.f32 %v960_v25  ;;  %vm1093_vm7 = vcmp.eq.s32.totalorder %v6454_v41, 2 }
 0x2a2   :  { %1362 = vmatpush.msrb.mxu1 %v6252_v53  ;;  %1382 = vmatpush.msrb.mxu2 %v6222_v40  ;;  %v954_v18 = vsel %vm951_vm8, %v953_v37, %v949_v12  ;;  %v964_v40 = vrot.slane %v6425_v10, 1 }
 0x2a3   :  { %1278 = vmatpush.msra.mxu0 %v6238_v48  ;;  %v962_v0 = vsub.f32 1.0, %v954_v18 }
 0x2a4   :  { %1363 = vmatpush.msrb.mxu1 %v6261_v55  ;;  %1383 = vmatpush.msrb.mxu2 %v6225_v43  ;;  %v966_v29 = vmul.f32 %v964_v40, %v954_v18  ;;  %v720_v43 = vperm.slane %v6425_v10, 7 }
 0x2a5   :  { %1279 = vmatpush.msra.mxu0 %v6241_v49 }
 0x2a6   :  { %1364 = vmatpush.msrb.mxu1 %v6268_v57  ;;  %1384 = vmatpush.msrb.mxu2 %v6228_v45  ;;  %v721_v26 = vsel %vm719_vm9, %v720_v43, 0.0 }
 0x2a7   :  { %1280 = vmatpush.msra.mxu0 %v6244_v50  ;;  %v5258_v14 = vpop.eup %5257 }
 0x2a8   :  { %1365 = vmatpush.msrb.mxu1 %v6277_v59  ;;  %1385 = vmatpush.msrb.mxu2 %v6231_v46  ;;  %v963_v8 = vmul.f32 %v5258_v14, %v962_v0 }
 0x2aa   :  { %v6490_v49 = vadd.f32 %v966_v29, %v963_v8 }
 0x2ac   :  { %v969_v45 = vperm.slane %v6490_v49, 6  ;;  %v1097_v50 = vrot.slane %v6490_v49, 6 }
 0x2ae   :  { %v6499_v46 = vsel %vm968_vm10, %v969_v45, %v721_v26  ;;  %5056 = vmatmul.msk.f32.vlgmr.msrb.gmra.mxu3 %vm304_vm2, %v1097_v50  ;;  %5057 = vmatmul.msk.f32.vlgmr.msrb.gmra.mxu0 %vm304_vm2, %v1097_v50 }
 0x2af   :  { %5058 = vmatmul.msk.f32.vlgmr.msra.gmra.mxu1 %vm304_vm2, %v1097_v50  ;;  %1402 = vmatpush.msrb.mxu3 %v6280_v60 }
 0x2b0   :  { %1487 = vmatpush.msrb.mxu0 %v6176_v13  ;;  %1507 = vmatpush.msra.mxu1 %v6250_v51 }
 0x2b1   :  { %1403 = vmatpush.msrb.mxu3 %v6286_v61 }
 0x2b2   :  { %1488 = vmatpush.msrb.mxu0 %v6188_v17  ;;  %1508 = vmatpush.msra.mxu1 %v6257_v54 }
 0x2b3   :  { %1404 = vmatpush.msrb.mxu3 %v6290_v62 }
 0x2b4   :  { %1489 = vmatpush.msrb.mxu0 %v6199_v21  ;;  %1509 = vmatpush.msra.mxu1 %v6264_v56 }
 0x2b5   :  { %1405 = vmatpush.msrb.mxu3 %v6298_v63 }
 0x2b6   :  { %1490 = vmatpush.msrb.mxu0 %v6218_v30  ;;  %1510 = vmatpush.msra.mxu1 %v6271_v58 }
 0x31d   :  { %v992_v13 = vpop.f32.mrf.mxu0  ;;  %v1012_v51 = vpop.f32.mrf.mxu1 }
 0x31e   :  { %v993_v60 = vadd.f32 %v992_v13, %v6333_v2  ;;  %v1013_v17 = vadd.f32 %v1012_v51, %v6356_v28 }
 0x320   :  { %v1036_v61 = vrot.slane %v993_v60, 6  ;;  %v1059_v54 = vrot.slane %v1013_v17, 6 }
 0x322   :  { %v1038_v62 = vadd.f32 %v1036_v61, %v6337_v7  ;;  %v1061_v21 = vadd.f32 %v1059_v54, %v6362_v35 }
 0x324   :  { %v5054_v10 = vmul.f32 -1.442695, %v1038_v62  ;;  %v5055_v56 = vmul.f32 -1.442695, %v1061_v21  ;;  %v1032_v5 = vpop.f32.mrf.mxu2 }
 0x325   :  { %v1033_v0 = vadd.f32 %v1032_v5, %v6375_v20 }
 0x326   :  { %5259 = vpow2.f32 %v5054_v10 }
 0x327   :  { %5261 = vpow2.f32 %v5055_v56  ;;  %v1082_v51 = vrot.slane %v1033_v0, 6 }
 0x32b   :  { %v1137_v58 = vpop.f32.mrf.mxu0 }
 0x32c   :  { %v5260_v1 = vpop.eup %5259  ;;  %v1138_v15 = vadd.f32 %v1137_v58, %v6346_v11 }
 0x32d   :  { %v5262_v30 = vpop.eup %5261  ;;  %v1042_v31 = vadd.f32 1.0, %v5260_v1 }
 0x32e   :  { %v1065_v22 = vadd.f32 1.0, %v5262_v30  ;;  %v1184_v27 = vrot.slane %v1138_v15, 3 }
 0x32f   :  { %5263 = vrcp.f32 %v1042_v31  ;;  %v1054_v40 = vand.u32 2147483648, %v1042_v31  ;;  %v1052_v8 = vand.u32 2147483647, %v1042_v31  ;;  %vm1048_vm12 = vweird.f32 %v1042_v31 }
 0x330   :  { %5265 = vrcp.f32 %v1065_v22  ;;  %v1186_v44 = vadd.f32 %v1184_v27, %v6358_v32  ;;  %v1077_v54 = vand.u32 2147483648, %v1065_v22  ;;  %vm1071_vm3 = vweird.f32 %v1065_v22 }
 0x331   :  { %v1117_v42 = vpop.f32.mrf.mxu3  ;;  %v1055_v26 = vor.u32 1.1754944e-38, %v1054_v40  ;;  %vm1053_vm14 = vcmp.eq.f32.partialorder %v1052_v8, 8.507059e+37  ;;  %v1075_v21 = vand.u32 2147483647, %v1065_v22 }
 0x332   :  { %v1118_v16 = vadd.f32 %v1117_v42, %v6368_v39  ;;  %v5060_v33 = vmul.f32 -1.442695, %v1186_v44  ;;  %v1089_v44 = vrot.slane %v6459_v19, 7 }
 0x333   :  { %vm1076_vm6 = vcmp.eq.f32.partialorder %v1075_v21, 8.507059e+37  ;;  %v6577_v21 = vld [vmem:[#allocation6 + $0x8] sm:$0xff] }
 0x334   :  { %v1161_v3 = vrot.slane %v1118_v16, 3  ;;  %5267 = vpow2.f32 %v5060_v33 }
 0x335   :  { %v5264_v6 = vpop.eup %5263 }
 0x336   :  { %v5266_v24 = vpop.eup %5265  ;;  %v1044_v52 = vmul.f32 %v5264_v6, %v1042_v31  ;;  %v1163_v37 = vadd.f32 %v1161_v3, %v6372_v9  ;;  %vm1049_vm11 = vweird.f32 %v5264_v6  ;;  %v1078_v31 = vor.u32 1.1754944e-38, %v1077_v54  ;;  %v1157_v3 = vpop.f32.mrf.mxu1  ;;  %v6572_v54 = vld [vmem:[#allocation2 + $0x10] sm:$0xff] }
 0x337   :  { %v1067_v25 = vmul.f32 %v5266_v24, %v1065_v22  ;;  %vm1050_vm13 = vmor %vm1048_vm12, %vm1049_vm11  ;;  %vm1072_vm15 = vweird.f32 %v5266_v24 }
 0x338   :  { %v1045_v12 = vsub.f32 1.0, %v1044_v52  ;;  %v5059_v29 = vmul.f32 -1.442695, %v1163_v37  ;;  %vm1073_vm5 = vmor %vm1071_vm3, %vm1072_vm15 }
 0x339   :  { %v1068_v18 = vsub.f32 1.0, %v1067_v25 }
 0x33a   :  { %v1046_v14 = vmul.f32 %v5264_v6, %v1045_v12  ;;  %5269 = vpow2.f32 %v5059_v29  ;;  %v5268_v50 = vpop.eup %5267 }
 0x33b   :  { %v1069_v43 = vmul.f32 %v5266_v24, %v1068_v18  ;;  %v6525_v60 = vadd.f32 1.0, %v5268_v50  ;;  %v1158_v18 = vadd.f32 %v1157_v3, %v6390_v34  ;;  %v6625_v3 = vld [vmem:[#allocation2 + $0x8] sm:$0xff] }
 0x33c   :  { %v1047_v45 = vadd.f32 %v5264_v6, %v1046_v14 }
 0x33d   :  { %v1070_v61 = vadd.f32 %v5266_v24, %v1069_v43  ;;  %5271 = vrcp.f32 %v6525_v60  ;;  %v1207_v50 = vrot.slane %v1158_v18, 3  ;;  %vm1196_vm15 = vweird.f32 %v6525_v60 }
 0x33e   :  { %v1051_v13 = vsel %vm1050_vm13, %v5264_v6, %v1047_v45  ;;  %v6551_v45 = vld [vmem:[#allocation6 + $0x50] sm:$0xff] }
 0x33f   :  { %v1056_v17 = vsel %vm1053_vm14, %v1055_v26, %v1051_v13  ;;  %v1074_v1 = vsel %vm1073_vm5, %v5266_v24, %v1070_v61  ;;  %v6568_v61 = vld [vmem:[#allocation6 + $0x20] sm:$0xff] }
 0x340   :  { %v1084_v62 = vmul.f32 %v1082_v51, %v1056_v17  ;;  %v5270_v10 = vpop.eup %5269  ;;  %v1079_v15 = vsel %vm1076_vm6, %v1078_v31, %v1074_v1  ;;  %v6562_v17 = vld [vmem:[#allocation2 + $0x28] sm:$0xff]  ;;  %vm1218_vm6 = vcmp.eq.s32.totalorder %v6454_v41, 5 }
 0x341   :  { %v1167_v30 = vadd.f32 1.0, %v5270_v10  ;;  %v1087_v27 = vsub.f32 1.0, %v1079_v15  ;;  %v1091_v33 = vmul.f32 %v1089_v44, %v1079_v15  ;;  %v1214_v10 = vrot.slane %v6490_v49, 1  ;;  %v6594_v49 = vld [vmem:[#allocation6 + $0x58] sm:$0xff]  ;;  %v6597_v44 = vld [vmem:[#allocation2 + $0x48] sm:$0xff] }
 0x342   :  { %v1085_v56 = vadd.f32 %v1084_v62, %v6382_v4 }
 0x343   :  { %v6529_v58 = vpop.eup %5271  ;;  %v1179_v37 = vand.u32 2147483648, %v1167_v30  ;;  %v1177_v40 = vand.u32 2147483647, %v1167_v30  ;;  %vm1173_vm11 = vweird.f32 %v1167_v30 }
 0x344   :  { %5273 = vtanh.f32 %v1085_v56  ;;  %v1192_v42 = vmul.f32 %v6529_v58, %v6525_v60  ;;  %vm1197_vm14 = vweird.f32 %v6529_v58 }
 0x345   :  { %5275 = vrcp.f32 %v1167_v30  ;;  %v1180_v43 = vor.u32 1.1754944e-38, %v1179_v37  ;;  %vm1178_vm13 = vcmp.eq.f32.partialorder %v1177_v40, 8.507059e+37  ;;  %vm1198_vm3 = vmor %vm1196_vm15, %vm1197_vm14 }
 0x346   :  { %v1193_v52 = vsub.f32 1.0, %v1192_v42  ;;  %v6600_v42 = vld [vmem:[#allocation2 + $0x50] sm:$0xff] }
 0x348   :  { %v1194_v14 = vmul.f32 %v6529_v58, %v1193_v52  ;;  %v6622_v52 = vld [vmem:[#allocation2] sm:$0xff] }
 0x34a   :  { %v5274_v22 = vpop.eup %5273 }
 0x34b   :  { %v5276_v16 = vpop.eup %5275  ;;  %v1088_v6 = vmul.f32 %v5274_v22, %v1087_v27  ;;  %v6606_v22 = vld [vmem:[#allocation2 + $0x30] sm:$0xff] }
 0x34c   :  { %v1169_v5 = vmul.f32 %v5276_v16, %v1167_v30  ;;  %vm1174_vm8 = vweird.f32 %v5276_v16 }
 0x34d   :  { %v6534_v24 = vadd.f32 %v1091_v33, %v1088_v6  ;;  %vm1175_vm12 = vmor %vm1173_vm11, %vm1174_vm8  ;;  %v6612_v6 = vld [vmem:[#allocation6 + $0x28] sm:$0xff]  ;;  %v6615_v33 = vld [vmem:[#allocation2 + $0x18] sm:$0xff] }
 0x34e   :  { %v1170_v25 = vsub.f32 1.0, %v1169_v5  ;;  %v6618_v5 = vld [vmem:[#allocation2 + $0x20] sm:$0xff] }
 0x34f   :  { %v1094_v12 = vperm.slane %v6534_v24, 2  ;;  %v1222_v19 = vrot.slane %v6534_v24, 2 }
 0x350   :  { %v1171_v0 = vmul.f32 %v5276_v16, %v1170_v25 }
 0x351   :  { %5061 = vmatmul.msk.f32.vlgmr.msra.gmra.mxu2 %vm304_vm2, %v1222_v19  ;;  %5062 = vmatmul.msk.f32.vlgmr.msra.gmra.mxu3 %vm304_vm2, %v1222_v19  ;;  %v6546_v8 = vsel %vm1093_vm7, %v1094_v12, %v6471_v36  ;;  %v1195_v36 = vadd.f32 %v6529_v58, %v1194_v14 }
 0x352   :  { %v1172_v29 = vadd.f32 %v5276_v16, %v1171_v0  ;;  %5063 = vmatmul.msk.f32.vlgmr.msra.gmra.mxu0 %vm304_vm2, %v1222_v19  ;;  %1527 = vmatpush.msra.mxu2 %v6235_v47  ;;  %v6558_v47 = vld [vmem:[#allocation6 + $0x38] sm:$0xff] }
 0x353   :  { %1611 = vmatpush.msra.mxu3 %v6252_v53  ;;  %1631 = vmatpush.msra.mxu0 %v6551_v45  ;;  %v1202_v53 = vand.u32 2147483648, %v6525_v60  ;;  %v1199_v62 = vsel %vm1198_vm3, %v6529_v58, %v1195_v36 }
 0x354   :  { %v1176_v26 = vsel %vm1175_vm12, %v5276_v16, %v1172_v29  ;;  %1528 = vmatpush.msra.mxu2 %v6238_v48  ;;  %v1200_v48 = vand.u32 2147483647, %v6525_v60  ;;  %v6609_v16 = vld [vmem:[#allocation2 + $0x38] sm:$0xff] }
 0x355   :  { %v1181_v13 = vsel %vm1178_vm13, %v1180_v43, %v1176_v26  ;;  %1612 = vmatpush.msra.mxu3 %v6261_v55  ;;  %1632 = vmatpush.msra.mxu0 %v6558_v47 }
 0x356   :  { %v1209_v51 = vmul.f32 %v1207_v50, %v1181_v13  ;;  %1529 = vmatpush.msra.mxu2 %v6562_v17  ;;  %vm1201_vm5 = vcmp.eq.f32.partialorder %v1200_v48, 8.507059e+37 }
 0x357   :  { %1613 = vmatpush.msra.mxu3 %v6268_v57  ;;  %1633 = vmatpush.msra.mxu0 %v6568_v61  ;;  %v1203_v57 = vor.u32 1.1754944e-38, %v1202_v53 }
 0x358   :  { %v1210_v55 = vadd.f32 %v1209_v51, %v6410_v38  ;;  %1530 = vmatpush.msra.mxu2 %v6572_v54 }
 0x359   :  { %1614 = vmatpush.msra.mxu3 %v6277_v59  ;;  %1634 = vmatpush.msra.mxu0 %v6577_v21  ;;  %v1204_v60 = vsel %vm1201_vm5, %v1203_v57, %v1199_v62 }
 0x35a   :  { %5277 = vtanh.f32 %v1210_v55  ;;  %v1212_v56 = vsub.f32 1.0, %v1204_v60  ;;  %v1216_v31 = vmul.f32 %v1214_v10, %v1204_v60 }
 0x360   :  { %v5278_v1 = vpop.eup %5277 }
 0x361   :  { %v1213_v30 = vmul.f32 %v5278_v1, %v1212_v56 }
 0x363   :  { %v6581_v15 = vadd.f32 %v1216_v31, %v1213_v30 }
 0x365   :  { %v1219_v59 = vperm.slane %v6581_v15, 5  ;;  %v1347_v58 = vrot.slane %v6581_v15, 5 }
 0x367   :  { %v6589_v27 = vsel %vm1218_vm6, %v1219_v59, %v6499_v46  ;;  %5066 = vmatmul.msk.f32.vlgmr.msrb.gmra.mxu1 %vm304_vm2, %v1347_v58  ;;  %5067 = vmatmul.msk.f32.vlgmr.msrb.gmra.mxu2 %vm304_vm2, %v1347_v58  ;;  %v6603_v46 = vld [vmem:[#allocation6 + $0x40] sm:$0xff] }
 0x368   :  { %5068 = vmatmul.msk.f32.vlgmr.msrb.gmra.mxu3 %vm304_vm2, %v1347_v58  ;;  %1651 = vmatpush.msrb.mxu1 %v6594_v49 }
 0x369   :  { %1735 = vmatpush.msrb.mxu2 %v6597_v44  ;;  %1755 = vmatpush.msrb.mxu3 %v6600_v42 }
 0x36a   :  { %1652 = vmatpush.msrb.mxu1 %v6603_v46 }
 0x36b   :  { %1736 = vmatpush.msrb.mxu2 %v6606_v22  ;;  %1756 = vmatpush.msrb.mxu3 %v6609_v16 }
 0x36c   :  { %1653 = vmatpush.msrb.mxu1 %v6612_v6 }
 0x36d   :  { %1737 = vmatpush.msrb.mxu2 %v6615_v33  ;;  %1757 = vmatpush.msrb.mxu3 %v6618_v5 }
 0x36e   :  { %1654 = vmatpush.msrb.mxu1 %v6298_v63 }
 0x36f   :  { %1738 = vmatpush.msrb.mxu2 %v6622_v52  ;;  %1758 = vmatpush.msrb.mxu3 %v6625_v3 }
 0x3cf   :  { %v1282_v56 = vpop.f32.mrf.mxu0 }
 0x3d4   :  { %v1242_v25 = vpop.f32.mrf.mxu2  ;;  %v1262_v12 = vpop.f32.mrf.mxu3 }
 0x3d5   :  { %v1243_v37 = vadd.f32 %v1242_v25, %v6333_v2  ;;  %v1263_v19 = vadd.f32 %v1262_v12, %v6356_v28  ;;  %v1283_v25 = vadd.f32 %v1282_v56, %v6375_v20 }
 0x3d7   :  { %v1286_v18 = vrot.slane %v1243_v37, 5  ;;  %v1309_v0 = vrot.slane %v1263_v19, 5 }
 0x3d9   :  { %v1288_v40 = vadd.f32 %v1286_v18, %v6337_v7  ;;  %v1311_v63 = vadd.f32 %v1309_v0, %v6362_v35 }
 0x3db   :  { %v5064_v14 = vmul.f32 -1.442695, %v1288_v40  ;;  %v5065_v29 = vmul.f32 -1.442695, %v1311_v63 }
 0x3dd   :  { %5279 = vpow2.f32 %v5064_v14 }
 0x3de   :  { %5281 = vpow2.f32 %v5065_v29 }
 0x3e3   :  { %v5280_v43 = vpop.eup %5279 }
 0x3e4   :  { %v5282_v50 = vpop.eup %5281  ;;  %v1292_v26 = vadd.f32 1.0, %v5280_v43  ;;  %v1367_v36 = vpop.f32.mrf.mxu1  ;;  %v1332_v43 = vrot.slane %v1283_v25, 5  ;;  %v1339_v25 = vrot.slane %v6534_v24, 7 }
 0x3e5   :  { %v1315_v13 = vadd.f32 1.0, %v5282_v50  ;;  %v1368_v53 = vadd.f32 %v1367_v36, %v6368_v39 }
 0x3e6   :  { %5283 = vrcp.f32 %v1292_v26  ;;  %v1304_v12 = vand.u32 2147483648, %v1292_v26  ;;  %v1302_v18 = vand.u32 2147483647, %v1292_v26  ;;  %vm1298_vm11 = vweird.f32 %v1292_v26 }
 0x3e7   :  { %5285 = vrcp.f32 %v1315_v13  ;;  %v1411_v51 = vrot.slane %v1368_v53, 4  ;;  %vm1321_vm15 = vweird.f32 %v1315_v13 }
 0x3e8   :  { %v1305_v29 = vor.u32 1.1754944e-38, %v1304_v12  ;;  %vm1303_vm13 = vcmp.eq.f32.partialorder %v1302_v18, 8.507059e+37 }
 0x3e9   :  { %v1413_v48 = vadd.f32 %v1411_v51, %v6372_v9 }
 0x3ea   :  { %v1387_v55 = vpop.f32.mrf.mxu2 }
 0x3eb   :  { %v1388_v62 = vadd.f32 %v1387_v55, %v6346_v11  ;;  %v5069_v60 = vmul.f32 -1.442695, %v1413_v48  ;;  %v1327_v55 = vand.u32 2147483648, %v1315_v13 }
 0x3ec   :  { %v5284_v57 = vpop.eup %5283 }
 0x3ed   :  { %v5286_v10 = vpop.eup %5285  ;;  %v1294_v1 = vmul.f32 %v5284_v57, %v1292_v26  ;;  %v1434_v30 = vrot.slane %v1388_v62, 4  ;;  %5287 = vpow2.f32 %v5069_v60  ;;  %vm1299_vm8 = vweird.f32 %v5284_v57 }
 0x3ee   :  { %v1317_v31 = vmul.f32 %v5286_v10, %v1315_v13  ;;  %vm1300_vm12 = vmor %vm1298_vm11, %vm1299_vm8  ;;  %vm1322_vm14 = vweird.f32 %v5286_v10  ;;  %v1325_v62 = vand.u32 2147483647, %v1315_v13 }
 0x3ef   :  { %v1295_v59 = vsub.f32 1.0, %v1294_v1  ;;  %v1436_v58 = vadd.f32 %v1434_v30, %v6358_v32  ;;  %vm1323_vm3 = vmor %vm1321_vm15, %vm1322_vm14  ;;  %v1328_v30 = vor.u32 1.1754944e-38, %v1327_v55 }
 0x3f0   :  { %v1318_v37 = vsub.f32 1.0, %v1317_v31  ;;  %vm1326_vm5 = vcmp.eq.f32.partialorder %v1325_v62, 8.507059e+37 }
 0x3f1   :  { %v1296_v19 = vmul.f32 %v5284_v57, %v1295_v59  ;;  %v5070_v0 = vmul.f32 -1.442695, %v1436_v58  ;;  %v1407_v59 = vpop.f32.mrf.mxu3 }
 0x3f2   :  { %v1319_v40 = vmul.f32 %v5286_v10, %v1318_v37  ;;  %v1408_v13 = vadd.f32 %v1407_v59, %v6390_v34  ;;  %v6653_v59 = vld [vmem:[#allocation2 + $0x58] sm:$0xff] }
 0x3f3   :  { %v1297_v63 = vadd.f32 %v5284_v57, %v1296_v19  ;;  %5289 = vpow2.f32 %v5070_v0  ;;  %v5288_v14 = vpop.eup %5287 }
 0x3f4   :  { %v1417_v36 = vadd.f32 1.0, %v5288_v14  ;;  %v1320_v51 = vadd.f32 %v5286_v10, %v1319_v40 }
 0x3f5   :  { %v1301_v50 = vsel %vm1300_vm12, %v5284_v57, %v1297_v63 }
 0x3f6   :  { %v1306_v53 = vsel %vm1303_vm13, %v1305_v29, %v1301_v50  ;;  %5291 = vrcp.f32 %v1417_v36  ;;  %v1324_v26 = vsel %vm1323_vm3, %v5286_v10, %v1320_v51  ;;  %v1427_v18 = vand.u32 2147483647, %v1417_v36 }
 0x3f7   :  { %v1334_v48 = vmul.f32 %v1332_v43, %v1306_v53  ;;  %v1329_v31 = vsel %vm1326_vm5, %v1328_v30, %v1324_v26  ;;  %v1429_v0 = vand.u32 2147483648, %v1417_v36  ;;  %vm1423_vm11 = vweird.f32 %v1417_v36 }
 0x3f8   :  { %v1337_v37 = vsub.f32 1.0, %v1329_v31  ;;  %v1341_v14 = vmul.f32 %v1339_v25, %v1329_v31  ;;  %v1457_v51 = vrot.slane %v1408_v13, 4  ;;  %vm1343_vm13 = vcmp.eq.s32.totalorder %v6454_v41, 3 }
 0x3f9   :  { %v5290_v60 = vpop.eup %5289  ;;  %v1335_v56 = vadd.f32 %v1334_v48, %v6382_v4  ;;  %v1430_v24 = vor.u32 1.1754944e-38, %v1429_v0  ;;  %vm1428_vm14 = vcmp.eq.f32.partialorder %v1427_v18, 8.507059e+37  ;;  %v6675_v18 = vld [vmem:[#allocation6 + $0x18] sm:$0xff]  ;;  %v6680_v0 = vld [vmem:[#allocation6] sm:$0xff] }
 0x3fa   :  { %v1440_v1 = vadd.f32 1.0, %v5290_v60 }
 0x3fb   :  { %5293 = vtanh.f32 %v1335_v56 }
 0x3fc   :  { %5295 = vrcp.f32 %v1440_v1  ;;  %v5292_v57 = vpop.eup %5291  ;;  %v1452_v26 = vand.u32 2147483648, %v1440_v1  ;;  %vm1446_vm3 = vweird.f32 %v1440_v1  ;;  %v1450_v31 = vand.u32 2147483647, %v1440_v1 }
 0x3fd   :  { %v1419_v58 = vmul.f32 %v5292_v57, %v1417_v36  ;;  %vm1424_vm8 = vweird.f32 %v5292_v57 }
 0x3fe   :  { %vm1425_vm12 = vmor %vm1423_vm11, %vm1424_vm8  ;;  %vm1451_vm8 = vcmp.eq.f32.partialorder %v1450_v31, 8.507059e+37  ;;  %vm1468_vm11 = vcmp.eq.s32.totalorder %v6454_v41, 4 }
 0x3ff   :  { %v1420_v12 = vsub.f32 1.0, %v1419_v58 }
 0x401   :  { %v5294_v19 = vpop.eup %5293  ;;  %v1421_v10 = vmul.f32 %v5292_v57, %v1420_v12  ;;  %v6661_v12 = vld [vmem:[#allocation6 + $0x48] sm:$0xff] }
 0x402   :  { %v5296_v40 = vpop.eup %5295  ;;  %v1338_v63 = vmul.f32 %v5294_v19, %v1337_v37  ;;  %v1453_v37 = vor.u32 1.1754944e-38, %v1452_v26  ;;  %v6670_v19 = vld [vmem:[#allocation6 + $0x30] sm:$0xff] }
 0x403   :  { %v1442_v29 = vmul.f32 %v5296_v40, %v1440_v1  ;;  %v1422_v43 = vadd.f32 %v5292_v57, %v1421_v10  ;;  %vm1447_vm15 = vweird.f32 %v5296_v40  ;;  %v6667_v1 = vld [vmem:[#allocation2 + $0x40] sm:$0xff]  ;;  %v1464_v10 = vrot.slane %v6581_v15, 1  ;;  %v6707_v15 = vld [vmem:[#allocation6 + $0x10] sm:$0xff] }
 0x404   :  { %v6640_v50 = vadd.f32 %v1341_v14, %v1338_v63  ;;  %vm6656_vm5 = vmor %vm1446_vm3, %vm1447_vm15 }
 0x405   :  { %v1443_v53 = vsub.f32 1.0, %v1442_v29  ;;  %v1426_v48 = vsel %vm1425_vm12, %v5292_v57, %v1422_v43 }
 0x406   :  { %v1344_v55 = vperm.slane %v6640_v50, 3  ;;  %v1472_v62 = vrot.slane %v6640_v50, 3  ;;  %v1431_v56 = vsel %vm1428_vm14, %v1430_v24, %v1426_v48 }
 0x407   :  { %v1444_v60 = vmul.f32 %v5296_v40, %v1443_v53  ;;  %v1459_v30 = vmul.f32 %v1457_v51, %v1431_v56 }
 0x408   :  { %5071 = vmatmul.msk.f32.vlgmr.msrb.gmra.mxu0 %vm304_vm2, %v1472_v62  ;;  %5072 = vmatmul.msk.f32.vlgmr.msra.gmra.mxu1 %vm304_vm2, %v1472_v62  ;;  %v6650_v36 = vsel %vm1343_vm13, %v1344_v55, %v6546_v8 }
 0x409   :  { %v1445_v57 = vadd.f32 %v5296_v40, %v1444_v60  ;;  %5073 = vmatmul.msk.f32.vlgmr.msra.gmra.mxu2 %vm304_vm2, %v1472_v62  ;;  %1775 = vmatpush.msrb.mxu0 %v6653_v59  ;;  %v1460_v25 = vadd.f32 %v1459_v30, %v6410_v38 }
 0x40a   :  { %1859 = vmatpush.msra.mxu1 %v6661_v12  ;;  %1879 = vmatpush.msra.mxu2 %v6551_v45 }
 0x40b   :  { %v1449_v8 = vsel %vm6656_vm5, %v5296_v40, %v1445_v57  ;;  %1776 = vmatpush.msrb.mxu0 %v6667_v1  ;;  %5297 = vtanh.f32 %v1460_v25 }
 0x40c   :  { %1860 = vmatpush.msra.mxu1 %v6670_v19  ;;  %1880 = vmatpush.msra.mxu2 %v6558_v47  ;;  %v1454_v13 = vsel %vm1451_vm8, %v1453_v37, %v1449_v8 }
 0x40d   :  { %1777 = vmatpush.msrb.mxu0 %v6562_v17  ;;  %v1462_v40 = vsub.f32 1.0, %v1454_v13  ;;  %v1466_v29 = vmul.f32 %v1464_v10, %v1454_v13 }
 0x40e   :  { %1861 = vmatpush.msra.mxu1 %v6675_v18  ;;  %1881 = vmatpush.msra.mxu2 %v6568_v61 }
 0x40f   :  { %1778 = vmatpush.msrb.mxu0 %v6572_v54 }
 0x410   :  { %1862 = vmatpush.msra.mxu1 %v6680_v0  ;;  %1882 = vmatpush.msra.mxu2 %v6577_v21 }
 0x411   :  { %v5298_v63 = vpop.eup %5297 }
 0x412   :  { %v1463_v14 = vmul.f32 %v5298_v63, %v1462_v40 }
 0x414   :  { %v6685_v43 = vadd.f32 %v1466_v29, %v1463_v14 }
 0x416   :  { %v1469_v53 = vperm.slane %v6685_v43, 4  ;;  %v1596_v24 = vrot.slane %v6685_v43, 4 }
 0x418   :  { %v6693_v51 = vsel %vm1468_vm11, %v1469_v53, %v6589_v27  ;;  %5076 = vmatmul.msk.f32.vlgmr.msra.gmra.mxu3 %vm304_vm2, %v1596_v24  ;;  %5077 = vmatmul.msk.f32.vlgmr.msra.gmra.mxu0 %vm304_vm2, %v1596_v24 }
 0x419   :  { %5078 = vmatmul.msk.f32.vlgmr.msrb.gmra.mxu1 %vm304_vm2, %v1596_v24  ;;  %1899 = vmatpush.msra.mxu3 %v6594_v49 }
 0x41a   :  { %1983 = vmatpush.msra.mxu0 %v6597_v44  ;;  %2003 = vmatpush.msrb.mxu1 %v6600_v42 }
 0x41b   :  { %1900 = vmatpush.msra.mxu3 %v6603_v46 }
 0x41c   :  { %1984 = vmatpush.msra.mxu0 %v6606_v22  ;;  %2004 = vmatpush.msrb.mxu1 %v6609_v16 }
 0x41d   :  { %1901 = vmatpush.msra.mxu3 %v6612_v6 }
 0x41e   :  { %1985 = vmatpush.msra.mxu0 %v6615_v33  ;;  %2005 = vmatpush.msrb.mxu1 %v6618_v5 }
 0x41f   :  { %1902 = vmatpush.msra.mxu3 %v6707_v15 }
 0x420   :  { %1986 = vmatpush.msra.mxu0 %v6622_v52  ;;  %2006 = vmatpush.msrb.mxu1 %v6625_v3 }
 0x485   :  { %v1492_v27 = vpop.f32.mrf.mxu0  ;;  %v1512_v48 = vpop.f32.mrf.mxu1 }
 0x486   :  { %v1493_v55 = vadd.f32 %v1492_v27, %v6333_v2  ;;  %v1513_v62 = vadd.f32 %v1512_v48, %v6356_v28 }
 0x488   :  { %v1536_v60 = vrot.slane %v1493_v55, 4  ;;  %v1559_v56 = vrot.slane %v1513_v62, 4 }
 0x48a   :  { %v1538_v26 = vadd.f32 %v1536_v60, %v6337_v7  ;;  %v1561_v30 = vadd.f32 %v1559_v56, %v6362_v35 }
 0x48c   :  { %v5074_v57 = vmul.f32 -1.442695, %v1538_v26  ;;  %v5075_v31 = vmul.f32 -1.442695, %v1561_v30  ;;  %v1532_v55 = vpop.f32.mrf.mxu2 }
 0x48e   :  { %5299 = vpow2.f32 %v5074_v57 }
 0x48f   :  { %5301 = vpow2.f32 %v5075_v31  ;;  %v1533_v31 = vadd.f32 %v1532_v55, %v6375_v20 }
 0x494   :  { %v5300_v58 = vpop.eup %5299 }
 0x495   :  { %v5302_v25 = vpop.eup %5301  ;;  %v1542_v8 = vadd.f32 1.0, %v5300_v58  ;;  %v1636_v13 = vpop.f32.mrf.mxu0 }
 0x496   :  { %v1565_v37 = vadd.f32 1.0, %v5302_v25  ;;  %v1637_v40 = vadd.f32 %v1636_v13, %v6346_v11 }
 0x497   :  { %5303 = vrcp.f32 %v1542_v8  ;;  %v1554_v30 = vand.u32 2147483648, %v1542_v8  ;;  %v1552_v25 = vand.u32 2147483647, %v1542_v8  ;;  %vm1548_vm14 = vweird.f32 %v1542_v8 }
 0x498   :  { %5305 = vrcp.f32 %v1565_v37  ;;  %v1683_v10 = vrot.slane %v1637_v40, 5  ;;  %vm1571_vm8 = vweird.f32 %v1565_v37 }
 0x499   :  { %vm1553_vm3 = vcmp.eq.f32.partialorder %v1552_v25, 8.507059e+37 }
 0x49a   :  { %v1685_v29 = vadd.f32 %v1683_v10, %v6358_v32 }
 0x49b   :  { %v1616_v63 = vpop.f32.mrf.mxu3 }
 0x49c   :  { %v1617_v53 = vadd.f32 %v1616_v63, %v6368_v39  ;;  %v5080_v62 = vmul.f32 -1.442695, %v1685_v29  ;;  %v1555_v63 = vor.u32 1.1754944e-38, %v1554_v30 }
 0x49d   :  { %v5304_v14 = vpop.eup %5303 }
 0x49e   :  { %v5306_v24 = vpop.eup %5305  ;;  %v1544_v27 = vmul.f32 %v5304_v14, %v1542_v8  ;;  %v1660_v60 = vrot.slane %v1617_v53, 5  ;;  %5307 = vpow2.f32 %v5080_v62  ;;  %vm1549_vm12 = vweird.f32 %v5304_v14 }
 0x49f   :  { %v1567_v48 = vmul.f32 %v5306_v24, %v1565_v37  ;;  %vm1550_vm15 = vmor %vm1548_vm14, %vm1549_vm12  ;;  %v1582_v53 = vrot.slane %v1533_v31, 4  ;;  %vm1572_vm5 = vweird.f32 %v5306_v24 }
 0x4a0   :  { %v1545_v56 = vsub.f32 1.0, %v1544_v27  ;;  %v1662_v57 = vadd.f32 %v1660_v60, %v6372_v9  ;;  %v1577_v60 = vand.u32 2147483648, %v1565_v37  ;;  %vm1573_vm1 = vmor %vm1571_vm8, %vm1572_vm5 }
 0x4a1   :  { %v1568_v26 = vsub.f32 1.0, %v1567_v48 }
 0x4a2   :  { %v1546_v58 = vmul.f32 %v5304_v14, %v1545_v56  ;;  %v5079_v40 = vmul.f32 -1.442695, %v1662_v57  ;;  %v1575_v56 = vand.u32 2147483647, %v1565_v37 }
 0x4a3   :  { %v1569_v13 = vmul.f32 %v5306_v24, %v1568_v26 }
 0x4a4   :  { %v1547_v10 = vadd.f32 %v5304_v14, %v1546_v58  ;;  %5309 = vpow2.f32 %v5079_v40  ;;  %v5308_v27 = vpop.eup %5307  ;;  %vm1576_vm12 = vcmp.eq.f32.partialorder %v1575_v56, 8.507059e+37 }
 0x4a5   :  { %v1570_v62 = vadd.f32 %v5306_v24, %v1569_v13  ;;  %v6721_v55 = vadd.f32 1.0, %v5308_v27  ;;  %v1589_v13 = vrot.slane %v6640_v50, 7 }
 0x4a6   :  { %v1551_v29 = vsel %vm1550_vm15, %v5304_v14, %v1547_v10  ;;  %v1578_v14 = vor.u32 1.1754944e-38, %v1577_v60 }
 0x4a7   :  { %v1556_v48 = vsel %vm1553_vm3, %v1555_v63, %v1551_v29  ;;  %5311 = vrcp.f32 %v6721_v55  ;;  %v1574_v30 = vsel %vm1573_vm1, %v5306_v24, %v1570_v62  ;;  %vm1695_vm5 = vweird.f32 %v6721_v55 }
 0x4a8   :  { %v1584_v23 = vmul.f32 %v1582_v53, %v1556_v48  ;;  %v1579_v31 = vsel %vm1576_vm12, %v1578_v14, %v1574_v30  ;;  %v1656_v53 = vpop.f32.mrf.mxu1 }
 0x4a9   :  { %v1587_v25 = vsub.f32 1.0, %v1579_v31  ;;  %v1591_v63 = vmul.f32 %v1589_v13, %v1579_v31  ;;  %v1657_v60 = vadd.f32 %v1656_v53, %v6390_v34 }
 0x4aa   :  { %v1585_v26 = vadd.f32 %v1584_v23, %v6382_v4  ;;  %v5310_v8 = vpop.eup %5309 }
 0x4ab   :  { %v1666_v57 = vadd.f32 1.0, %v5310_v8  ;;  %v1706_v13 = vrot.slane %v1657_v60, 5 }
 0x4ac   :  { %5313 = vtanh.f32 %v1585_v26 }
 0x4ad   :  { %5315 = vrcp.f32 %v1666_v57  ;;  %v5312_v58 = vpop.eup %5311  ;;  %v1678_v56 = vand.u32 2147483648, %v1666_v57  ;;  %v1676_v8 = vand.u32 2147483647, %v1666_v57  ;;  %vm1672_vm14 = vweird.f32 %v1666_v57 }
 0x4ae   :  { %v1691_v37 = vmul.f32 %v5312_v58, %v6721_v55  ;;  %vm1696_vm3 = vweird.f32 %v5312_v58 }
 0x4af   :  { %vm1697_vm8 = vmor %vm1695_vm5, %vm1696_vm3 }
 0x4b0   :  { %v1692_v27 = vsub.f32 1.0, %v1691_v37 }
 0x4b2   :  { %v5314_v40 = vpop.eup %5313  ;;  %v1693_v14 = vmul.f32 %v5312_v58, %v1692_v27 }
 0x4b3   :  { %v1588_v10 = vmul.f32 %v5314_v40, %v1587_v25  ;;  %v5316_v23 = vpop.eup %5315  ;;  %v1679_v25 = vor.u32 1.1754944e-38, %v1678_v56 }
 0x4b4   :  { %v1668_v24 = vmul.f32 %v5316_v23, %v1666_v57  ;;  %vm1673_vm1 = vweird.f32 %v5316_v23  ;;  %v1694_v40 = vadd.f32 %v5312_v58, %v1693_v14  ;;  %v1701_v57 = vand.u32 2147483648, %v6721_v55 }
 0x4b5   :  { %v6727_v29 = vadd.f32 %v1591_v63, %v1588_v10  ;;  %vm1674_vm15 = vmor %vm1672_vm14, %vm1673_vm1  ;;  %v1699_v63 = vand.u32 2147483647, %v6721_v55  ;;  %v1713_v55 = vrot.slane %v6685_v43, 1 }
 0x4b6   :  { %v1669_v62 = vsub.f32 1.0, %v1668_v24  ;;  %v1698_v53 = vsel %vm1697_vm8, %v5312_v58, %v1694_v40  ;;  %v1702_v24 = vor.u32 1.1754944e-38, %v1701_v57 }
 0x4b7   :  { %v1593_v48 = vperm.slane %v6727_v29, 4  ;;  %v1720_v26 = vrot.slane %v6727_v29, 4  ;;  %vm1700_vm12 = vcmp.eq.f32.partialorder %v1699_v63, 8.507059e+37 }
 0x4b8   :  { %v1670_v50 = vmul.f32 %v5316_v23, %v1669_v62  ;;  %v1703_v27 = vsel %vm1700_vm12, %v1702_v24, %v1698_v53 }
 0x4b9   :  { %v6735_v30 = vsel %vm1468_vm11, %v1593_v48, %v6650_v36  ;;  %5081 = vmatmul.msk.f32.vlgmr.msrb.gmra.mxu2 %vm304_vm2, %v1720_v26  ;;  %5082 = vmatmul.msk.f32.vlgmr.msrb.gmra.mxu3 %vm304_vm2, %v1720_v26  ;;  %vm1677_vm11 = vcmp.eq.f32.partialorder %v1676_v8, 8.507059e+37  ;;  %v1711_v48 = vsub.f32 1.0, %v1703_v27  ;;  %v1715_v56 = vmul.f32 %v1713_v55, %v1703_v27 }
 0x4ba   :  { %v1671_v31 = vadd.f32 %v5316_v23, %v1670_v50  ;;  %5083 = vmatmul.msk.f32.vlgmr.msrb.gmra.mxu0 %vm304_vm2, %v1720_v26  ;;  %2023 = vmatpush.msrb.mxu2 %v6653_v59 }
 0x4bb   :  { %2107 = vmatpush.msrb.mxu3 %v6661_v12  ;;  %2127 = vmatpush.msrb.mxu0 %v6551_v45 }
 0x4bc   :  { %v1675_v36 = vsel %vm1674_vm15, %v5316_v23, %v1671_v31  ;;  %2024 = vmatpush.msrb.mxu2 %v6667_v1 }
 0x4bd   :  { %v1680_v37 = vsel %vm1677_vm11, %v1679_v25, %v1675_v36  ;;  %2108 = vmatpush.msrb.mxu3 %v6670_v19  ;;  %2128 = vmatpush.msrb.mxu0 %v6558_v47 }
 0x4be   :  { %v1708_v10 = vmul.f32 %v1706_v13, %v1680_v37  ;;  %2025 = vmatpush.msrb.mxu2 %v6562_v17 }
 0x4bf   :  { %2109 = vmatpush.msrb.mxu3 %v6675_v18  ;;  %2129 = vmatpush.msrb.mxu0 %v6568_v61 }
 0x4c0   :  { %v1709_v23 = vadd.f32 %v1708_v10, %v6410_v38  ;;  %2026 = vmatpush.msrb.mxu2 %v6572_v54 }
 0x4c1   :  { %2110 = vmatpush.msrb.mxu3 %v6680_v0  ;;  %2130 = vmatpush.msrb.mxu0 %v6577_v21 }
 0x4c2   :  { %5317 = vtanh.f32 %v1709_v23 }
 0x4c8   :  { %v5318_v62 = vpop.eup %5317 }
 0x4c9   :  { %v1712_v60 = vmul.f32 %v5318_v62, %v1711_v48 }
 0x4cb   :  { %v6757_v26 = vadd.f32 %v1715_v56, %v1712_v60 }
 0x4cd   :  { %v1717_v50 = vperm.slane %v6757_v26, 3  ;;  %v1844_v58 = vrot.slane %v6757_v26, 3 }
 0x4cf   :  { %5086 = vmatmul.msk.f32.vlgmr.msra.gmra.mxu1 %vm304_vm2, %v1844_v58  ;;  %5087 = vmatmul.msk.f32.vlgmr.msra.gmra.mxu2 %vm304_vm2, %v1844_v58  ;;  %v6766_v8 = vsel %vm1343_vm13, %v1717_v50, %v6693_v51 }
 0x4d0   :  { %5088 = vmatmul.msk.f32.vlgmr.msra.gmra.mxu3 %vm304_vm2, %v1844_v58  ;;  %2147 = vmatpush.msra.mxu1 %v6594_v49 }
 0x4d1   :  { %2231 = vmatpush.msra.mxu2 %v6597_v44  ;;  %2251 = vmatpush.msra.mxu3 %v6600_v42 }
 0x4d2   :  { %2148 = vmatpush.msra.mxu1 %v6603_v46 }
 0x4d3   :  { %2232 = vmatpush.msra.mxu2 %v6606_v22  ;;  %2252 = vmatpush.msra.mxu3 %v6609_v16 }
 0x4d4   :  { %2149 = vmatpush.msra.mxu1 %v6612_v6 }
 0x4d5   :  { %2233 = vmatpush.msra.mxu2 %v6615_v33  ;;  %2253 = vmatpush.msra.mxu3 %v6618_v5 }
 0x4d6   :  { %2150 = vmatpush.msra.mxu1 %v6707_v15 }
 0x4d7   :  { %2234 = vmatpush.msra.mxu2 %v6622_v52  ;;  %2254 = vmatpush.msra.mxu3 %v6625_v3 }
 0x537   :  { %v1780_v27 = vpop.f32.mrf.mxu0 }
 0x538   :  { %v1781_v50 = vadd.f32 %v1780_v27, %v6375_v20 }
 0x53c   :  { %v1740_v44 = vpop.f32.mrf.mxu2  ;;  %v1760_v42 = vpop.f32.mrf.mxu3 }
 0x53d   :  { %v1741_v43 = vadd.f32 %v1740_v44, %v6333_v2  ;;  %v1761_v22 = vadd.f32 %v1760_v42, %v6356_v28 }
 0x53f   :  { %v1784_v51 = vrot.slane %v1741_v43, 3  ;;  %v1807_v16 = vrot.slane %v1761_v22, 3 }
 0x541   :  { %v1786_v14 = vadd.f32 %v1784_v51, %v6337_v7  ;;  %v1809_v33 = vadd.f32 %v1807_v16, %v6362_v35 }
 0x543   :  { %v5084_v31 = vmul.f32 -1.442695, %v1786_v14  ;;  %v5085_v5 = vmul.f32 -1.442695, %v1809_v33 }
 0x545   :  { %5319 = vpow2.f32 %v5084_v31  ;;  %v1830_v31 = vrot.slane %v1781_v50, 3 }
 0x546   :  { %5321 = vpow2.f32 %v5085_v5 }
 0x54b   :  { %v5320_v25 = vpop.eup %5319 }
 0x54c   :  { %v5322_v52 = vpop.eup %5321  ;;  %v1790_v13 = vadd.f32 1.0, %v5320_v25  ;;  %v1864_v3 = vpop.f32.mrf.mxu1 }
 0x54d   :  { %v1813_v36 = vadd.f32 1.0, %v5322_v52  ;;  %v1865_v40 = vadd.f32 %v1864_v3, %v6368_v39 }
 0x54e   :  { %5323 = vrcp.f32 %v1790_v13  ;;  %v1802_v58 = vand.u32 2147483648, %v1790_v13  ;;  %v1800_v43 = vand.u32 2147483647, %v1790_v13  ;;  %vm1796_vm1 = vweird.f32 %v1790_v13 }
 0x54f   :  { %5325 = vrcp.f32 %v1813_v36  ;;  %v1908_v37 = vrot.slane %v1865_v40, 6  ;;  %vm1819_vm3 = vweird.f32 %v1813_v36 }
 0x550   :  { %v1803_v33 = vor.u32 1.1754944e-38, %v1802_v58  ;;  %vm1801_vm15 = vcmp.eq.f32.partialorder %v1800_v43, 8.507059e+37 }
 0x551   :  { %v1910_v57 = vadd.f32 %v1908_v37, %v6372_v9  ;;  %v1825_v37 = vand.u32 2147483648, %v1813_v36 }
 0x552   :  { %v1884_v10 = vpop.f32.mrf.mxu2 }
 0x553   :  { %v1885_v63 = vadd.f32 %v1884_v10, %v6346_v11  ;;  %v5089_v53 = vmul.f32 -1.442695, %v1910_v57  ;;  %v1823_v57 = vand.u32 2147483647, %v1813_v36  ;;  %v1826_v27 = vor.u32 1.1754944e-38, %v1825_v37 }
 0x554   :  { %v5324_v23 = vpop.eup %5323 }
 0x555   :  { %v5326_v24 = vpop.eup %5325  ;;  %v1792_v55 = vmul.f32 %v5324_v23, %v1790_v13  ;;  %v1931_v48 = vrot.slane %v1885_v63, 6  ;;  %5327 = vpow2.f32 %v5089_v53  ;;  %vm1797_vm13 = vweird.f32 %v5324_v23 }
 0x556   :  { %v1815_v62 = vmul.f32 %v5326_v24, %v1813_v36  ;;  %vm1798_vm14 = vmor %vm1796_vm1, %vm1797_vm13  ;;  %vm1820_vm11 = vweird.f32 %v5326_v24  ;;  %vm1824_vm8 = vcmp.eq.f32.partialorder %v1823_v57, 8.507059e+37 }
 0x557   :  { %v1793_v60 = vsub.f32 1.0, %v1792_v55  ;;  %v1933_v56 = vadd.f32 %v1931_v48, %v6358_v32  ;;  %vm1821_vm5 = vmor %vm1819_vm3, %vm1820_vm11  ;;  %v1904_v48 = vpop.f32.mrf.mxu3 }
 0x558   :  { %v1816_v44 = vsub.f32 1.0, %v1815_v62  ;;  %v1905_v36 = vadd.f32 %v1904_v48, %v6390_v34 }
 0x559   :  { %v1794_v42 = vmul.f32 %v5324_v23, %v1793_v60  ;;  %v5090_v22 = vmul.f32 -1.442695, %v1933_v56  ;;  %v1837_v60 = vrot.slane %v6727_v29, 7 }
 0x55a   :  { %v1817_v51 = vmul.f32 %v5326_v24, %v1816_v44 }
 0x55b   :  { %v1795_v16 = vadd.f32 %v5324_v23, %v1794_v42  ;;  %5329 = vpow2.f32 %v5090_v22  ;;  %v5328_v14 = vpop.eup %5327 }
 0x55c   :  { %v1914_v25 = vadd.f32 1.0, %v5328_v14  ;;  %v1818_v3 = vadd.f32 %v5326_v24, %v1817_v51 }
 0x55d   :  { %v1799_v5 = vsel %vm1798_vm14, %v5324_v23, %v1795_v16 }
 0x55e   :  { %v1804_v52 = vsel %vm1801_vm15, %v1803_v33, %v1799_v5  ;;  %5331 = vrcp.f32 %v1914_v25  ;;  %v1822_v13 = vsel %vm1821_vm5, %v5326_v24, %v1818_v3  ;;  %v1924_v44 = vand.u32 2147483647, %v1914_v25 }
 0x55f   :  { %v1832_v40 = vmul.f32 %v1830_v31, %v1804_v52  ;;  %v1827_v55 = vsel %vm1824_vm8, %v1826_v27, %v1822_v13  ;;  %v1926_v42 = vand.u32 2147483648, %v1914_v25  ;;  %vm1920_vm13 = vweird.f32 %v1914_v25 }
 0x560   :  { %v1835_v50 = vsub.f32 1.0, %v1827_v55  ;;  %v1839_v51 = vmul.f32 %v1837_v60, %v1827_v55  ;;  %v1954_v5 = vrot.slane %v1905_v36, 6  ;;  %vm1925_vm14 = vcmp.eq.f32.partialorder %v1924_v44, 8.507059e+37 }
 0x561   :  { %v5330_v10 = vpop.eup %5329  ;;  %v1833_v63 = vadd.f32 %v1832_v40, %v6382_v4  ;;  %v1927_v29 = vor.u32 1.1754944e-38, %v1926_v42 }
 0x562   :  { %v1937_v53 = vadd.f32 1.0, %v5330_v10 }
 0x563   :  { %5333 = vtanh.f32 %v1833_v63 }
 0x564   :  { %5335 = vrcp.f32 %v1937_v53  ;;  %v5332_v23 = vpop.eup %5331  ;;  %v1949_v10 = vand.u32 2147483648, %v1937_v53  ;;  %vm1943_vm11 = vweird.f32 %v1937_v53  ;;  %v1947_v27 = vand.u32 2147483647, %v1937_v53 }
 0x565   :  { %v1916_v62 = vmul.f32 %v5332_v23, %v1914_v25  ;;  %vm1921_vm12 = vweird.f32 %v5332_v23 }
 0x566   :  { %vm1922_vm1 = vmor %vm1920_vm13, %vm1921_vm12  ;;  %v1950_v48 = vor.u32 1.1754944e-38, %v1949_v10 }
 0x567   :  { %v1917_v56 = vsub.f32 1.0, %v1916_v62 }
 0x569   :  { %v5334_v58 = vpop.eup %5333  ;;  %v1918_v24 = vmul.f32 %v5332_v23, %v1917_v56 }
 0x56a   :  { %v5336_v43 = vpop.eup %5335  ;;  %v1836_v22 = vmul.f32 %v5334_v58, %v1835_v50 }
 0x56b   :  { %v1939_v16 = vmul.f32 %v5336_v43, %v1937_v53  ;;  %v1919_v14 = vadd.f32 %v5332_v23, %v1918_v24  ;;  %vm1944_vm15 = vweird.f32 %v5336_v43 }
 0x56c   :  { %v6793_v33 = vadd.f32 %v1839_v51, %v1836_v22  ;;  %vm1945_vm3 = vmor %vm1943_vm11, %vm1944_vm15 }
 0x56d   :  { %v1940_v31 = vsub.f32 1.0, %v1939_v16  ;;  %v1923_v52 = vsel %vm1922_vm1, %v5332_v23, %v1919_v14 }
 0x56e   :  { %v1841_v3 = vperm.slane %v6793_v33, 5  ;;  %v1968_v40 = vrot.slane %v6793_v33, 5  ;;  %v1928_v57 = vsel %vm1925_vm14, %v1927_v29, %v1923_v52 }
 0x56f   :  { %v1941_v37 = vmul.f32 %v5336_v43, %v1940_v31  ;;  %v1956_v63 = vmul.f32 %v1954_v5, %v1928_v57 }
 0x570   :  { %5091 = vmatmul.msk.f32.vlgmr.msra.gmra.mxu0 %vm304_vm2, %v1968_v40  ;;  %5092 = vmatmul.msk.f32.vlgmr.msrb.gmra.mxu1 %vm304_vm2, %v1968_v40  ;;  %v6802_v25 = vsel %vm1218_vm6, %v1841_v3, %v6735_v30  ;;  %vm1948_vm6 = vcmp.eq.f32.partialorder %v1947_v27, 8.507059e+37 }
 0x571   :  { %v1942_v13 = vadd.f32 %v5336_v43, %v1941_v37  ;;  %5093 = vmatmul.msk.f32.vlgmr.msrb.gmra.mxu2 %vm304_vm2, %v1968_v40  ;;  %2271 = vmatpush.msra.mxu0 %v6653_v59  ;;  %v1957_v23 = vadd.f32 %v1956_v63, %v6410_v38 }
 0x572   :  { %2355 = vmatpush.msrb.mxu1 %v6661_v12  ;;  %2375 = vmatpush.msrb.mxu2 %v6551_v45  ;;  %v1961_v12 = vrot.slane %v6757_v26, 1 }
 0x573   :  { %v1946_v55 = vsel %vm1945_vm3, %v5336_v43, %v1942_v13  ;;  %2272 = vmatpush.msra.mxu0 %v6667_v1  ;;  %5337 = vtanh.f32 %v1957_v23 }
 0x574   :  { %2356 = vmatpush.msrb.mxu1 %v6670_v19  ;;  %2376 = vmatpush.msrb.mxu2 %v6558_v47  ;;  %v1951_v59 = vsel %vm1948_vm6, %v1950_v48, %v1946_v55 }
 0x575   :  { %2273 = vmatpush.msra.mxu0 %v6562_v17  ;;  %v1959_v45 = vsub.f32 1.0, %v1951_v59  ;;  %v1963_v47 = vmul.f32 %v1961_v12, %v1951_v59 }
 0x576   :  { %2357 = vmatpush.msrb.mxu1 %v6675_v18  ;;  %2377 = vmatpush.msrb.mxu2 %v6568_v61 }
 0x577   :  { %2274 = vmatpush.msra.mxu0 %v6572_v54 }
 0x578   :  { %2358 = vmatpush.msrb.mxu1 %v6680_v0  ;;  %2378 = vmatpush.msrb.mxu2 %v6577_v21 }
 0x579   :  { %v5338_v1 = vpop.eup %5337 }
 0x57a   :  { %v1960_v19 = vmul.f32 %v5338_v1, %v1959_v45 }
 0x57c   :  { %v6819_v30 = vadd.f32 %v1963_v47, %v1960_v19 }
 0x57e   :  { %v1965_v17 = vperm.slane %v6819_v30, 2  ;;  %v2092_v18 = vrot.slane %v6819_v30, 2 }
 0x580   :  { %5096 = vmatmul.msk.f32.vlgmr.msrb.gmra.mxu3 %vm304_vm2, %v2092_v18  ;;  %5097 = vmatmul.msk.f32.vlgmr.msrb.gmra.mxu0 %vm304_vm2, %v2092_v18  ;;  %v6828_v61 = vsel %vm1093_vm7, %v1965_v17, %v6766_v8 }
 0x581   :  { %5098 = vmatmul.msk.f32.vlgmr.msra.gmra.mxu1 %vm304_vm2, %v2092_v18  ;;  %2395 = vmatpush.msrb.mxu3 %v6594_v49 }
 0x583   :  { %2396 = vmatpush.msrb.mxu3 %v6603_v46 }
 0x585   :  { %2397 = vmatpush.msrb.mxu3 %v6612_v6 }
 0x587   :  { %2398 = vmatpush.msrb.mxu3 %v6707_v15 }
 0x5ed   :  { %v1988_v54 = vpop.f32.mrf.mxu0  ;;  %v2008_v21 = vpop.f32.mrf.mxu1 }
 0x5ee   :  { %v1989_v0 = vadd.f32 %v1988_v54, %v6333_v2  ;;  %v2009_v26 = vadd.f32 %v2008_v21, %v6356_v28 }
 0x5f0   :  { %v2032_v53 = vrot.slane %v1989_v0, 2  ;;  %v2055_v62 = vrot.slane %v2009_v26, 2 }
 0x5f2   :  { %v2034_v8 = vadd.f32 %v2032_v53, %v6337_v7  ;;  %v2057_v60 = vadd.f32 %v2055_v62, %v6362_v35 }
 0x5f4   :  { %v5094_v56 = vmul.f32 -1.442695, %v2034_v8  ;;  %v5095_v49 = vmul.f32 -1.442695, %v2057_v60  ;;  %v2028_v31 = vpop.f32.mrf.mxu2 }
 0x5f5   :  { %v2029_v57 = vadd.f32 %v2028_v31, %v6375_v20 }
 0x5f6   :  { %5339 = vpow2.f32 %v5094_v56  ;;  %v2085_v56 = vrot.slane %v6793_v33, 7 }
 0x5f7   :  { %5341 = vpow2.f32 %v5095_v49  ;;  %v2078_v59 = vrot.slane %v2029_v57, 2 }
 0x5fc   :  { %v5340_v46 = vpop.eup %5339 }
 0x5fd   :  { %v5342_v6 = vpop.eup %5341  ;;  %v2038_v50 = vadd.f32 1.0, %v5340_v46  ;;  %v2132_v58 = vpop.f32.mrf.mxu0 }
 0x5fe   :  { %v2061_v15 = vadd.f32 1.0, %v5342_v6  ;;  %v2133_v36 = vadd.f32 %v2132_v58, %v6346_v11 }
 0x5ff   :  { %5343 = vrcp.f32 %v2038_v50  ;;  %v2050_v40 = vand.u32 2147483648, %v2038_v50  ;;  %v2048_v63 = vand.u32 2147483647, %v2038_v50  ;;  %vm2044_vm5 = vweird.f32 %v2038_v50 }
 0x600   :  { %5345 = vrcp.f32 %v2061_v15  ;;  %v2179_v44 = vrot.slane %v2133_v36, 7  ;;  %v2073_v19 = vand.u32 2147483648, %v2061_v15  ;;  %vm2067_vm1 = vweird.f32 %v2061_v15  ;;  %v2152_v36 = vpop.f32.mrf.mxu1 }
 0x601   :  { %v2051_v55 = vor.u32 1.1754944e-38, %v2050_v40  ;;  %vm2049_vm12 = vcmp.eq.f32.partialorder %v2048_v63, 8.507059e+37  ;;  %v2071_v18 = vand.u32 2147483647, %v2061_v15 }
 0x602   :  { %v2181_v24 = vadd.f32 %v2179_v44, %v6358_v32  ;;  %v2074_v26 = vor.u32 1.1754944e-38, %v2073_v19 }
 0x603   :  { %v2112_v42 = vpop.f32.mrf.mxu3  ;;  %vm2072_vm15 = vcmp.eq.f32.partialorder %v2071_v18, 8.507059e+37 }
 0x604   :  { %v2113_v22 = vadd.f32 %v2112_v42, %v6368_v39  ;;  %v5100_v29 = vmul.f32 -1.442695, %v2181_v24 }
 0x605   :  { %v5344_v43 = vpop.eup %5343 }
 0x606   :  { %v5346_v51 = vpop.eup %5345  ;;  %v2040_v16 = vmul.f32 %v5344_v43, %v2038_v50  ;;  %v2156_v5 = vrot.slane %v2113_v22, 7  ;;  %5347 = vpow2.f32 %v5100_v29  ;;  %vm2045_vm7 = vweird.f32 %v5344_v43 }
 0x607   :  { %v2063_v14 = vmul.f32 %v5346_v51, %v2061_v15  ;;  %vm2046_vm8 = vmor %vm2044_vm5, %vm2045_vm7  ;;  %vm2068_vm13 = vweird.f32 %v5346_v51 }
 0x608   :  { %v2041_v52 = vsub.f32 1.0, %v2040_v16  ;;  %v2158_v37 = vadd.f32 %v2156_v5, %v6372_v9  ;;  %vm2069_vm14 = vmor %vm2067_vm1, %vm2068_vm13 }
 0x609   :  { %v2064_v3 = vsub.f32 1.0, %v2063_v14 }
 0x60a   :  { %v2042_v10 = vmul.f32 %v5344_v43, %v2041_v52  ;;  %v5099_v27 = vmul.f32 -1.442695, %v2158_v37 }
 0x60b   :  { %v2065_v13 = vmul.f32 %v5346_v51, %v2064_v3 }
 0x60c   :  { %v2043_v23 = vadd.f32 %v5344_v43, %v2042_v10  ;;  %5349 = vpow2.f32 %v5099_v27  ;;  %v5348_v45 = vpop.eup %5347 }
 0x60d   :  { %v2066_v1 = vadd.f32 %v5346_v51, %v2065_v13  ;;  %v2185_v17 = vadd.f32 1.0, %v5348_v45 }
 0x60e   :  { %v2047_v48 = vsel %vm2046_vm8, %v5344_v43, %v2043_v23 }
 0x60f   :  { %v2052_v12 = vsel %vm2049_vm12, %v2051_v55, %v2047_v48  ;;  %5351 = vrcp.f32 %v2185_v17  ;;  %v2070_v0 = vsel %vm2069_vm14, %v5346_v51, %v2066_v1  ;;  %v2153_v51 = vadd.f32 %v2152_v36, %v6390_v34 }
 0x610   :  { %v2080_v47 = vmul.f32 %v2078_v59, %v2052_v12  ;;  %v2075_v62 = vsel %vm2072_vm15, %v2074_v26, %v2070_v0  ;;  %v2197_v10 = vand.u32 2147483648, %v2185_v17  ;;  %vm2191_vm8 = vweird.f32 %v2185_v17 }
 0x611   :  { %v2083_v60 = vsub.f32 1.0, %v2075_v62  ;;  %v2087_v50 = vmul.f32 %v2085_v56, %v2075_v62  ;;  %v2202_v3 = vrot.slane %v2153_v51, 7  ;;  %v2195_v13 = vand.u32 2147483647, %v2185_v17  ;;  %v6876_v62 = vld [vmem:[#allocation7 + $0xa8] sm:$0xff] }
 0x612   :  { %v2081_v54 = vadd.f32 %v2080_v47, %v6382_v4  ;;  %v5350_v21 = vpop.eup %5349  ;;  %v2198_v23 = vor.u32 1.1754944e-38, %v2197_v10  ;;  %v2209_v59 = vrot.slane %v6819_v30, 1  ;;  %2550 = vmatpush.msra.mxu1 %v6876_v62  ;;  %v8139_v51 = vmov 0.0  }
 0x613   :  { %v2162_v53 = vadd.f32 1.0, %v5350_v21 }
 0x614   :  { %5353 = vtanh.f32 %v2081_v54 }
 0x615   :  { %5355 = vrcp.f32 %v2162_v53  ;;  %v5352_v8 = vpop.eup %5351  ;;  %v2174_v16 = vand.u32 2147483648, %v2162_v53  ;;  %v2172_v33 = vand.u32 2147483647, %v2162_v53  ;;  %vm2168_vm3 = vweird.f32 %v2162_v53 }
 0x616   :  { %v2187_v46 = vmul.f32 %v5352_v8, %v2185_v17  ;;  %vm2192_vm5 = vweird.f32 %v5352_v8 }
 0x617   :  { %v2175_v52 = vor.u32 1.1754944e-38, %v2174_v16  ;;  %vm2173_vm7 = vcmp.eq.f32.partialorder %v2172_v33, 8.507059e+37  ;;  %vm2193_vm12 = vmor %vm2191_vm8, %vm2192_vm5 }
 0x618   :  { %v2188_v42 = vsub.f32 1.0, %v2187_v46  ;;  %v6884_v46 = vld [vmem:[#allocation7 + $0x78] sm:$0xff] }
 0x61a   :  { %v5354_v49 = vpop.eup %5353  ;;  %v2189_v29 = vmul.f32 %v5352_v8, %v2188_v42  ;;  %v6901_v42 = vld [vmem:[#allocation7] sm:$0xff] }
 0x61b   :  { %v2084_v6 = vmul.f32 %v5354_v49, %v2083_v60  ;;  %v5356_v15 = vpop.eup %5355  ;;  %v6881_v60 = vld [vmem:[#allocation7 + $0x90] sm:$0xff] }
 0x61c   :  { %v2164_v44 = vmul.f32 %v5356_v15, %v2162_v53  ;;  %vm2169_vm11 = vweird.f32 %v5356_v15  ;;  %v2190_v37 = vadd.f32 %v5352_v8, %v2189_v29  ;;  %2551 = vmatpush.msra.mxu1 %v6881_v60 }
 0x61d   :  { %v6846_v58 = vadd.f32 %v2087_v50, %v2084_v6  ;;  %vm2170_vm6 = vmor %vm2168_vm3, %vm2169_vm11  ;;  %v6896_v6 = vld [vmem:[#allocation7 + $0x18] sm:$0xff] }
 0x61e   :  { %v2165_v24 = vsub.f32 1.0, %v2164_v44  ;;  %v2194_v27 = vsel %vm2193_vm12, %v5352_v8, %v2190_v37  ;;  %2552 = vmatpush.msra.mxu1 %v6884_v46 }
 0x61f   :  { %v2089_v43 = vperm.slane %v6846_v58, 6  ;;  %v2216_v22 = vrot.slane %v6846_v58, 6 }
 0x620   :  { %v2166_v14 = vmul.f32 %v5356_v15, %v2165_v24  ;;  %v6906_v24 = vld [vmem:[#allocation9 + $0x58] sm:$0xff] }
 0x621   :  { %5101 = vmatmul.msk.f32.vlgmr.msra.gmra.mxu2 %vm304_vm2, %v2216_v22  ;;  %5102 = vmatmul.msk.f32.vlgmr.msra.gmra.mxu3 %vm304_vm2, %v2216_v22  ;;  %v6856_v31 = vsel %vm968_vm10, %v2089_v43, %v6802_v25  ;;  %vm2196_vm10 = vcmp.eq.f32.partialorder %v2195_v13, 8.507059e+37  ;;  %v8138_v43 = vld [vmem:[#allocation28_spill] sm:$0xff] }
 0x622   :  { %5103 = vmatmul.msk.f32.vlgmr.msra.gmra.mxu0 %vm304_vm2, %v2216_v22  ;;  %v2167_v5 = vadd.f32 %v5356_v15, %v2166_v14  ;;  %v2199_v55 = vsel %vm2196_vm10, %v2198_v23, %v2194_v27  ;;  %v6917_v14 = vld [vmem:[#allocation9 + $0x40] sm:$0xff] }
 0x623   :  { %v2207_v48 = vsub.f32 1.0, %v2199_v55  ;;  %v2211_v1 = vmul.f32 %v2209_v59, %v2199_v55 }
 0x624   :  { %v2171_v40 = vsel %vm2170_vm6, %v5356_v15, %v2167_v5  ;;  %v6921_v5 = vld [vmem:[#allocation9 + $0x28] sm:$0xff] }
 0x625   :  { %v2176_v57 = vsel %vm2173_vm7, %v2175_v52, %v2171_v40 }
 0x626   :  { %v2204_v63 = vmul.f32 %v2202_v3, %v2176_v57  ;;  %v6927_v57 = vld [vmem:[#allocation9 + $0x10] sm:$0xff] }
 0x628   :  { %v2205_v25 = vadd.f32 %v2204_v63, %v6410_v38 }
 0x62a   :  { %5357 = vtanh.f32 %v2205_v25 }
 0x630   :  { %v5358_v45 = vpop.eup %5357 }
 0x631   :  { %v2208_v12 = vmul.f32 %v5358_v45, %v2207_v48 }
 0x633   :  { %v2212_v19 = vadd.f32 %v2211_v1, %v2208_v12 }
 0x635   :  { %v2213_v47 = vperm.slane %v2212_v19, 1  ;;  %v6861_v18 = vrot.slane %v2212_v19, 1 }
 0x637   :  { %v6866_v17 = vsel %vm843_vm4, %v2213_v47, %v6828_v61  ;;  %5106 = vmatmul.msk.f32.vlgmr.msrb.gmra.mxu1 %vm304_vm2, %v6861_v18  ;;  %5107 = vmatmul.msk.f32.vlgmr.msrb.gmra.mxu2 %vm304_vm2, %v6861_v18  ;;  %vm2529_vm4 = vcmp.eq.s32.totalorder %v8138_v43, 1 }
 0x638   :  { %5108 = vmatmul.msk.f32.vlgmr.msrb.gmra.mxu3 %vm304_vm2, %v6861_v18  ;;  %v6912_v16 = vsel %vm2529_vm4, 1.0, %v8139_v51 }
 0x69f   :  { %v2276_v10 = vpop.f32.mrf.mxu0 }
 0x6a0   :  { %v2277_v23 = vadd.f32 %v2276_v10, %v6375_v20  ;;  %v6979_v10 = vld [vmem:[#allocation9 + $0x18] sm:$0xff] }
 0x6a4   :  { %v2236_v30 = vpop.f32.mrf.mxu2  ;;  %v2256_v54 = vpop.f32.mrf.mxu3 }
 0x6a5   :  { %v2237_v21 = vadd.f32 %v2236_v30, %v6333_v2  ;;  %v2257_v0 = vadd.f32 %v2256_v54, %v6356_v28  ;;  %v6887_v2 = vld [vmem:[#allocation7 + $0x60] sm:$0xff]  ;;  %v6890_v28 = vld [vmem:[#allocation7 + $0x48] sm:$0xff] }
 0x6a6   :  { %2553 = vmatpush.msra.mxu1 %v6887_v2  ;;  %v2505_v30 = vld [vmem:[#allocation15 + $0x18] sm:$0xff] }
 0x6a7   :  { %v2280_v26 = vrot.slane %v2237_v21, 1  ;;  %v2303_v53 = vrot.slane %v2257_v0, 1  ;;  %2521 = vmatpush.msrb.mxu0 %v2505_v30  ;;  %v2504_v0 = vld [vmem:[#allocation15 + $0x10] sm:$0xff] }
 0x6a8   :  { %2554 = vmatpush.msra.mxu1 %v6890_v28 }
 0x6a9   :  { %v2282_v61 = vadd.f32 %v2280_v26, %v6337_v7  ;;  %v2305_v8 = vadd.f32 %v2303_v53, %v6362_v35  ;;  %v6893_v7 = vld [vmem:[#allocation7 + $0x30] sm:$0xff]  ;;  %2522 = vmatpush.msrb.mxu0 %v2504_v0 }
 0x6aa   :  { %2555 = vmatpush.msra.mxu1 %v6893_v7  ;;  %v6940_v26 = vld [vmem:[#allocation7 + $0xb0] sm:$0xff] }
 0x6ab   :  { %v5104_v56 = vmul.f32 -1.442695, %v2282_v61  ;;  %v5105_v49 = vmul.f32 -1.442695, %v2305_v8  ;;  %2570 = vmatpush.msra.mxu2 %v6940_v26 }
 0x6ac   :  { %2556 = vmatpush.msra.mxu1 %v6896_v6 }
 0x6ad   :  { %5359 = vpow2.f32 %v5104_v56 }
 0x6ae   :  { %5361 = vpow2.f32 %v5105_v49  ;;  %2557 = vmatpush.msra.mxu1 %v6901_v42 }
 0x6af   :  { %5113 = vmatmul.msk.f32.vlgmr.msra.gmra.mxu1 %vm260_vm0, %v6912_v16 }
 0x6b0   :  { %2665 = vmatpush.msrb.mxu1 %v6906_v24 }
 0x6b2   :  { %2666 = vmatpush.msrb.mxu1 %v6917_v14 }
 0x6b3   :  { %v5360_v35 = vpop.eup %5359 }
 0x6b4   :  { %v5362_v50 = vpop.eup %5361  ;;  %v2286_v15 = vadd.f32 1.0, %v5360_v35  ;;  %v2360_v44 = vpop.f32.mrf.mxu1  ;;  %2667 = vmatpush.msrb.mxu1 %v6921_v5  ;;  %v2503_v35 = vld [vmem:[#allocation15 + $0x8] sm:$0xff] }
 0x6b5   :  { %v6899_v36 = vadd.f32 1.0, %v5362_v50  ;;  %v2361_v22 = vadd.f32 %v2360_v44, %v6368_v39  ;;  %v6949_v50 = vld [vmem:[#allocation7 + $0x98] sm:$0xff]  ;;  %2523 = vmatpush.msrb.mxu0 %v2503_v35  ;;  %v2502_v44 = vld [vmem:[#allocation15] sm:$0xff] }
 0x6b6   :  { %5363 = vrcp.f32 %v2286_v15  ;;  %2668 = vmatpush.msrb.mxu1 %v6927_v57  ;;  %v2298_v25 = vand.u32 2147483648, %v2286_v15  ;;  %v2296_v48 = vand.u32 2147483647, %v2286_v15  ;;  %vm2292_vm1 = vweird.f32 %v2286_v15  ;;  %2571 = vmatpush.msra.mxu2 %v6949_v50 }
 0x6b7   :  { %5365 = vrcp.f32 %v6899_v36  ;;  %v2403_v33 = vadd.f32 %v2361_v22, %v6372_v9  ;;  %v2321_v61 = vand.u32 2147483648, %v6899_v36  ;;  %vm2315_vm3 = vweird.f32 %v6899_v36  ;;  %2524 = vmatpush.msrb.mxu0 %v2502_v44 }
 0x6b8   :  { %v2299_v1 = vor.u32 1.1754944e-38, %v2298_v25  ;;  %vm2297_vm15 = vcmp.eq.f32.partialorder %v2296_v48, 8.507059e+37  ;;  %v2319_v8 = vand.u32 2147483647, %v6899_v36  ;;  %2891 = vmatpush.msra.mxu1 %v6940_v26 }
 0x6b9   :  { %v5109_v52 = vmul.f32 -1.442695, %v2403_v33  ;;  %v2322_v22 = vor.u32 1.1754944e-38, %v2321_v61  ;;  %v6967_v33 = vld [vmem:[#allocation9 + $0x48] sm:$0xff] }
 0x6ba   :  { %v2380_v29 = vpop.f32.mrf.mxu2  ;;  %2892 = vmatpush.msra.mxu1 %v6949_v50  ;;  %vm2320_vm7 = vcmp.eq.f32.partialorder %v2319_v8, 8.507059e+37  ;;  %2625 = vmatpush.msra.mxu0 %v6967_v33 }
 0x6bb   :  { %v2381_v3 = vadd.f32 %v2380_v29, %v6346_v11  ;;  %5367 = vpow2.f32 %v5109_v52  ;;  %v6969_v29 = vld [vmem:[#allocation7 + $0x68] sm:$0xff] }
 0x6bc   :  { %v5364_v39 = vpop.eup %5363 }
 0x6bd   :  { %v6925_v40 = vpop.eup %5365  ;;  %v2288_v37 = vmul.f32 %v5364_v39, %v2286_v15  ;;  %v2423_v63 = vadd.f32 %v2381_v3, %v6358_v32  ;;  %vm2293_vm13 = vweird.f32 %v5364_v39  ;;  %v2326_v32 = vrot.slane %v2277_v23, 1  ;;  %v6974_v3 = vld [vmem:[#allocation7 + $0x50] sm:$0xff] }
 0x6be   :  { %v2311_v9 = vmul.f32 %v6925_v40, %v6899_v36  ;;  %vm2294_vm14 = vmor %vm2292_vm1, %vm2293_vm13  ;;  %vm2316_vm11 = vweird.f32 %v6925_v40  ;;  %v6959_v36 = vld [vmem:[#allocation7 + $0x80] sm:$0xff]  ;;  %v2333_v23 = vrot.slane %v6846_v58, 7 }
 0x6bf   :  { %v2289_v13 = vsub.f32 1.0, %v2288_v37  ;;  %v5110_v11 = vmul.f32 -1.442695, %v2423_v63  ;;  %vm6954_vm6 = vmor %vm2315_vm3, %vm2316_vm11  ;;  %2572 = vmatpush.msra.mxu2 %v6959_v36  ;;  %2893 = vmatpush.msra.mxu1 %v6959_v36 }
 0x6c0   :  { %v2312_v27 = vsub.f32 1.0, %v2311_v9  ;;  %v6982_v9 = vld [vmem:[#allocation7 + $0x38] sm:$0xff] }
 0x6c1   :  { %v2290_v55 = vmul.f32 %v5364_v39, %v2289_v13  ;;  %5369 = vpow2.f32 %v5110_v11  ;;  %v5368_v12 = vpop.eup %5367  ;;  %2573 = vmatpush.msra.mxu2 %v6969_v29  ;;  %2894 = vmatpush.msra.mxu1 %v6969_v29  ;;  %v6986_v13 = vld [vmem:[#allocation9] sm:$0xff] }
 0x6c2   :  { %v2313_v45 = vmul.f32 %v6925_v40, %v2312_v27  ;;  %v6935_v47 = vadd.f32 1.0, %v5368_v12 }
 0x6c3   :  { %v2291_v59 = vadd.f32 %v5364_v39, %v2290_v55  ;;  %2574 = vmatpush.msra.mxu2 %v6974_v3  ;;  %v6991_v55 = vld [vmem:[#allocation7 + $0x20] sm:$0xff]  ;;  %2895 = vmatpush.msra.mxu1 %v6974_v3 }
 0x6c4   :  { %v2314_v21 = vadd.f32 %v6925_v40, %v2313_v45  ;;  %5371 = vrcp.f32 %v6935_v47  ;;  %v2419_v27 = vand.u32 2147483648, %v6935_v47  ;;  %v2417_v12 = vand.u32 2147483647, %v6935_v47 }
 0x6c5   :  { %v2295_v19 = vsel %vm2294_vm14, %v5364_v39, %v2291_v59  ;;  %v6971_v39 = vld [vmem:[#allocation9 + $0x30] sm:$0xff]  ;;  %2575 = vmatpush.msra.mxu2 %v6982_v9  ;;  %2896 = vmatpush.msra.mxu1 %v6982_v9  ;;  %vm2413_vm8 = vweird.f32 %v6935_v47 }
 0x6c6   :  { %v2300_v54 = vsel %vm2297_vm15, %v2299_v1, %v2295_v19  ;;  %2626 = vmatpush.msra.mxu0 %v6971_v39  ;;  %v2400_v1 = vpop.f32.mrf.mxu3  ;;  %vm2418_vm10 = vcmp.eq.f32.partialorder %v2417_v12, 8.507059e+37  ;;  %v7038_v12 = vld [vmem:[#allocation7 + $0x28] sm:$0xff] }
 0x6c7   :  { %v2328_v20 = vmul.f32 %v2326_v32, %v2300_v54  ;;  %v5370_v53 = vpop.eup %5369  ;;  %2576 = vmatpush.msra.mxu2 %v6991_v55  ;;  %v7001_v54 = vld [vmem:[#allocation7 + $0x8] sm:$0xff]  ;;  %2897 = vmatpush.msra.mxu1 %v6991_v55 }
 0x6c8   :  { %v6946_v56 = vadd.f32 1.0, %v5370_v53  ;;  %2627 = vmatpush.msra.mxu0 %v6979_v10  ;;  %v2401_v53 = vadd.f32 %v2400_v1, %v6390_v34 }
 0x6c9   :  { %v2329_v49 = vadd.f32 %v2328_v20, %v6382_v4  ;;  %v2318_v4 = vsel %vm6954_vm6, %v6925_v40, %v2314_v21  ;;  %v2420_v20 = vor.u32 1.1754944e-38, %v2419_v27  ;;  %2577 = vmatpush.msra.mxu2 %v7001_v54  ;;  %2898 = vmatpush.msra.mxu1 %v7001_v54  ;;  %v7025_v27 = vld [vmem:[#allocation7 + $0x88] sm:$0xff] }
 0x6ca   :  { %5373 = vrcp.f32 %v6946_v56  ;;  %v5372_v52 = vpop.eup %5371  ;;  %v2323_v37 = vsel %vm2320_vm7, %v2322_v22, %v2318_v4  ;;  %2628 = vmatpush.msra.mxu0 %v6986_v13  ;;  %5114 = vmatmul.msk.f32.vlgmr.msra.gmra.mxu2 %vm260_vm0, %v6912_v16  ;;  %v2439_v35 = vand.u32 2147483648, %v6946_v56  ;;  %vm2433_vm1 = vweird.f32 %v6946_v56 }
 0x6cb   :  { %5375 = vtanh.f32 %v2329_v49  ;;  %v2409_v40 = vmul.f32 %v5372_v52, %v6935_v47  ;;  %v2331_v11 = vsub.f32 1.0, %v2323_v37  ;;  %vm2414_vm5 = vweird.f32 %v5372_v52 }
 0x6cc   :  { %v2335_v19 = vmul.f32 %v2333_v23, %v2323_v37  ;;  %vm2415_vm12 = vmor %vm2413_vm8, %vm2414_vm5  ;;  %v2437_v34 = vand.u32 2147483647, %v6946_v56  ;;  %v7020_v37 = vld [vmem:[#allocation7 + $0xb8] sm:$0xff] }
 0x6cd   :  { %v2410_v63 = vsub.f32 1.0, %v2409_v40  ;;  %v2440_v40 = vor.u32 1.1754944e-38, %v2439_v35  ;;  %2590 = vmatpush.msra.mxu3 %v7020_v37 }
 0x6ce   :  { %vm2438_vm15 = vcmp.eq.f32.partialorder %v2437_v34, 8.507059e+37 }
 0x6cf   :  { %v2411_v45 = vmul.f32 %v5372_v52, %v2410_v63  ;;  %v7022_v63 = vld [vmem:[#allocation7 + $0xa0] sm:$0xff] }
 0x6d0   :  { %v5374_v25 = vpop.eup %5373  ;;  %2591 = vmatpush.msra.mxu3 %v7022_v63 }
 0x6d1   :  { %v5376_v48 = vpop.eup %5375  ;;  %v2429_v59 = vmul.f32 %v5374_v25, %v6946_v56  ;;  %v2412_v30 = vadd.f32 %v5372_v52, %v2411_v45  ;;  %vm2434_vm13 = vweird.f32 %v5374_v25 }
 0x6d2   :  { %v2332_v32 = vmul.f32 %v5376_v48, %v2331_v11  ;;  %vm2435_vm14 = vmor %vm2433_vm1, %vm2434_vm13  ;;  %2592 = vmatpush.msra.mxu3 %v7025_v27 }
 0x6d3   :  { %v2430_v58 = vsub.f32 1.0, %v2429_v59  ;;  %v2416_v61 = vsel %vm2415_vm12, %v5372_v52, %v2412_v30  ;;  %v7035_v59 = vld [vmem:[#allocation7 + $0x40] sm:$0xff]  ;;  %v7054_v30 = vld [vmem:[#allocation9 + $0x38] sm:$0xff] }
 0x6d4   :  { %v2336_v21 = vadd.f32 %v2335_v19, %v2332_v32  ;;  %v2421_v8 = vsel %vm2418_vm10, %v2420_v20, %v2416_v61  ;;  %v7041_v32 = vld [vmem:[#allocation7 + $0x10] sm:$0xff] }
 0x6d5   :  { %v2431_v0 = vmul.f32 %v5374_v25, %v2430_v58  ;;  %v2443_v44 = vmul.f32 %v2421_v8, %v2401_v53  ;;  %v7049_v58 = vld [vmem:[#allocation9 + $0x50] sm:$0xff] }
 0x6d6   :  { %v2337_v49 = vperm.slane %v2336_v21, 7  ;;  %v7006_v47 = vrot.slane %v2336_v21, 7 }
 0x6d7   :  { %v2432_v15 = vadd.f32 %v5374_v25, %v2431_v0  ;;  %v2444_v22 = vadd.f32 %v2443_v44, %v6410_v38  ;;  %v2491_v0 = vld [vmem:[#allocation12] sm:$0x7] }
 0x6d8   :  { %v2338_v4 = vsel %vm719_vm9, %v2337_v49, %v6856_v31  ;;  %5118 = vmatmul.msk.f32.vlgmr.msrb.gmra.mxu1 %vm304_vm2, %v7006_v47  ;;  %v7028_v31 = vld [vmem:[#allocation7 + $0x70] sm:$0xff]  ;;  %vm8142_vm9 = vcmp.eq.s32.totalorder %v6454_v41, 0  ;;  %v7059_v41 = vld [vmem:[#allocation9 + $0x20] sm:$0xff]  ;;  %v7086_v53 = vperm.slane %v2491_v0, 0 }
 0x6d9   :  { %v2436_v52 = vsel %vm2435_vm14, %v5374_v25, %v2432_v15  ;;  %5377 = vtanh.f32 %v2444_v22  ;;  %v7031_v25 = vld [vmem:[#allocation7 + $0x58] sm:$0xff]  ;;  %2593 = vmatpush.msra.mxu3 %v7028_v31  ;;  %v7092_v22 = vperm.slane %v2491_v0, 1 }
 0x6da   :  { %v2441_v56 = vsel %vm2438_vm15, %v2440_v40, %v2436_v52  ;;  %8144 = vst [vmem:[#allocation29_spill] sm:$0xff] %v7086_v53 }
 0x6db   :  { %v2446_v11 = vsub.f32 1.0, %v2441_v56  ;;  %v2449_v48 = vmul.f32 %v2441_v56, %v6861_v18  ;;  %2594 = vmatpush.msra.mxu3 %v7031_v25  ;;  %8146 = vst [vmem:[#allocation31_spill] sm:$0xff] %v7092_v22 }
 0x6dd   :  { %2595 = vmatpush.msra.mxu3 %v7035_v59 }
 0x6df   :  { %v5378_v38 = vpop.eup %5377  ;;  %2596 = vmatpush.msra.mxu3 %v7038_v12 }
 0x6e0   :  { %v2447_v23 = vmul.f32 %v5378_v38, %v2446_v11  ;;  %v7096_v11 = vld [vmem:[#allocation13 + $0x18] sm:$0xff] }
 0x6e1   :  { %2597 = vmatpush.msra.mxu3 %v7041_v32  ;;  %8147 = vst [vmem:[#allocation32_spill] sm:$0xff] %v7096_v11  ;;  %2779 = vmatpush.msrb.mxu2 %v7096_v11 }
 0x6e2   :  { %v2450_v45 = vadd.f32 %v2449_v48, %v2447_v23  ;;  %5115 = vmatmul.msk.f32.vlgmr.msra.gmra.mxu3 %vm260_vm0, %v6912_v16  ;;  %v2478_v16 = vld [vmem:[#allocation10] sm:$0x7]  ;;  %3088 = vmatpush.msrb.mxu1 %v7096_v11  ;;  %v7100_v23 = vld [vmem:[#allocation13 + $0x10] sm:$0xff] }
 0x6e3   :  { %v7084_v21 = vperm.slane %v2478_v16, 0  ;;  %v7090_v44 = vperm.slane %v2478_v16, 1  ;;  %8148 = vst [vmem:[#allocation33_spill] sm:$0xff] %v7100_v23  ;;  %2780 = vmatpush.msrb.mxu2 %v7100_v23 }
 0x6e4   :  { %v2451_v1 = vperm.slane %v2450_v45, 0  ;;  %3089 = vmatpush.msrb.mxu1 %v7100_v23 }
 0x6e5   :  { %8143 = vst [vmem:[#allocation28_spill] sm:$0xff] %v7084_v21 }
 0x6e6   :  { %v2452_v19 = vsel %vm8142_vm9, %v2451_v1, %v6866_v17  ;;  %v7062_v17 = vld [vmem:[#allocation9 + $0x8] sm:$0xff]  ;;  %8145 = vst [vmem:[#allocation30_spill] sm:$0xff] %v7090_v44  ;;  %v7104_v1 = vld [vmem:[#allocation13 + $0x8] sm:$0xff]  ;;  %vm2812_vm9 = vcmask 516096  }
 0x6e7   :  { %v7047_v18 = vadd.f32 %v2452_v19, %v2338_v4  ;;  %8149 = vst [vmem:[#allocation34_spill] sm:$0xff] %v7104_v1  ;;  %2781 = vmatpush.msrb.mxu2 %v7104_v1  ;;  %3090 = vmatpush.msrb.mxu1 %v7104_v1 }
 0x6e9   :  { %5111 = vmatmul.msk.f32.vlgmr.msrb.gmra.mxu0 %vm304_vm2, %v7047_v18 }
 0x6ea   :  { %2645 = vmatpush.msrb.mxu0 %v7049_v58 }
 0x6ec   :  { %2646 = vmatpush.msrb.mxu0 %v7054_v30 }
 0x6ee   :  { %2647 = vmatpush.msrb.mxu0 %v7059_v41 }
 0x6f0   :  { %2648 = vmatpush.msrb.mxu0 %v7062_v17 }
 0x6f1   :  { %5116 = vmatmul.msk.f32.vlgmr.msra.gmra.mxu0 %vm304_vm2, %v7006_v47 }
 0x6f2   :  { %2871 = vmatpush.msra.mxu0 %v6876_v62 }
 0x6f4   :  { %2872 = vmatpush.msra.mxu0 %v6881_v60 }
 0x6f6   :  { %2873 = vmatpush.msra.mxu0 %v6884_v46 }
 0x6f8   :  { %2874 = vmatpush.msra.mxu0 %v6887_v2 }
 0x6f9   :  { %5117 = vmatmul.msk.f32.vlgmr.msrb.gmra.mxu0 %vm304_vm2, %v7006_v47 }
 0x6fa   :  { %2875 = vmatpush.msra.mxu0 %v6890_v28 }
 0x6fc   :  { %2876 = vmatpush.msra.mxu0 %v6893_v7 }
 0x6fe   :  { %2877 = vmatpush.msra.mxu0 %v6896_v6 }
 0x700   :  { %2878 = vmatpush.msra.mxu0 %v6901_v42 }
 0x702   :  { %2975 = vmatpush.msrb.mxu0 %v6906_v24 }
 0x704   :  { %2976 = vmatpush.msrb.mxu0 %v6917_v14 }
 0x706   :  { %2977 = vmatpush.msrb.mxu0 %v6921_v5 }
 0x708   :  { %2978 = vmatpush.msrb.mxu0 %v6927_v57 }
 0x72c   :  { %v2559_v61 = vpop.f32.mrf.mxu1 }
 0x72d   :  { %v2560_v8 = vadd.f32 %v2559_v61, %v7084_v21  ;;  %v7107_v61 = vld [vmem:[#allocation13] sm:$0xff] }
 0x72e   :  { %8150 = vst [vmem:[#allocation35_spill] sm:$0xff] %v7107_v61  ;;  %2782 = vmatpush.msrb.mxu2 %v7107_v61  ;;  %3091 = vmatpush.msrb.mxu1 %v7107_v61 }
 0x730   :  { %2911 = vmatpush.msra.mxu2 %v7020_v37 }
 0x732   :  { %2912 = vmatpush.msra.mxu2 %v7022_v63 }
 0x734   :  { %2913 = vmatpush.msra.mxu2 %v7025_v27 }
 0x736   :  { %2914 = vmatpush.msra.mxu2 %v7028_v31 }
 0x738   :  { %2915 = vmatpush.msra.mxu2 %v7031_v25 }
 0x73a   :  { %2916 = vmatpush.msra.mxu2 %v7035_v59 }
 0x73c   :  { %2917 = vmatpush.msra.mxu2 %v7038_v12 }
 0x73e   :  { %2918 = vmatpush.msra.mxu2 %v7041_v32 }
 0x74d   :  { %v2579_v34 = vpop.f32.mrf.mxu2 }
 0x74e   :  { %v2580_v52 = vadd.f32 %v2579_v34, %v7090_v44 }
 0x766   :  { %v7082_v20 = vpop.f32.mrf.mxu0 }
 0x76e   :  { %v2630_v49 = vpop.f32.mrf.mxu0 }
 0x76f   :  { %v2631_v35 = vadd.f32 %v2630_v49, %v7086_v53 }
 0x771   :  { %v2673_v15 = vadd.f32 %v2631_v35, %v2560_v8 }
 0x773   :  { %v5119_v4 = vmul.f32 -1.442695, %v2673_v15 }
 0x775   :  { %5379 = vpow2.f32 %v5119_v4  ;;  %v7117_v4 = vperm.slane %v2491_v0, 2 }
 0x776   :  { %v2650_v40 = vpop.f32.mrf.mxu0 }
 0x777   :  { %v2651_v56 = vadd.f32 %v2650_v40, %v7092_v22  ;;  %v2670_v40 = vpop.f32.mrf.mxu1 }
 0x779   :  { %v2693_v38 = vadd.f32 %v2651_v56, %v2580_v52  ;;  %v7119_v56 = vperm.slane %v2478_v16, 2 }
 0x77b   :  { %v5380_v48 = vpop.eup %5379  ;;  %v5120_v45 = vmul.f32 -1.442695, %v2693_v38 }
 0x77c   :  { %v2677_v19 = vadd.f32 1.0, %v5380_v48 }
 0x77d   :  { %5381 = vpow2.f32 %v5120_v45  ;;  %v2599_v45 = vpop.f32.mrf.mxu3 }
 0x77e   :  { %5383 = vrcp.f32 %v2677_v19  ;;  %v2689_v52 = vand.u32 2147483648, %v2677_v19  ;;  %v2687_v48 = vand.u32 2147483647, %v2677_v19  ;;  %vm2683_vm3 = vweird.f32 %v2677_v19 }
 0x77f   :  { %v2600_v22 = vadd.f32 %v2599_v45, %v7119_v56 }
 0x780   :  { %v2690_v0 = vor.u32 1.1754944e-38, %v2689_v52  ;;  %vm2688_vm7 = vcmp.eq.f32.partialorder %v2687_v48, 8.507059e+37 }
 0x783   :  { %v5382_v8 = vpop.eup %5381 }
 0x784   :  { %v5384_v49 = vpop.eup %5383  ;;  %v2697_v35 = vadd.f32 1.0, %v5382_v8 }
 0x785   :  { %v2679_v15 = vmul.f32 %v5384_v49, %v2677_v19  ;;  %vm2684_vm11 = vweird.f32 %v5384_v49 }
 0x786   :  { %5385 = vrcp.f32 %v2697_v35  ;;  %vm2685_vm6 = vmor %vm2683_vm3, %vm2684_vm11  ;;  %v2709_v1 = vand.u32 2147483648, %v2697_v35  ;;  %v2707_v19 = vand.u32 2147483647, %v2697_v35  ;;  %vm2703_vm8 = vweird.f32 %v2697_v35 }
 0x787   :  { %v2680_v34 = vsub.f32 1.0, %v2679_v15  ;;  %v2671_v15 = vadd.f32 %v2670_v40, %v7117_v4 }
 0x788   :  { %v2710_v52 = vor.u32 1.1754944e-38, %v2709_v1  ;;  %vm2708_vm10 = vcmp.eq.f32.partialorder %v2707_v19, 8.507059e+37 }
 0x789   :  { %v2681_v38 = vmul.f32 %v5384_v49, %v2680_v34 }
 0x78b   :  { %v2682_v8 = vadd.f32 %v5384_v49, %v2681_v38 }
 0x78c   :  { %v5386_v44 = vpop.eup %5385 }
 0x78d   :  { %v2699_v21 = vmul.f32 %v5386_v44, %v2697_v35  ;;  %v2686_v16 = vsel %vm2685_vm6, %v5384_v49, %v2682_v8  ;;  %vm2704_vm5 = vweird.f32 %v5386_v44 }
 0x78e   :  { %v2691_v34 = vsel %vm2688_vm7, %v2690_v0, %v2686_v16  ;;  %vm2705_vm12 = vmor %vm2703_vm8, %vm2704_vm5 }
 0x78f   :  { %v2700_v53 = vsub.f32 1.0, %v2699_v21  ;;  %v2713_v61 = vmul.f32 %v2691_v34, %v2671_v15 }
 0x791   :  { %v2701_v38 = vmul.f32 %v5386_v44, %v2700_v53  ;;  %v2714_v23 = vadd.f32 %v2713_v61, %v2600_v22 }
 0x793   :  { %v2702_v11 = vadd.f32 %v5386_v44, %v2701_v38  ;;  %5387 = vtanh.f32 %v2714_v23 }
 0x795   :  { %v2706_v40 = vsel %vm2705_vm12, %v5386_v44, %v2702_v11 }
 0x796   :  { %v2711_v45 = vsel %vm2708_vm10, %v2710_v52, %v2706_v40 }
 0x797   :  { %v2716_v49 = vsub.f32 1.0, %v2711_v45  ;;  %v2719_v0 = vmul.f32 %v2711_v45, %v7006_v47 }
 0x799   :  { %v5388_v48 = vpop.eup %5387 }
 0x79a   :  { %v2717_v8 = vmul.f32 %v5388_v48, %v2716_v49 }
 0x79c   :  { %v7127_v21 = vadd.f32 %v2719_v0, %v2717_v8  ;;  %v7134_v0 = vld [vmem:[#allocation18 + $0x18] sm:$0xff] }
 0x79d   :  { %2804 = vmatpush.msrb.mxu3 %v7134_v0 }
 0x79e   :  { %5121 = vmatmul.msk.f32.vlgmr.msrb.gmra.mxu2 %vm304_vm2, %v7127_v21  ;;  %v2721_v53 = vperm.slane %v7127_v21, 0 }
 0x79f   :  { %3113 = vmatpush.msrb.mxu2 %v7134_v0 }
 0x7a0   :  { %v2722_v22 = vmul.f32 %v2721_v53, %v7047_v18  ;;  %v7136_v53 = vld [vmem:[#allocation18 + $0x10] sm:$0xff] }
 0x7a1   :  { %2805 = vmatpush.msrb.mxu3 %v7136_v53  ;;  %3114 = vmatpush.msrb.mxu2 %v7136_v53 }
 0x7a2   :  { %v2723_v23 = vsel %vm304_vm2, %v2722_v22, 0.0 }
 0x7a3   :  { %2724 = vadd.xlane.f32.xlu0 %v2723_v23  ;;  %v7140_v23 = vld [vmem:[#allocation18 + $0x8] sm:$0xff] }
 0x7a4   :  { %2806 = vmatpush.msrb.mxu3 %v7140_v23  ;;  %3115 = vmatpush.msrb.mxu2 %v7140_v23 }
 0x816   :  { %v2725_v44 = vpop.xlane.xlu0 %2724 }
 0x817   :  { %v2726_v11 = vrot.slane %v2725_v44, 4 }
 0x819   :  { %v2727_v1 = vmax.f32 %v2725_v44, %v2726_v11 }
 0x81b   :  { %v2728_v61 = vrot.slane %v2727_v1, 2 }
 0x81d   :  { %v2729_v35 = vmax.f32 %v2727_v1, %v2728_v61  ;;  %v7144_v1 = vld [vmem:[#allocation18] sm:$0xff] }
 0x81e   :  { %2807 = vmatpush.msrb.mxu3 %v7144_v1  ;;  %3116 = vmatpush.msrb.mxu2 %v7144_v1 }
 0x81f   :  { %v2730_v15 = vrot.slane %v2729_v35, 1 }
 0x820   :  { %2935 = vmatpush.msra.mxu3 %v6967_v33 }
 0x821   :  { %v2731_v16 = vmax.f32 %v2729_v35, %v2730_v15 }
 0x822   :  { %2936 = vmatpush.msra.mxu3 %v6971_v39 }
 0x823   :  { %v2732_v47 = vsub.f32 %v2725_v44, %v2731_v16 }
 0x824   :  { %2937 = vmatpush.msra.mxu3 %v6979_v10 }
 0x825   :  { %v2733_v34 = vmul.f32 1.442695, %v2732_v47 }
 0x826   :  { %2938 = vmatpush.msra.mxu3 %v6986_v13 }
 0x827   :  { %5389 = vpow2.f32 %v2733_v34 }
 0x82d   :  { %v5390_v38 = vpop.eup %5389 }
 0x82e   :  { %v2735_v19 = vrot.slane %v5390_v38, 4 }
 0x830   :  { %v2736_v52 = vadd.f32 %v5390_v38, %v2735_v19 }
 0x832   :  { %v2737_v40 = vrot.slane %v2736_v52, 2 }
 0x834   :  { %v2738_v45 = vadd.f32 %v2737_v40, %v2736_v52 }
 0x836   :  { %v2739_v49 = vrot.slane %v2738_v45, 1 }
 0x838   :  { %v2740_v48 = vadd.f32 %v2739_v49, %v2738_v45 }
 0x83a   :  { %5391 = vrcp.f32 %v2740_v48  ;;  %v2752_v11 = vand.u32 2147483648, %v2740_v48  ;;  %v2750_v35 = vand.u32 2147483647, %v2740_v48  ;;  %vm2746_vm1 = vweird.f32 %v2740_v48 }
 0x83c   :  { %v2753_v16 = vor.u32 1.1754944e-38, %v2752_v11  ;;  %vm2751_vm15 = vcmp.eq.f32.partialorder %v2750_v35, 8.507059e+37 }
 0x840   :  { %v5392_v8 = vpop.eup %5391 }
 0x841   :  { %v2742_v22 = vmul.f32 %v5392_v8, %v2740_v48  ;;  %vm2747_vm13 = vweird.f32 %v5392_v8 }
 0x842   :  { %vm2748_vm14 = vmor %vm2746_vm1, %vm2747_vm13 }
 0x843   :  { %v2743_v44 = vsub.f32 1.0, %v2742_v22 }
 0x845   :  { %v2744_v61 = vmul.f32 %v5392_v8, %v2743_v44 }
 0x847   :  { %v2745_v15 = vadd.f32 %v5392_v8, %v2744_v61  ;;  %v2784_v61 = vpop.f32.mrf.mxu2 }
 0x849   :  { %v2749_v47 = vsel %vm2748_vm14, %v5392_v8, %v2745_v15  ;;  %v7156_v8 = vld [vmem:[#allocation16] sm:$0x1] }
 0x84a   :  { %v2754_v34 = vsel %vm2751_vm15, %v2753_v16, %v2749_v47 }
 0x84b   :  { %v2755_v19 = vmul.f32 %v5390_v38, %v2754_v34 }
 0x84d   :  { %v2756_v52 = vmul.f32 %v2755_v19, %v7082_v20 }
 0x84f   :  { %v2757_v40 = vsel %vm304_vm2, %v2756_v52, 0.0 }
 0x850   :  { %v2758_v45 = vrot.slane %v2757_v40, 4 }
 0x852   :  { %v2759_v49 = vadd.f32 %v2758_v45, %v2757_v40 }
 0x854   :  { %v2760_v48 = vrot.slane %v2759_v49, 2 }
 0x856   :  { %v2761_v22 = vadd.f32 %v2760_v48, %v2759_v49  ;;  %v8157_v49 = vld [vmem:[#allocation29_spill] sm:$0xff] }
 0x858   :  { %v2762_v44 = vrot.slane %v2761_v22, 1 }
 0x85a   :  { %v2763_v11 = vadd.f32 %v2762_v44, %v2761_v22  ;;  %v8158_v22 = vld [vmem:[#allocation31_spill] sm:$0xff] }
 0x85c   :  { %v2785_v35 = vadd.f32 %v2784_v61, %v2763_v11  ;;  %v8159_v11 = vld [vmem:[#allocation28_spill] sm:$0xff] }
 0x85e   :  { %v2787_v38 = vadd.f32 %v2785_v35, %v7156_v8  ;;  %v8160_v35 = vld [vmem:[#allocation30_spill] sm:$0xff] }
 0x860   :  { %5393 = vtanh.f32 %v2787_v38 }
 0x866   :  { %v5394_v15 = vpop.eup %5393 }
 0x867   :  { %5122 = vmatmul.msk.f32.vlgmr.msrb.gmra.mxu3 %vm304_vm2, %v5394_v15 }
 0x868   :  { %2955 = vmatpush.msrb.mxu3 %v7049_v58 }
 0x86a   :  { %2956 = vmatpush.msrb.mxu3 %v7054_v30 }
 0x86c   :  { %2957 = vmatpush.msrb.mxu3 %v7059_v41 }
 0x86e   :  { %2958 = vmatpush.msrb.mxu3 %v7062_v17 }
 0x86f   :  { %5127 = vmatmul.msk.f32.vlgmr.msra.gmra.mxu3 %vm304_vm2, %v7127_v21 }
 0x870   :  { %3178 = vmatpush.msra.mxu3 %v6876_v62  ;;  %v7180_v62 = vld [vmem:[#allocation19] sm:$0x1] }
 0x872   :  { %3179 = vmatpush.msra.mxu3 %v6881_v60 }
 0x874   :  { %3180 = vmatpush.msra.mxu3 %v6884_v46 }
 0x876   :  { %3181 = vmatpush.msra.mxu3 %v6887_v2 }
 0x877   :  { %5128 = vmatmul.msk.f32.vlgmr.msrb.gmra.mxu3 %vm304_vm2, %v7127_v21 }
 0x878   :  { %3182 = vmatpush.msra.mxu3 %v6890_v28 }
 0x87a   :  { %3183 = vmatpush.msra.mxu3 %v6893_v7 }
 0x87c   :  { %3184 = vmatpush.msra.mxu3 %v6896_v6 }
 0x87e   :  { %3185 = vmatpush.msra.mxu3 %v6901_v42 }
 0x880   :  { %3282 = vmatpush.msrb.mxu3 %v6906_v24 }
 0x882   :  { %3283 = vmatpush.msrb.mxu3 %v6917_v14 }
 0x884   :  { %3284 = vmatpush.msrb.mxu3 %v6921_v5 }
 0x886   :  { %3285 = vmatpush.msrb.mxu3 %v6927_v57 }
 0x8ea   :  { %v2809_v60 = vpop.f32.mrf.mxu3 }
 0x8eb   :  { %v7183_v46 = vadd.f32 %v2809_v60, %v7180_v62 }
 0x8ed   :  { %8151 = vst [vmem:[#allocation36_spill] sm:$0xff] %v7183_v46  ;;  %v2813_v2 = vsel %vm2812_vm9, %v7183_v46, -inf }
 0x8ee   :  { %2814 = vmax.xlane.f32.xlu1 %v2813_v2 }
 0x961   :  { %v7187_v28 = vpop.xlane.xlu1 %2814 }
 0x962   :  { %8152 = vst [vmem:[#allocation37_spill] sm:$0xff] %v7187_v28  ;;  %vm2816_vm11 = vcmp.ge.f32.partialorder %v7183_v46, %v7187_v28 }
 0x963   :  { %v2817_v7 = vsel %vm2816_vm11, %v8138_v43, 64 }
 0x964   :  { %v2818_v6 = vsel %vm2812_vm9, %v2817_v7, 2147483647 }
 0x965   :  { %v2820_v42 = vshra.s32 %v2818_v6, 16  ;;  %v2819_v14 = vand.u32 65535, %v2818_v6 }
 0x967   :  { %v2822_v24 = vcvt.s32.f32 %v2820_v42  ;;  %v2821_v57 = vcvt.s32.f32 %v2819_v14 }
 0x969   :  { %2823 = vmin.xlane.f32.xlu1 %v2822_v24 }
 0x9dc   :  { %v2824_v5 = vpop.xlane.xlu1 %2823 }
 0x9dd   :  { %vm2825_vm3 = vcmp.eq.f32.partialorder %v2822_v24, %v2824_v5  ;;  %v2830_v47 = vcvt.f32.s32 %v2824_v5 }
 0x9de   :  { %v2826_v16 = vsel %vm2825_vm3, %v2821_v57, inf }
 0x9df   :  { %2827 = vmin.xlane.f32.xlu2 %v2826_v16  ;;  %v2831_v19 = vshll.u32 %v2830_v47, 16 }
 0xa52   :  { %v2828_v34 = vpop.xlane.xlu2 %2827 }
 0xa53   :  { %v2829_v52 = vcvt.f32.s32 %v2828_v34 }
 0xa55   :  { %v7193_v40 = vadd.s32 %v2831_v19, %v2829_v52 }
 0xa57   :  { %vm2857_vm6 = vcmp.eq.s32.totalorder %v7193_v40, %v8138_v43 }
 0xa58   :  { %v5123_v45 = vsel %vm2857_vm6, 1.0, %v8139_v51 }
 0xa59   :  { %5124 = vmatmul.msk.f32.vlgmr.msra.gmra.mxu0 %vm260_vm0, %v5123_v45  ;;  %5125 = vmatmul.msk.f32.vlgmr.msra.gmra.mxu1 %vm260_vm0, %v5123_v45 }
 0xa5a   :  { %5126 = vmatmul.msk.f32.vlgmr.msra.gmra.mxu2 %vm260_vm0, %v5123_v45  ;;  %3198 = vmatpush.msra.mxu0 %v6940_v26  ;;  %v8153_v26 = vld [vmem:[#allocation32_spill] sm:$0xff] }
 0xa5b   :  { %3242 = vmatpush.msra.mxu2 %v6967_v33  ;;  %3218 = vmatpush.msra.mxu1 %v7020_v37  ;;  %v8156_v33 = vld [vmem:[#allocation35_spill] sm:$0xff] }
 0xa5c   :  { %3199 = vmatpush.msra.mxu0 %v6949_v50  ;;  %v8154_v50 = vld [vmem:[#allocation33_spill] sm:$0xff] }
 0xa5d   :  { %3243 = vmatpush.msra.mxu2 %v6971_v39  ;;  %3219 = vmatpush.msra.mxu1 %v7022_v63 }
 0xa5e   :  { %3200 = vmatpush.msra.mxu0 %v6959_v36  ;;  %v8155_v36 = vld [vmem:[#allocation34_spill] sm:$0xff] }
 0xa5f   :  { %3244 = vmatpush.msra.mxu2 %v6979_v10  ;;  %3220 = vmatpush.msra.mxu1 %v7025_v27 }
 0xa60   :  { %3201 = vmatpush.msra.mxu0 %v6969_v29  ;;  %v2940_v29 = vpop.f32.mrf.mxu3 }
 0xa61   :  { %5129 = vmatmul.msk.f32.vlgmr.msrb.gmra.mxu0 %vm304_vm2, %v7127_v21  ;;  %3245 = vmatpush.msra.mxu2 %v6986_v13  ;;  %v2941_v48 = vadd.f32 %v2940_v29, %v8157_v49 }
 0xa62   :  { %3221 = vmatpush.msra.mxu1 %v7028_v31  ;;  %3202 = vmatpush.msra.mxu0 %v6974_v3 }
 0xa64   :  { %3222 = vmatpush.msra.mxu1 %v7031_v25  ;;  %3203 = vmatpush.msra.mxu0 %v6982_v9 }
 0xa66   :  { %3223 = vmatpush.msra.mxu1 %v7035_v59  ;;  %3204 = vmatpush.msra.mxu0 %v6991_v55 }
 0xa68   :  { %3224 = vmatpush.msra.mxu1 %v7038_v12  ;;  %3205 = vmatpush.msra.mxu0 %v7001_v54  ;;  %v2960_v39 = vpop.f32.mrf.mxu3 }
 0xa69   :  { %v2961_v44 = vadd.f32 %v2960_v39, %v8158_v22 }
 0xa6a   :  { %3395 = vmatpush.msrb.mxu0 %v8153_v26  ;;  %3225 = vmatpush.msra.mxu1 %v7041_v32 }
 0xa6c   :  { %3396 = vmatpush.msrb.mxu0 %v8154_v50 }
 0xa6e   :  { %3397 = vmatpush.msrb.mxu0 %v8155_v36 }
 0xa70   :  { %3398 = vmatpush.msrb.mxu0 %v8156_v33 }
 0xad6   :  { %v2880_v3 = vpop.f32.mrf.mxu0  ;;  %v2900_v9 = vpop.f32.mrf.mxu1 }
 0xad7   :  { %v2881_v61 = vadd.f32 %v2880_v3, %v8159_v11  ;;  %v2901_v38 = vadd.f32 %v2900_v9, %v8160_v35 }
 0xad9   :  { %v2983_v15 = vadd.f32 %v2941_v48, %v2881_v61  ;;  %v3003_v60 = vadd.f32 %v2961_v44, %v2901_v38 }
 0xadb   :  { %v5130_v2 = vmul.f32 -1.442695, %v2983_v15  ;;  %v5131_v7 = vmul.f32 -1.442695, %v3003_v60 }
 0xadd   :  { %5395 = vpow2.f32 %v5130_v2  ;;  %v2920_v48 = vpop.f32.mrf.mxu2 }
 0xade   :  { %5397 = vpow2.f32 %v5131_v7  ;;  %v2980_v3 = vpop.f32.mrf.mxu0  ;;  %v2921_v7 = vadd.f32 %v2920_v48, %v7119_v56 }
 0xadf   :  { %v2981_v61 = vadd.f32 %v2980_v3, %v7117_v4 }
 0xae3   :  { %v5396_v6 = vpop.eup %5395 }
 0xae4   :  { %v5398_v42 = vpop.eup %5397  ;;  %v2987_v24 = vadd.f32 1.0, %v5396_v6 }
 0xae5   :  { %v3007_v14 = vadd.f32 1.0, %v5398_v42 }
 0xae6   :  { %5399 = vrcp.f32 %v2987_v24  ;;  %v2999_v52 = vand.u32 2147483648, %v2987_v24  ;;  %v2997_v29 = vand.u32 2147483647, %v2987_v24  ;;  %vm2993_vm5 = vweird.f32 %v2987_v24 }
 0xae7   :  { %5401 = vrcp.f32 %v3007_v14  ;;  %v3019_v2 = vand.u32 2147483648, %v3007_v14  ;;  %vm3013_vm13 = vweird.f32 %v3007_v14  ;;  %v3017_v42 = vand.u32 2147483647, %v3007_v14 }
 0xae8   :  { %v3000_v44 = vor.u32 1.1754944e-38, %v2999_v52  ;;  %vm2998_vm12 = vcmp.eq.f32.partialorder %v2997_v29, 8.507059e+37 }
 0xae9   :  { %vm3018_vm14 = vcmp.eq.f32.partialorder %v3017_v42, 8.507059e+37 }
 0xaec   :  { %v5400_v5 = vpop.eup %5399 }
 0xaed   :  { %v5402_v57 = vpop.eup %5401  ;;  %v2989_v16 = vmul.f32 %v5400_v5, %v2987_v24  ;;  %vm2994_vm7 = vweird.f32 %v5400_v5  ;;  %v3020_v24 = vor.u32 1.1754944e-38, %v3019_v2 }
 0xaee   :  { %v3009_v47 = vmul.f32 %v5402_v57, %v3007_v14  ;;  %vm2995_vm8 = vmor %vm2993_vm5, %vm2994_vm7  ;;  %vm3014_vm10 = vweird.f32 %v5402_v57 }
 0xaef   :  { %v2990_v34 = vsub.f32 1.0, %v2989_v16  ;;  %vm3015_vm1 = vmor %vm3013_vm13, %vm3014_vm10 }
 0xaf0   :  { %v3010_v19 = vsub.f32 1.0, %v3009_v47 }
 0xaf1   :  { %v2991_v45 = vmul.f32 %v5400_v5, %v2990_v34 }
 0xaf2   :  { %v3011_v39 = vmul.f32 %v5402_v57, %v3010_v19 }
 0xaf3   :  { %v2992_v9 = vadd.f32 %v5400_v5, %v2991_v45 }
 0xaf4   :  { %v3012_v60 = vadd.f32 %v5402_v57, %v3011_v39 }
 0xaf5   :  { %v2996_v38 = vsel %vm2995_vm8, %v5400_v5, %v2992_v9  ;;  %vm2854_vm8 = vcmp.eq.s32.totalorder %v8138_v43, 0 }
 0xaf6   :  { %v3001_v15 = vsel %vm2998_vm12, %v3000_v44, %v2996_v38  ;;  %v3016_v47 = vsel %vm3015_vm1, %v5402_v57, %v3012_v60 }
 0xaf7   :  { %v3023_v6 = vmul.f32 %v3001_v15, %v2981_v61  ;;  %v3021_v34 = vsel %vm3018_vm14, %v3020_v24, %v3016_v47 }
 0xaf8   :  { %v3026_v19 = vsub.f32 1.0, %v3021_v34  ;;  %v3028_v45 = vmul.f32 %v3021_v34, %v7127_v21 }
 0xaf9   :  { %v3024_v16 = vadd.f32 %v3023_v6, %v2921_v7 }
 0xafb   :  { %5403 = vtanh.f32 %v3024_v16 }
 0xb01   :  { %v5404_v52 = vpop.eup %5403 }
 0xb02   :  { %v3027_v5 = vmul.f32 %v5404_v52, %v3026_v19 }
 0xb04   :  { %v7234_v29 = vadd.f32 %v3028_v45, %v3027_v5 }
 0xb06   :  { %5132 = vmatmul.msk.f32.vlgmr.msrb.gmra.mxu1 %vm304_vm2, %v7234_v29  ;;  %v3030_v39 = vperm.slane %v7234_v29, 0 }
 0xb07   :  { %3420 = vmatpush.msrb.mxu1 %v7134_v0 }
 0xb08   :  { %v3031_v14 = vmul.f32 %v3030_v39, %v7047_v18 }
 0xb09   :  { %3421 = vmatpush.msrb.mxu1 %v7136_v53 }
 0xb0a   :  { %v3032_v57 = vsel %vm304_vm2, %v3031_v14, 0.0 }
 0xb0b   :  { %3033 = vadd.xlane.f32.xlu2 %v3032_v57  ;;  %3422 = vmatpush.msrb.mxu1 %v7140_v23 }
 0xb0d   :  { %3423 = vmatpush.msrb.mxu1 %v7144_v1 }
 0xb7e   :  { %v3034_v21 = vpop.xlane.xlu2 %3033 }
 0xb7f   :  { %v3035_v3 = vrot.slane %v3034_v21, 4 }
 0xb81   :  { %v3036_v9 = vmax.f32 %v3034_v21, %v3035_v3 }
 0xb83   :  { %v3037_v48 = vrot.slane %v3036_v9, 2 }
 0xb85   :  { %v3038_v44 = vmax.f32 %v3036_v9, %v3037_v48 }
 0xb87   :  { %v3039_v61 = vrot.slane %v3038_v44, 1 }
 0xb89   :  { %v3040_v38 = vmax.f32 %v3038_v44, %v3039_v61 }
 0xb8b   :  { %v3041_v15 = vsub.f32 %v3034_v21, %v3040_v38 }
 0xb8d   :  { %v3042_v60 = vmul.f32 1.442695, %v3041_v15 }
 0xb8f   :  { %5405 = vpow2.f32 %v3042_v60 }
 0xb95   :  { %v5406_v2 = vpop.eup %5405 }
 0xb96   :  { %v3044_v7 = vrot.slane %v5406_v2, 4 }
 0xb98   :  { %v3045_v6 = vadd.f32 %v5406_v2, %v3044_v7 }
 0xb9a   :  { %v3046_v42 = vrot.slane %v3045_v6, 2 }
 0xb9c   :  { %v3047_v16 = vadd.f32 %v3046_v42, %v3045_v6  ;;  %v3093_v42 = vpop.f32.mrf.mxu1 }
 0xb9e   :  { %v3048_v47 = vrot.slane %v3047_v16, 1 }
 0xba0   :  { %v3049_v24 = vadd.f32 %v3048_v47, %v3047_v16 }
 0xba2   :  { %5407 = vrcp.f32 %v3049_v24  ;;  %v3061_v5 = vand.u32 2147483648, %v3049_v24  ;;  %v3059_v39 = vand.u32 2147483647, %v3049_v24  ;;  %vm3055_vm11 = vweird.f32 %v3049_v24 }
 0xba4   :  { %v3062_v57 = vor.u32 1.1754944e-38, %v3061_v5  ;;  %vm3060_vm6 = vcmp.eq.f32.partialorder %v3059_v39, 8.507059e+37  ;;  %v7281_v5 = vld [vmem:[#allocation9 + $0x58] sm:$0xff]  ;;  %v7287_v39 = vld [vmem:[#allocation9 + $0x28] sm:$0xff] }
 0xba8   :  { %v5408_v34 = vpop.eup %5407 }
 0xba9   :  { %v3051_v19 = vmul.f32 %v5408_v34, %v3049_v24  ;;  %vm3056_vm15 = vweird.f32 %v5408_v34 }
 0xbaa   :  { %vm3057_vm3 = vmor %vm3055_vm11, %vm3056_vm15 }
 0xbab   :  { %v3052_v52 = vsub.f32 1.0, %v3051_v19  ;;  %v7261_v19 = vld [vmem:[#allocation7 + $0x78] sm:$0xff] }
 0xbad   :  { %v3053_v45 = vmul.f32 %v5408_v34, %v3052_v52  ;;  %v7278_v52 = vld [vmem:[#allocation7] sm:$0xff] }
 0xbaf   :  { %v3054_v14 = vadd.f32 %v5408_v34, %v3053_v45  ;;  %v7284_v45 = vld [vmem:[#allocation9 + $0x40] sm:$0xff] }
 0xbb1   :  { %v3058_v21 = vsel %vm3057_vm3, %v5408_v34, %v3054_v14  ;;  %v7258_v34 = vld [vmem:[#allocation7 + $0x90] sm:$0xff] }
 0xbb2   :  { %v3063_v3 = vsel %vm3060_vm6, %v3062_v57, %v3058_v21  ;;  %v7290_v14 = vld [vmem:[#allocation9 + $0x10] sm:$0xff] }
 0xbb3   :  { %v3064_v9 = vmul.f32 %v5406_v2, %v3063_v3  ;;  %v7255_v2 = vld [vmem:[#allocation7 + $0xa8] sm:$0xff] }
 0xbb5   :  { %v3065_v48 = vmul.f32 %v3064_v9, %v7082_v20 }
 0xbb7   :  { %v3066_v44 = vsel %vm304_vm2, %v3065_v48, 0.0 }
 0xbb8   :  { %v3067_v61 = vrot.slane %v3066_v44, 4 }
 0xbba   :  { %v3068_v38 = vadd.f32 %v3067_v61, %v3066_v44 }
 0xbbc   :  { %v3069_v15 = vrot.slane %v3068_v38, 2 }
 0xbbe   :  { %v3070_v60 = vadd.f32 %v3069_v15, %v3068_v38 }
 0xbc0   :  { %v3071_v7 = vrot.slane %v3070_v60, 1 }
 0xbc2   :  { %v3072_v6 = vadd.f32 %v3071_v7, %v3070_v60 }
 0xbc4   :  { %v3094_v16 = vadd.f32 %v3093_v42, %v3072_v6 }
 0xbc6   :  { %v3096_v47 = vadd.f32 %v3094_v16, %v7156_v8 }
 0xbc8   :  { %5409 = vtanh.f32 %v3096_v47 }
 0xbce   :  { %v5410_v24 = vpop.eup %5409 }
 0xbcf   :  { %5133 = vmatmul.msk.f32.vlgmr.msrb.gmra.mxu2 %vm304_vm2, %v5410_v24 }
 0xbd0   :  { %3262 = vmatpush.msrb.mxu2 %v7049_v58  ;;  %v7264_v58 = vld [vmem:[#allocation7 + $0x60] sm:$0xff] }
 0xbd2   :  { %3263 = vmatpush.msrb.mxu2 %v7054_v30  ;;  %v7269_v30 = vld [vmem:[#allocation7 + $0x48] sm:$0xff] }
 0xbd4   :  { %3264 = vmatpush.msrb.mxu2 %v7059_v41  ;;  %v7272_v41 = vld [vmem:[#allocation7 + $0x30] sm:$0xff] }
 0xbd6   :  { %3265 = vmatpush.msrb.mxu2 %v7062_v17  ;;  %v7275_v17 = vld [vmem:[#allocation7 + $0x18] sm:$0xff] }
 0xbd7   :  { %5138 = vmatmul.msk.f32.vlgmr.msra.gmra.mxu2 %vm304_vm2, %v7234_v29 }
 0xbd8   :  { %3486 = vmatpush.msra.mxu2 %v7255_v2 }
 0xbda   :  { %3487 = vmatpush.msra.mxu2 %v7258_v34 }
 0xbdc   :  { %3488 = vmatpush.msra.mxu2 %v7261_v19 }
 0xbde   :  { %3489 = vmatpush.msra.mxu2 %v7264_v58 }
 0xbdf   :  { %5139 = vmatmul.msk.f32.vlgmr.msrb.gmra.mxu2 %vm304_vm2, %v7234_v29 }
 0xbe0   :  { %3490 = vmatpush.msra.mxu2 %v7269_v30 }
 0xbe2   :  { %3491 = vmatpush.msra.mxu2 %v7272_v41 }
 0xbe4   :  { %3492 = vmatpush.msra.mxu2 %v7275_v17 }
 0xbe6   :  { %3493 = vmatpush.msra.mxu2 %v7278_v52 }
 0xbe8   :  { %3590 = vmatpush.msrb.mxu2 %v7281_v5 }
 0xbea   :  { %3591 = vmatpush.msrb.mxu2 %v7284_v45 }
 0xbec   :  { %3592 = vmatpush.msrb.mxu2 %v7287_v39 }
 0xbee   :  { %3593 = vmatpush.msrb.mxu2 %v7290_v14 }
 0xc52   :  { %v3118_v57 = vpop.f32.mrf.mxu2 }
 0xc53   :  { %v7294_v21 = vadd.f32 %v3118_v57, %v7180_v62 }
 0xc55   :  { %8161 = vst [vmem:[#allocation32_spill] sm:$0xff] %v7294_v21  ;;  %v3121_v3 = vsel %vm2812_vm9, %v7294_v21, -inf }
 0xc56   :  { %3122 = vmax.xlane.f32.xlu1 %v3121_v3  ;;  %v2855_v3 = vsel %vm2854_vm8, %v7193_v40, 0  ;;  %v7324_v40 = vld [vmem:[#allocation7 + $0x98] sm:$0xff] }
 0xcc9   :  { %v7298_v9 = vpop.xlane.xlu1 %3122 }
 0xcca   :  { %8162 = vst [vmem:[#allocation33_spill] sm:$0xff] %v7298_v9  ;;  %vm3124_vm7 = vcmp.ge.f32.partialorder %v7294_v21, %v7298_v9 }
 0xccb   :  { %v3125_v48 = vsel %vm3124_vm7, %v8138_v43, 64 }
 0xccc   :  { %v3126_v44 = vsel %vm2812_vm9, %v3125_v48, 2147483647 }
 0xccd   :  { %v3128_v61 = vshra.s32 %v3126_v44, 16  ;;  %v3127_v15 = vand.u32 65535, %v3126_v44 }
 0xccf   :  { %v3130_v38 = vcvt.s32.f32 %v3128_v61  ;;  %v3129_v7 = vcvt.s32.f32 %v3127_v15  ;;  %v7317_v61 = vld [vmem:[#allocation7 + $0xb0] sm:$0xff] }
 0xcd0   :  { %v7327_v15 = vld [vmem:[#allocation9 + $0x30] sm:$0xff] }
 0xcd1   :  { %3131 = vmin.xlane.f32.xlu2 %v3130_v38 }
 0xd44   :  { %v3132_v60 = vpop.xlane.xlu2 %3131 }
 0xd45   :  { %vm3133_vm5 = vcmp.eq.f32.partialorder %v3130_v38, %v3132_v60  ;;  %v3138_v42 = vcvt.f32.s32 %v3132_v60  ;;  %v7320_v38 = vld [vmem:[#allocation9 + $0x48] sm:$0xff]  ;;  %v7331_v60 = vld [vmem:[#allocation7 + $0x80] sm:$0xff] }
 0xd46   :  { %v3134_v6 = vsel %vm3133_vm5, %v3129_v7, inf  ;;  %v7336_v7 = vld [vmem:[#allocation7 + $0x68] sm:$0xff] }
 0xd47   :  { %3135 = vmin.xlane.f32.xlu1 %v3134_v6  ;;  %v3139_v47 = vshll.u32 %v3138_v42, 16 }
 0xdba   :  { %v3136_v16 = vpop.xlane.xlu1 %3135 }
 0xdbb   :  { %v3137_v24 = vcvt.f32.s32 %v3136_v16 }
 0xdbd   :  { %v3140_v57 = vadd.s32 %v3139_v47, %v3137_v24 }
 0xdbf   :  { %v7310_v48 = vsel %vm2529_vm4, %v3140_v57, %v2855_v3  ;;  %vm3164_vm12 = vcmp.eq.s32.totalorder %v3140_v57, %v8138_v43 }
 0xdc0   :  { %v5134_v44 = vsel %vm3164_vm12, 1.0, %v8139_v51 }
 0xdc1   :  { %5135 = vmatmul.msk.f32.vlgmr.msra.gmra.mxu3 %vm260_vm0, %v5134_v44  ;;  %5136 = vmatmul.msk.f32.vlgmr.msra.gmra.mxu0 %vm260_vm0, %v5134_v44 }
 0xdc2   :  { %5137 = vmatmul.msk.f32.vlgmr.msra.gmra.mxu1 %vm260_vm0, %v5134_v44  ;;  %3506 = vmatpush.msra.mxu3 %v7317_v61 }
 0xdc3   :  { %3550 = vmatpush.msra.mxu1 %v7320_v38  ;;  %3526 = vmatpush.msra.mxu0 %v7020_v37  ;;  %v7343_v37 = vld [vmem:[#allocation7 + $0x50] sm:$0xff] }
 0xdc4   :  { %3507 = vmatpush.msra.mxu3 %v7324_v40 }
 0xdc5   :  { %3551 = vmatpush.msra.mxu1 %v7327_v15  ;;  %3527 = vmatpush.msra.mxu0 %v7022_v63 }
 0xdc6   :  { %3508 = vmatpush.msra.mxu3 %v7331_v60 }
 0xdc7   :  { %3552 = vmatpush.msra.mxu1 %v6979_v10  ;;  %3528 = vmatpush.msra.mxu0 %v7025_v27  ;;  %v7347_v10 = vld [vmem:[#allocation7 + $0x38] sm:$0xff] }
 0xdc8   :  { %3509 = vmatpush.msra.mxu3 %v7336_v7 }
 0xdc9   :  { %5140 = vmatmul.msk.f32.vlgmr.msrb.gmra.mxu3 %vm304_vm2, %v7234_v29  ;;  %3553 = vmatpush.msra.mxu1 %v6986_v13  ;;  %v3247_v13 = vpop.f32.mrf.mxu2 }
 0xdca   :  { %3529 = vmatpush.msra.mxu0 %v7028_v31  ;;  %3510 = vmatpush.msra.mxu3 %v7343_v37 }
 0xdcc   :  { %3530 = vmatpush.msra.mxu0 %v7031_v25  ;;  %3511 = vmatpush.msra.mxu3 %v7347_v10 }
 0xdce   :  { %3531 = vmatpush.msra.mxu0 %v7035_v59  ;;  %3512 = vmatpush.msra.mxu3 %v6991_v55 }
 0xdd0   :  { %3532 = vmatpush.msra.mxu0 %v7038_v12  ;;  %3513 = vmatpush.msra.mxu3 %v7001_v54  ;;  %v3248_v12 = vadd.f32 %v3247_v13, %v8157_v49 }
 0xdd1   :  { %v3267_v63 = vpop.f32.mrf.mxu2 }
 0xdd2   :  { %3703 = vmatpush.msrb.mxu3 %v8153_v26  ;;  %3533 = vmatpush.msra.mxu0 %v7041_v32  ;;  %v3268_v31 = vadd.f32 %v3267_v63, %v8158_v22 }
 0xdd4   :  { %3704 = vmatpush.msrb.mxu3 %v8154_v50 }
 0xdd6   :  { %3705 = vmatpush.msrb.mxu3 %v8155_v36 }
 0xdd8   :  { %3706 = vmatpush.msrb.mxu3 %v8156_v33 }
 0xe3e   :  { %v3207_v27 = vpop.f32.mrf.mxu0 }
 0xe3f   :  { %v3208_v55 = vadd.f32 %v3207_v27, %v8160_v35 }
 0xe41   :  { %v3310_v25 = vadd.f32 %v3268_v31, %v3208_v55 }
 0xe43   :  { %v5142_v59 = vmul.f32 -1.442695, %v3310_v25 }
 0xe44   :  { %v3187_v54 = vpop.f32.mrf.mxu3 }
 0xe45   :  { %5411 = vpow2.f32 %v5142_v59  ;;  %v3188_v32 = vadd.f32 %v3187_v54, %v8159_v11  ;;  %v3227_v59 = vpop.f32.mrf.mxu1 }
 0xe47   :  { %v3290_v26 = vadd.f32 %v3248_v12, %v3188_v32 }
 0xe49   :  { %v5141_v50 = vmul.f32 -1.442695, %v3290_v26 }
 0xe4b   :  { %v5412_v36 = vpop.eup %5411  ;;  %5413 = vpow2.f32 %v5141_v50 }
 0xe4c   :  { %v3314_v33 = vadd.f32 1.0, %v5412_v36  ;;  %v3287_v55 = vpop.f32.mrf.mxu3 }
 0xe4d   :  { %v3288_v12 = vadd.f32 %v3287_v55, %v7117_v4 }
 0xe4e   :  { %5415 = vrcp.f32 %v3314_v33  ;;  %v3326_v36 = vand.u32 2147483648, %v3314_v33  ;;  %vm3320_vm11 = vweird.f32 %v3314_v33 }
 0xe51   :  { %v5414_v6 = vpop.eup %5413 }
 0xe52   :  { %v3294_v42 = vadd.f32 1.0, %v5414_v6  ;;  %v3228_v6 = vadd.f32 %v3227_v59, %v7119_v56 }
 0xe54   :  { %5417 = vrcp.f32 %v3294_v42  ;;  %v5416_v16 = vpop.eup %5415  ;;  %v3306_v63 = vand.u32 2147483648, %v3294_v42  ;;  %v3304_v27 = vand.u32 2147483647, %v3294_v42  ;;  %vm3300_vm13 = vweird.f32 %v3294_v42 }
 0xe55   :  { %v3316_v47 = vmul.f32 %v5416_v16, %v3314_v33  ;;  %vm3321_vm15 = vweird.f32 %v5416_v16 }
 0xe56   :  { %v3307_v54 = vor.u32 1.1754944e-38, %v3306_v63  ;;  %vm3305_vm14 = vcmp.eq.f32.partialorder %v3304_v27, 8.507059e+37  ;;  %vm3322_vm3 = vmor %vm3320_vm11, %vm3321_vm15 }
 0xe57   :  { %v3317_v3 = vsub.f32 1.0, %v3316_v47 }
 0xe59   :  { %v3318_v31 = vmul.f32 %v5416_v16, %v3317_v3 }
 0xe5a   :  { %v5418_v24 = vpop.eup %5417 }
 0xe5b   :  { %v3296_v57 = vmul.f32 %v5418_v24, %v3294_v42  ;;  %vm3301_vm10 = vweird.f32 %v5418_v24  ;;  %v3319_v50 = vadd.f32 %v5416_v16, %v3318_v31  ;;  %v3327_v42 = vor.u32 1.1754944e-38, %v3326_v36 }
 0xe5c   :  { %vm3302_vm1 = vmor %vm3300_vm13, %vm3301_vm10 }
 0xe5d   :  { %v3297_v44 = vsub.f32 1.0, %v3296_v57  ;;  %v3324_v57 = vand.u32 2147483647, %v3314_v33 }
 0xe5f   :  { %v3298_v13 = vmul.f32 %v5418_v24, %v3297_v44  ;;  %v3323_v44 = vsel %vm3322_vm3, %v5416_v16, %v3319_v50  ;;  %vm3325_vm6 = vcmp.eq.f32.partialorder %v3324_v57, 8.507059e+37 }
 0xe60   :  { %v3328_v63 = vsel %vm3325_vm6, %v3327_v42, %v3323_v44 }
 0xe61   :  { %v3299_v25 = vadd.f32 %v5418_v24, %v3298_v13  ;;  %v3333_v13 = vsub.f32 1.0, %v3328_v63  ;;  %v3335_v27 = vmul.f32 %v3328_v63, %v7234_v29 }
 0xe63   :  { %v3303_v32 = vsel %vm3302_vm1, %v5418_v24, %v3299_v25 }
 0xe64   :  { %v3308_v26 = vsel %vm3305_vm14, %v3307_v54, %v3303_v32  ;;  %vm3469_vm14 = vcmp.eq.s32.totalorder %v8138_v43, 2 }
 0xe65   :  { %v3330_v47 = vmul.f32 %v3308_v26, %v3288_v12 }
 0xe67   :  { %v3331_v3 = vadd.f32 %v3330_v47, %v3228_v6 }
 0xe69   :  { %5419 = vtanh.f32 %v3331_v3 }
 0xe6f   :  { %v5420_v55 = vpop.eup %5419 }
 0xe70   :  { %v3334_v24 = vmul.f32 %v5420_v55, %v3333_v13 }
 0xe72   :  { %v7366_v25 = vadd.f32 %v3335_v27, %v3334_v24 }
 0xe74   :  { %5143 = vmatmul.msk.f32.vlgmr.msrb.gmra.mxu0 %vm304_vm2, %v7366_v25  ;;  %v3337_v31 = vperm.slane %v7366_v25, 0 }
 0xe75   :  { %3728 = vmatpush.msrb.mxu0 %v7134_v0 }
 0xe76   :  { %v3338_v33 = vmul.f32 %v3337_v31, %v7047_v18 }
 0xe77   :  { %3729 = vmatpush.msrb.mxu0 %v7136_v53 }
 0xe78   :  { %v3339_v16 = vsel %vm304_vm2, %v3338_v33, 0.0 }
 0xe79   :  { %3340 = vadd.xlane.f32.xlu2 %v3339_v16  ;;  %3730 = vmatpush.msrb.mxu0 %v7140_v23 }
 0xe7b   :  { %3731 = vmatpush.msrb.mxu0 %v7144_v1 }
 0xeec   :  { %v3341_v29 = vpop.xlane.xlu2 %3340 }
 0xeed   :  { %v3342_v59 = vrot.slane %v3341_v29, 4 }
 0xeef   :  { %v3343_v54 = vmax.f32 %v3341_v29, %v3342_v59 }
 0xef1   :  { %v3344_v12 = vrot.slane %v3343_v54, 2 }
 0xef3   :  { %v3345_v32 = vmax.f32 %v3343_v54, %v3344_v12 }
 0xef5   :  { %v3346_v26 = vrot.slane %v3345_v32, 1 }
 0xef7   :  { %v3347_v50 = vmax.f32 %v3345_v32, %v3346_v26 }
 0xef9   :  { %v3348_v36 = vsub.f32 %v3341_v29, %v3347_v50 }
 0xefb   :  { %v3349_v0 = vmul.f32 1.442695, %v3348_v36 }
 0xefd   :  { %5421 = vpow2.f32 %v3349_v0 }
 0xf03   :  { %v5422_v6 = vpop.eup %5421 }
 0xf04   :  { %v3351_v47 = vrot.slane %v5422_v6, 4 }
 0xf06   :  { %v3352_v53 = vadd.f32 %v5422_v6, %v3351_v47  ;;  %v3400_v47 = vpop.f32.mrf.mxu0 }
 0xf08   :  { %v3353_v57 = vrot.slane %v3352_v53, 2 }
 0xf0a   :  { %v3354_v3 = vadd.f32 %v3353_v57, %v3352_v53 }
 0xf0c   :  { %v3355_v44 = vrot.slane %v3354_v3, 1 }
 0xf0e   :  { %v3356_v42 = vadd.f32 %v3355_v44, %v3354_v3  ;;  %v7381_v44 = vld [vmem:[#allocation9 + $0x50] sm:$0xff] }
 0xf10   :  { %5423 = vrcp.f32 %v3356_v42  ;;  %v3368_v13 = vand.u32 2147483648, %v3356_v42  ;;  %v3366_v24 = vand.u32 2147483647, %v3356_v42  ;;  %vm3362_vm5 = vweird.f32 %v3356_v42 }
 0xf12   :  { %v3369_v31 = vor.u32 1.1754944e-38, %v3368_v13  ;;  %vm3367_vm10 = vcmp.eq.f32.partialorder %v3366_v24, 8.507059e+37 }
 0xf16   :  { %v5424_v23 = vpop.eup %5423 }
 0xf17   :  { %v3358_v1 = vmul.f32 %v5424_v23, %v3356_v42  ;;  %vm3363_vm7 = vweird.f32 %v5424_v23  ;;  %v7387_v42 = vld [vmem:[#allocation9 + $0x20] sm:$0xff] }
 0xf18   :  { %vm3364_vm12 = vmor %vm3362_vm5, %vm3363_vm7 }
 0xf19   :  { %v3359_v63 = vsub.f32 1.0, %v3358_v1 }
 0xf1b   :  { %v3360_v55 = vmul.f32 %v5424_v23, %v3359_v63 }
 0xf1d   :  { %v3361_v27 = vadd.f32 %v5424_v23, %v3360_v55 }
 0xf1f   :  { %v3365_v33 = vsel %vm3364_vm12, %v5424_v23, %v3361_v27  ;;  %v7390_v23 = vld [vmem:[#allocation9 + $0x8] sm:$0xff] }
 0xf20   :  { %v3370_v16 = vsel %vm3367_vm10, %v3369_v31, %v3365_v33 }
 0xf21   :  { %v3371_v29 = vmul.f32 %v5422_v6, %v3370_v16  ;;  %v7384_v6 = vld [vmem:[#allocation9 + $0x38] sm:$0xff] }
 0xf23   :  { %v3372_v59 = vmul.f32 %v3371_v29, %v7082_v20 }
 0xf25   :  { %v3373_v54 = vsel %vm304_vm2, %v3372_v59, 0.0 }
 0xf26   :  { %v3374_v12 = vrot.slane %v3373_v54, 4 }
 0xf28   :  { %v3375_v32 = vadd.f32 %v3374_v12, %v3373_v54 }
 0xf2a   :  { %v3376_v26 = vrot.slane %v3375_v32, 2 }
 0xf2c   :  { %v3377_v50 = vadd.f32 %v3376_v26, %v3375_v32 }
 0xf2e   :  { %v3378_v36 = vrot.slane %v3377_v50, 1 }
 0xf30   :  { %v3379_v0 = vadd.f32 %v3378_v36, %v3377_v50 }
 0xf32   :  { %v3401_v53 = vadd.f32 %v3400_v47, %v3379_v0  ;;  %v7433_v0 = vld [vmem:[#allocation7 + $0xb8] sm:$0xff] }
 0xf33   :  { %v7442_v47 = vld [vmem:[#allocation9 + $0x18] sm:$0xff] }
 0xf34   :  { %v3403_v57 = vadd.f32 %v3401_v53, %v7156_v8  ;;  %v7445_v53 = vld [vmem:[#allocation7 + $0x88] sm:$0xff] }
 0xf36   :  { %5425 = vtanh.f32 %v3403_v57  ;;  %v7451_v57 = vld [vmem:[#allocation9] sm:$0xff] }
 0xf3c   :  { %v5426_v3 = vpop.eup %5425 }
 0xf3d   :  { %5144 = vmatmul.msk.f32.vlgmr.msrb.gmra.mxu1 %vm304_vm2, %v5426_v3  ;;  %v7454_v3 = vld [vmem:[#allocation7 + $0x70] sm:$0xff] }
 0xf3e   :  { %3570 = vmatpush.msrb.mxu1 %v7381_v44 }
 0xf40   :  { %3571 = vmatpush.msrb.mxu1 %v7384_v6 }
 0xf42   :  { %3572 = vmatpush.msrb.mxu1 %v7387_v42 }
 0xf44   :  { %3573 = vmatpush.msrb.mxu1 %v7390_v23 }
 0xf45   :  { %5149 = vmatmul.msk.f32.vlgmr.msra.gmra.mxu1 %vm304_vm2, %v7366_v25 }
 0xf46   :  { %3794 = vmatpush.msra.mxu1 %v7255_v2 }
 0xf48   :  { %3795 = vmatpush.msra.mxu1 %v7258_v34 }
 0xf4a   :  { %3796 = vmatpush.msra.mxu1 %v7261_v19 }
 0xf4c   :  { %3797 = vmatpush.msra.mxu1 %v7264_v58 }
 0xf4d   :  { %5150 = vmatmul.msk.f32.vlgmr.msrb.gmra.mxu1 %vm304_vm2, %v7366_v25 }
 0xf4e   :  { %3798 = vmatpush.msra.mxu1 %v7269_v30 }
 0xf50   :  { %3799 = vmatpush.msra.mxu1 %v7272_v41 }
 0xf52   :  { %3800 = vmatpush.msra.mxu1 %v7275_v17 }
 0xf54   :  { %3801 = vmatpush.msra.mxu1 %v7278_v52 }
 0xf56   :  { %3898 = vmatpush.msrb.mxu1 %v7281_v5 }
 0xf58   :  { %3899 = vmatpush.msrb.mxu1 %v7284_v45 }
 0xf5a   :  { %3900 = vmatpush.msrb.mxu1 %v7287_v39 }
 0xf5c   :  { %3901 = vmatpush.msrb.mxu1 %v7290_v14 }
 0xfba   :  { %v3425_v8 = vpop.f32.mrf.mxu1 }
 0xfbb   :  { %v7410_v1 = vadd.f32 %v3425_v8, %v7180_v62  ;;  %v7458_v8 = vld [vmem:[#allocation7 + $0x58] sm:$0xff] }
 0xfbd   :  { %8163 = vst [vmem:[#allocation34_spill] sm:$0xff] %v7410_v1  ;;  %v3428_v63 = vsel %vm2812_vm9, %v7410_v1, -inf }
 0xfbe   :  { %3429 = vmax.xlane.f32.xlu1 %v3428_v63  ;;  %v7462_v63 = vld [vmem:[#allocation7 + $0x40] sm:$0xff] }
0x1031   :  { %v7414_v13 = vpop.xlane.xlu1 %3429 }
0x1032   :  { %8164 = vst [vmem:[#allocation35_spill] sm:$0xff] %v7414_v13  ;;  %vm3431_vm13 = vcmp.ge.f32.partialorder %v7410_v1, %v7414_v13 }
0x1033   :  { %v3432_v55 = vsel %vm3431_vm13, %v8138_v43, 64 }
0x1034   :  { %v3433_v24 = vsel %vm2812_vm9, %v3432_v55, 2147483647  ;;  %v7465_v55 = vld [vmem:[#allocation7 + $0x20] sm:$0xff] }
0x1035   :  { %v3435_v27 = vshra.s32 %v3433_v24, 16  ;;  %v3434_v33 = vand.u32 65535, %v3433_v24  ;;  %v7468_v24 = vld [vmem:[#allocation7 + $0x28] sm:$0xff] }
0x1037   :  { %v3437_v31 = vcvt.s32.f32 %v3435_v27  ;;  %v3436_v62 = vcvt.s32.f32 %v3434_v33  ;;  %v7471_v27 = vld [vmem:[#allocation7 + $0x8] sm:$0xff]  ;;  %v7477_v33 = vld [vmem:[#allocation7 + $0x10] sm:$0xff] }
0x1038   :  { %8165 = vst [vmem:[#allocation38_spill] sm:$0xff] %v7471_v27 }
0x1039   :  { %3438 = vmin.xlane.f32.xlu2 %v3437_v31  ;;  %8167 = vst [vmem:[#allocation40_spill] sm:$0xff] %v7477_v33 }
0x10ac   :  { %v3439_v16 = vpop.xlane.xlu2 %3438 }
0x10ad   :  { %vm3440_vm1 = vcmp.eq.f32.partialorder %v3437_v31, %v3439_v16  ;;  %v3445_v59 = vcvt.f32.s32 %v3439_v16  ;;  %v7474_v31 = vld [vmem:[#allocation13 + $0x18] sm:$0xff]  ;;  %v7480_v16 = vld [vmem:[#allocation13 + $0x10] sm:$0xff] }
0x10ae   :  { %v3441_v29 = vsel %vm3440_vm1, %v3436_v62, inf  ;;  %8166 = vst [vmem:[#allocation39_spill] sm:$0xff] %v7474_v31  ;;  %v7483_v62 = vld [vmem:[#allocation13 + $0x8] sm:$0xff] }
0x10af   :  { %3442 = vmin.xlane.f32.xlu1 %v3441_v29  ;;  %v3446_v12 = vshll.u32 %v3445_v59, 16  ;;  %8168 = vst [vmem:[#allocation41_spill] sm:$0xff] %v7480_v16  ;;  %v7486_v29 = vld [vmem:[#allocation13] sm:$0xff]  ;;  %v3555_v59 = vpop.f32.mrf.mxu1 }
0x10b0   :  { %8169 = vst [vmem:[#allocation42_spill] sm:$0xff] %v7483_v62 }
0x10b1   :  { %8170 = vst [vmem:[#allocation43_spill] sm:$0xff] %v7486_v29 }
0x1122   :  { %v3443_v54 = vpop.xlane.xlu1 %3442 }
0x1123   :  { %v3444_v32 = vcvt.f32.s32 %v3443_v54  ;;  %v3575_v54 = vpop.f32.mrf.mxu1 }
0x1125   :  { %v3447_v26 = vadd.s32 %v3446_v12, %v3444_v32 }
0x1127   :  { %v7424_v50 = vsel %vm3469_vm14, %v3447_v26, %v7310_v48  ;;  %vm3472_vm15 = vcmp.eq.s32.totalorder %v3447_v26, %v8138_v43  ;;  %v7438_v48 = vld [vmem:[#allocation7 + $0xa0] sm:$0xff]  ;;  %v3556_v26 = vadd.f32 %v3555_v59, %v8157_v49 }
0x1128   :  { %v5145_v36 = vsel %vm3472_vm15, 1.0, %v8139_v51 }
0x1129   :  { %5146 = vmatmul.msk.f32.vlgmr.msra.gmra.mxu2 %vm260_vm0, %v5145_v36  ;;  %5147 = vmatmul.msk.f32.vlgmr.msra.gmra.mxu3 %vm260_vm0, %v5145_v36 }
0x112a   :  { %5148 = vmatmul.msk.f32.vlgmr.msra.gmra.mxu0 %vm260_vm0, %v5145_v36  ;;  %3814 = vmatpush.msra.mxu2 %v7317_v61  ;;  %v3576_v36 = vadd.f32 %v3575_v54, %v8158_v22 }
0x112b   :  { %3858 = vmatpush.msra.mxu0 %v7320_v38  ;;  %3834 = vmatpush.msra.mxu3 %v7433_v0 }
0x112c   :  { %3815 = vmatpush.msra.mxu2 %v7324_v40 }
0x112d   :  { %3859 = vmatpush.msra.mxu0 %v7327_v15  ;;  %3835 = vmatpush.msra.mxu3 %v7438_v48 }
0x112e   :  { %3816 = vmatpush.msra.mxu2 %v7331_v60 }
0x112f   :  { %3860 = vmatpush.msra.mxu0 %v7442_v47  ;;  %3836 = vmatpush.msra.mxu3 %v7445_v53 }
0x1130   :  { %3817 = vmatpush.msra.mxu2 %v7336_v7 }
0x1131   :  { %5151 = vmatmul.msk.f32.vlgmr.msrb.gmra.mxu2 %vm304_vm2, %v7366_v25  ;;  %3861 = vmatpush.msra.mxu0 %v7451_v57 }
0x1132   :  { %3837 = vmatpush.msra.mxu3 %v7454_v3  ;;  %3818 = vmatpush.msra.mxu2 %v7343_v37 }
0x1134   :  { %3838 = vmatpush.msra.mxu3 %v7458_v8  ;;  %3819 = vmatpush.msra.mxu2 %v7347_v10 }
0x1136   :  { %3839 = vmatpush.msra.mxu3 %v7462_v63  ;;  %3820 = vmatpush.msra.mxu2 %v7465_v55 }
0x1138   :  { %3840 = vmatpush.msra.mxu3 %v7468_v24  ;;  %3821 = vmatpush.msra.mxu2 %v7471_v27 }
0x113a   :  { %4011 = vmatpush.msrb.mxu2 %v7474_v31  ;;  %3841 = vmatpush.msra.mxu3 %v7477_v33 }
0x113c   :  { %4012 = vmatpush.msrb.mxu2 %v7480_v16 }
0x113e   :  { %4013 = vmatpush.msrb.mxu2 %v7483_v62 }
0x1140   :  { %4014 = vmatpush.msrb.mxu2 %v7486_v29 }
0x11ac   :  { %v3495_v12 = vpop.f32.mrf.mxu2  ;;  %v3515_v32 = vpop.f32.mrf.mxu3 }
0x11ad   :  { %v3496_v1 = vadd.f32 %v3495_v12, %v8159_v11  ;;  %v3516_v13 = vadd.f32 %v3515_v32, %v8160_v35 }
0x11af   :  { %v3598_v21 = vadd.f32 %v3556_v26, %v3496_v1  ;;  %v3618_v9 = vadd.f32 %v3576_v36, %v3516_v13 }
0x11b1   :  { %v5152_v46 = vmul.f32 -1.442695, %v3598_v21  ;;  %v5153_v28 = vmul.f32 -1.442695, %v3618_v9 }
0x11b3   :  { %5427 = vpow2.f32 %v5152_v46 }
0x11b4   :  { %5429 = vpow2.f32 %v5153_v28  ;;  %v3595_v9 = vpop.f32.mrf.mxu2  ;;  %v3535_v28 = vpop.f32.mrf.mxu0 }
0x11b9   :  { %v5428_v62 = vpop.eup %5427 }
0x11ba   :  { %v5430_v29 = vpop.eup %5429  ;;  %v3602_v16 = vadd.f32 1.0, %v5428_v62  ;;  %v3596_v62 = vadd.f32 %v3595_v9, %v7117_v4 }
0x11bb   :  { %v3622_v33 = vadd.f32 1.0, %v5430_v29 }
0x11bc   :  { %5431 = vrcp.f32 %v3602_v16  ;;  %v3614_v11 = vand.u32 2147483648, %v3602_v16  ;;  %v3612_v1 = vand.u32 2147483647, %v3602_v16  ;;  %vm3608_vm3 = vweird.f32 %v3602_v16 }
0x11bd   :  { %5433 = vrcp.f32 %v3622_v33  ;;  %vm3628_vm12 = vweird.f32 %v3622_v33  ;;  %v3632_v35 = vand.u32 2147483647, %v3622_v33 }
0x11be   :  { %v3615_v13 = vor.u32 1.1754944e-38, %v3614_v11  ;;  %vm3613_vm7 = vcmp.eq.f32.partialorder %v3612_v1, 8.507059e+37 }
0x11bf   :  { %vm3633_vm13 = vcmp.eq.f32.partialorder %v3632_v35, 8.507059e+37  ;;  %v7505_v35 = vld [vmem:[#allocation18 + $0x10] sm:$0xff] }
0x11c0   :  { %8171 = vst [vmem:[#allocation44_spill] sm:$0xff] %v7505_v35 }
0x11c2   :  { %v5432_v31 = vpop.eup %5431 }
0x11c3   :  { %v5434_v59 = vpop.eup %5433  ;;  %v3604_v49 = vmul.f32 %v5432_v31, %v3602_v16  ;;  %vm3609_vm11 = vweird.f32 %v5432_v31 }
0x11c4   :  { %v3624_v54 = vmul.f32 %v5434_v59, %v3622_v33  ;;  %vm3610_vm6 = vmor %vm3608_vm3, %vm3609_vm11  ;;  %vm3629_vm5 = vweird.f32 %v5434_v59 }
0x11c5   :  { %v3605_v22 = vsub.f32 1.0, %v3604_v49  ;;  %v3536_v49 = vadd.f32 %v3535_v28, %v7119_v56  ;;  %vm3630_vm10 = vmor %vm3628_vm12, %vm3629_vm5  ;;  %v7512_v28 = vld [vmem:[#allocation18] sm:$0xff]  ;;  %vm3777_vm5 = vcmp.eq.s32.totalorder %v8138_v43, 3 }
0x11c6   :  { %v3625_v12 = vsub.f32 1.0, %v3624_v54  ;;  %v3634_v54 = vand.u32 2147483648, %v3622_v33  ;;  %v7501_v33 = vld [vmem:[#allocation18 + $0x18] sm:$0xff]  ;;  %8173 = vst [vmem:[#allocation46_spill] sm:$0xff] %v7512_v28 }
0x11c7   :  { %v3606_v32 = vmul.f32 %v5432_v31, %v3605_v22 }
0x11c8   :  { %v3626_v21 = vmul.f32 %v5434_v59, %v3625_v12  ;;  %v3635_v16 = vor.u32 1.1754944e-38, %v3634_v54 }
0x11c9   :  { %v3607_v46 = vadd.f32 %v5432_v31, %v3606_v32 }
0x11ca   :  { %v3627_v36 = vadd.f32 %v5434_v59, %v3626_v21 }
0x11cb   :  { %v3611_v29 = vsel %vm3610_vm6, %v5432_v31, %v3607_v46 }
0x11cc   :  { %v3616_v26 = vsel %vm3613_vm7, %v3615_v13, %v3611_v29  ;;  %v3631_v32 = vsel %vm3630_vm10, %v5434_v59, %v3627_v36 }
0x11cd   :  { %v3638_v22 = vmul.f32 %v3616_v26, %v3596_v62  ;;  %v3636_v11 = vsel %vm3633_vm13, %v3635_v16, %v3631_v32 }
0x11ce   :  { %v3641_v27 = vsub.f32 1.0, %v3636_v11  ;;  %v3643_v1 = vmul.f32 %v3636_v11, %v7366_v25  ;;  %v7509_v25 = vld [vmem:[#allocation18 + $0x8] sm:$0xff] }
0x11cf   :  { %v3639_v12 = vadd.f32 %v3638_v22, %v3536_v49  ;;  %8172 = vst [vmem:[#allocation45_spill] sm:$0xff] %v7509_v25 }
0x11d1   :  { %5435 = vtanh.f32 %v3639_v12 }
0x11d7   :  { %v5436_v9 = vpop.eup %5435 }
0x11d8   :  { %v3642_v31 = vmul.f32 %v5436_v9, %v3641_v27 }
0x11da   :  { %v7496_v46 = vadd.f32 %v3643_v1, %v3642_v31 }
0x11dc   :  { %5154 = vmatmul.msk.f32.vlgmr.msrb.gmra.mxu3 %vm304_vm2, %v7496_v46  ;;  %v3645_v21 = vperm.slane %v7496_v46, 0 }
0x11dd   :  { %4036 = vmatpush.msrb.mxu3 %v7501_v33 }
0x11de   :  { %v3646_v59 = vmul.f32 %v3645_v21, %v7047_v18 }
0x11df   :  { %4037 = vmatpush.msrb.mxu3 %v7505_v35 }
0x11e0   :  { %v3647_v27 = vsel %vm304_vm2, %v3646_v59, 0.0 }
0x11e1   :  { %3648 = vadd.xlane.f32.xlu2 %v3647_v27  ;;  %4038 = vmatpush.msrb.mxu3 %v7509_v25 }
0x11e3   :  { %4039 = vmatpush.msrb.mxu3 %v7512_v28 }
0x1254   :  { %v3649_v13 = vpop.xlane.xlu2 %3648 }
0x1255   :  { %v3650_v62 = vrot.slane %v3649_v13, 4 }
0x1257   :  { %v3651_v29 = vmax.f32 %v3649_v13, %v3650_v62 }
0x1259   :  { %v3652_v26 = vrot.slane %v3651_v29, 2 }
0x125b   :  { %v3653_v36 = vmax.f32 %v3651_v29, %v3652_v26 }
0x125d   :  { %v3654_v49 = vrot.slane %v3653_v36, 1 }
0x125f   :  { %v3655_v54 = vmax.f32 %v3653_v36, %v3654_v49 }
0x1261   :  { %v3656_v22 = vsub.f32 %v3649_v13, %v3655_v54 }
0x1263   :  { %v3657_v12 = vmul.f32 1.442695, %v3656_v22 }
0x1265   :  { %5437 = vpow2.f32 %v3657_v12 }
0x126b   :  { %v5438_v32 = vpop.eup %5437 }
0x126c   :  { %v3659_v16 = vrot.slane %v5438_v32, 4 }
0x126e   :  { %v3660_v11 = vadd.f32 %v5438_v32, %v3659_v16 }
0x1270   :  { %v3661_v9 = vrot.slane %v3660_v11, 2 }
0x1272   :  { %v3662_v31 = vadd.f32 %v3661_v9, %v3660_v11 }
0x1274   :  { %v3663_v1 = vrot.slane %v3662_v31, 1 }
0x1276   :  { %v3664_v21 = vadd.f32 %v3663_v1, %v3662_v31 }
0x1278   :  { %5439 = vrcp.f32 %v3664_v21  ;;  %v3676_v25 = vand.u32 2147483648, %v3664_v21  ;;  %v3674_v29 = vand.u32 2147483647, %v3664_v21  ;;  %vm3670_vm15 = vweird.f32 %v3664_v21 }
0x127a   :  { %v3677_v13 = vor.u32 1.1754944e-38, %v3676_v25  ;;  %vm3675_vm3 = vcmp.eq.f32.partialorder %v3674_v29, 8.507059e+37 }
0x127e   :  { %v5440_v59 = vpop.eup %5439 }
0x127f   :  { %v3666_v27 = vmul.f32 %v5440_v59, %v3664_v21  ;;  %vm3671_vm1 = vweird.f32 %v5440_v59 }
0x1280   :  { %vm3672_vm11 = vmor %vm3670_vm15, %vm3671_vm1 }
0x1281   :  { %v3667_v28 = vsub.f32 1.0, %v3666_v27  ;;  %v3708_v27 = vpop.f32.mrf.mxu3 }
0x1283   :  { %v3668_v62 = vmul.f32 %v5440_v59, %v3667_v28 }
0x1285   :  { %v3669_v26 = vadd.f32 %v5440_v59, %v3668_v62  ;;  %v7517_v62 = vld [vmem:[#allocation16] sm:$0x1] }
0x1287   :  { %v3673_v36 = vsel %vm3672_vm11, %v5440_v59, %v3669_v26 }
0x1288   :  { %v3678_v49 = vsel %vm3675_vm3, %v3677_v13, %v3673_v36 }
0x1289   :  { %v3679_v54 = vmul.f32 %v5438_v32, %v3678_v49 }
0x128b   :  { %v3680_v22 = vmul.f32 %v3679_v54, %v7082_v20 }
0x128d   :  { %v3681_v12 = vsel %vm304_vm2, %v3680_v22, 0.0  ;;  %v8181_v22 = vld [vmem:[#allocation28_spill] sm:$0xff] }
0x128e   :  { %v3682_v16 = vrot.slane %v3681_v12, 4 }
0x1290   :  { %v3683_v11 = vadd.f32 %v3682_v16, %v3681_v12 }
0x1292   :  { %v3684_v9 = vrot.slane %v3683_v11, 2 }
0x1294   :  { %v3685_v31 = vadd.f32 %v3684_v9, %v3683_v11 }
0x1296   :  { %v3686_v1 = vrot.slane %v3685_v31, 1 }
0x1298   :  { %v3687_v28 = vadd.f32 %v3686_v1, %v3685_v31  ;;  %v8182_v1 = vld [vmem:[#allocation31_spill] sm:$0xff] }
0x129a   :  { %v3709_v35 = vadd.f32 %v3708_v27, %v3687_v28  ;;  %v8183_v27 = vld [vmem:[#allocation30_spill] sm:$0xff] }
0x129c   :  { %v3711_v25 = vadd.f32 %v7517_v62, %v3709_v35 }
0x129e   :  { %5441 = vtanh.f32 %v3711_v25 }
0x12a4   :  { %v5442_v21 = vpop.eup %5441 }
0x12a5   :  { %5155 = vmatmul.msk.f32.vlgmr.msrb.gmra.mxu0 %vm304_vm2, %v5442_v21 }
0x12a6   :  { %3878 = vmatpush.msrb.mxu0 %v7381_v44 }
0x12a8   :  { %3879 = vmatpush.msrb.mxu0 %v7384_v6 }
0x12aa   :  { %3880 = vmatpush.msrb.mxu0 %v7387_v42 }
0x12ac   :  { %3881 = vmatpush.msrb.mxu0 %v7390_v23 }
0x12ad   :  { %5160 = vmatmul.msk.f32.vlgmr.msra.gmra.mxu0 %vm304_vm2, %v7496_v46 }
0x12ae   :  { %4102 = vmatpush.msra.mxu0 %v7255_v2 }
0x12b0   :  { %4103 = vmatpush.msra.mxu0 %v7258_v34  ;;  %v7541_v34 = vld [vmem:[#allocation19] sm:$0x1] }
0x12b2   :  { %4104 = vmatpush.msra.mxu0 %v7261_v19 }
0x12b4   :  { %4105 = vmatpush.msra.mxu0 %v7264_v58 }
0x12b5   :  { %5161 = vmatmul.msk.f32.vlgmr.msrb.gmra.mxu0 %vm304_vm2, %v7496_v46 }
0x12b6   :  { %4106 = vmatpush.msra.mxu0 %v7269_v30 }
0x12b8   :  { %4107 = vmatpush.msra.mxu0 %v7272_v41 }
0x12ba   :  { %4108 = vmatpush.msra.mxu0 %v7275_v17 }
0x12bc   :  { %4109 = vmatpush.msra.mxu0 %v7278_v52 }
0x12be   :  { %4206 = vmatpush.msrb.mxu0 %v7281_v5 }
0x12c0   :  { %4207 = vmatpush.msrb.mxu0 %v7284_v45 }
0x12c2   :  { %4208 = vmatpush.msrb.mxu0 %v7287_v39 }
0x12c4   :  { %4209 = vmatpush.msrb.mxu0 %v7290_v14 }
0x1322   :  { %v3733_v2 = vpop.f32.mrf.mxu0 }
0x1323   :  { %v7544_v19 = vadd.f32 %v7541_v34, %v3733_v2 }
0x1325   :  { %v3736_v58 = vsel %vm2812_vm9, %v7544_v19, -inf }
0x1326   :  { %3737 = vmax.xlane.f32.xlu1 %v3736_v58 }
0x1399   :  { %v7548_v30 = vpop.xlane.xlu1 %3737 }
0x139a   :  { %vm3739_vm6 = vcmp.ge.f32.partialorder %v7544_v19, %v7548_v30 }
0x139b   :  { %v3740_v41 = vsel %vm3739_vm6, %v8138_v43, 64 }
0x139c   :  { %v3741_v17 = vsel %vm2812_vm9, %v3740_v41, 2147483647 }
0x139d   :  { %v3743_v52 = vshra.s32 %v3741_v17, 16  ;;  %v3742_v45 = vand.u32 65535, %v3741_v17 }
0x139f   :  { %v3745_v5 = vcvt.s32.f32 %v3743_v52  ;;  %v3744_v14 = vcvt.s32.f32 %v3742_v45 }
0x13a1   :  { %3746 = vmin.xlane.f32.xlu2 %v3745_v5 }
0x1414   :  { %v3747_v39 = vpop.xlane.xlu2 %3746 }
0x1415   :  { %vm3748_vm7 = vcmp.eq.f32.partialorder %v3745_v5, %v3747_v39  ;;  %v3753_v32 = vcvt.f32.s32 %v3747_v39 }
0x1416   :  { %v3749_v35 = vsel %vm3748_vm7, %v3744_v14, inf }
0x1417   :  { %3750 = vmin.xlane.f32.xlu0 %v3749_v35  ;;  %v3754_v29 = vshll.u32 %v3753_v32, 16 }
0x148a   :  { %v3751_v59 = vpop.xlane.xlu0 %3750 }
0x148b   :  { %v3752_v26 = vcvt.f32.s32 %v3751_v59 }
0x148d   :  { %v3755_v13 = vadd.s32 %v3754_v29, %v3752_v26 }
0x148f   :  { %v7558_v36 = vsel %vm3777_vm5, %v3755_v13, %v7424_v50  ;;  %vm3780_vm12 = vcmp.eq.s32.totalorder %v3755_v13, %v8138_v43  ;;  %v8180_v50 = vld [vmem:[#allocation29_spill] sm:$0xff] }
0x1490   :  { %v5156_v49 = vsel %vm3780_vm12, 1.0, %v8139_v51 }
0x1491   :  { %5157 = vmatmul.msk.f32.vlgmr.msra.gmra.mxu1 %vm260_vm0, %v5156_v49  ;;  %5158 = vmatmul.msk.f32.vlgmr.msra.gmra.mxu2 %vm260_vm0, %v5156_v49 }
0x1492   :  { %5159 = vmatmul.msk.f32.vlgmr.msra.gmra.mxu3 %vm260_vm0, %v5156_v49  ;;  %4122 = vmatpush.msra.mxu1 %v7317_v61  ;;  %v8174_v61 = vld [vmem:[#allocation38_spill] sm:$0xff] }
0x1493   :  { %4166 = vmatpush.msra.mxu3 %v7320_v38  ;;  %4142 = vmatpush.msra.mxu2 %v7433_v0  ;;  %v8175_v38 = vld [vmem:[#allocation39_spill] sm:$0xff] }
0x1494   :  { %4123 = vmatpush.msra.mxu1 %v7324_v40  ;;  %v8176_v40 = vld [vmem:[#allocation40_spill] sm:$0xff] }
0x1495   :  { %4167 = vmatpush.msra.mxu3 %v7327_v15  ;;  %4143 = vmatpush.msra.mxu2 %v7438_v48  ;;  %v8177_v15 = vld [vmem:[#allocation41_spill] sm:$0xff] }
0x1496   :  { %4124 = vmatpush.msra.mxu1 %v7331_v60  ;;  %v8178_v60 = vld [vmem:[#allocation42_spill] sm:$0xff] }
0x1497   :  { %4168 = vmatpush.msra.mxu3 %v7442_v47  ;;  %4144 = vmatpush.msra.mxu2 %v7445_v53 }
0x1498   :  { %4125 = vmatpush.msra.mxu1 %v7336_v7  ;;  %v8179_v7 = vld [vmem:[#allocation43_spill] sm:$0xff] }
0x1499   :  { %5162 = vmatmul.msk.f32.vlgmr.msrb.gmra.mxu1 %vm304_vm2, %v7496_v46  ;;  %4169 = vmatpush.msra.mxu3 %v7451_v57 }
0x149a   :  { %4145 = vmatpush.msra.mxu2 %v7454_v3  ;;  %4126 = vmatpush.msra.mxu1 %v7343_v37  ;;  %v3863_v37 = vpop.f32.mrf.mxu0 }
0x149b   :  { %v3864_v54 = vadd.f32 %v3863_v37, %v8180_v50 }
0x149c   :  { %4146 = vmatpush.msra.mxu2 %v7458_v8  ;;  %4127 = vmatpush.msra.mxu1 %v7347_v10 }
0x149e   :  { %4147 = vmatpush.msra.mxu2 %v7462_v63  ;;  %4128 = vmatpush.msra.mxu1 %v7465_v55 }
0x14a0   :  { %4148 = vmatpush.msra.mxu2 %v7468_v24  ;;  %4129 = vmatpush.msra.mxu1 %v8174_v61 }
0x14a2   :  { %4319 = vmatpush.msrb.mxu1 %v8175_v38  ;;  %4149 = vmatpush.msra.mxu2 %v8176_v40  ;;  %v3883_v11 = vpop.f32.mrf.mxu0 }
0x14a3   :  { %v3884_v28 = vadd.f32 %v3883_v11, %v8182_v1 }
0x14a4   :  { %4320 = vmatpush.msrb.mxu1 %v8177_v15 }
0x14a6   :  { %4321 = vmatpush.msrb.mxu1 %v8178_v60 }
0x14a8   :  { %4322 = vmatpush.msrb.mxu1 %v8179_v7 }
0x150e   :  { %v3803_v10 = vpop.f32.mrf.mxu1 }
0x150f   :  { %v3804_v12 = vadd.f32 %v3803_v10, %v8181_v22 }
0x1511   :  { %v3906_v16 = vadd.f32 %v3864_v54, %v3804_v12 }
0x1513   :  { %v5163_v9 = vmul.f32 -1.442695, %v3906_v16 }
0x1514   :  { %v3823_v31 = vpop.f32.mrf.mxu2 }
0x1515   :  { %5443 = vpow2.f32 %v5163_v9  ;;  %v3824_v25 = vadd.f32 %v3823_v31, %v8183_v27  ;;  %v3843_v13 = vpop.f32.mrf.mxu3 }
0x1516   :  { %v3903_v29 = vpop.f32.mrf.mxu1  ;;  %v3844_v16 = vadd.f32 %v3843_v13, %v7119_v56  ;;  %v8186_v13 = vld [vmem:[#allocation46_spill] sm:$0xff] }
0x1517   :  { %v3926_v21 = vadd.f32 %v3884_v28, %v3824_v25  ;;  %v3904_v54 = vadd.f32 %v3903_v29, %v7117_v4 }
0x1519   :  { %v5164_v2 = vmul.f32 -1.442695, %v3926_v21 }
0x151b   :  { %v5444_v58 = vpop.eup %5443  ;;  %5445 = vpow2.f32 %v5164_v2 }
0x151c   :  { %v3910_v41 = vadd.f32 1.0, %v5444_v58 }
0x151e   :  { %5447 = vrcp.f32 %v3910_v41  ;;  %v3922_v14 = vand.u32 2147483648, %v3910_v41  ;;  %v3920_v32 = vand.u32 2147483647, %v3910_v41  ;;  %vm3916_vm13 = vweird.f32 %v3910_v41 }
0x1520   :  { %v3923_v37 = vor.u32 1.1754944e-38, %v3922_v14  ;;  %vm3921_vm15 = vcmp.eq.f32.partialorder %v3920_v32, 8.507059e+37 }
0x1521   :  { %v5446_v17 = vpop.eup %5445 }
0x1522   :  { %v3930_v52 = vadd.f32 1.0, %v5446_v17 }
0x1524   :  { %v5448_v5 = vpop.eup %5447  ;;  %5449 = vrcp.f32 %v3930_v52  ;;  %v3942_v31 = vand.u32 2147483648, %v3930_v52  ;;  %v3940_v25 = vand.u32 2147483647, %v3930_v52  ;;  %vm3936_vm3 = vweird.f32 %v3930_v52 }
0x1525   :  { %v3912_v45 = vmul.f32 %v5448_v5, %v3910_v41  ;;  %vm3917_vm10 = vweird.f32 %v5448_v5 }
0x1526   :  { %vm3918_vm1 = vmor %vm3916_vm13, %vm3917_vm10  ;;  %v3943_v58 = vor.u32 1.1754944e-38, %v3942_v31  ;;  %vm3941_vm7 = vcmp.eq.f32.partialorder %v3940_v25, 8.507059e+37 }
0x1527   :  { %v3913_v39 = vsub.f32 1.0, %v3912_v45 }
0x1529   :  { %v3914_v35 = vmul.f32 %v5448_v5, %v3913_v39 }
0x152a   :  { %v5450_v59 = vpop.eup %5449 }
0x152b   :  { %v3932_v26 = vmul.f32 %v5450_v59, %v3930_v52  ;;  %v3915_v49 = vadd.f32 %v5448_v5, %v3914_v35  ;;  %vm3937_vm11 = vweird.f32 %v5450_v59 }
0x152c   :  { %vm3938_vm6 = vmor %vm3936_vm3, %vm3937_vm11  ;;  %vm4085_vm3 = vcmp.eq.s32.totalorder %v8138_v43, 4 }
0x152d   :  { %v3933_v10 = vsub.f32 1.0, %v3932_v26  ;;  %v3919_v12 = vsel %vm3918_vm1, %v5448_v5, %v3915_v49  ;;  %v8185_v26 = vld [vmem:[#allocation45_spill] sm:$0xff] }
0x152e   :  { %v3924_v11 = vsel %vm3921_vm15, %v3923_v37, %v3919_v12 }
0x152f   :  { %v3934_v9 = vmul.f32 %v5450_v59, %v3933_v10  ;;  %v3946_v28 = vmul.f32 %v3924_v11, %v3904_v54 }
0x1531   :  { %v3935_v21 = vadd.f32 %v5450_v59, %v3934_v9  ;;  %v3947_v2 = vadd.f32 %v3946_v28, %v3844_v16 }
0x1533   :  { %v3939_v41 = vsel %vm3938_vm6, %v5450_v59, %v3935_v21  ;;  %5451 = vtanh.f32 %v3947_v2  ;;  %v8184_v59 = vld [vmem:[#allocation44_spill] sm:$0xff] }
0x1534   :  { %v3944_v17 = vsel %vm3941_vm7, %v3943_v58, %v3939_v41 }
0x1535   :  { %v3949_v45 = vsub.f32 1.0, %v3944_v17  ;;  %v3951_v14 = vmul.f32 %v3944_v17, %v7496_v46 }
0x1539   :  { %v5452_v5 = vpop.eup %5451 }
0x153a   :  { %v3950_v39 = vmul.f32 %v5452_v5, %v3949_v45 }
0x153c   :  { %v7598_v35 = vadd.f32 %v3951_v14, %v3950_v39 }
0x153e   :  { %5165 = vmatmul.msk.f32.vlgmr.msrb.gmra.mxu2 %vm304_vm2, %v7598_v35  ;;  %v3953_v52 = vperm.slane %v7598_v35, 0 }
0x153f   :  { %4344 = vmatpush.msrb.mxu2 %v7501_v33 }
0x1540   :  { %v3954_v32 = vmul.f32 %v3953_v52, %v7047_v18 }
0x1541   :  { %4345 = vmatpush.msrb.mxu2 %v8184_v59 }
0x1542   :  { %v3955_v29 = vsel %vm304_vm2, %v3954_v32, 0.0 }
0x1543   :  { %3956 = vadd.xlane.f32.xlu1 %v3955_v29  ;;  %4346 = vmatpush.msrb.mxu2 %v8185_v26 }
0x1545   :  { %4347 = vmatpush.msrb.mxu2 %v8186_v13 }
0x15b6   :  { %v3957_v46 = vpop.xlane.xlu1 %3956 }
0x15b7   :  { %v3958_v49 = vrot.slane %v3957_v46, 4 }
0x15b9   :  { %v3959_v37 = vmax.f32 %v3957_v46, %v3958_v49 }
0x15bb   :  { %v3960_v10 = vrot.slane %v3959_v37, 2 }
0x15bd   :  { %v3961_v54 = vmax.f32 %v3959_v37, %v3960_v10 }
0x15bf   :  { %v3962_v12 = vrot.slane %v3961_v54, 1 }
0x15c1   :  { %v3963_v16 = vmax.f32 %v3961_v54, %v3962_v12 }
0x15c3   :  { %v3964_v11 = vsub.f32 %v3957_v46, %v3963_v16 }
0x15c5   :  { %v3965_v9 = vmul.f32 1.442695, %v3964_v11 }
0x15c7   :  { %5453 = vpow2.f32 %v3965_v9 }
0x15cd   :  { %v5454_v31 = vpop.eup %5453 }
0x15ce   :  { %v3967_v28 = vrot.slane %v5454_v31, 4 }
0x15d0   :  { %v3968_v25 = vadd.f32 %v5454_v31, %v3967_v28 }
0x15d2   :  { %v3969_v21 = vrot.slane %v3968_v25, 2 }
0x15d4   :  { %v3970_v2 = vadd.f32 %v3969_v21, %v3968_v25  ;;  %v4016_v21 = vpop.f32.mrf.mxu2 }
0x15d6   :  { %v3971_v58 = vrot.slane %v3970_v2, 1 }
0x15d8   :  { %v3972_v41 = vadd.f32 %v3971_v58, %v3970_v2 }
0x15da   :  { %5455 = vrcp.f32 %v3972_v41  ;;  %v3984_v39 = vand.u32 2147483648, %v3972_v41  ;;  %v3982_v52 = vand.u32 2147483647, %v3972_v41  ;;  %vm3978_vm10 = vweird.f32 %v3972_v41 }
0x15dc   :  { %v3985_v29 = vor.u32 1.1754944e-38, %v3984_v39  ;;  %vm3983_vm1 = vcmp.eq.f32.partialorder %v3982_v52, 8.507059e+37  ;;  %v7645_v39 = vld [vmem:[#allocation9 + $0x58] sm:$0xff]  ;;  %v7651_v52 = vld [vmem:[#allocation9 + $0x28] sm:$0xff] }
0x15e0   :  { %v5456_v17 = vpop.eup %5455 }
0x15e1   :  { %v3974_v45 = vmul.f32 %v5456_v17, %v3972_v41  ;;  %vm3979_vm12 = vweird.f32 %v5456_v17 }
0x15e2   :  { %vm3980_vm13 = vmor %vm3978_vm10, %vm3979_vm12 }
0x15e3   :  { %v3975_v5 = vsub.f32 1.0, %v3974_v45  ;;  %v7625_v45 = vld [vmem:[#allocation7 + $0x78] sm:$0xff] }
0x15e5   :  { %v3976_v14 = vmul.f32 %v5456_v17, %v3975_v5  ;;  %v7642_v5 = vld [vmem:[#allocation7] sm:$0xff] }
0x15e7   :  { %v3977_v32 = vadd.f32 %v5456_v17, %v3976_v14  ;;  %v7648_v14 = vld [vmem:[#allocation9 + $0x40] sm:$0xff] }
0x15e9   :  { %v3981_v46 = vsel %vm3980_vm13, %v5456_v17, %v3977_v32  ;;  %v7622_v17 = vld [vmem:[#allocation7 + $0x90] sm:$0xff] }
0x15ea   :  { %v3986_v49 = vsel %vm3983_vm1, %v3985_v29, %v3981_v46  ;;  %v7654_v32 = vld [vmem:[#allocation9 + $0x10] sm:$0xff] }
0x15eb   :  { %v3987_v37 = vmul.f32 %v5454_v31, %v3986_v49  ;;  %v7619_v31 = vld [vmem:[#allocation7 + $0xa8] sm:$0xff] }
0x15ed   :  { %v3988_v10 = vmul.f32 %v3987_v37, %v7082_v20 }
0x15ef   :  { %v3989_v54 = vsel %vm304_vm2, %v3988_v10, 0.0 }
0x15f0   :  { %v3990_v12 = vrot.slane %v3989_v54, 4 }
0x15f2   :  { %v3991_v16 = vadd.f32 %v3990_v12, %v3989_v54 }
0x15f4   :  { %v3992_v11 = vrot.slane %v3991_v16, 2 }
0x15f6   :  { %v3993_v9 = vadd.f32 %v3992_v11, %v3991_v16 }
0x15f8   :  { %v3994_v28 = vrot.slane %v3993_v9, 1 }
0x15fa   :  { %v3995_v25 = vadd.f32 %v3994_v28, %v3993_v9 }
0x15fc   :  { %v4017_v2 = vadd.f32 %v4016_v21, %v3995_v25 }
0x15fe   :  { %v4019_v58 = vadd.f32 %v7517_v62, %v4017_v2 }
0x1600   :  { %5457 = vtanh.f32 %v4019_v58 }
0x1606   :  { %v5458_v41 = vpop.eup %5457 }
0x1607   :  { %5166 = vmatmul.msk.f32.vlgmr.msrb.gmra.mxu3 %vm304_vm2, %v5458_v41 }
0x1608   :  { %4186 = vmatpush.msrb.mxu3 %v7381_v44  ;;  %v7628_v44 = vld [vmem:[#allocation7 + $0x60] sm:$0xff] }
0x160a   :  { %4187 = vmatpush.msrb.mxu3 %v7384_v6  ;;  %v7633_v6 = vld [vmem:[#allocation7 + $0x48] sm:$0xff] }
0x160c   :  { %4188 = vmatpush.msrb.mxu3 %v7387_v42  ;;  %v7636_v42 = vld [vmem:[#allocation7 + $0x30] sm:$0xff] }
0x160e   :  { %4189 = vmatpush.msrb.mxu3 %v7390_v23  ;;  %v7639_v23 = vld [vmem:[#allocation7 + $0x18] sm:$0xff] }
0x160f   :  { %5171 = vmatmul.msk.f32.vlgmr.msra.gmra.mxu3 %vm304_vm2, %v7598_v35 }
0x1610   :  { %4410 = vmatpush.msra.mxu3 %v7619_v31 }
0x1612   :  { %4411 = vmatpush.msra.mxu3 %v7622_v17 }
0x1614   :  { %4412 = vmatpush.msra.mxu3 %v7625_v45 }
0x1616   :  { %4413 = vmatpush.msra.mxu3 %v7628_v44 }
0x1617   :  { %5172 = vmatmul.msk.f32.vlgmr.msrb.gmra.mxu3 %vm304_vm2, %v7598_v35 }
0x1618   :  { %4414 = vmatpush.msra.mxu3 %v7633_v6 }
0x161a   :  { %4415 = vmatpush.msra.mxu3 %v7636_v42 }
0x161c   :  { %4416 = vmatpush.msra.mxu3 %v7639_v23 }
0x161e   :  { %4417 = vmatpush.msra.mxu3 %v7642_v5 }
0x1620   :  { %4514 = vmatpush.msrb.mxu3 %v7645_v39 }
0x1622   :  { %4515 = vmatpush.msrb.mxu3 %v7648_v14 }
0x1624   :  { %4516 = vmatpush.msrb.mxu3 %v7651_v52 }
0x1626   :  { %4517 = vmatpush.msrb.mxu3 %v7654_v32 }
0x168a   :  { %v4041_v29 = vpop.f32.mrf.mxu3 }
0x168b   :  { %v7658_v46 = vadd.f32 %v7541_v34, %v4041_v29 }
0x168d   :  { %v4044_v49 = vsel %vm2812_vm9, %v7658_v46, -inf }
0x168e   :  { %4045 = vmax.xlane.f32.xlu2 %v4044_v49 }
0x1701   :  { %v7662_v37 = vpop.xlane.xlu2 %4045 }
0x1702   :  { %vm4047_vm15 = vcmp.ge.f32.partialorder %v7658_v46, %v7662_v37 }
0x1703   :  { %v4048_v10 = vsel %vm4047_vm15, %v8138_v43, 64 }
0x1704   :  { %v4049_v54 = vsel %vm2812_vm9, %v4048_v10, 2147483647 }
0x1705   :  { %v4051_v12 = vshra.s32 %v4049_v54, 16  ;;  %v4050_v11 = vand.u32 65535, %v4049_v54  ;;  %v7679_v54 = vld [vmem:[#allocation7 + $0xb0] sm:$0xff] }
0x1707   :  { %v4053_v16 = vcvt.s32.f32 %v4051_v12  ;;  %v4052_v28 = vcvt.s32.f32 %v4050_v11  ;;  %v7682_v12 = vld [vmem:[#allocation9 + $0x48] sm:$0xff]  ;;  %v7693_v11 = vld [vmem:[#allocation7 + $0x80] sm:$0xff] }
0x1709   :  { %4054 = vmin.xlane.f32.xlu0 %v4053_v16 }
0x177c   :  { %v4055_v9 = vpop.xlane.xlu0 %4054 }
0x177d   :  { %vm4056_vm11 = vcmp.eq.f32.partialorder %v4053_v16, %v4055_v9  ;;  %v4061_v21 = vcvt.f32.s32 %v4055_v9  ;;  %v7689_v16 = vld [vmem:[#allocation9 + $0x30] sm:$0xff]  ;;  %v7698_v9 = vld [vmem:[#allocation7 + $0x68] sm:$0xff] }
0x177e   :  { %v4057_v25 = vsel %vm4056_vm11, %v4052_v28, inf }
0x177f   :  { %4058 = vmin.xlane.f32.xlu1 %v4057_v25  ;;  %v4062_v58 = vshll.u32 %v4061_v21, 16 }
0x17f2   :  { %v4059_v2 = vpop.xlane.xlu1 %4058 }
0x17f3   :  { %v4060_v41 = vcvt.f32.s32 %v4059_v2 }
0x17f5   :  { %v4063_v29 = vadd.s32 %v4062_v58, %v4060_v41 }
0x17f7   :  { %v7672_v49 = vsel %vm4085_vm3, %v4063_v29, %v7558_v36  ;;  %vm4088_vm6 = vcmp.eq.s32.totalorder %v4063_v29, %v8138_v43  ;;  %v7686_v36 = vld [vmem:[#allocation7 + $0x98] sm:$0xff] }
0x17f8   :  { %v5167_v10 = vsel %vm4088_vm6, 1.0, %v8139_v51 }
0x17f9   :  { %5168 = vmatmul.msk.f32.vlgmr.msra.gmra.mxu0 %vm260_vm0, %v5167_v10  ;;  %5169 = vmatmul.msk.f32.vlgmr.msra.gmra.mxu1 %vm260_vm0, %v5167_v10 }
0x17fa   :  { %5170 = vmatmul.msk.f32.vlgmr.msra.gmra.mxu2 %vm260_vm0, %v5167_v10  ;;  %4430 = vmatpush.msra.mxu0 %v7679_v54 }
0x17fb   :  { %4474 = vmatpush.msra.mxu2 %v7682_v12  ;;  %4450 = vmatpush.msra.mxu1 %v7433_v0  ;;  %v7705_v0 = vld [vmem:[#allocation7 + $0x50] sm:$0xff] }
0x17fc   :  { %4431 = vmatpush.msra.mxu0 %v7686_v36 }
0x17fd   :  { %4475 = vmatpush.msra.mxu2 %v7689_v16  ;;  %4451 = vmatpush.msra.mxu1 %v7438_v48  ;;  %v7709_v48 = vld [vmem:[#allocation7 + $0x38] sm:$0xff] }
0x17fe   :  { %4432 = vmatpush.msra.mxu0 %v7693_v11 }
0x17ff   :  { %4476 = vmatpush.msra.mxu2 %v7442_v47  ;;  %4452 = vmatpush.msra.mxu1 %v7445_v53  ;;  %v4171_v47 = vpop.f32.mrf.mxu3 }
0x1800   :  { %4433 = vmatpush.msra.mxu0 %v7698_v9 }
0x1801   :  { %5173 = vmatmul.msk.f32.vlgmr.msrb.gmra.mxu0 %vm304_vm2, %v7598_v35  ;;  %4477 = vmatpush.msra.mxu2 %v7451_v57 }
0x1802   :  { %4453 = vmatpush.msra.mxu1 %v7454_v3  ;;  %4434 = vmatpush.msra.mxu0 %v7705_v0 }
0x1804   :  { %4454 = vmatpush.msra.mxu1 %v7458_v8  ;;  %4435 = vmatpush.msra.mxu0 %v7709_v48  ;;  %v4172_v8 = vadd.f32 %v4171_v47, %v8180_v50 }
0x1806   :  { %4455 = vmatpush.msra.mxu1 %v7462_v63  ;;  %4436 = vmatpush.msra.mxu0 %v7465_v55 }
0x1807   :  { %v4191_v53 = vpop.f32.mrf.mxu3 }
0x1808   :  { %4456 = vmatpush.msra.mxu1 %v7468_v24  ;;  %4437 = vmatpush.msra.mxu0 %v8174_v61  ;;  %v4192_v63 = vadd.f32 %v4191_v53, %v8182_v1 }
0x180a   :  { %4627 = vmatpush.msrb.mxu0 %v8175_v38  ;;  %4457 = vmatpush.msra.mxu1 %v8176_v40 }
0x180c   :  { %4628 = vmatpush.msrb.mxu0 %v8177_v15 }
0x180e   :  { %4629 = vmatpush.msrb.mxu0 %v8178_v60 }
0x1810   :  { %4630 = vmatpush.msrb.mxu0 %v8179_v7 }
0x1876   :  { %v4111_v57 = vpop.f32.mrf.mxu0  ;;  %v4131_v3 = vpop.f32.mrf.mxu1 }
0x1877   :  { %v4112_v55 = vadd.f32 %v4111_v57, %v8181_v22  ;;  %v4132_v24 = vadd.f32 %v4131_v3, %v8183_v27 }
0x1879   :  { %v4214_v61 = vadd.f32 %v4172_v8, %v4112_v55  ;;  %v4234_v38 = vadd.f32 %v4192_v63, %v4132_v24 }
0x187b   :  { %v5174_v40 = vmul.f32 -1.442695, %v4214_v61  ;;  %v5175_v15 = vmul.f32 -1.442695, %v4234_v38 }
0x187d   :  { %5459 = vpow2.f32 %v5174_v40  ;;  %v4151_v55 = vpop.f32.mrf.mxu2 }
0x187e   :  { %5461 = vpow2.f32 %v5175_v15  ;;  %v4211_v8 = vpop.f32.mrf.mxu0 }
0x187f   :  { %v4212_v61 = vadd.f32 %v4211_v8, %v7117_v4 }
0x1883   :  { %v5460_v60 = vpop.eup %5459 }
0x1884   :  { %v5462_v7 = vpop.eup %5461  ;;  %v4218_v28 = vadd.f32 1.0, %v5460_v60 }
0x1885   :  { %v4238_v25 = vadd.f32 1.0, %v5462_v7  ;;  %v4152_v7 = vadd.f32 %v4151_v55, %v7119_v56 }
0x1886   :  { %5463 = vrcp.f32 %v4218_v28  ;;  %v4230_v47 = vand.u32 2147483648, %v4218_v28  ;;  %v4228_v57 = vand.u32 2147483647, %v4218_v28  ;;  %vm4224_vm12 = vweird.f32 %v4218_v28 }
0x1887   :  { %5465 = vrcp.f32 %v4238_v25  ;;  %v4250_v60 = vand.u32 2147483648, %v4238_v25  ;;  %vm4244_vm15 = vweird.f32 %v4238_v25 }
0x1888   :  { %v4231_v24 = vor.u32 1.1754944e-38, %v4230_v47  ;;  %vm4229_vm13 = vcmp.eq.f32.partialorder %v4228_v57, 8.507059e+37 }
0x188c   :  { %v5464_v21 = vpop.eup %5463 }
0x188d   :  { %v5466_v2 = vpop.eup %5465  ;;  %v4220_v58 = vmul.f32 %v5464_v21, %v4218_v28  ;;  %vm4225_vm7 = vweird.f32 %v5464_v21  ;;  %v4251_v28 = vor.u32 1.1754944e-38, %v4250_v60 }
0x188e   :  { %v4240_v41 = vmul.f32 %v5466_v2, %v4238_v25  ;;  %vm4226_vm10 = vmor %vm4224_vm12, %vm4225_vm7  ;;  %vm4245_vm1 = vweird.f32 %v5466_v2 }
0x188f   :  { %v4221_v29 = vsub.f32 1.0, %v4220_v58  ;;  %vm4246_vm11 = vmor %vm4244_vm15, %vm4245_vm1 }
0x1890   :  { %v4241_v10 = vsub.f32 1.0, %v4240_v41  ;;  %v4248_v41 = vand.u32 2147483647, %v4238_v25 }
0x1891   :  { %v4222_v53 = vmul.f32 %v5464_v21, %v4221_v29 }
0x1892   :  { %v4242_v3 = vmul.f32 %v5466_v2, %v4241_v10  ;;  %vm4249_vm6 = vcmp.eq.f32.partialorder %v4248_v41, 8.507059e+37 }
0x1893   :  { %v4223_v63 = vadd.f32 %v5464_v21, %v4222_v53 }
0x1894   :  { %v4243_v15 = vadd.f32 %v5466_v2, %v4242_v3 }
0x1895   :  { %v4227_v38 = vsel %vm4226_vm10, %v5464_v21, %v4223_v63 }
0x1896   :  { %v4232_v40 = vsel %vm4229_vm13, %v4231_v24, %v4227_v38  ;;  %v4247_v10 = vsel %vm4246_vm11, %v5466_v2, %v4243_v15  ;;  %vm4393_vm11 = vcmp.eq.s32.totalorder %v8138_v43, 5 }
0x1897   :  { %v4254_v58 = vmul.f32 %v4232_v40, %v4212_v61  ;;  %v4252_v47 = vsel %vm4249_vm6, %v4251_v28, %v4247_v10 }
0x1898   :  { %v4257_v53 = vsub.f32 1.0, %v4252_v47  ;;  %v4259_v57 = vmul.f32 %v4252_v47, %v7598_v35 }
0x1899   :  { %v4255_v29 = vadd.f32 %v4254_v58, %v4152_v7 }
0x189b   :  { %5467 = vtanh.f32 %v4255_v29 }
0x18a1   :  { %v5468_v8 = vpop.eup %5467 }
0x18a2   :  { %v4258_v21 = vmul.f32 %v5468_v8, %v4257_v53 }
0x18a4   :  { %v7728_v63 = vadd.f32 %v4259_v57, %v4258_v21 }
0x18a6   :  { %5176 = vmatmul.msk.f32.vlgmr.msrb.gmra.mxu1 %vm304_vm2, %v7728_v63  ;;  %v4261_v3 = vperm.slane %v7728_v63, 0 }
0x18a7   :  { %4652 = vmatpush.msrb.mxu1 %v7501_v33 }
0x18a8   :  { %v4262_v25 = vmul.f32 %v4261_v3, %v7047_v18 }
0x18a9   :  { %4653 = vmatpush.msrb.mxu1 %v8184_v59 }
0x18aa   :  { %v4263_v2 = vsel %vm304_vm2, %v4262_v25, 0.0 }
0x18ab   :  { %4264 = vadd.xlane.f32.xlu2 %v4263_v2  ;;  %4654 = vmatpush.msrb.mxu1 %v8185_v26 }
0x18ad   :  { %4655 = vmatpush.msrb.mxu1 %v8186_v13 }
0x191e   :  { %v4265_v35 = vpop.xlane.xlu2 %4264 }
0x191f   :  { %v4266_v55 = vrot.slane %v4265_v35, 4 }
0x1921   :  { %v4267_v24 = vmax.f32 %v4265_v35, %v4266_v55 }
0x1923   :  { %v4268_v61 = vrot.slane %v4267_v24, 2 }
0x1925   :  { %v4269_v38 = vmax.f32 %v4267_v24, %v4268_v61 }
0x1927   :  { %v4270_v40 = vrot.slane %v4269_v38, 1 }
0x1929   :  { %v4271_v15 = vmax.f32 %v4269_v38, %v4270_v40 }
0x192b   :  { %v4272_v60 = vsub.f32 %v4265_v35, %v4271_v15 }
0x192d   :  { %v4273_v33 = vmul.f32 1.442695, %v4272_v60 }
0x192f   :  { %5469 = vpow2.f32 %v4273_v33 }
0x1935   :  { %v5470_v7 = vpop.eup %5469 }
0x1936   :  { %v4275_v58 = vrot.slane %v5470_v7, 4 }
0x1938   :  { %v4276_v59 = vadd.f32 %v5470_v7, %v4275_v58  ;;  %v4324_v58 = vpop.f32.mrf.mxu1 }
0x193a   :  { %v4277_v41 = vrot.slane %v4276_v59, 2 }
0x193c   :  { %v4278_v29 = vadd.f32 %v4277_v41, %v4276_v59 }
0x193e   :  { %v4279_v10 = vrot.slane %v4278_v29, 1 }
0x1940   :  { %v4280_v28 = vadd.f32 %v4279_v10, %v4278_v29  ;;  %v7743_v10 = vld [vmem:[#allocation9 + $0x50] sm:$0xff] }
0x1942   :  { %5471 = vrcp.f32 %v4280_v28  ;;  %v4292_v53 = vand.u32 2147483648, %v4280_v28  ;;  %v4290_v21 = vand.u32 2147483647, %v4280_v28  ;;  %vm4286_vm12 = vweird.f32 %v4280_v28 }
0x1944   :  { %v4293_v3 = vor.u32 1.1754944e-38, %v4292_v53  ;;  %vm4291_vm13 = vcmp.eq.f32.partialorder %v4290_v21, 8.507059e+37 }
0x1948   :  { %v5472_v26 = vpop.eup %5471 }
0x1949   :  { %v4282_v13 = vmul.f32 %v5472_v26, %v4280_v28  ;;  %vm4287_vm7 = vweird.f32 %v5472_v26  ;;  %v7749_v28 = vld [vmem:[#allocation9 + $0x20] sm:$0xff] }
0x194a   :  { %vm4288_vm10 = vmor %vm4286_vm12, %vm4287_vm7 }
0x194b   :  { %v4283_v47 = vsub.f32 1.0, %v4282_v13 }
0x194d   :  { %v4284_v8 = vmul.f32 %v5472_v26, %v4283_v47 }
0x194f   :  { %v4285_v57 = vadd.f32 %v5472_v26, %v4284_v8 }
0x1951   :  { %v4289_v25 = vsel %vm4288_vm10, %v5472_v26, %v4285_v57  ;;  %v7752_v26 = vld [vmem:[#allocation9 + $0x8] sm:$0xff]  ;;  %v5633_v57 = vld [vmem:[#allocation7 + $0xb8] sm:$0xff] }
0x1952   :  { %v4294_v2 = vsel %vm4291_vm13, %v4293_v3, %v4289_v25  ;;  %v5635_v3 = vld [vmem:[#allocation9 + $0x18] sm:$0xff]  ;;  %v5636_v25 = vld [vmem:[#allocation7 + $0x88] sm:$0xff] }
0x1953   :  { %v4295_v35 = vmul.f32 %v5470_v7, %v4294_v2  ;;  %v7746_v7 = vld [vmem:[#allocation9 + $0x38] sm:$0xff]  ;;  %v5642_v2 = vld [vmem:[#allocation7 + $0x28] sm:$0xff] }
0x1955   :  { %v4296_v55 = vmul.f32 %v4295_v35, %v7082_v20  ;;  %v5644_v35 = vld [vmem:[#allocation13 + $0x18] sm:$0xff] }
0x1957   :  { %v4297_v24 = vsel %vm304_vm2, %v4296_v55, 0.0  ;;  %v5645_v55 = vld [vmem:[#allocation7 + $0x10] sm:$0xff] }
0x1958   :  { %v4298_v61 = vrot.slane %v4297_v24, 4 }
0x195a   :  { %v4299_v38 = vadd.f32 %v4298_v61, %v4297_v24  ;;  %v5646_v24 = vld [vmem:[#allocation13 + $0x10] sm:$0xff]  ;;  %v5647_v61 = vld [vmem:[#allocation13 + $0x8] sm:$0xff] }
0x195c   :  { %v4300_v40 = vrot.slane %v4299_v38, 2 }
0x195e   :  { %v4301_v15 = vadd.f32 %v4300_v40, %v4299_v38 }
0x1960   :  { %v4302_v60 = vrot.slane %v4301_v15, 1 }
0x1962   :  { %v4303_v33 = vadd.f32 %v4302_v60, %v4301_v15 }
0x1964   :  { %v4325_v59 = vadd.f32 %v4324_v58, %v4303_v33 }
0x1966   :  { %v4327_v41 = vadd.f32 %v7517_v62, %v4325_v59 }
0x1968   :  { %5473 = vtanh.f32 %v4327_v41 }
0x196e   :  { %v5474_v29 = vpop.eup %5473 }
0x196f   :  { %5177 = vmatmul.msk.f32.vlgmr.msrb.gmra.mxu2 %vm304_vm2, %v5474_v29 }
0x1970   :  { %4494 = vmatpush.msrb.mxu2 %v7743_v10 }
0x1972   :  { %4495 = vmatpush.msrb.mxu2 %v7746_v7 }
0x1974   :  { %4496 = vmatpush.msrb.mxu2 %v7749_v28 }
0x1976   :  { %4497 = vmatpush.msrb.mxu2 %v7752_v26 }
0x1977   :  { %5182 = vmatmul.msk.f32.vlgmr.msra.gmra.mxu2 %vm304_vm2, %v7728_v63 }
0x1978   :  { %4718 = vmatpush.msra.mxu2 %v7619_v31 }
0x197a   :  { %4719 = vmatpush.msra.mxu2 %v7622_v17 }
0x197c   :  { %4720 = vmatpush.msra.mxu2 %v7625_v45 }
0x197e   :  { %4721 = vmatpush.msra.mxu2 %v7628_v44 }
0x197f   :  { %5183 = vmatmul.msk.f32.vlgmr.msrb.gmra.mxu2 %vm304_vm2, %v7728_v63 }
0x1980   :  { %4722 = vmatpush.msra.mxu2 %v7633_v6 }
0x1982   :  { %4723 = vmatpush.msra.mxu2 %v7636_v42 }
0x1984   :  { %4724 = vmatpush.msra.mxu2 %v7639_v23 }
0x1986   :  { %4725 = vmatpush.msra.mxu2 %v7642_v5 }
0x1988   :  { %4822 = vmatpush.msrb.mxu2 %v7645_v39 }
0x198a   :  { %4823 = vmatpush.msrb.mxu2 %v7648_v14 }
0x198c   :  { %4824 = vmatpush.msrb.mxu2 %v7651_v52 }
0x198e   :  { %4825 = vmatpush.msrb.mxu2 %v7654_v32 }
0x19f2   :  { %v4349_v62 = vpop.f32.mrf.mxu2 }
0x19f3   :  { %v7772_v31 = vadd.f32 %v7541_v34, %v4349_v62 }
0x19f5   :  { %v4352_v17 = vsel %vm2812_vm9, %v7772_v31, -inf }
0x19f6   :  { %4353 = vmax.xlane.f32.xlu0 %v4352_v17 }
0x19fa   :  { %v4479_v38 = vpop.f32.mrf.mxu2 }
0x19fb   :  { %v4480_v41 = vadd.f32 %v4479_v38, %v8180_v50 }
0x1a69   :  { %v7776_v45 = vpop.xlane.xlu0 %4353 }
0x1a6a   :  { %vm4355_vm1 = vcmp.ge.f32.partialorder %v7772_v31, %v7776_v45 }
0x1a6b   :  { %v4356_v44 = vsel %vm4355_vm1, %v8138_v43, 64 }
0x1a6c   :  { %v4357_v6 = vsel %vm2812_vm9, %v4356_v44, 2147483647 }
0x1a6d   :  { %v4359_v42 = vshra.s32 %v4357_v6, 16  ;;  %v4358_v5 = vand.u32 65535, %v4357_v6 }
0x1a6f   :  { %v4361_v23 = vcvt.s32.f32 %v4359_v42  ;;  %v4360_v34 = vcvt.s32.f32 %v4358_v5 }
0x1a71   :  { %4362 = vmin.xlane.f32.xlu1 %v4361_v23 }
0x1ae4   :  { %v4363_v39 = vpop.xlane.xlu1 %4362 }
0x1ae5   :  { %vm4364_vm15 = vcmp.eq.f32.partialorder %v4361_v23, %v4363_v39  ;;  %v4369_v52 = vcvt.f32.s32 %v4363_v39 }
0x1ae6   :  { %v4365_v14 = vsel %vm4364_vm15, %v4360_v34, inf }
0x1ae7   :  { %4366 = vmin.xlane.f32.xlu2 %v4365_v14  ;;  %v4370_v13 = vshll.u32 %v4369_v52, 16 }
0x1b5a   :  { %v4367_v32 = vpop.xlane.xlu2 %4366 }
0x1b5b   :  { %v4368_v47 = vcvt.f32.s32 %v4367_v32 }
0x1b5d   :  { %v4371_v53 = vadd.s32 %v4370_v13, %v4368_v47 }
0x1b5f   :  { %v7786_v8 = vsel %vm4393_vm11, %v4371_v53, %v7672_v49  ;;  %vm4396_vm6 = vcmp.eq.s32.totalorder %v4371_v53, %v8138_v43  ;;  %v5634_v49 = vld [vmem:[#allocation7 + $0xa0] sm:$0xff] }
0x1b60   :  { %v5178_v21 = vsel %vm4396_vm6, 1.0, %v8139_v51 }
0x1b61   :  { %5179 = vmatmul.msk.f32.vlgmr.msra.gmra.mxu3 %vm260_vm0, %v5178_v21  ;;  %5180 = vmatmul.msk.f32.vlgmr.msra.gmra.mxu0 %vm260_vm0, %v5178_v21 }
0x1b62   :  { %5181 = vmatmul.msk.f32.vlgmr.msra.gmra.mxu1 %vm260_vm0, %v5178_v21  ;;  %4738 = vmatpush.msra.mxu3 %v7679_v54  ;;  %v5637_v54 = vld [vmem:[#allocation9] sm:$0xff] }
0x1b63   :  { %4782 = vmatpush.msra.mxu1 %v7682_v12  ;;  %4758 = vmatpush.msra.mxu0 %v5633_v57  ;;  %v5638_v12 = vld [vmem:[#allocation7 + $0x70] sm:$0xff] }
0x1b64   :  { %4739 = vmatpush.msra.mxu3 %v7686_v36  ;;  %v5639_v36 = vld [vmem:[#allocation7 + $0x58] sm:$0xff] }
0x1b65   :  { %4783 = vmatpush.msra.mxu1 %v7689_v16  ;;  %4759 = vmatpush.msra.mxu0 %v5634_v49  ;;  %v5640_v16 = vld [vmem:[#allocation7 + $0x40] sm:$0xff] }
0x1b66   :  { %4740 = vmatpush.msra.mxu3 %v7693_v11  ;;  %v5641_v11 = vld [vmem:[#allocation7 + $0x20] sm:$0xff] }
0x1b67   :  { %4784 = vmatpush.msra.mxu1 %v5635_v3  ;;  %4760 = vmatpush.msra.mxu0 %v5636_v25 }
0x1b68   :  { %4741 = vmatpush.msra.mxu3 %v7698_v9  ;;  %v5643_v9 = vld [vmem:[#allocation7 + $0x8] sm:$0xff] }
0x1b69   :  { %5184 = vmatmul.msk.f32.vlgmr.msrb.gmra.mxu3 %vm304_vm2, %v7728_v63  ;;  %4785 = vmatpush.msra.mxu1 %v5637_v54 }
0x1b6a   :  { %4761 = vmatpush.msra.mxu0 %v5638_v12  ;;  %4742 = vmatpush.msra.mxu3 %v7705_v0  ;;  %v5648_v0 = vld [vmem:[#allocation13] sm:$0xff] }
0x1b6c   :  { %4762 = vmatpush.msra.mxu0 %v5639_v36  ;;  %4743 = vmatpush.msra.mxu3 %v7709_v48  ;;  %v4499_v48 = vpop.f32.mrf.mxu2 }
0x1b6d   :  { %v4500_v15 = vadd.f32 %v4499_v48, %v8182_v1 }
0x1b6e   :  { %4763 = vmatpush.msra.mxu0 %v5640_v16  ;;  %4744 = vmatpush.msra.mxu3 %v5641_v11 }
0x1b70   :  { %4764 = vmatpush.msra.mxu0 %v5642_v2  ;;  %4745 = vmatpush.msra.mxu3 %v5643_v9 }
0x1b72   :  { %4935 = vmatpush.msrb.mxu3 %v5644_v35  ;;  %4765 = vmatpush.msra.mxu0 %v5645_v55 }
0x1b74   :  { %4936 = vmatpush.msrb.mxu3 %v5646_v24 }
0x1b76   :  { %4937 = vmatpush.msrb.mxu3 %v5647_v61 }
0x1b78   :  { %4938 = vmatpush.msrb.mxu3 %v5648_v0 }
0x1bde   :  { %v4439_v40 = vpop.f32.mrf.mxu0 }
0x1bdf   :  { %v4440_v60 = vadd.f32 %v4439_v40, %v8183_v27  ;;  %v4459_v3 = vpop.f32.mrf.mxu1 }
0x1be0   :  { %v4460_v2 = vadd.f32 %v4459_v3, %v7119_v56 }
0x1be1   :  { %v4542_v33 = vadd.f32 %v4500_v15, %v4440_v60 }
0x1be3   :  { %v5186_v58 = vmul.f32 -1.442695, %v4542_v33 }
0x1be4   :  { %v4419_v59 = vpop.f32.mrf.mxu3 }
0x1be5   :  { %5475 = vpow2.f32 %v5186_v58  ;;  %v4420_v29 = vadd.f32 %v4419_v59, %v8181_v22  ;;  %v5649_v58 = vld [vmem:[#allocation18 + $0x18] sm:$0xff] }
0x1be7   :  { %v4522_v62 = vadd.f32 %v4480_v41, %v4420_v29  ;;  %v5650_v41 = vld [vmem:[#allocation18 + $0x10] sm:$0xff] }
0x1be9   :  { %v5185_v17 = vmul.f32 -1.442695, %v4522_v62  ;;  %v5651_v62 = vld [vmem:[#allocation18 + $0x8] sm:$0xff] }
0x1beb   :  { %v5476_v44 = vpop.eup %5475  ;;  %5477 = vpow2.f32 %v5185_v17  ;;  %v5652_v17 = vld [vmem:[#allocation18] sm:$0xff] }
0x1bec   :  { %v4546_v6 = vadd.f32 1.0, %v5476_v44  ;;  %v4519_v57 = vpop.f32.mrf.mxu3 }
0x1bed   :  { %v4520_v54 = vadd.f32 %v4519_v57, %v7117_v4 }
0x1bee   :  { %5479 = vrcp.f32 %v4546_v6  ;;  %v4558_v11 = vand.u32 2147483648, %v4546_v6  ;;  %vm4552_vm15 = vweird.f32 %v4546_v6  ;;  %v4556_v35 = vand.u32 2147483647, %v4546_v6 }
0x1bf0   :  { %v4559_v61 = vor.u32 1.1754944e-38, %v4558_v11 }
0x1bf1   :  { %v5478_v42 = vpop.eup %5477 }
0x1bf2   :  { %v4526_v23 = vadd.f32 1.0, %v5478_v42 }
0x1bf4   :  { %5481 = vrcp.f32 %v4526_v23  ;;  %v5480_v5 = vpop.eup %5479  ;;  %v4538_v13 = vand.u32 2147483648, %v4526_v23  ;;  %v4536_v53 = vand.u32 2147483647, %v4526_v23  ;;  %vm4532_vm12 = vweird.f32 %v4526_v23 }
0x1bf5   :  { %v4548_v39 = vmul.f32 %v5480_v5, %v4546_v6  ;;  %vm4553_vm1 = vweird.f32 %v5480_v5 }
0x1bf6   :  { %v4539_v25 = vor.u32 1.1754944e-38, %v4538_v13  ;;  %vm4537_vm13 = vcmp.eq.f32.partialorder %v4536_v53, 8.507059e+37  ;;  %vm4554_vm6 = vmor %vm4552_vm15, %vm4553_vm1 }
0x1bf7   :  { %v4549_v52 = vsub.f32 1.0, %v4548_v39 }
0x1bf9   :  { %v4550_v21 = vmul.f32 %v5480_v5, %v4549_v52 }
0x1bfa   :  { %v5482_v34 = vpop.eup %5481 }
0x1bfb   :  { %v4528_v14 = vmul.f32 %v5482_v34, %v4526_v23  ;;  %vm4533_vm7 = vweird.f32 %v5482_v34  ;;  %v4551_v16 = vadd.f32 %v5480_v5, %v4550_v21 }
0x1bfc   :  { %vm4534_vm10 = vmor %vm4532_vm12, %vm4533_vm7  ;;  %vm4557_vm7 = vcmp.eq.f32.partialorder %v4556_v35, 8.507059e+37 }
0x1bfd   :  { %v4529_v32 = vsub.f32 1.0, %v4528_v14  ;;  %v4555_v24 = vsel %vm4554_vm6, %v5480_v5, %v4551_v16 }
0x1bfe   :  { %v4560_v0 = vsel %vm4557_vm7, %v4559_v61, %v4555_v24  ;;  %vm4701_vm7 = vcmp.eq.s32.totalorder %v8138_v43, 6 }
0x1bff   :  { %v4530_v47 = vmul.f32 %v5482_v34, %v4529_v32  ;;  %v4565_v38 = vsub.f32 1.0, %v4560_v0  ;;  %v4567_v15 = vmul.f32 %v4560_v0, %v7728_v63 }
0x1c01   :  { %v4531_v49 = vadd.f32 %v5482_v34, %v4530_v47 }
0x1c03   :  { %v4535_v12 = vsel %vm4534_vm10, %v5482_v34, %v4531_v49 }
0x1c04   :  { %v4540_v36 = vsel %vm4537_vm13, %v4539_v25, %v4535_v12 }
0x1c05   :  { %v4562_v9 = vmul.f32 %v4540_v36, %v4520_v54 }
0x1c07   :  { %v4563_v55 = vadd.f32 %v4562_v9, %v4460_v2 }
0x1c09   :  { %5483 = vtanh.f32 %v4563_v55 }
0x1c0f   :  { %v5484_v48 = vpop.eup %5483 }
0x1c10   :  { %v4566_v40 = vmul.f32 %v5484_v48, %v4565_v38 }
0x1c12   :  { %v7810_v60 = vadd.f32 %v4567_v15, %v4566_v40 }
0x1c14   :  { %5187 = vmatmul.msk.f32.vlgmr.msrb.gmra.mxu0 %vm304_vm2, %v7810_v60  ;;  %v4569_v33 = vperm.slane %v7810_v60, 0 }
0x1c15   :  { %4960 = vmatpush.msrb.mxu0 %v5649_v58 }
0x1c16   :  { %v4570_v59 = vmul.f32 %v4569_v33, %v7047_v18 }
0x1c17   :  { %4961 = vmatpush.msrb.mxu0 %v5650_v41 }
0x1c18   :  { %v4571_v29 = vsel %vm304_vm2, %v4570_v59, 0.0  ;;  %v7819_v59 = vld [vmem:[#allocation16] sm:$0x1] }
0x1c19   :  { %4572 = vadd.xlane.f32.xlu0 %v4571_v29  ;;  %4962 = vmatpush.msrb.mxu0 %v5651_v62 }
0x1c1b   :  { %4963 = vmatpush.msrb.mxu0 %v5652_v17  ;;  %v7831_v17 = vld [vmem:[#allocation19] sm:$0x1] }
0x1c8c   :  { %v4573_v63 = vpop.xlane.xlu0 %4572 }
0x1c8d   :  { %v4574_v44 = vrot.slane %v4573_v63, 4 }
0x1c8f   :  { %v4575_v6 = vmax.f32 %v4573_v63, %v4574_v44 }
0x1c91   :  { %v4576_v42 = vrot.slane %v4575_v6, 2  ;;  %v4632_v33 = vpop.f32.mrf.mxu0 }
0x1c93   :  { %v4577_v23 = vmax.f32 %v4575_v6, %v4576_v42 }
0x1c95   :  { %v4578_v5 = vrot.slane %v4577_v23, 1 }
0x1c97   :  { %v4579_v39 = vmax.f32 %v4577_v23, %v4578_v5 }
0x1c99   :  { %v4580_v34 = vsub.f32 %v4573_v63, %v4579_v39 }
0x1c9b   :  { %v4581_v14 = vmul.f32 1.442695, %v4580_v34 }
0x1c9d   :  { %5485 = vpow2.f32 %v4581_v14 }
0x1ca3   :  { %v5486_v52 = vpop.eup %5485 }
0x1ca4   :  { %v4583_v32 = vrot.slane %v5486_v52, 4 }
0x1ca6   :  { %v4584_v13 = vadd.f32 %v5486_v52, %v4583_v32 }
0x1ca8   :  { %v4585_v47 = vrot.slane %v4584_v13, 2 }
0x1caa   :  { %v4586_v53 = vadd.f32 %v4585_v47, %v4584_v13 }
0x1cac   :  { %v4587_v21 = vrot.slane %v4586_v53, 1 }
0x1cae   :  { %v4588_v57 = vadd.f32 %v4587_v21, %v4586_v53 }
0x1cb0   :  { %5487 = vrcp.f32 %v4588_v57  ;;  %v4600_v54 = vand.u32 2147483648, %v4588_v57  ;;  %v4598_v36 = vand.u32 2147483647, %v4588_v57  ;;  %vm4594_vm10 = vweird.f32 %v4588_v57 }
0x1cb2   :  { %v4601_v11 = vor.u32 1.1754944e-38, %v4600_v54  ;;  %vm4599_vm1 = vcmp.eq.f32.partialorder %v4598_v36, 8.507059e+37 }
0x1cb6   :  { %v5488_v49 = vpop.eup %5487 }
0x1cb7   :  { %v4590_v3 = vmul.f32 %v5488_v49, %v4588_v57  ;;  %vm4595_vm12 = vweird.f32 %v5488_v49 }
0x1cb8   :  { %vm4596_vm13 = vmor %vm4594_vm10, %vm4595_vm12 }
0x1cb9   :  { %v4591_v25 = vsub.f32 1.0, %v4590_v3 }
0x1cbb   :  { %v4592_v12 = vmul.f32 %v5488_v49, %v4591_v25 }
0x1cbd   :  { %v4593_v16 = vadd.f32 %v5488_v49, %v4592_v12 }
0x1cbf   :  { %v4597_v2 = vsel %vm4596_vm13, %v5488_v49, %v4593_v16 }
0x1cc0   :  { %v4602_v9 = vsel %vm4599_vm1, %v4601_v11, %v4597_v2 }
0x1cc1   :  { %v4603_v35 = vmul.f32 %v5486_v52, %v4602_v9 }
0x1cc3   :  { %v4604_v55 = vmul.f32 %v4603_v35, %v7082_v20 }
0x1cc5   :  { %v4605_v24 = vsel %vm304_vm2, %v4604_v55, 0.0 }
0x1cc6   :  { %v4606_v61 = vrot.slane %v4605_v24, 4 }
0x1cc8   :  { %v4607_v0 = vadd.f32 %v4606_v61, %v4605_v24 }
0x1cca   :  { %v4608_v38 = vrot.slane %v4607_v0, 2 }
0x1ccc   :  { %v4609_v48 = vadd.f32 %v4608_v38, %v4607_v0 }
0x1cce   :  { %v4610_v40 = vrot.slane %v4609_v48, 1 }
0x1cd0   :  { %v4611_v15 = vadd.f32 %v4610_v40, %v4609_v48 }
0x1cd2   :  { %v4633_v58 = vadd.f32 %v4632_v33, %v4611_v15 }
0x1cd4   :  { %v4635_v41 = vadd.f32 %v7819_v59, %v4633_v58 }
0x1cd6   :  { %5489 = vtanh.f32 %v4635_v41 }
0x1cdc   :  { %v5490_v29 = vpop.eup %5489 }
0x1cdd   :  { %5188 = vmatmul.msk.f32.vlgmr.msrb.gmra.mxu1 %vm304_vm2, %v5490_v29 }
0x1cde   :  { %4802 = vmatpush.msrb.mxu1 %v7743_v10 }
0x1ce0   :  { %4803 = vmatpush.msrb.mxu1 %v7746_v7 }
0x1ce2   :  { %4804 = vmatpush.msrb.mxu1 %v7749_v28 }
0x1ce4   :  { %4805 = vmatpush.msrb.mxu1 %v7752_v26 }
0x1ce5   :  { %5193 = vmatmul.msk.f32.vlgmr.msra.gmra.mxu1 %vm304_vm2, %v7810_v60 }
0x1ced   :  { %5194 = vmatmul.msk.f32.vlgmr.msrb.gmra.mxu1 %vm304_vm2, %v7810_v60 }
0x1d5a   :  { %v4657_v62 = vpop.f32.mrf.mxu1 }
0x1d5b   :  { %v7834_v63 = vadd.f32 %v7831_v17, %v4657_v62 }
0x1d5d   :  { %v4660_v10 = vsel %vm2812_vm9, %v7834_v63, -inf }
0x1d5e   :  { %4661 = vmax.xlane.f32.xlu1 %v4660_v10 }
0x1d62   :  { %v4787_v21 = vpop.f32.mrf.mxu1 }
0x1d6a   :  { %v4807_v57 = vpop.f32.mrf.mxu1 }
0x1d6b   :  { %v4808_v25 = vadd.f32 %v4807_v57, %v8182_v1 }
0x1dd1   :  { %v7838_v7 = vpop.xlane.xlu1 %4661 }
0x1dd2   :  { %vm4663_vm15 = vcmp.ge.f32.partialorder %v7834_v63, %v7838_v7 }
0x1dd3   :  { %v4664_v28 = vsel %vm4663_vm15, %v8138_v43, 64 }
0x1dd4   :  { %v4665_v26 = vsel %vm2812_vm9, %v4664_v28, 2147483647 }
0x1dd5   :  { %v4667_v44 = vshra.s32 %v4665_v26, 16  ;;  %v4666_v42 = vand.u32 65535, %v4665_v26 }
0x1dd7   :  { %v4669_v6 = vcvt.s32.f32 %v4667_v44  ;;  %v4668_v5 = vcvt.s32.f32 %v4666_v42 }
0x1dd9   :  { %4670 = vmin.xlane.f32.xlu2 %v4669_v6 }
0x1e4c   :  { %v4671_v23 = vpop.xlane.xlu2 %4670 }
0x1e4d   :  { %vm4672_vm6 = vcmp.eq.f32.partialorder %v4669_v6, %v4671_v23  ;;  %v4677_v34 = vcvt.f32.s32 %v4671_v23 }
0x1e4e   :  { %v4673_v39 = vsel %vm4672_vm6, %v4668_v5, inf }
0x1e4f   :  { %4674 = vmin.xlane.f32.xlu0 %v4673_v39  ;;  %v4678_v52 = vshll.u32 %v4677_v34, 16 }
0x1ec2   :  { %v4675_v14 = vpop.xlane.xlu0 %4674 }
0x1ec3   :  { %v4676_v32 = vcvt.f32.s32 %v4675_v14 }
0x1ec5   :  { %v4679_v13 = vadd.s32 %v4678_v52, %v4676_v32  ;;  %v8187_v52 = vld [vmem:[#allocation37_spill] sm:$0xff]  ;;  %v8188_v32 = vld [vmem:[#allocation36_spill] sm:$0xff] }
0x1ec7   :  { %v7848_v47 = vsel %vm4701_vm7, %v4679_v13, %v7786_v8  ;;  %vm4704_vm12 = vcmp.eq.s32.totalorder %v4679_v13, %v8138_v43  ;;  %v4788_v8 = vadd.f32 %v4787_v21, %v8180_v50  ;;  %v2833_v13 = vsub.f32 %v8188_v32, %v8187_v52 }
0x1ec8   :  { %v5189_v53 = vsel %vm4704_vm12, 1.0, %v8139_v51 }
0x1ec9   :  { %5190 = vmatmul.msk.f32.vlgmr.msra.gmra.mxu2 %vm260_vm0, %v5189_v53  ;;  %5191 = vmatmul.msk.f32.vlgmr.msra.gmra.mxu3 %vm260_vm0, %v5189_v53  ;;  %v2834_v57 = vmul.f32 1.442695, %v2833_v13 }
0x1eca   :  { %5192 = vmatmul.msk.f32.vlgmr.msra.gmra.mxu0 %vm260_vm0, %v5189_v53 }
0x1ed1   :  { %5195 = vmatmul.msk.f32.vlgmr.msrb.gmra.mxu2 %vm304_vm2, %v7810_v60 }
0x1f47   :  { %v4767_v58 = vpop.f32.mrf.mxu0 }
0x1f48   :  { %v4768_v26 = vadd.f32 %v4767_v58, %v7119_v56 }
0x1f4c   :  { %v4727_v49 = vpop.f32.mrf.mxu2  ;;  %v4747_v3 = vpop.f32.mrf.mxu3 }
0x1f4d   :  { %v4728_v54 = vadd.f32 %v4727_v49, %v8181_v22  ;;  %v4748_v51 = vadd.f32 %v4747_v3, %v8183_v27 }
0x1f4f   :  { %v4830_v12 = vadd.f32 %v4788_v8, %v4728_v54  ;;  %v4850_v36 = vadd.f32 %v4808_v25, %v4748_v51  ;;  %v3756_v8 = vsub.f32 %v7544_v19, %v7548_v30 }
0x1f51   :  { %v5196_v16 = vmul.f32 -1.442695, %v4830_v12  ;;  %v5197_v11 = vmul.f32 -1.442695, %v4850_v36  ;;  %v3757_v54 = vmul.f32 1.442695, %v3756_v8  ;;  %v4064_v8 = vsub.f32 %v7658_v46, %v7662_v37 }
0x1f53   :  { %5491 = vpow2.f32 %v5196_v16 }
0x1f54   :  { %5493 = vpow2.f32 %v5197_v11  ;;  %v4827_v15 = vpop.f32.mrf.mxu2 }
0x1f55   :  { %v4828_v29 = vadd.f32 %v4827_v15, %v7117_v4 }
0x1f59   :  { %v5492_v2 = vpop.eup %5491 }
0x1f5a   :  { %v5494_v9 = vpop.eup %5493  ;;  %v4834_v35 = vadd.f32 1.0, %v5492_v2 }
0x1f5b   :  { %v4854_v55 = vadd.f32 1.0, %v5494_v9 }
0x1f5c   :  { %5495 = vrcp.f32 %v4834_v35  ;;  %v4846_v38 = vand.u32 2147483648, %v4834_v35  ;;  %v4844_v48 = vand.u32 2147483647, %v4834_v35  ;;  %vm4840_vm10 = vweird.f32 %v4834_v35 }
0x1f5d   :  { %5497 = vrcp.f32 %v4854_v55  ;;  %v4866_v44 = vand.u32 2147483648, %v4854_v55  ;;  %vm4860_vm6 = vweird.f32 %v4854_v55  ;;  %v4864_v42 = vand.u32 2147483647, %v4854_v55 }
0x1f5e   :  { %v4847_v41 = vor.u32 1.1754944e-38, %v4846_v38  ;;  %vm4845_vm1 = vcmp.eq.f32.partialorder %v4844_v48, 8.507059e+37 }
0x1f5f   :  { %v4867_v39 = vor.u32 1.1754944e-38, %v4866_v44 }
0x1f62   :  { %v5496_v24 = vpop.eup %5495 }
0x1f63   :  { %v5498_v50 = vpop.eup %5497  ;;  %v4836_v61 = vmul.f32 %v5496_v24, %v4834_v35  ;;  %vm4841_vm0 = vweird.f32 %v5496_v24 }
0x1f64   :  { %v4856_v1 = vmul.f32 %v5498_v50, %v4854_v55  ;;  %vm4842_vm13 = vmor %vm4840_vm10, %vm4841_vm0  ;;  %vm4861_vm15 = vweird.f32 %v5498_v50  ;;  %vm4865_vm0 = vcmp.eq.f32.partialorder %v4864_v42, 8.507059e+37 }
0x1f65   :  { %v4837_v0 = vsub.f32 1.0, %v4836_v61  ;;  %vm4862_vm12 = vmor %vm4860_vm6, %vm4861_vm15 }
0x1f66   :  { %v4857_v22 = vsub.f32 1.0, %v4856_v1 }
0x1f67   :  { %v4838_v27 = vmul.f32 %v5496_v24, %v4837_v0 }
0x1f68   :  { %v4858_v40 = vmul.f32 %v5498_v50, %v4857_v22 }
0x1f69   :  { %v4839_v33 = vadd.f32 %v5496_v24, %v4838_v27 }
0x1f6a   :  { %v4859_v28 = vadd.f32 %v5498_v50, %v4858_v40 }
0x1f6b   :  { %v4843_v62 = vsel %vm4842_vm13, %v5496_v24, %v4839_v33 }
0x1f6c   :  { %v4848_v10 = vsel %vm4845_vm1, %v4847_v41, %v4843_v62  ;;  %v4863_v5 = vsel %vm4862_vm12, %v5498_v50, %v4859_v28 }
0x1f6d   :  { %v4870_v6 = vmul.f32 %v4848_v10, %v4828_v29  ;;  %v4868_v34 = vsel %vm4865_vm0, %v4867_v39, %v4863_v5 }
0x1f6e   :  { %v4873_v14 = vsub.f32 1.0, %v4868_v34  ;;  %v4875_v21 = vmul.f32 %v4868_v34, %v7810_v60  ;;  %v4680_v60 = vsub.f32 %v7834_v63, %v7838_v7 }
0x1f6f   :  { %v4871_v23 = vadd.f32 %v4870_v6, %v4768_v26 }
0x1f70   :  { %v4681_v36 = vmul.f32 1.442695, %v4680_v60 }
0x1f71   :  { %5499 = vtanh.f32 %v4871_v23 }
0x1f72   :  { %5501 = vpow2.f32 %v2834_v57 }
0x1f73   :  { %5503 = vpow2.f32 %v3757_v54  ;;  %v4065_v54 = vmul.f32 1.442695, %v4064_v8 }
0x1f74   :  { %5505 = vpow2.f32 %v4681_v36  ;;  %v8191_v36 = vld [vmem:[#allocation35_spill] sm:$0xff] }
0x1f77   :  { %v5500_v4 = vpop.eup %5499 }
0x1f78   :  { %v4874_v53 = vmul.f32 %v5500_v4, %v4873_v14  ;;  %v5502_v51 = vpop.eup %5501 }
0x1f79   :  { %v2836_v12 = vsel %vm2812_vm9, %v5502_v51, 0.0  ;;  %v5504_v16 = vpop.eup %5503 }
0x1f7a   :  { %v4876_v56 = vadd.f32 %v4875_v21, %v4874_v53  ;;  %v5506_v11 = vpop.eup %5505  ;;  %v8189_v21 = vld [vmem:[#allocation33_spill] sm:$0xff] }
0x1f7b   :  { %v4683_v19 = vsel %vm2812_vm9, %v5506_v11, 0.0 }
0x1f7c   :  { %5198 = vmatmul.msk.f32.vlgmr.msrb.gmra.mxu3 %vm304_vm2, %v4876_v56  ;;  %v4877_v49 = vperm.slane %v4876_v56, 0  ;;  %v8190_v56 = vld [vmem:[#allocation32_spill] sm:$0xff] }
0x1f7d   :  { %v3141_v57 = vsub.f32 %v8190_v56, %v8189_v21 }
0x1f7e   :  { %v4878_v3 = vmul.f32 %v4877_v49, %v7047_v18  ;;  %v3759_v18 = vsel %vm2812_vm9, %v5504_v16, 0.0  ;;  %v8192_v16 = vld [vmem:[#allocation34_spill] sm:$0xff] }
0x1f80   :  { %v4879_v25 = vsel %vm304_vm2, %v4878_v3, 0.0 }
0x1f81   :  { %4880 = vadd.xlane.f32.xlu1 %v4879_v25 }
0x1f89   :  { %2837 = vadd.xlane.f32.xlu1 %v2836_v12 }
0x1f91   :  { %3760 = vadd.xlane.f32.xlu1 %v3759_v18 }
0x1f99   :  { %4684 = vadd.xlane.f32.xlu1 %v4683_v19 }
0x1ff4   :  { %v4881_v30 = vpop.xlane.xlu1 %4880 }
0x1ff5   :  { %v4882_v2 = vrot.slane %v4881_v30, 4 }
0x1ff7   :  { %v4883_v9 = vmax.f32 %v4881_v30, %v4882_v2 }
0x1ff9   :  { %v4884_v35 = vrot.slane %v4883_v9, 2 }
0x1ffb   :  { %v4885_v55 = vmax.f32 %v4883_v9, %v4884_v35  ;;  %v4372_v9 = vsub.f32 %v7772_v31, %v7776_v45 }
0x1ffd   :  { %v4886_v24 = vrot.slane %v4885_v55, 1 }
0x1fff   :  { %v4887_v63 = vmax.f32 %v4885_v55, %v4886_v24  ;;  %v4940_v52 = vpop.f32.mrf.mxu3  ;;  %v4373_v55 = vmul.f32 1.442695, %v4372_v9 }
0x2001   :  { %v4888_v7 = vsub.f32 %v4881_v30, %v4887_v63 }
0x2003   :  { %v4889_v50 = vmul.f32 1.442695, %v4888_v7 }
0x2005   :  { %5507 = vpow2.f32 %v4889_v50 }
0x200b   :  { %v5508_v61 = vpop.eup %5507 }
0x200c   :  { %v4891_v1 = vrot.slane %v5508_v61, 4 }
0x200e   :  { %v4892_v0 = vadd.f32 %v5508_v61, %v4891_v1 }
0x2010   :  { %v4893_v22 = vrot.slane %v4892_v0, 2 }
0x2012   :  { %v4894_v38 = vadd.f32 %v4893_v22, %v4892_v0  ;;  %v2838_v0 = vpop.xlane.xlu1 %2837 }
0x2013   :  { %vm2844_vm12 = vweird.f32 %v2838_v0 }
0x2014   :  { %v4895_v27 = vrot.slane %v4894_v38, 1 }
0x2016   :  { %v4896_v48 = vadd.f32 %v4895_v27, %v4894_v38 }
0x2018   :  { %5509 = vrcp.f32 %v4896_v48  ;;  %v4908_v58 = vand.u32 2147483648, %v4896_v48  ;;  %v4906_v29 = vand.u32 2147483647, %v4896_v48  ;;  %vm4902_vm13 = vweird.f32 %v4896_v48 }
0x201a   :  { %v4909_v10 = vor.u32 1.1754944e-38, %v4908_v58  ;;  %vm4907_vm15 = vcmp.eq.f32.partialorder %v4906_v29, 8.507059e+37  ;;  %v3761_v31 = vpop.xlane.xlu1 %3760 }
0x201e   :  { %v5510_v40 = vpop.eup %5509 }
0x201f   :  { %v4898_v15 = vmul.f32 %v5510_v40, %v4896_v48  ;;  %vm4903_vm10 = vweird.f32 %v5510_v40 }
0x2020   :  { %vm4904_vm1 = vmor %vm4902_vm13, %vm4903_vm10 }
0x2021   :  { %v4899_v33 = vsub.f32 1.0, %v4898_v15 }
0x2022   :  { %v7909_v29 = vpop.xlane.xlu1 %4684 }
0x2023   :  { %v4900_v41 = vmul.f32 %v5510_v40, %v4899_v33 }
0x2025   :  { %v4901_v62 = vadd.f32 %v5510_v40, %v4900_v41 }
0x2027   :  { %v4905_v28 = vsel %vm4904_vm1, %v5510_v40, %v4901_v62  ;;  %vm3767_vm1 = vweird.f32 %v3761_v31 }
0x2028   :  { %v4910_v26 = vsel %vm4907_vm15, %v4909_v10, %v4905_v28 }
0x2029   :  { %v4911_v44 = vmul.f32 %v5508_v61, %v4910_v26 }
0x202b   :  { %v4912_v6 = vmul.f32 %v4911_v44, %v7082_v20  ;;  %v3142_v20 = vmul.f32 1.442695, %v3141_v57 }
0x202d   :  { %v4913_v42 = vsel %vm304_vm2, %v4912_v6, 0.0 }
0x202e   :  { %v4914_v23 = vrot.slane %v4913_v42, 4 }
0x2030   :  { %v4915_v5 = vadd.f32 %v4914_v23, %v4913_v42 }
0x2032   :  { %v4916_v39 = vrot.slane %v4915_v5, 2 }
0x2034   :  { %v4917_v34 = vadd.f32 %v4916_v39, %v4915_v5  ;;  %v2848_v39 = vand.u32 2147483647, %v2838_v0 }
0x2036   :  { %v4918_v14 = vrot.slane %v4917_v34, 1  ;;  %vm2849_vm10 = vcmp.eq.f32.partialorder %v2848_v39, 8.507059e+37 }
0x2038   :  { %v4919_v4 = vadd.f32 %v4918_v14, %v4917_v34  ;;  %v2850_v14 = vand.u32 2147483648, %v2838_v0 }
0x203a   :  { %v4941_v32 = vadd.f32 %v4940_v52, %v4919_v4 }
0x203c   :  { %v4943_v13 = vadd.f32 %v7819_v59, %v4941_v32 }
0x203e   :  { %5511 = vtanh.f32 %v4943_v13 }
0x203f   :  { %5513 = vpow2.f32 %v3142_v20  ;;  %v2851_v20 = vor.u32 1.1754944e-38, %v2850_v14 }
0x2040   :  { %5515 = vpow2.f32 %v4065_v54 }
0x2044   :  { %v5512_v53 = vpop.eup %5511 }
0x2045   :  { %5199 = vmatmul.msk.f32.vlgmr.msrb.gmra.mxu0 %vm304_vm2, %v5512_v53  ;;  %v5514_v59 = vpop.eup %5513  ;;  %v3771_v53 = vand.u32 2147483647, %v3761_v31 }
0x2046   :  { %v3144_v51 = vsel %vm2812_vm9, %v5514_v59, 0.0  ;;  %v5516_v60 = vpop.eup %5515 }
0x2047   :  { %v4067_v12 = vsel %vm2812_vm9, %v5516_v60, 0.0 }
0x20c2   :  { %v4965_v49 = vpop.f32.mrf.mxu0 }
0x20c3   :  { %v4966_v3 = vadd.f32 %v7831_v17, %v4965_v49  ;;  %v3448_v17 = vsub.f32 %v8192_v16, %v8191_v36  ;;  %v3773_v49 = vand.u32 2147483648, %v3761_v31 }
0x20c5   :  { %v4968_v25 = vsel %vm2812_vm9, %v4966_v3, -inf  ;;  %v3449_v46 = vmul.f32 1.442695, %v3448_v17 }
0x20c6   :  { %4969 = vmax.xlane.f32.xlu2 %v4968_v25 }
0x20ce   :  { %3145 = vadd.xlane.f32.xlu2 %v3144_v51 }
0x20d6   :  { %4068 = vadd.xlane.f32.xlu2 %v4067_v12 }
0x2139   :  { %v4970_v18 = vpop.xlane.xlu2 %4969 }
0x213a   :  { %vm4971_vm2 = vcmp.ge.f32.partialorder %v4966_v3, %v4970_v18  ;;  %v4988_v11 = vsub.f32 %v4966_v3, %v4970_v18 }
0x213b   :  { %v4972_v37 = vsel %vm4971_vm2, %v8138_v43, 64  ;;  %vm7944_vm2 = vcmp.eq.f32.partialorder %v3771_v53, 8.507059e+37 }
0x213c   :  { %v4989_v19 = vmul.f32 1.442695, %v4988_v11  ;;  %v4973_v30 = vsel %vm2812_vm9, %v4972_v37, 2147483647  ;;  %v3774_v11 = vor.u32 1.1754944e-38, %v3773_v49 }
0x213d   :  { %v4975_v2 = vshra.s32 %v4973_v30, 16  ;;  %v4974_v38 = vand.u32 65535, %v4973_v30 }
0x213e   :  { %5517 = vpow2.f32 %v4989_v19 }
0x213f   :  { %5519 = vpow2.f32 %v3449_v46  ;;  %v4977_v35 = vcvt.s32.f32 %v4975_v2  ;;  %v4976_v58 = vcvt.s32.f32 %v4974_v38 }
0x2140   :  { %5521 = vpow2.f32 %v4373_v55 }
0x2141   :  { %4978 = vmin.xlane.f32.xlu0 %v4977_v35  ;;  %v7897_v22 = vpop.xlane.xlu2 %3145  ;;  %5523 = vrcp.f32 %v2838_v0 }
0x2142   :  { %5525 = vrcp.f32 %v3761_v31  ;;  %v3158_v17 = vand.u32 2147483648, %v7897_v22  ;;  %v3156_v19 = vand.u32 2147483647, %v7897_v22 }
0x2143   :  { %5527 = vrcp.f32 %v7897_v22 }
0x2144   :  { %v5518_v24 = vpop.eup %5517 }
0x2145   :  { %v5520_v63 = vpop.eup %5519  ;;  %v4991_v7 = vsel %vm2812_vm9, %v5518_v24, 0.0 }
0x2146   :  { %4992 = vadd.xlane.f32.xlu2 %v4991_v7  ;;  %v3451_v50 = vsel %vm2812_vm9, %v5520_v63, 0.0  ;;  %v5522_v61 = vpop.eup %5521 }
0x2147   :  { %v4375_v1 = vsel %vm2812_vm9, %v5522_v61, 0.0  ;;  %v5524_v45 = vpop.eup %5523  ;;  %v4697_v61 = vand.u32 2147483648, %v7909_v29 }
0x2148   :  { %v2840_v27 = vmul.f32 %v5524_v45, %v2838_v0  ;;  %v7902_v40 = vpop.eup %5525  ;;  %vm2845_vm6 = vweird.f32 %v5524_v45 }
0x2149   :  { %3452 = vadd.xlane.f32.xlu0 %v3451_v50  ;;  %v7900_v48 = vpop.xlane.xlu2 %4068  ;;  %v7904_v15 = vpop.eup %5527  ;;  %v3763_v10 = vmul.f32 %v7902_v40, %v3761_v31  ;;  %vm7928_vm0 = vmor %vm2844_vm12, %vm2845_vm6  ;;  %vm3768_vm13 = vweird.f32 %v7902_v40  ;;  %vm3152_vm6 = vweird.f32 %v7897_v22  ;;  %v4695_v50 = vand.u32 2147483647, %v7909_v29 }
0x214a   :  { %v2841_v41 = vsub.f32 1.0, %v2840_v27  ;;  %v3148_v28 = vmul.f32 %v7904_v15, %v7897_v22  ;;  %5529 = vrcp.f32 %v7900_v48  ;;  %vm3153_vm15 = vweird.f32 %v7904_v15 }
0x214b   :  { %5531 = vrcp.f32 %v7909_v29  ;;  %v3764_v6 = vsub.f32 1.0, %v3763_v10  ;;  %vm7960_vm12 = vmor %vm3152_vm6, %vm3153_vm15  ;;  %vm7986_vm6 = vcmp.eq.f32.partialorder %v4695_v50, 8.507059e+37 }
0x214c   :  { %v2842_v26 = vmul.f32 %v5524_v45, %v2841_v41  ;;  %v3149_v42 = vsub.f32 1.0, %v3148_v28  ;;  %v4081_v28 = vand.u32 2147483648, %v7900_v48 }
0x214d   :  { %v3765_v52 = vmul.f32 %v7902_v40, %v3764_v6 }
0x214e   :  { %v2843_v5 = vadd.f32 %v5524_v45, %v2842_v26  ;;  %v3150_v32 = vmul.f32 %v7904_v15, %v3149_v42 }
0x214f   :  { %v3766_v25 = vadd.f32 %v7902_v40, %v3765_v52 }
0x2150   :  { %v7922_v34 = vpop.eup %5529  ;;  %v2847_v56 = vsel %vm7928_vm0, %v5524_v45, %v2843_v5  ;;  %v3151_v54 = vadd.f32 %v7904_v15, %v3150_v32  ;;  %vm4691_vm0 = vweird.f32 %v7909_v29  ;;  %v4079_v5 = vand.u32 2147483647, %v7900_v48 }
0x2151   :  { %4376 = vadd.xlane.f32.xlu0 %v4375_v1  ;;  %v7924_v4 = vpop.eup %5531  ;;  %v4071_v57 = vmul.f32 %v7922_v34, %v7900_v48  ;;  %v2852_v59 = vsel %vm2849_vm10, %v2851_v20, %v2847_v56  ;;  %v3159_v1 = vor.u32 1.1754944e-38, %v3158_v17 }
0x2152   :  { %v4687_v3 = vmul.f32 %v7924_v4, %v7909_v29  ;;  %v2856_v2 = vsel %vm2854_vm8, %v2852_v59, 0.0  ;;  %vm3157_vm8 = vcmp.eq.f32.partialorder %v3156_v19, 8.507059e+37 }
0x2153   :  { %v4072_v18 = vsub.f32 1.0, %v4071_v57  ;;  %v4082_v57 = vor.u32 1.1754944e-38, %v4081_v28 }
0x2154   :  { %v4688_v46 = vsub.f32 1.0, %v4687_v3 }
0x2155   :  { %v4073_v0 = vmul.f32 %v7922_v34, %v4072_v18 }
0x2156   :  { %v4689_v22 = vmul.f32 %v7924_v4, %v4688_v46 }
0x2157   :  { %v4074_v10 = vadd.f32 %v7922_v34, %v4073_v0 }
0x2158   :  { %v4690_v6 = vadd.f32 %v7924_v4, %v4689_v22 }
0x21b4   :  { %v7906_v33 = vpop.xlane.xlu0 %4978 }
0x21b5   :  { %vm4980_vm9 = vcmp.eq.f32.partialorder %v4977_v35, %v7906_v33  ;;  %v3155_v35 = vsel %vm7960_vm12, %v7904_v15, %v3151_v54  ;;  %vm4076_vm12 = vweird.f32 %v7922_v34 }
0x21b6   :  { %v4981_v62 = vsel %vm4980_vm9, %v4976_v58, inf  ;;  %vm7953_vm9 = vmor %vm3767_vm1, %vm3768_vm13  ;;  %vm4692_vm1 = vweird.f32 %v7924_v4  ;;  %v3160_v27 = vsel %vm3157_vm8, %v3159_v1, %v3155_v35 }
0x21b7   :  { %4982 = vmin.xlane.f32.xlu0 %v4981_v62  ;;  %v3770_v9 = vsel %vm7953_vm9, %v7902_v40, %v3766_v25  ;;  %v3163_v42 = vsel %vm2529_vm4, %v3160_v27, %v2856_v2  ;;  %v4698_v25 = vor.u32 1.1754944e-38, %v4697_v61 }
0x21b8   :  { %v3775_v38 = vsel %vm7944_vm2, %v3774_v11, %v3770_v9  ;;  %vm4075_vm2 = vweird.f32 %v7900_v48  ;;  %v4985_v11 = vcvt.f32.s32 %v7906_v33 }
0x21b9   :  { %v7916_v44 = vpop.xlane.xlu2 %4992  ;;  %vm8002_vm8 = vmor %vm4075_vm2, %vm4076_vm12 }
0x21ba   :  { %5533 = vrcp.f32 %v7916_v44  ;;  %v4078_v56 = vsel %vm8002_vm8, %v7922_v34, %v4074_v10  ;;  %v5005_v20 = vand.u32 2147483648, %v7916_v44  ;;  %v5003_v3 = vand.u32 2147483647, %v7916_v44 }
0x21bb   :  { %v4986_v37 = vshll.u32 %v4985_v11, 16 }
0x21bc   :  { %v7919_v23 = vpop.xlane.xlu0 %3452  ;;  %vm5004_vm2 = vcmp.eq.f32.partialorder %v5003_v3, 8.507059e+37 }
0x21bd   :  { %5535 = vrcp.f32 %v7919_v23  ;;  %v3465_v55 = vand.u32 2147483648, %v7919_v23  ;;  %v3463_v7 = vand.u32 2147483647, %v7919_v23  ;;  %vm3459_vm13 = vweird.f32 %v7919_v23 }
0x21bf   :  { %v3466_v40 = vor.u32 1.1754944e-38, %v3465_v55  ;;  %vm3464_vm9 = vcmp.eq.f32.partialorder %v3463_v7, 8.507059e+37 }
0x21c0   :  { %v7932_v21 = vpop.eup %5533 }
0x21c1   :  { %v4995_v60 = vmul.f32 %v7932_v21, %v7916_v44 }
0x21c3   :  { %v5536_v8 = vpop.eup %5535  ;;  %v4996_v24 = vsub.f32 1.0, %v4995_v60  ;;  %v5006_v60 = vor.u32 1.1754944e-38, %v5005_v20 }
0x21c4   :  { %v3455_v12 = vmul.f32 %v5536_v8, %v7919_v23  ;;  %v7951_v36 = vpop.xlane.xlu0 %4376  ;;  %vm3460_vm10 = vweird.f32 %v5536_v8 }
0x21c5   :  { %5537 = vrcp.f32 %v7951_v36  ;;  %vm3461_vm15 = vmor %vm3459_vm13, %vm3460_vm10  ;;  %v4997_v15 = vmul.f32 %v7932_v21, %v4996_v24  ;;  %vm5000_vm10 = vweird.f32 %v7932_v21  ;;  %v4389_v14 = vand.u32 2147483648, %v7951_v36 }
0x21c6   :  { %v3456_v30 = vsub.f32 1.0, %v3455_v12  ;;  %v4387_v53 = vand.u32 2147483647, %v7951_v36  ;;  %vm8012_vm13 = vmor %vm4691_vm0, %vm4692_vm1  ;;  %vm4383_vm0 = vweird.f32 %v7951_v36  ;;  %vm4080_vm1 = vcmp.eq.f32.partialorder %v4079_v5, 8.507059e+37 }
0x21c7   :  { %v4998_v32 = vadd.f32 %v7932_v21, %v4997_v15  ;;  %v4694_v34 = vsel %vm8012_vm13, %v7924_v4, %v4690_v6  ;;  %v4390_v54 = vor.u32 1.1754944e-38, %v4389_v14  ;;  %v4083_v59 = vsel %vm4080_vm1, %v4082_v57, %v4078_v56 }
0x21c8   :  { %v3457_v63 = vmul.f32 %v5536_v8, %v3456_v30  ;;  %vm4388_vm12 = vcmp.eq.f32.partialorder %v4387_v53, 8.507059e+37  ;;  %v4699_v4 = vsel %vm7986_vm6, %v4698_v25, %v4694_v34 }
0x21ca   :  { %v3458_v31 = vadd.f32 %v5536_v8, %v3457_v63 }
0x21cb   :  { %v5538_v45 = vpop.eup %5537 }
0x21cc   :  { %v3462_v58 = vsel %vm3461_vm15, %v5536_v8, %v3458_v31  ;;  %v4379_v41 = vmul.f32 %v5538_v45, %v7951_v36  ;;  %vm4384_vm4 = vweird.f32 %v5538_v45 }
0x21cd   :  { %v3467_v26 = vsel %vm3464_vm9, %v3466_v40, %v3462_v58  ;;  %vm4385_vm9 = vmor %vm4383_vm0, %vm4384_vm4 }
0x21ce   :  { %v4380_v23 = vsub.f32 1.0, %v4379_v41  ;;  %v3471_v39 = vsel %vm3469_vm14, %v3467_v26, %v3163_v42  ;;  %vm4999_vm14 = vweird.f32 %v7916_v44 }
0x21cf   :  { %vm8021_vm15 = vmor %vm4999_vm14, %vm5000_vm10  ;;  %v3779_v29 = vsel %vm3777_vm5, %v3775_v38, %v3471_v39  ;;  %vm5009_vm5 = vcmp.eq.s32.totalorder %v8138_v43, 7 }
0x21d0   :  { %v4381_v13 = vmul.f32 %v5538_v45, %v4380_v23  ;;  %v5002_v44 = vsel %vm8021_vm15, %v7932_v21, %v4998_v32  ;;  %v4087_v12 = vsel %vm4085_vm3, %v4083_v59, %v3779_v29 }
0x21d1   :  { %v5007_v17 = vsel %vm5004_vm2, %v5006_v60, %v5002_v44 }
0x21d2   :  { %v4382_v8 = vadd.f32 %v5538_v45, %v4381_v13 }
0x21d4   :  { %v4386_v51 = vsel %vm4385_vm9, %v5538_v45, %v4382_v8 }
0x21d5   :  { %v4391_v36 = vsel %vm4388_vm12, %v4390_v54, %v4386_v51 }
0x21d6   :  { %v4395_v16 = vsel %vm4393_vm11, %v4391_v36, %v4087_v12 }
0x21d7   :  { %v4703_v21 = vsel %vm4701_vm7, %v4699_v4, %v4395_v16 }
0x21d8   :  { %v5011_v18 = vsel %vm5009_vm5, %v5007_v17, %v4703_v21 }
0x21d9   :  { %5013 = vst [vmem:[%s8073_s20] sm:$0x1] %v5011_v18 }
0x222a   :  { %v4983_v46 = vpop.xlane.xlu0 %4982 }
0x222b   :  { %v4984_v19 = vcvt.f32.s32 %v4983_v46 }
0x222d   :  { %v4987_v30 = vadd.s32 %v4986_v37, %v4984_v19 }
0x222f   :  { %v5010_v2 = vsel %vm5009_vm5, %v4987_v30, %v7848_v47 }
0x2230   :  { %5012 = vst [vmem:[%s8072_s19] sm:$0x1] %v5010_v2 }
0x2231   :  { %5022 = vsyncpa [#allocation3], 1 }
0x2232   :  { %5023 = vsyncpa [#allocation5], 1 }
0x2233   :  { %5024 = vsyncpa [#allocation8], 1 }
0x2234   :  { %5025 = vsyncpa [#allocation11], 1 }
0x2235   :  { %5026 = vsyncpa [#allocation14], 1 }
0x2236   :  { %5027 = vsyncpa [#allocation17], 1 }
0x2237   :  { %5028 = vsyncpa [#allocation20], 1 }

</bundles_post_ra>
